<compile_context>
chip_gen: v7x
topology: tpu7x:2x2x1
jax: 0.10.0
libtpu: 0.0.40
codegen_flags: <defaults>
</compile_context>

<pallas_src>
import functools

import jax
import jax.numpy as jnp
from jax.experimental import pallas as pl
from jax.experimental.pallas import tpu as pltpu

LN_EPS = 1e-5


def _finetuning_kernel(x_ref, w1_ref, b1_ref, w2_ref, b2_ref,
                       g1_ref, be1_ref, g2_ref, be2_ref, o_ref, *, hc):
    # x_ref: (tm, D) row tile. w1/w2/b*/g*/be* are full, VMEM-resident.
    D = x_ref.shape[-1]
    H = w1_ref.shape[1]
    n_chunks = H // hc                      # static
    w_dtype = w1_ref.dtype                  # bf16 weights -> bf16 MXU operands

    # Load LN params / biases once (f32 for the elementwise path).
    g1 = g1_ref[...].astype(jnp.float32)
    be1 = be1_ref[...].astype(jnp.float32)
    g2 = g2_ref[...].astype(jnp.float32)
    be2 = be2_ref[...].astype(jnp.float32)
    b2 = b2_ref[...].astype(jnp.float32)    # (1, D), folded once per MLP pass

    x = x_ref[...].astype(jnp.float32)      # (tm, D)

    def layer_norm(v, gamma, beta):
        mu = jnp.mean(v, axis=-1, keepdims=True)
        d = v - mu
        var = jnp.mean(d * d, axis=-1, keepdims=True)
        return d * jax.lax.rsqrt(var + LN_EPS) * gamma + beta

    def mlp_add(base, v):
        """base + Linear2(relu(Linear1(v))); f32 in/out, chunked over H.

        Equivalent to a fully-unrolled fori_loop (n_chunks is small & static);
        static pl.ds starts keep all lane-dim slices aligned/static.
        """
        vm = v.astype(w_dtype)                          # matmul operand dtype
        acc = base + b2                                 # fold bias2 once
        for c in range(n_chunks):
            sl = pl.ds(c * hc, hc)                      # static start
            h = jnp.dot(vm, w1_ref[:, sl],
                        preferred_element_type=jnp.float32)
            h = h + b1_ref[:, sl].astype(jnp.float32)
            h = jnp.maximum(h, 0.0)                     # relu (dropout = id)
            acc = acc + jnp.dot(h.astype(w_dtype), w2_ref[sl, :],
                                preferred_element_type=jnp.float32)
        return acc

    # prenorm path, res1 and res2 enabled, dropout1/dropout2 = identity.
    y = mlp_add(x, layer_norm(x, g1, be1))
    y = mlp_add(y, layer_norm(y, g2, be2))

    o_ref[...] = y.astype(o_ref.dtype)


@functools.partial(jax.jit, static_argnames=("tm", "hid_chunk"))
def finetuning_layer(feats, params, *, tm=256, hid_chunk=512):
    """feats: (..., embed_dim).  params: dict of weights (f32 or bf16)."""
    orig_shape = feats.shape
    D = orig_shape[-1]
    x2d = feats.reshape(-1, D)
    N = x2d.shape[0]

    # Pad rows to a multiple of the row tile (padded rows are sliced off).
    n_tiles = pl.cdiv(N, tm)
    N_pad = n_tiles * tm
    if N_pad != N:
        x2d = jnp.pad(x2d, ((0, N_pad - N), (0, 0)))

    w1, b1 = params["w1"], params["b1"]       # (D, H), (1, H)
    w2, b2 = params["w2"], params["b2"]       # (H, D), (1, D)
    g1, be1 = params["g1"], params["be1"]     # (1, D)
    g2, be2 = params["g2"], params["be2"]     # (1, D)
    H = w1.shape[1]

    # Static hidden-dim chunk; must divide H and stay lane-aligned.
    if hid_chunk and 0 < hid_chunk <= H and H % hid_chunk == 0 \
            and hid_chunk % 128 == 0:
        hc = hid_chunk
    else:
        hc = H

    # Grid-invariant operands: whole-array, single-buffered VMEM residency.
    resident = pl.BlockSpec(memory_space=pltpu.MemorySpace.VMEM)

    out = pl.pallas_call(
        functools.partial(_finetuning_kernel, hc=hc),
        out_shape=jax.ShapeDtypeStruct((N_pad, D), feats.dtype),
        grid_spec=pltpu.PrefetchScalarGridSpec(
            num_scalar_prefetch=0,
            grid=(n_tiles,),
            in_specs=[
                pl.BlockSpec((tm, D), lambda i: (i, 0)),  # x row tile (pipelined)
                resident,   # w1
                resident,   # b1
                resident,   # w2
                resident,   # b2
                resident,   # gamma1
                resident,   # beta1
                resident,   # gamma2
                resident,   # beta2
            ],
            out_specs=pl.BlockSpec((tm, D), lambda i: (i, 0)),
        ),
        compiler_params=pltpu.CompilerParams(
            dimension_semantics=("parallel",),
            vmem_limit_bytes=48 * 1024 * 1024,
        ),
    )(x2d, w1, b1, w2, b2, g1, be1, g2, be2)

    if N_pad != N:
        out = out[:N]
    return out.reshape(orig_shape)


def _reference(feats, params):
    """Pure-JAX reference (same semantics as the PyTorch prenorm path)."""
    def ln(v, g, b):
        mu = jnp.mean(v, axis=-1, keepdims=True)
        var = jnp.mean((v - mu) ** 2, axis=-1, keepdims=True)
        return (v - mu) / jnp.sqrt(var + LN_EPS) * g + b

    def mlp(v):
        h = jnp.maximum(v @ params["w1"] + params["b1"], 0.0)
        return h @ params["w2"] + params["b2"]

    y = feats + mlp(ln(feats, params["g1"], params["be1"]))
    y = y + mlp(ln(y, params["g2"], params["be2"]))
    return y


def init_params(key, embed_dim, d_hid, dtype=jnp.float32):
    k1, k2, k3, k4 = jax.random.split(key, 4)
    # nn.Linear-style uniform(-1/sqrt(fan_in), 1/sqrt(fan_in)) init.
    lim1 = 1.0 / jnp.sqrt(embed_dim)
    lim2 = 1.0 / jnp.sqrt(d_hid)
    return {
        "w1": jax.random.uniform(k1, (embed_dim, d_hid), dtype, -lim1, lim1),
        "b1": jax.random.uniform(k2, (1, d_hid), dtype, -lim1, lim1),
        "w2": jax.random.uniform(k3, (d_hid, embed_dim), dtype, -lim2, lim2),
        "b2": jax.random.uniform(k4, (1, embed_dim), dtype, -lim2, lim2),
        "g1": jnp.ones((1, embed_dim), dtype),
        "be1": jnp.zeros((1, embed_dim), dtype),
        "g2": jnp.ones((1, embed_dim), dtype),
        "be2": jnp.zeros((1, embed_dim), dtype),
    }


if __name__ == "__main__":
    # Small shapes; N = 2*250 = 500 rows exercises row padding (-> 512) and a
    # grid of 2 row tiles at tm=256.
    batch, seq, embed_dim = 2, 250, 256
    d_hid = 4 * embed_dim   # default d_hid = 4 * embed_dim

    key = jax.random.PRNGKey(0)
    kx, kp = jax.random.split(key)
    feats = jax.random.normal(kx, (batch, seq, embed_dim), jnp.float32)
    params = init_params(kp, embed_dim, d_hid)

    # f32 path vs pure-JAX reference.
    out = jax.block_until_ready(finetuning_layer(feats, params))
    ref = _reference(feats, params)
    assert out.shape == feats.shape
    assert jnp.allclose(out, ref, atol=1e-3, rtol=1e-3), "mismatch vs reference"

    # bf16 path (bf16 MXU operands, f32 accumulation) — smoke test.
    feats_bf = feats.astype(jnp.bfloat16)
    params_bf = {k: v.astype(jnp.bfloat16) for k, v in params.items()}
    out_bf = jax.block_until_ready(finetuning_layer(feats_bf, params_bf))
    assert out_bf.shape == feats.shape
    assert bool(jnp.all(jnp.isfinite(out_bf.astype(jnp.float32))))

    print("KERNEL_OK")
</pallas_src>

<mosaic_0001>
module attributes {stable_mosaic.version = 11 : i64} {
  func.func @_finetuning_kernel(%arg0: i32, %arg1: memref<256x256xf32, #tpu.memory_space<vmem>>, %arg2: memref<256x1024xf32, #tpu.memory_space<vmem>>, %arg3: memref<1x1024xf32, #tpu.memory_space<vmem>>, %arg4: memref<1024x256xf32, #tpu.memory_space<vmem>>, %arg5: memref<1x256xf32, #tpu.memory_space<vmem>>, %arg6: memref<1x256xf32, #tpu.memory_space<vmem>>, %arg7: memref<1x256xf32, #tpu.memory_space<vmem>>, %arg8: memref<1x256xf32, #tpu.memory_space<vmem>>, %arg9: memref<1x256xf32, #tpu.memory_space<vmem>>, %arg10: memref<256x256xf32, #tpu.memory_space<vmem>>) attributes {dimension_semantics = [#tpu.dimension_semantics<parallel>], iteration_bounds = array<i64: 2>, scalar_prefetch = 0 : i64, scratch_operands = 0 : i64, tpu.core_type = #tpu.core_type<tc>, window_params = [{transform_indices = @transform_0, window_bounds = array<i64: 256, 256>}, {pipeline_mode = #tpu.pipeline_mode<synchronous>, transform_indices = @transform_1, window_bounds = array<i64: 256, 1024>}, {pipeline_mode = #tpu.pipeline_mode<synchronous>, transform_indices = @transform_2, window_bounds = array<i64: 1, 1024>}, {pipeline_mode = #tpu.pipeline_mode<synchronous>, transform_indices = @transform_3, window_bounds = array<i64: 1024, 256>}, {pipeline_mode = #tpu.pipeline_mode<synchronous>, transform_indices = @transform_4, window_bounds = array<i64: 1, 256>}, {pipeline_mode = #tpu.pipeline_mode<synchronous>, transform_indices = @transform_5, window_bounds = array<i64: 1, 256>}, {pipeline_mode = #tpu.pipeline_mode<synchronous>, transform_indices = @transform_6, window_bounds = array<i64: 1, 256>}, {pipeline_mode = #tpu.pipeline_mode<synchronous>, transform_indices = @transform_7, window_bounds = array<i64: 1, 256>}, {pipeline_mode = #tpu.pipeline_mode<synchronous>, transform_indices = @transform_8, window_bounds = array<i64: 1, 256>}, {transform_indices = @transform_9, window_bounds = array<i64: 256, 256>}]} {
    %c0 = arith.constant 0 : index
    %c0_0 = arith.constant 0 : index
    %0 = vector.load %arg6[%c0, %c0_0] : memref<1x256xf32, #tpu.memory_space<vmem>>, vector<1x256xf32>
    %c0_1 = arith.constant 0 : index
    %c0_2 = arith.constant 0 : index
    %1 = vector.load %arg7[%c0_1, %c0_2] : memref<1x256xf32, #tpu.memory_space<vmem>>, vector<1x256xf32>
    %c0_3 = arith.constant 0 : index
    %c0_4 = arith.constant 0 : index
    %2 = vector.load %arg8[%c0_3, %c0_4] : memref<1x256xf32, #tpu.memory_space<vmem>>, vector<1x256xf32>
    %c0_5 = arith.constant 0 : index
    %c0_6 = arith.constant 0 : index
    %3 = vector.load %arg9[%c0_5, %c0_6] : memref<1x256xf32, #tpu.memory_space<vmem>>, vector<1x256xf32>
    %c0_7 = arith.constant 0 : index
    %c0_8 = arith.constant 0 : index
    %4 = vector.load %arg5[%c0_7, %c0_8] : memref<1x256xf32, #tpu.memory_space<vmem>>, vector<1x256xf32>
    %c0_9 = arith.constant 0 : index
    %c0_10 = arith.constant 0 : index
    %5 = vector.load %arg1[%c0_9, %c0_10] : memref<256x256xf32, #tpu.memory_space<vmem>>, vector<256x256xf32>
    %cst = arith.constant dense<0.000000e+00> : vector<256xf32>
    %6 = vector.multi_reduction <add>, %5, %cst [1] : vector<256x256xf32> to vector<256xf32>
    %7 = vector.shape_cast %6 : vector<256xf32> to vector<256x1xf32>
    %cst_11 = arith.constant 2.560000e+02 : f32
    %8 = vector.broadcast %cst_11 : f32 to vector<256x1xf32>
    %9 = arith.divf %7, %8 : vector<256x1xf32>
    %10 = vector.broadcast %9 : vector<256x1xf32> to vector<256x256xf32>
    %11 = arith.subf %5, %10 : vector<256x256xf32>
    %12 = arith.mulf %11, %11 : vector<256x256xf32>
    %cst_12 = arith.constant dense<0.000000e+00> : vector<256xf32>
    %13 = vector.multi_reduction <add>, %12, %cst_12 [1] : vector<256x256xf32> to vector<256xf32>
    %14 = vector.shape_cast %13 : vector<256xf32> to vector<256x1xf32>
    %cst_13 = arith.constant 2.560000e+02 : f32
    %15 = vector.broadcast %cst_13 : f32 to vector<256x1xf32>
    %16 = arith.divf %14, %15 : vector<256x1xf32>
    %cst_14 = arith.constant 9.99999974E-6 : f32
    %17 = vector.broadcast %cst_14 : f32 to vector<256x1xf32>
    %18 = arith.addf %16, %17 : vector<256x1xf32>
    %19 = math.rsqrt %18 : vector<256x1xf32>
    %20 = vector.broadcast %19 : vector<256x1xf32> to vector<256x256xf32>
    %21 = arith.mulf %11, %20 : vector<256x256xf32>
    %22 = vector.broadcast %0 : vector<1x256xf32> to vector<256x256xf32>
    %23 = arith.mulf %21, %22 : vector<256x256xf32>
    %24 = vector.broadcast %1 : vector<1x256xf32> to vector<256x256xf32>
    %25 = arith.addf %23, %24 : vector<256x256xf32>
    %26 = vector.broadcast %4 : vector<1x256xf32> to vector<256x256xf32>
    %27 = arith.addf %5, %26 : vector<256x256xf32>
    %c0_15 = arith.constant 0 : index
    %c0_16 = arith.constant 0 : index
    %28 = vector.load %arg2[%c0_15, %c0_16] : memref<256x1024xf32, #tpu.memory_space<vmem>>, vector<256x512xf32>
    %cst_17 = arith.constant dense<0.000000e+00> : vector<256x512xf32>
    %29 = tpu.matmul %25, %28, %cst_17 {dimension_numbers = #tpu.dot_dimension_numbers<[1], [0], [0], [1], [0, 0, 1, 1], [], []>} : vector<256x256xf32>, vector<256x512xf32>, vector<256x512xf32> -> vector<256x512xf32>
    %c0_18 = arith.constant 0 : index
    %c0_19 = arith.constant 0 : index
    %30 = vector.load %arg3[%c0_18, %c0_19] : memref<1x1024xf32, #tpu.memory_space<vmem>>, vector<1x512xf32>
    %31 = vector.broadcast %30 : vector<1x512xf32> to vector<256x512xf32>
    %32 = arith.addf %29, %31 : vector<256x512xf32>
    %cst_20 = arith.constant 0.000000e+00 : f32
    %33 = vector.broadcast %cst_20 : f32 to vector<256x512xf32>
    %34 = arith.maximumf %32, %33 : vector<256x512xf32>
    %c0_21 = arith.constant 0 : index
    %c0_22 = arith.constant 0 : index
    %35 = vector.load %arg4[%c0_21, %c0_22] : memref<1024x256xf32, #tpu.memory_space<vmem>>, vector<512x256xf32>
    %cst_23 = arith.constant dense<0.000000e+00> : vector<256x256xf32>
    %36 = tpu.matmul %34, %35, %cst_23 {dimension_numbers = #tpu.dot_dimension_numbers<[1], [0], [0], [1], [0, 0, 1, 1], [], []>} : vector<256x512xf32>, vector<512x256xf32>, vector<256x256xf32> -> vector<256x256xf32>
    %37 = arith.addf %27, %36 : vector<256x256xf32>
    %c0_24 = arith.constant 0 : index
    %c512 = arith.constant 512 : index
    %38 = vector.load %arg2[%c0_24, %c512] : memref<256x1024xf32, #tpu.memory_space<vmem>>, vector<256x512xf32>
    %cst_25 = arith.constant dense<0.000000e+00> : vector<256x512xf32>
    %39 = tpu.matmul %25, %38, %cst_25 {dimension_numbers = #tpu.dot_dimension_numbers<[1], [0], [0], [1], [0, 0, 1, 1], [], []>} : vector<256x256xf32>, vector<256x512xf32>, vector<256x512xf32> -> vector<256x512xf32>
    %c0_26 = arith.constant 0 : index
    %c512_27 = arith.constant 512 : index
    %40 = vector.load %arg3[%c0_26, %c512_27] : memref<1x1024xf32, #tpu.memory_space<vmem>>, vector<1x512xf32>
    %41 = vector.broadcast %40 : vector<1x512xf32> to vector<256x512xf32>
    %42 = arith.addf %39, %41 : vector<256x512xf32>
    %cst_28 = arith.constant 0.000000e+00 : f32
    %43 = vector.broadcast %cst_28 : f32 to vector<256x512xf32>
    %44 = arith.maximumf %42, %43 : vector<256x512xf32>
    %c512_29 = arith.constant 512 : index
    %c0_30 = arith.constant 0 : index
    %45 = vector.load %arg4[%c512_29, %c0_30] : memref<1024x256xf32, #tpu.memory_space<vmem>>, vector<512x256xf32>
    %cst_31 = arith.constant dense<0.000000e+00> : vector<256x256xf32>
    %46 = tpu.matmul %44, %45, %cst_31 {dimension_numbers = #tpu.dot_dimension_numbers<[1], [0], [0], [1], [0, 0, 1, 1], [], []>} : vector<256x512xf32>, vector<512x256xf32>, vector<256x256xf32> -> vector<256x256xf32>
    %47 = arith.addf %37, %46 : vector<256x256xf32>
    %cst_32 = arith.constant dense<0.000000e+00> : vector<256xf32>
    %48 = vector.multi_reduction <add>, %47, %cst_32 [1] : vector<256x256xf32> to vector<256xf32>
    %49 = vector.shape_cast %48 : vector<256xf32> to vector<256x1xf32>
    %cst_33 = arith.constant 2.560000e+02 : f32
    %50 = vector.broadcast %cst_33 : f32 to vector<256x1xf32>
    %51 = arith.divf %49, %50 : vector<256x1xf32>
    %52 = vector.broadcast %51 : vector<256x1xf32> to vector<256x256xf32>
    %53 = arith.subf %47, %52 : vector<256x256xf32>
    %54 = arith.mulf %53, %53 : vector<256x256xf32>
    %cst_34 = arith.constant dense<0.000000e+00> : vector<256xf32>
    %55 = vector.multi_reduction <add>, %54, %cst_34 [1] : vector<256x256xf32> to vector<256xf32>
    %56 = vector.shape_cast %55 : vector<256xf32> to vector<256x1xf32>
    %cst_35 = arith.constant 2.560000e+02 : f32
    %57 = vector.broadcast %cst_35 : f32 to vector<256x1xf32>
    %58 = arith.divf %56, %57 : vector<256x1xf32>
    %cst_36 = arith.constant 9.99999974E-6 : f32
    %59 = vector.broadcast %cst_36 : f32 to vector<256x1xf32>
    %60 = arith.addf %58, %59 : vector<256x1xf32>
    %61 = math.rsqrt %60 : vector<256x1xf32>
    %62 = vector.broadcast %61 : vector<256x1xf32> to vector<256x256xf32>
    %63 = arith.mulf %53, %62 : vector<256x256xf32>
    %64 = vector.broadcast %2 : vector<1x256xf32> to vector<256x256xf32>
    %65 = arith.mulf %63, %64 : vector<256x256xf32>
    %66 = vector.broadcast %3 : vector<1x256xf32> to vector<256x256xf32>
    %67 = arith.addf %65, %66 : vector<256x256xf32>
    %68 = vector.broadcast %4 : vector<1x256xf32> to vector<256x256xf32>
    %69 = arith.addf %47, %68 : vector<256x256xf32>
    %c0_37 = arith.constant 0 : index
    %c0_38 = arith.constant 0 : index
    %70 = vector.load %arg2[%c0_37, %c0_38] : memref<256x1024xf32, #tpu.memory_space<vmem>>, vector<256x512xf32>
    %cst_39 = arith.constant dense<0.000000e+00> : vector<256x512xf32>
    %71 = tpu.matmul %67, %70, %cst_39 {dimension_numbers = #tpu.dot_dimension_numbers<[1], [0], [0], [1], [0, 0, 1, 1], [], []>} : vector<256x256xf32>, vector<256x512xf32>, vector<256x512xf32> -> vector<256x512xf32>
    %c0_40 = arith.constant 0 : index
    %c0_41 = arith.constant 0 : index
    %72 = vector.load %arg3[%c0_40, %c0_41] : memref<1x1024xf32, #tpu.memory_space<vmem>>, vector<1x512xf32>
    %73 = vector.broadcast %72 : vector<1x512xf32> to vector<256x512xf32>
    %74 = arith.addf %71, %73 : vector<256x512xf32>
    %cst_42 = arith.constant 0.000000e+00 : f32
    %75 = vector.broadcast %cst_42 : f32 to vector<256x512xf32>
    %76 = arith.maximumf %74, %75 : vector<256x512xf32>
    %c0_43 = arith.constant 0 : index
    %c0_44 = arith.constant 0 : index
    %77 = vector.load %arg4[%c0_43, %c0_44] : memref<1024x256xf32, #tpu.memory_space<vmem>>, vector<512x256xf32>
    %cst_45 = arith.constant dense<0.000000e+00> : vector<256x256xf32>
    %78 = tpu.matmul %76, %77, %cst_45 {dimension_numbers = #tpu.dot_dimension_numbers<[1], [0], [0], [1], [0, 0, 1, 1], [], []>} : vector<256x512xf32>, vector<512x256xf32>, vector<256x256xf32> -> vector<256x256xf32>
    %79 = arith.addf %69, %78 : vector<256x256xf32>
    %c0_46 = arith.constant 0 : index
    %c512_47 = arith.constant 512 : index
    %80 = vector.load %arg2[%c0_46, %c512_47] : memref<256x1024xf32, #tpu.memory_space<vmem>>, vector<256x512xf32>
    %cst_48 = arith.constant dense<0.000000e+00> : vector<256x512xf32>
    %81 = tpu.matmul %67, %80, %cst_48 {dimension_numbers = #tpu.dot_dimension_numbers<[1], [0], [0], [1], [0, 0, 1, 1], [], []>} : vector<256x256xf32>, vector<256x512xf32>, vector<256x512xf32> -> vector<256x512xf32>
    %c0_49 = arith.constant 0 : index
    %c512_50 = arith.constant 512 : index
    %82 = vector.load %arg3[%c0_49, %c512_50] : memref<1x1024xf32, #tpu.memory_space<vmem>>, vector<1x512xf32>
    %83 = vector.broadcast %82 : vector<1x512xf32> to vector<256x512xf32>
    %84 = arith.addf %81, %83 : vector<256x512xf32>
    %cst_51 = arith.constant 0.000000e+00 : f32
    %85 = vector.broadcast %cst_51 : f32 to vector<256x512xf32>
    %86 = arith.maximumf %84, %85 : vector<256x512xf32>
    %c512_52 = arith.constant 512 : index
    %c0_53 = arith.constant 0 : index
    %87 = vector.load %arg4[%c512_52, %c0_53] : memref<1024x256xf32, #tpu.memory_space<vmem>>, vector<512x256xf32>
    %cst_54 = arith.constant dense<0.000000e+00> : vector<256x256xf32>
    %88 = tpu.matmul %86, %87, %cst_54 {dimension_numbers = #tpu.dot_dimension_numbers<[1], [0], [0], [1], [0, 0, 1, 1], [], []>} : vector<256x512xf32>, vector<512x256xf32>, vector<256x256xf32> -> vector<256x256xf32>
    %89 = arith.addf %79, %88 : vector<256x256xf32>
    %c0_55 = arith.constant 0 : index
    %c0_56 = arith.constant 0 : index
    %90 = vector.load %arg10[%c0_55, %c0_56] : memref<256x256xf32, #tpu.memory_space<vmem>>, vector<256x256xf32>
    tpu.vector_store %arg10[%c0_55, %c0_56], %89 {strides = array<i32>} : memref<256x256xf32, #tpu.memory_space<vmem>>, vector<256x256xf32>,
    return
  }
  func.func @transform_0(%arg0: i32) -> (i32, i32) {
    %c0_i32 = arith.constant 0 : i32
    %c0_i32_0 = arith.constant 0 : i32
    return %arg0, %c0_i32 : i32, i32
  }
  func.func @transform_1(%arg0: i32) -> (i32, i32) {
    %c0_i32 = arith.constant 0 : i32
    %c0_i32_0 = arith.constant 0 : i32
    %c0_i32_1 = arith.constant 0 : i32
    return %c0_i32, %c0_i32_0 : i32, i32
  }
  func.func @transform_2(%arg0: i32) -> (i32, i32) {
    %c0_i32 = arith.constant 0 : i32
    %c0_i32_0 = arith.constant 0 : i32
    %c0_i32_1 = arith.constant 0 : i32
    return %c0_i32, %c0_i32_0 : i32, i32
  }
  func.func @transform_3(%arg0: i32) -> (i32, i32) {
    %c0_i32 = arith.constant 0 : i32
    %c0_i32_0 = arith.constant 0 : i32
    %c0_i32_1 = arith.constant 0 : i32
    return %c0_i32, %c0_i32_0 : i32, i32
  }
  func.func @transform_4(%arg0: i32) -> (i32, i32) {
    %c0_i32 = arith.constant 0 : i32
    %c0_i32_0 = arith.constant 0 : i32
    %c0_i32_1 = arith.constant 0 : i32
    return %c0_i32, %c0_i32_0 : i32, i32
  }
  func.func @transform_5(%arg0: i32) -> (i32, i32) {
    %c0_i32 = arith.constant 0 : i32
    %c0_i32_0 = arith.constant 0 : i32
    %c0_i32_1 = arith.constant 0 : i32
    return %c0_i32, %c0_i32_0 : i32, i32
  }
  func.func @transform_6(%arg0: i32) -> (i32, i32) {
    %c0_i32 = arith.constant 0 : i32
    %c0_i32_0 = arith.constant 0 : i32
    %c0_i32_1 = arith.constant 0 : i32
    return %c0_i32, %c0_i32_0 : i32, i32
  }
  func.func @transform_7(%arg0: i32) -> (i32, i32) {
    %c0_i32 = arith.constant 0 : i32
    %c0_i32_0 = arith.constant 0 : i32
    %c0_i32_1 = arith.constant 0 : i32
    return %c0_i32, %c0_i32_0 : i32, i32
  }
  func.func @transform_8(%arg0: i32) -> (i32, i32) {
    %c0_i32 = arith.constant 0 : i32
    %c0_i32_0 = arith.constant 0 : i32
    %c0_i32_1 = arith.constant 0 : i32
    return %c0_i32, %c0_i32_0 : i32, i32
  }
  func.func @transform_9(%arg0: i32) -> (i32, i32) {
    %c0_i32 = arith.constant 0 : i32
    %c0_i32_0 = arith.constant 0 : i32
    return %arg0, %c0_i32 : i32, i32
  }
}

</mosaic_0001>

<bundles_post_ra>
// kernel: finetuning_layer.1
= control target key start
LH: loop header
LB: loop body
LE: loop exit
PB: predicated region body
PF: predicated region fallthrough
CT: control target
= control target key end

     0   :  { %s9243_s30 = smov 0   ;;  %s14990_s0 = inlined_call_operand.vmem [shape: f32[512,256], index: 0, kind: input, shape index: {}]   ;;  %s14991_s1 = inlined_call_operand.vmem [shape: f32[256,1024], index: 1, kind: input, shape index: {}]   ;;  %s14992_s2 = inlined_call_operand.vmem [shape: f32[1,1024], index: 2, kind: input, shape index: {}]   ;;  %s14993_s3 = inlined_call_operand.vmem [shape: f32[1024,256], index: 3, kind: input, shape index: {}]   ;;  %s14994_s4 = inlined_call_operand.vmem [shape: f32[1,256], index: 4, kind: input, shape index: {}]   ;;  %s14995_s5 = inlined_call_operand.vmem [shape: f32[1,256], index: 5, kind: input, shape index: {}]   ;;  %s14996_s6 = inlined_call_operand.vmem [shape: f32[1,256], index: 6, kind: input, shape index: {}]   ;;  %s14997_s7 = inlined_call_operand.vmem [shape: f32[1,256], index: 7, kind: input, shape index: {}]   ;;  %s14998_s8 = inlined_call_operand.vmem [shape: f32[1,256], index: 8, kind: input, shape index: {}]   ;;  %s14999_s9 = inlined_call_operand.vmem [shape: f32[512,256], index: 9, kind: output, shape index: {}]  }
   0x1 LB: > { %s7432_s10 = sadd.s32 4294967295, %s9191_s30   ;;  %p7436_p0 = scmp.ge.s32.totalorder %s9191_s30, 1  ;;  %s9191_s30 = sphi %s9243_s30, %s19_s30  }
   0x2   : > { %p289_p1 = scmp.lt.s32.totalorder %s9191_s30, 3 }
   0x4   : > { %p290_p2 = pnand %p7436_p0, %p289_p1 }
   0x6   : > { %293 = sbr.rel (%p290_p2) target bundleno = 2411 (0x96b), region = 56 }
   0xd   : > { %s7437_s11 = sshll.u32 %s7432_s10, 5 }
   0xe   : > { %p328_p3 = scmp.lt.s32.totalorder %s7437_s11, 63 }
  0x10   : > { %s16493_s11 = smov (!%p328_p3, %s7437_s11), 63 }
  0x11   : > { %s7445_s12 = sshll.u32 %s16493_s11, 4 }
  0x12   : > { %s9259_s15 = scalar_lea.vmem %s14990_s0, %s7445_s12  ;;  %s14795_s22 = scalar_lea.vmem %s14999_s9, %s7445_s12 }
  0x13   : > { %v9262_v0 = vld [vmem:[%s9259_s15] sm:$0xff]  ;;  %v9265_v1 = vld [vmem:[%s9259_s15 + $0x8] sm:$0xff]  ;;  %v9268_v2 = vld [vmem:[%s9259_s15 + $0x10] sm:$0xff] }
  0x14   : > { %v410_v3 = vadd.f32 %v9265_v1, %v9262_v0  ;;  %v9273_v4 = vld [vmem:[%s9259_s15 + $0x18] sm:$0xff]  ;;  %v9276_v5 = vld [vmem:[%s9259_s15 + $0x20] sm:$0xff]  ;;  %v9279_v6 = vld [vmem:[%s9259_s15 + $0x28] sm:$0xff] }
  0x15   : > { %v416_v7 = vadd.f32 %v9279_v6, %v9276_v5  ;;  %v9284_v8 = vld [vmem:[%s9259_s15 + $0x30] sm:$0xff]  ;;  %v413_v9 = vadd.f32 %v9273_v4, %v9268_v2  ;;  %v9289_v10 = vld [vmem:[%s9259_s15 + $0x38] sm:$0xff]  ;;  %v9292_v11 = vld [vmem:[%s9259_s15 + $0x40] sm:$0xff] }
  0x16   : > { %411 = vadd.xlane.f32.xlu0 %v410_v3  ;;  %v9295_v12 = vld [vmem:[%s9259_s15 + $0x48] sm:$0xff]  ;;  %v419_v13 = vadd.f32 %v9289_v10, %v9284_v8  ;;  %v9300_v14 = vld [vmem:[%s9259_s15 + $0x50] sm:$0xff]  ;;  %v9303_v15 = vld [vmem:[%s9259_s15 + $0x58] sm:$0xff] }
  0x17   : > { %417 = vadd.xlane.f32.xlu1 %v416_v7  ;;  %v422_v16 = vadd.f32 %v9295_v12, %v9292_v11  ;;  %v9308_v17 = vld [vmem:[%s9259_s15 + $0x60] sm:$0xff]  ;;  %v9311_v18 = vld [vmem:[%s9259_s15 + $0x68] sm:$0xff]  ;;  %v425_v19 = vadd.f32 %v9303_v15, %v9300_v14  ;;  %v9316_v20 = vld [vmem:[%s9259_s15 + $0x70] sm:$0xff] }
  0x18   : > { %v9319_v21 = vld [vmem:[%s9259_s15 + $0x78] sm:$0xff]  ;;  %v428_v22 = vadd.f32 %v9311_v18, %v9308_v17  ;;  %v9324_v23 = vld [vmem:[%s9259_s15 + $0x80] sm:$0xff]  ;;  %v9327_v24 = vld [vmem:[%s9259_s15 + $0x88] sm:$0xff] }
  0x19   : > { %v431_v25 = vadd.f32 %v9319_v21, %v9316_v20  ;;  %v9332_v26 = vld [vmem:[%s9259_s15 + $0x90] sm:$0xff]  ;;  %v9335_v27 = vld [vmem:[%s9259_s15 + $0x98] sm:$0xff]  ;;  %v434_v28 = vadd.f32 %v9327_v24, %v9324_v23  ;;  %v9340_v29 = vld [vmem:[%s9259_s15 + $0xa0] sm:$0xff] }
  0x1a   : > { %414 = vadd.xlane.f32.xlu0 %v413_v9  ;;  %v9343_v30 = vld [vmem:[%s9259_s15 + $0xa8] sm:$0xff]  ;;  %v437_v31 = vadd.f32 %v9335_v27, %v9332_v26  ;;  %v9348_v32 = vld [vmem:[%s9259_s15 + $0xb0] sm:$0xff]  ;;  %v9351_v33 = vld [vmem:[%s9259_s15 + $0xb8] sm:$0xff] }
  0x1b   : > { %420 = vadd.xlane.f32.xlu1 %v419_v13  ;;  %v440_v34 = vadd.f32 %v9343_v30, %v9340_v29  ;;  %v9356_v35 = vld [vmem:[%s9259_s15 + $0xc0] sm:$0xff]  ;;  %v9359_v36 = vld [vmem:[%s9259_s15 + $0xc8] sm:$0xff]  ;;  %v443_v37 = vadd.f32 %v9351_v33, %v9348_v32  ;;  %v9364_v38 = vld [vmem:[%s9259_s15 + $0xd0] sm:$0xff] }
  0x1c   : > { %v9367_v39 = vld [vmem:[%s9259_s15 + $0xd8] sm:$0xff]  ;;  %v446_v40 = vadd.f32 %v9359_v36, %v9356_v35  ;;  %v9372_v41 = vld [vmem:[%s9259_s15 + $0xe0] sm:$0xff]  ;;  %v9375_v42 = vld [vmem:[%s9259_s15 + $0xe8] sm:$0xff] }
  0x1d   : > { %v449_v43 = vadd.f32 %v9367_v39, %v9364_v38  ;;  %v9380_v44 = vld [vmem:[%s9259_s15 + $0xf0] sm:$0xff]  ;;  %v9383_v45 = vld [vmem:[%s9259_s15 + $0xf8] sm:$0xff]  ;;  %v452_v46 = vadd.f32 %v9375_v42, %v9372_v41  ;;  %v9388_v47 = vld [vmem:[%s9259_s15 + $0x100] sm:$0xff] }
  0x1e   : > { %423 = vadd.xlane.f32.xlu0 %v422_v16  ;;  %v9391_v48 = vld [vmem:[%s9259_s15 + $0x108] sm:$0xff]  ;;  %v455_v49 = vadd.f32 %v9383_v45, %v9380_v44  ;;  %v9396_v50 = vld [vmem:[%s9259_s15 + $0x110] sm:$0xff]  ;;  %v9399_v51 = vld [vmem:[%s9259_s15 + $0x118] sm:$0xff] }
  0x1f   : > { %426 = vadd.xlane.f32.xlu1 %v425_v19  ;;  %v458_v52 = vadd.f32 %v9391_v48, %v9388_v47  ;;  %v9404_v53 = vld [vmem:[%s9259_s15 + $0x120] sm:$0xff]  ;;  %v9407_v54 = vld [vmem:[%s9259_s15 + $0x128] sm:$0xff]  ;;  %v461_v55 = vadd.f32 %v9399_v51, %v9396_v50  ;;  %v9412_v56 = vld [vmem:[%s9259_s15 + $0x130] sm:$0xff] }
  0x20   : > { %v9415_v57 = vld [vmem:[%s9259_s15 + $0x138] sm:$0xff]  ;;  %v464_v58 = vadd.f32 %v9407_v54, %v9404_v53  ;;  %v9420_v59 = vld [vmem:[%s9259_s15 + $0x140] sm:$0xff]  ;;  %v9423_v60 = vld [vmem:[%s9259_s15 + $0x148] sm:$0xff] }
  0x21   : > { %v467_v61 = vadd.f32 %v9415_v57, %v9412_v56  ;;  %v470_v62 = vadd.f32 %v9423_v60, %v9420_v59  ;;  %v9430_v63 = vld [vmem:[%s9259_s15 + $0x150] sm:$0xff]  ;;  %v9433_v3 = vld [vmem:[%s9259_s15 + $0x158] sm:$0xff]  ;;  %v9438_v9 = vld [vmem:[%s9259_s15 + $0x160] sm:$0xff] }
  0x22   : > { %429 = vadd.xlane.f32.xlu0 %v428_v22  ;;  %v473_v7 = vadd.f32 %v9433_v3, %v9430_v63  ;;  %v9441_v13 = vld [vmem:[%s9259_s15 + $0x168] sm:$0xff]  ;;  %v9446_v19 = vld [vmem:[%s9259_s15 + $0x170] sm:$0xff]  ;;  %v9449_v22 = vld [vmem:[%s9259_s15 + $0x178] sm:$0xff] }
  0x23   : > { %432 = vadd.xlane.f32.xlu1 %v431_v25  ;;  %v476_v16 = vadd.f32 %v9441_v13, %v9438_v9  ;;  %15533 = vst [vmem:[#allocation2_spill] sm:$0xff] %v9449_v22  ;;  %v479_v25 = vadd.f32 %v9449_v22, %v9446_v19 }
  0x26   : > { %435 = vadd.xlane.f32.xlu0 %v434_v28  ;;  %v9454_v28 = vld [vmem:[%s9259_s15 + $0x180] sm:$0xff] }
  0x27   : > { %438 = vadd.xlane.f32.xlu1 %v437_v31  ;;  %v9457_v31 = vld [vmem:[%s9259_s15 + $0x188] sm:$0xff] }
  0x2a   : > { %441 = vadd.xlane.f32.xlu0 %v440_v34  ;;  %v482_v34 = vadd.f32 %v9457_v31, %v9454_v28 }
  0x2b   : > { %444 = vadd.xlane.f32.xlu1 %v443_v37  ;;  %v9462_v37 = vld [vmem:[%s9259_s15 + $0x190] sm:$0xff] }
  0x2c   : > { %15534 = vst [vmem:[#allocation3_spill] sm:$0xff] %v9462_v37 }
  0x2e   : > { %447 = vadd.xlane.f32.xlu0 %v446_v40  ;;  %v9465_v40 = vld [vmem:[%s9259_s15 + $0x198] sm:$0xff] }
  0x2f   : > { %450 = vadd.xlane.f32.xlu1 %v449_v43  ;;  %15535 = vst [vmem:[#allocation4_spill] sm:$0xff] %v9465_v40  ;;  %v485_v43 = vadd.f32 %v9465_v40, %v9462_v37  ;;  %v9505_v40 = vld [vmem:[%s9259_s15 + $0x1e8] sm:$0xff] }
  0x30   : > { %15545 = vst [vmem:[#allocation14_spill] sm:$0xff] %v9505_v40 }
  0x32   : > { %453 = vadd.xlane.f32.xlu0 %v452_v46  ;;  %v9470_v46 = vld [vmem:[%s9259_s15 + $0x1a0] sm:$0xff] }
  0x33   : > { %456 = vadd.xlane.f32.xlu1 %v455_v49  ;;  %15536 = vst [vmem:[#allocation5_spill] sm:$0xff] %v9470_v46  ;;  %v9473_v49 = vld [vmem:[%s9259_s15 + $0x1a8] sm:$0xff] }
  0x34   : > { %15537 = vst [vmem:[#allocation6_spill] sm:$0xff] %v9473_v49 }
  0x36   : > { %459 = vadd.xlane.f32.xlu0 %v458_v52  ;;  %v488_v52 = vadd.f32 %v9473_v49, %v9470_v46  ;;  %v1228_v49 = vld [vmem:[%s14991_s1 + $0x500] sm:$0xff] }
  0x37   : > { %462 = vadd.xlane.f32.xlu1 %v461_v55  ;;  %v9478_v55 = vld [vmem:[%s9259_s15 + $0x1b0] sm:$0xff]  ;;  %v1232_v46 = vld [vmem:[%s14991_s1 + $0x540] sm:$0xff] }
  0x38   : > { %15538 = vst [vmem:[#allocation7_spill] sm:$0xff] %v9478_v55 }
  0x3a   : > { %465 = vadd.xlane.f32.xlu0 %v464_v58  ;;  %v9481_v58 = vld [vmem:[%s9259_s15 + $0x1b8] sm:$0xff] }
  0x3b   : > { %468 = vadd.xlane.f32.xlu1 %v467_v61  ;;  %15539 = vst [vmem:[#allocation8_spill] sm:$0xff] %v9481_v58  ;;  %v491_v61 = vadd.f32 %v9481_v58, %v9478_v55  ;;  %v9513_v55 = vld [vmem:[%s9259_s15 + $0x1f8] sm:$0xff] }
  0x3c   : > { %15547 = vst [vmem:[#allocation16_spill] sm:$0xff] %v9513_v55 }
  0x3e   : > { %471 = vadd.xlane.f32.xlu0 %v470_v62  ;;  %v9486_v62 = vld [vmem:[%s9259_s15 + $0x1c0] sm:$0xff] }
  0x3f   : > { %15540 = vst [vmem:[#allocation9_spill] sm:$0xff] %v9486_v62 }
  0x42   : > { %474 = vadd.xlane.f32.xlu0 %v473_v7  ;;  %v9489_v7 = vld [vmem:[%s9259_s15 + $0x1c8] sm:$0xff] }
  0x43   : > { %15541 = vst [vmem:[#allocation10_spill] sm:$0xff] %v9489_v7 }
  0x46   : > { %477 = vadd.xlane.f32.xlu0 %v476_v16  ;;  %v494_v16 = vadd.f32 %v9489_v7, %v9486_v62  ;;  %v1173_v62 = vld [vmem:[%s14991_s1 + $0x188] sm:$0xff] }
  0x4a   : > { %480 = vadd.xlane.f32.xlu0 %v479_v25  ;;  %v9494_v25 = vld [vmem:[%s9259_s15 + $0x1d0] sm:$0xff] }
  0x4b   : > { %15542 = vst [vmem:[#allocation11_spill] sm:$0xff] %v9494_v25 }
  0x4e   : > { %483 = vadd.xlane.f32.xlu0 %v482_v34  ;;  %v9497_v34 = vld [vmem:[%s9259_s15 + $0x1d8] sm:$0xff] }
  0x4f   : > { %15543 = vst [vmem:[#allocation12_spill] sm:$0xff] %v9497_v34 }
  0x52   : > { %486 = vadd.xlane.f32.xlu0 %v485_v43  ;;  %v497_v43 = vadd.f32 %v9497_v34, %v9494_v25  ;;  %v1165_v25 = vld [vmem:[%s14991_s1 + $0x108] sm:$0xff] }
  0x56   : > { %489 = vadd.xlane.f32.xlu0 %v488_v52  ;;  %v9502_v52 = vld [vmem:[%s9259_s15 + $0x1e0] sm:$0xff] }
  0x57   : > { %15544 = vst [vmem:[#allocation13_spill] sm:$0xff] %v9502_v52  ;;  %v500_v58 = vadd.f32 %v9505_v40, %v9502_v52  ;;  %v1148_v40 = vld [vmem:[%s14991_s1] sm:$0xff] }
  0x5a   : > { %492 = vadd.xlane.f32.xlu0 %v491_v61  ;;  %v9510_v61 = vld [vmem:[%s9259_s15 + $0x1f0] sm:$0xff] }
  0x5b   : > { %15546 = vst [vmem:[#allocation15_spill] sm:$0xff] %v9510_v61  ;;  %v503_v7 = vadd.f32 %v9513_v55, %v9510_v61  ;;  %v1161_v55 = vld [vmem:[%s14991_s1 + $0xc8] sm:$0xff] }
  0x5e   : > { %495 = vadd.xlane.f32.xlu0 %v494_v16  ;;  %v1149_v16 = vld [vmem:[%s14991_s1 + $0x8] sm:$0xff] }
  0x62   : > { %498 = vadd.xlane.f32.xlu0 %v497_v43  ;;  %v1153_v43 = vld [vmem:[%s14991_s1 + $0x48] sm:$0xff] }
  0x63   : > { %v9526_v52 = vpack.c.bf16 %v1153_v43, %v1149_v16  ;;  %v1156_v16 = vld [vmem:[%s14991_s1 + $0x80] sm:$0xff] }
  0x64   : > { %v1160_v43 = vld [vmem:[%s14991_s1 + $0xc0] sm:$0xff] }
  0x65   : > { %15548 = vst [vmem:[#allocation17_spill] sm:$0xff] %v9526_v52  ;;  %7448 = vmatprep.subr.bf16.mxu1 %v9526_v52  ;;  %v1168_v52 = vld [vmem:[%s14991_s1 + $0x140] sm:$0xff] }
  0x66   : > { %501 = vadd.xlane.f32.xlu0 %v500_v58  ;;  %v1152_v58 = vld [vmem:[%s14991_s1 + $0x40] sm:$0xff] }
  0x67   : > { %v9537_v61 = vpack.c.bf16 %v1152_v58, %v1148_v40  ;;  %v1169_v40 = vld [vmem:[%s14991_s1 + $0x148] sm:$0xff] }
  0x68   : > { %v9558_v58 = vpack.c.bf16 %v1169_v40, %v1165_v25  ;;  %v1172_v40 = vld [vmem:[%s14991_s1 + $0x180] sm:$0xff] }
  0x69   : > { %15549 = vst [vmem:[#allocation18_spill] sm:$0xff] %v9537_v61  ;;  %7450 = vmatpush1.bf16.msra.mxu1 %v9537_v61  ;;  %v1181_v61 = vld [vmem:[%s14991_s1 + $0x208] sm:$0xff] }
  0x6a   : > { %504 = vadd.xlane.f32.xlu0 %v503_v7  ;;  %v1157_v7 = vld [vmem:[%s14991_s1 + $0x88] sm:$0xff]  ;;  %15552 = vst [vmem:[#allocation21_spill] sm:$0xff] %v9558_v58 }
  0x6b   : > { %v9539_v34 = vpack.c.bf16 %v1161_v55, %v1157_v7  ;;  %v9555_v55 = vpack.c.bf16 %v1160_v43, %v1156_v16  ;;  %v1164_v7 = vld [vmem:[%s14991_s1 + $0x100] sm:$0xff]  ;;  %v1177_v16 = vld [vmem:[%s14991_s1 + $0x1c8] sm:$0xff] }
  0x6c   : > { %v9573_v25 = vpack.c.bf16 %v1168_v52, %v1164_v7  ;;  %v9576_v43 = vpack.c.bf16 %v1177_v16, %v1173_v62  ;;  %v1185_v52 = vld [vmem:[%s14991_s1 + $0x248] sm:$0xff]  ;;  %v1180_v16 = vld [vmem:[%s14991_s1 + $0x200] sm:$0xff] }
  0x6d   : > { %15550 = vst [vmem:[#allocation19_spill] sm:$0xff] %v9539_v34  ;;  %15551 = vst [vmem:[#allocation20_spill] sm:$0xff] %v9555_v55  ;;  %7452 = vmatprep.subr.bf16.mxu1 %v9539_v34  ;;  %v1176_v34 = vld [vmem:[%s14991_s1 + $0x1c0] sm:$0xff]  ;;  %v9594_v7 = vpack.c.bf16 %v1185_v52, %v1181_v61 }
  0x6e   : > { %7454 = vmatpush1.bf16.msra.mxu1 %v9555_v55  ;;  %15553 = vst [vmem:[#allocation22_spill] sm:$0xff] %v9573_v25  ;;  %15554 = vst [vmem:[#allocation23_spill] sm:$0xff] %v9576_v43  ;;  %v9591_v62 = vpack.c.bf16 %v1176_v34, %v1172_v40  ;;  %v1189_v55 = vld [vmem:[%s14991_s1 + $0x288] sm:$0xff]  ;;  %v1188_v52 = vld [vmem:[%s14991_s1 + $0x280] sm:$0xff] }
  0x6f   : > { %7456 = vmatprep.subr.bf16.mxu1 %v9558_v58  ;;  %15556 = vst [vmem:[#allocation25_spill] sm:$0xff] %v9594_v7  ;;  %v1184_v58 = vld [vmem:[%s14991_s1 + $0x240] sm:$0xff]  ;;  %v1193_v34 = vld [vmem:[%s14991_s1 + $0x2c8] sm:$0xff] }
  0x70   : > { %15555 = vst [vmem:[#allocation24_spill] sm:$0xff] %v9591_v62  ;;  %v9609_v61 = vpack.c.bf16 %v1184_v58, %v1180_v16  ;;  %v9612_v40 = vpack.c.bf16 %v1193_v34, %v1189_v55  ;;  %v1201_v58 = vld [vmem:[%s14991_s1 + $0x348] sm:$0xff]  ;;  %v1196_v34 = vld [vmem:[%s14991_s1 + $0x300] sm:$0xff] }
  0x72   : > { %7458 = vmatpush1.bf16.msra.mxu1 %v9573_v25  ;;  %15557 = vst [vmem:[#allocation26_spill] sm:$0xff] %v9609_v61  ;;  %15558 = vst [vmem:[#allocation27_spill] sm:$0xff] %v9612_v40  ;;  %v1197_v25 = vld [vmem:[%s14991_s1 + $0x308] sm:$0xff] }
  0x73   : > { %7460 = vmatprep.subr.bf16.mxu1 %v9576_v43  ;;  %v1192_v43 = vld [vmem:[%s14991_s1 + $0x2c0] sm:$0xff]  ;;  %v9630_v16 = vpack.c.bf16 %v1201_v58, %v1197_v25 }
  0x74   : > { %v9627_v55 = vpack.c.bf16 %v1192_v43, %v1188_v52  ;;  %v1209_v43 = vld [vmem:[%s14991_s1 + $0x3c8] sm:$0xff]  ;;  %v1204_v58 = vld [vmem:[%s14991_s1 + $0x380] sm:$0xff] }
  0x75   : > { %15560 = vst [vmem:[#allocation29_spill] sm:$0xff] %v9630_v16 }
  0x76   : > { %7462 = vmatpush1.bf16.msra.mxu1 %v9591_v62  ;;  %15559 = vst [vmem:[#allocation28_spill] sm:$0xff] %v9627_v55  ;;  %v1205_v62 = vld [vmem:[%s14991_s1 + $0x388] sm:$0xff] }
  0x77   : > { %7464 = vmatprep.subr.bf16.mxu1 %v9594_v7  ;;  %v1200_v7 = vld [vmem:[%s14991_s1 + $0x340] sm:$0xff]  ;;  %v9648_v52 = vpack.c.bf16 %v1209_v43, %v1205_v62 }
  0x78   : > { %v9645_v25 = vpack.c.bf16 %v1200_v7, %v1196_v34  ;;  %v1217_v7 = vld [vmem:[%s14991_s1 + $0x448] sm:$0xff]  ;;  %v1212_v43 = vld [vmem:[%s14991_s1 + $0x400] sm:$0xff] }
  0x79   : > { %15562 = vst [vmem:[#allocation31_spill] sm:$0xff] %v9648_v52 }
  0x7a   : > { %7466 = vmatpush1.bf16.msra.mxu1 %v9609_v61  ;;  %15561 = vst [vmem:[#allocation30_spill] sm:$0xff] %v9645_v25  ;;  %v1213_v61 = vld [vmem:[%s14991_s1 + $0x408] sm:$0xff] }
  0x7b   : > { %7468 = vmatprep.subr.bf16.mxu1 %v9612_v40  ;;  %v1208_v40 = vld [vmem:[%s14991_s1 + $0x3c0] sm:$0xff]  ;;  %v9666_v34 = vpack.c.bf16 %v1217_v7, %v1213_v61 }
  0x7c   : > { %v9663_v62 = vpack.c.bf16 %v1208_v40, %v1204_v58  ;;  %v1225_v40 = vld [vmem:[%s14991_s1 + $0x4c8] sm:$0xff]  ;;  %v1220_v7 = vld [vmem:[%s14991_s1 + $0x480] sm:$0xff] }
  0x7d   : > { %15564 = vst [vmem:[#allocation33_spill] sm:$0xff] %v9666_v34 }
  0x7e   : > { %7470 = vmatpush1.bf16.msra.mxu1 %v9627_v55  ;;  %15563 = vst [vmem:[#allocation32_spill] sm:$0xff] %v9663_v62  ;;  %v1221_v55 = vld [vmem:[%s14991_s1 + $0x488] sm:$0xff] }
  0x7f   : > { %7472 = vmatprep.subr.bf16.mxu1 %v9630_v16  ;;  %v1216_v16 = vld [vmem:[%s14991_s1 + $0x440] sm:$0xff]  ;;  %v9684_v58 = vpack.c.bf16 %v1225_v40, %v1221_v55 }
  0x80   : > { %v9681_v61 = vpack.c.bf16 %v1216_v16, %v1212_v43  ;;  %v1233_v16 = vld [vmem:[%s14991_s1 + $0x548] sm:$0xff] }
  0x81   : > { %15566 = vst [vmem:[#allocation35_spill] sm:$0xff] %v9684_v58 }
  0x82   : > { %7474 = vmatpush1.bf16.msra.mxu1 %v9645_v25  ;;  %15565 = vst [vmem:[#allocation34_spill] sm:$0xff] %v9681_v61  ;;  %v1229_v25 = vld [vmem:[%s14991_s1 + $0x508] sm:$0xff] }
  0x83   : > { %7476 = vmatprep.subr.bf16.mxu1 %v9648_v52  ;;  %v1224_v52 = vld [vmem:[%s14991_s1 + $0x4c0] sm:$0xff]  ;;  %v9702_v37 = vpack.c.bf16 %v1233_v16, %v1229_v25 }
  0x84   : > { %v9699_v40 = vpack.c.bf16 %v1224_v52, %v1220_v7 }
  0x85   : > { %15568 = vst [vmem:[#allocation37_spill] sm:$0xff] %v9702_v37 }
  0x86   : > { %7478 = vmatpush1.bf16.msra.mxu1 %v9663_v62  ;;  %15567 = vst [vmem:[#allocation36_spill] sm:$0xff] %v9699_v40 }
  0x87   : > { %7480 = vmatprep.subr.bf16.mxu1 %v9666_v34 }
  0x8a   : > { %7482 = vmatpush1.bf16.msra.mxu1 %v9681_v61 }
  0x8b   : > { %7484 = vmatprep.subr.bf16.mxu1 %v9684_v58 }
  0x8e   : > { %7486 = vmatpush1.bf16.msra.mxu1 %v9699_v40 }
  0x8f   : > { %7488 = vmatprep.subr.bf16.mxu1 %v9702_v37 }
  0xa3   : > { %v412_v43 = vpop.xlane.xlu0 %411 }
  0xa4   : > { %v507_v34 = vmul.f32 0.00390625, %v412_v43  ;;  %v418_v55 = vpop.xlane.xlu1 %417 }
  0xa5   : > { %v509_v62 = vmul.f32 0.00390625, %v418_v55 }
  0xa6   : > { %v9711_v43 = vsub.f32 %v9262_v0, %v507_v34  ;;  %v9714_v61 = vsub.f32 %v9265_v1, %v507_v34  ;;  %v9727_v0 = vpack.c.bf16 %v1232_v46, %v1228_v49 }
  0xa7   : > { %v415_v52 = vpop.xlane.xlu0 %414  ;;  %v9717_v7 = vsub.f32 %v9276_v5, %v509_v62  ;;  %v9720_v25 = vsub.f32 %v9279_v6, %v509_v62 }
  0xa8   : > { %15569 = vst [vmem:[#allocation38_spill] sm:$0xff] %v9711_v43  ;;  %v508_v16 = vmul.f32 0.00390625, %v415_v52  ;;  %v603_v55 = vmul.f32 %v9711_v43, %v9711_v43  ;;  %v604_v58 = vmul.f32 %v9714_v61, %v9714_v61  ;;  %v421_v22 = vpop.xlane.xlu1 %420  ;;  %15570 = vst [vmem:[#allocation39_spill] sm:$0xff] %v9727_v0  ;;  %7490 = vmatpush1.bf16.msra.mxu1 %v9727_v0 }
  0xa9   : > { %v510_v1 = vmul.f32 0.00390625, %v421_v22  ;;  %v607_v43 = vmul.f32 %v9717_v7, %v9717_v7  ;;  %v608_v46 = vmul.f32 %v9720_v25, %v9720_v25 }
  0xaa   : > { %v9731_v5 = vsub.f32 %v9268_v2, %v508_v16  ;;  %v9734_v6 = vsub.f32 %v9273_v4, %v508_v16  ;;  %v667_v62 = vadd.f32 %v604_v58, %v603_v55 }
  0xab   : > { %v424_v34 = vpop.xlane.xlu0 %423  ;;  %v9737_v52 = vsub.f32 %v9284_v8, %v510_v1  ;;  %v9744_v49 = vsub.f32 %v9289_v10, %v510_v1  ;;  %v673_v55 = vadd.f32 %v608_v46, %v607_v43 }
  0xac   : > { %v511_v22 = vmul.f32 0.00390625, %v424_v34  ;;  %668 = vadd.xlane.f32.xlu1 %v667_v62  ;;  %v605_v2 = vmul.f32 %v9731_v5, %v9731_v5  ;;  %v606_v4 = vmul.f32 %v9734_v6, %v9734_v6  ;;  %v427_v58 = vpop.xlane.xlu1 %426 }
  0xad   : > { %v512_v37 = vmul.f32 0.00390625, %v427_v58  ;;  %v609_v10 = vmul.f32 %v9737_v52, %v9737_v52  ;;  %v610_v1 = vmul.f32 %v9744_v49, %v9744_v49 }
  0xae   : > { %v670_v8 = vadd.f32 %v606_v4, %v605_v2  ;;  %v9752_v40 = vsub.f32 %v9292_v11, %v511_v22  ;;  %v9755_v62 = vsub.f32 %v9295_v12, %v511_v22 }
  0xaf   : > { %v430_v16 = vpop.xlane.xlu0 %429  ;;  %v9762_v0 = vsub.f32 %v9300_v14, %v512_v37  ;;  %v9765_v43 = vsub.f32 %v9303_v15, %v512_v37  ;;  %v676_v2 = vadd.f32 %v610_v1, %v609_v10  ;;  %v1237_v10 = vld [vmem:[%s14991_s1 + $0x588] sm:$0xff] }
  0xb0   : > { %15571 = vst [vmem:[#allocation40_spill] sm:$0xff] %v9752_v40  ;;  %15572 = vst [vmem:[#allocation41_spill] sm:$0xff] %v9755_v62  ;;  %671 = vadd.xlane.f32.xlu1 %v670_v8  ;;  %v433_v46 = vpop.xlane.xlu1 %432  ;;  %v513_v11 = vmul.f32 0.00390625, %v430_v16  ;;  %v611_v12 = vmul.f32 %v9752_v40, %v9752_v40  ;;  %v612_v22 = vmul.f32 %v9755_v62, %v9755_v62  ;;  %v1241_v1 = vld [vmem:[%s14991_s1 + $0x5c8] sm:$0xff] }
  0xb1   : > { %15573 = vst [vmem:[#allocation42_spill] sm:$0xff] %v9762_v0  ;;  %15574 = vst [vmem:[#allocation43_spill] sm:$0xff] %v9765_v43  ;;  %v514_v4 = vmul.f32 0.00390625, %v433_v46  ;;  %v613_v8 = vmul.f32 %v9762_v0, %v9762_v0  ;;  %v614_v16 = vmul.f32 %v9765_v43, %v9765_v43  ;;  %v9790_v46 = vpack.c.bf16 %v1241_v1, %v1237_v10 }
  0xb2   : > { %v9774_v14 = vsub.f32 %v9308_v17, %v513_v11  ;;  %v9777_v15 = vsub.f32 %v9311_v18, %v513_v11  ;;  %v679_v37 = vadd.f32 %v612_v22, %v611_v12  ;;  %v1236_v18 = vld [vmem:[%s14991_s1 + $0x580] sm:$0xff] }
  0xb3   : > { %v436_v34 = vpop.xlane.xlu0 %435  ;;  %v9788_v17 = vsub.f32 %v9316_v20, %v514_v4  ;;  %15575 = vst [vmem:[#allocation44_spill] sm:$0xff] %v9790_v46  ;;  %v1240_v11 = vld [vmem:[%s14991_s1 + $0x5c0] sm:$0xff]  ;;  %v9799_v22 = vsub.f32 %v9319_v21, %v514_v4  ;;  %v682_v20 = vadd.f32 %v614_v16, %v613_v8  ;;  %7492 = vmatprep.subr.bf16.mxu1 %v9790_v46  ;;  %v1245_v21 = vld [vmem:[%s14991_s1 + $0x608] sm:$0xff] }
  0xb4   : > { %674 = vadd.xlane.f32.xlu1 %v673_v55  ;;  %v439_v55 = vpop.xlane.xlu1 %438  ;;  %v9801_v0 = vpack.c.bf16 %v1240_v11, %v1236_v18  ;;  %v615_v10 = vmul.f32 %v9774_v14, %v9774_v14  ;;  %v616_v1 = vmul.f32 %v9777_v15, %v9777_v15  ;;  %v1248_v18 = vld [vmem:[%s14991_s1 + $0x640] sm:$0xff] }
  0xb5   : > { %v516_v40 = vmul.f32 0.00390625, %v439_v55  ;;  %v1244_v55 = vld [vmem:[%s14991_s1 + $0x600] sm:$0xff] }
  0xb6   : > { %15576 = vst [vmem:[#allocation45_spill] sm:$0xff] %v9801_v0  ;;  %7494 = vmatpush1.bf16.msra.mxu1 %v9801_v0 }
  0xb7   : > { %v442_v58 = vpop.xlane.xlu0 %441 }
  0xb8   : > { %677 = vadd.xlane.f32.xlu1 %v676_v2  ;;  %v515_v2 = vmul.f32 0.00390625, %v436_v34  ;;  %v445_v62 = vpop.xlane.xlu1 %444  ;;  %v1249_v34 = vld [vmem:[%s14991_s1 + $0x648] sm:$0xff] }
  0xb9   : > { %v9823_v16 = vpack.c.bf16 %v1249_v34, %v1245_v21  ;;  %v685_v34 = vadd.f32 %v616_v1, %v615_v10 }
  0xba   : > { %v9832_v11 = vsub.f32 %v9324_v23, %v515_v2  ;;  %v9847_v23 = vsub.f32 %v9332_v26, %v516_v40 }
  0xbb   : > { %v448_v12 = vpop.xlane.xlu0 %447  ;;  %15577 = vst [vmem:[#allocation46_spill] sm:$0xff] %v9823_v16  ;;  %7496 = vmatprep.subr.bf16.mxu1 %v9823_v16 }
  0xbc   : > { %v519_v43 = vmul.f32 0.00390625, %v448_v12  ;;  %680 = vadd.xlane.f32.xlu1 %v679_v37  ;;  %v617_v37 = vmul.f32 %v9788_v17, %v9788_v17  ;;  %v9839_v12 = vpack.c.bf16 %v1248_v18, %v1244_v55  ;;  %v517_v18 = vmul.f32 0.00390625, %v442_v58  ;;  %v451_v16 = vpop.xlane.xlu1 %450 }
  0xbe   : > { %v9816_v4 = vsub.f32 %v9356_v35, %v519_v43  ;;  %v9819_v8 = vsub.f32 %v9359_v36, %v519_v43  ;;  %v9835_v35 = vsub.f32 %v9327_v24, %v515_v2  ;;  %v618_v43 = vmul.f32 %v9799_v22, %v9799_v22  ;;  %15578 = vst [vmem:[#allocation47_spill] sm:$0xff] %v9839_v12  ;;  %v1253_v2 = vld [vmem:[%s14991_s1 + $0x688] sm:$0xff] }
  0xbf   : > { %v454_v36 = vpop.xlane.xlu0 %453  ;;  %v9850_v24 = vsub.f32 %v9335_v27, %v516_v40  ;;  %7498 = vmatpush1.bf16.msra.mxu1 %v9839_v12  ;;  %v1252_v27 = vld [vmem:[%s14991_s1 + $0x680] sm:$0xff] }
  0xc0   : > { %v521_v21 = vmul.f32 0.00390625, %v454_v36  ;;  %683 = vadd.xlane.f32.xlu1 %v682_v20  ;;  %v627_v0 = vmul.f32 %v9816_v4, %v9816_v4  ;;  %v628_v46 = vmul.f32 %v9819_v8, %v9819_v8  ;;  %v1257_v20 = vld [vmem:[%s14991_s1 + $0x6c8] sm:$0xff]  ;;  %v1256_v40 = vld [vmem:[%s14991_s1 + $0x6c0] sm:$0xff]  ;;  %v688_v12 = vadd.f32 %v618_v43, %v617_v37 }
  0xc1   : > { %v9865_v55 = vpack.c.bf16 %v1257_v20, %v1253_v2  ;;  %v620_v58 = vmul.f32 %v9835_v35, %v9835_v35  ;;  %v518_v2 = vmul.f32 0.00390625, %v445_v62  ;;  %v621_v37 = vmul.f32 %v9847_v23, %v9847_v23  ;;  %v1261_v43 = vld [vmem:[%s14991_s1 + $0x708] sm:$0xff] }
  0xc2   : > { %v9860_v10 = vsub.f32 %v9372_v41, %v521_v21  ;;  %v9863_v1 = vsub.f32 %v9375_v42, %v521_v21  ;;  %v703_v26 = vadd.f32 %v628_v46, %v627_v0  ;;  %v619_v41 = vmul.f32 %v9832_v11, %v9832_v11 }
  0xc3   : > { %15580 = vst [vmem:[#allocation49_spill] sm:$0xff] %v9865_v55  ;;  %v460_v36 = vpop.xlane.xlu0 %459  ;;  %v9875_v42 = vpack.c.bf16 %v1256_v40, %v1252_v27  ;;  %7500 = vmatprep.subr.bf16.mxu1 %v9865_v55  ;;  %v1260_v40 = vld [vmem:[%s14991_s1 + $0x700] sm:$0xff]  ;;  %v9908_v55 = vsub.f32 %v9340_v29, %v517_v18 }
  0xc4   : > { %15579 = vst [vmem:[#allocation48_spill] sm:$0xff] %v9860_v10  ;;  %v523_v0 = vmul.f32 0.00390625, %v460_v36  ;;  %686 = vadd.xlane.f32.xlu1 %v685_v34  ;;  %704 = vadd.xlane.f32.xlu0 %v703_v26  ;;  %v631_v46 = vmul.f32 %v9860_v10, %v9860_v10  ;;  %v632_v21 = vmul.f32 %v9863_v1, %v9863_v1  ;;  %v1265_v34 = vld [vmem:[%s14991_s1 + $0x748] sm:$0xff]  ;;  %v1264_v36 = vld [vmem:[%s14991_s1 + $0x740] sm:$0xff]  ;;  %v457_v10 = vpop.xlane.xlu1 %456 }
  0xc5   : > { %15581 = vst [vmem:[#allocation50_spill] sm:$0xff] %v9875_v42  ;;  %7502 = vmatpush1.bf16.msra.mxu1 %v9875_v42  ;;  %v9899_v27 = vpack.c.bf16 %v1265_v34, %v1261_v43  ;;  %v691_v43 = vadd.f32 %v620_v58, %v619_v41  ;;  %v9922_v42 = vsub.f32 %v9348_v32, %v518_v2  ;;  %v1273_v41 = vld [vmem:[%s14991_s1 + $0x7c8] sm:$0xff] }
  0xc6   : > { %v9893_v20 = vsub.f32 %v9388_v47, %v523_v0  ;;  %v9896_v26 = vsub.f32 %v9391_v48, %v523_v0  ;;  %v709_v62 = vadd.f32 %v632_v21, %v631_v46  ;;  %v9911_v47 = vsub.f32 %v9343_v30, %v517_v18 }
  0xc7   : > { %15582 = vst [vmem:[#allocation51_spill] sm:$0xff] %v9899_v27  ;;  %v466_v48 = vpop.xlane.xlu0 %465  ;;  %v622_v0 = vmul.f32 %v9850_v24, %v9850_v24  ;;  %v9915_v46 = vpack.c.bf16 %v1264_v36, %v1260_v40  ;;  %v9925_v30 = vsub.f32 %v9351_v33, %v518_v2  ;;  %v520_v18 = vmul.f32 0.00390625, %v451_v16  ;;  %7504 = vmatprep.subr.bf16.mxu1 %v9899_v27  ;;  %v1268_v2 = vld [vmem:[%s14991_s1 + $0x780] sm:$0xff] }
  0xc8   : > { %v525_v21 = vmul.f32 0.00390625, %v466_v48  ;;  %689 = vadd.xlane.f32.xlu1 %v688_v12  ;;  %710 = vadd.xlane.f32.xlu0 %v709_v62  ;;  %v635_v34 = vmul.f32 %v9893_v20, %v9893_v20  ;;  %v636_v29 = vmul.f32 %v9896_v26, %v9896_v26  ;;  %v1269_v12 = vld [vmem:[%s14991_s1 + $0x788] sm:$0xff]  ;;  %v1272_v62 = vld [vmem:[%s14991_s1 + $0x7c0] sm:$0xff] }
  0xc9   : > { %15583 = vst [vmem:[#allocation52_spill] sm:$0xff] %v9915_v46  ;;  %7506 = vmatpush1.bf16.msra.mxu1 %v9915_v46  ;;  %v9941_v16 = vpack.c.bf16 %v1273_v41, %v1269_v12  ;;  %v694_v36 = vadd.f32 %v622_v0, %v621_v37  ;;  %v9953_v48 = vpack.c.bf16 %v1272_v62, %v1268_v2  ;;  %v924_v12 = vlaneseq  ;;  %v2774_v27 = vld [vmem:[%s14992_s2 + $0x4] sm:$0xf] }
  0xca   : > { %v9935_v58 = vsub.f32 %v9404_v53, %v525_v21  ;;  %v9938_v32 = vsub.f32 %v9407_v54, %v525_v21  ;;  %v715_v33 = vadd.f32 %v636_v29, %v635_v34  ;;  %v623_v53 = vmul.f32 %v9908_v55, %v9908_v55 }
  0xcb   : > { %15586 = vst [vmem:[#allocation55_spill] sm:$0xff] %v9941_v16  ;;  %v472_v40 = vpop.xlane.xlu0 %471  ;;  %v624_v54 = vmul.f32 %v9911_v47, %v9911_v47  ;;  %15587 = vst [vmem:[#allocation56_spill] sm:$0xff] %v9953_v48  ;;  %7508 = vmatprep.subr.bf16.mxu1 %v9941_v16  ;;  %v9967_v2 = vsub.f32 %v9364_v38, %v520_v18  ;;  %v522_v62 = vmul.f32 0.00390625, %v457_v10  ;;  %v463_v16 = vpop.xlane.xlu1 %462 }
  0xcc   : > { %15584 = vst [vmem:[#allocation53_spill] sm:$0xff] %v9935_v58  ;;  %15585 = vst [vmem:[#allocation54_spill] sm:$0xff] %v9938_v32  ;;  %v527_v21 = vmul.f32 0.00390625, %v472_v40  ;;  %692 = vadd.xlane.f32.xlu1 %v691_v43  ;;  %716 = vadd.xlane.f32.xlu0 %v715_v33  ;;  %v639_v34 = vmul.f32 %v9935_v58, %v9935_v58  ;;  %v640_v29 = vmul.f32 %v9938_v32, %v9938_v32 }
  0xcd   : > { %7510 = vmatpush1.bf16.msra.mxu1 %v9953_v48  ;;  %v9971_v33 = vsub.f32 %v9367_v39, %v520_v18  ;;  %v625_v40 = vmul.f32 %v9922_v42, %v9922_v42  ;;  %v629_v10 = vmul.f32 %v9967_v2, %v9967_v2  ;;  %v9987_v48 = vsub.f32 %v9380_v44, %v522_v62 }
  0xce   : > { %v9961_v37 = vsub.f32 %v9420_v59, %v527_v21  ;;  %v9964_v0 = vsub.f32 %v9423_v60, %v527_v21  ;;  %v721_v41 = vadd.f32 %v640_v29, %v639_v34  ;;  %v626_v59 = vmul.f32 %v9925_v30, %v9925_v30 }
  0xcf   : > { %v475_v43 = vpop.xlane.xlu0 %474  ;;  %v697_v60 = vadd.f32 %v624_v54, %v623_v53  ;;  %v9981_v34 = vshrl.u32 %v924_v12, 7  ;;  %v630_v53 = vmul.f32 %v9971_v33, %v9971_v33  ;;  %v1276_v54 = vld [vmem:[%s14992_s2] sm:$0xf] }
  0xd0   : > { %15588 = vst [vmem:[#allocation57_spill] sm:$0xff] %v9961_v37  ;;  %15589 = vst [vmem:[#allocation58_spill] sm:$0xff] %v9964_v0  ;;  %695 = vadd.xlane.f32.xlu1 %v694_v36  ;;  %722 = vadd.xlane.f32.xlu0 %v721_v41  ;;  %v643_v38 = vmul.f32 %v9961_v37, %v9961_v37  ;;  %v644_v21 = vmul.f32 %v9964_v0, %v9964_v0  ;;  %v524_v36 = vmul.f32 0.00390625, %v463_v16  ;;  %v1151_v41 = vld [vmem:[%s14991_s1 + $0x18] sm:$0xff]  ;;  %v469_v37 = vpop.xlane.xlu1 %468 }
  0xd1   : > { %v1288_v18 = vsub.s32 2, %v9981_v34  ;;  %v1292_v12 = vsub.s32 3, %v9981_v34  ;;  %v10002_v16 = vsub.f32 %v9383_v45, %v522_v62 }
  0xd2   : > { %v727_v39 = vadd.f32 %v644_v21, %v643_v38  ;;  %v1155_v38 = vld [vmem:[%s14991_s1 + $0x58] sm:$0xff]  ;;  %v700_v21 = vadd.f32 %v626_v59, %v625_v40  ;;  %v10024_v59 = vsub.f32 %v9396_v50, %v524_v36 }
  0xd3   : > { %v478_v29 = vpop.xlane.xlu0 %477  ;;  %v10004_v46 = vrot.slane %v1276_v54, %v1288_v18  ;;  %v10009_v0 = vrot.slane %v1276_v54, %v1292_v12  ;;  %v10011_v58 = vrot.slane %v2774_v27, %v1288_v18  ;;  %v10013_v32 = vrot.slane %v2774_v27, %v1292_v12 }
  0xd4   : > { %v529_v44 = vmul.f32 0.00390625, %v478_v29  ;;  %698 = vadd.xlane.f32.xlu1 %v697_v60  ;;  %728 = vadd.xlane.f32.xlu0 %v727_v39  ;;  %v10021_v62 = vpack.c.bf16 %v1155_v38, %v1151_v41  ;;  %v10027_v39 = vsub.f32 %v9399_v51, %v524_v36  ;;  %v706_v29 = vadd.f32 %v630_v53, %v629_v10 }
  0xd5   : > { %15590 = vst [vmem:[#allocation59_spill] sm:$0xff] %v10004_v46  ;;  %15591 = vst [vmem:[#allocation60_spill] sm:$0xff] %v10009_v0  ;;  %v633_v27 = vmul.f32 %v9987_v48, %v9987_v48  ;;  %v526_v18 = vmul.f32 0.00390625, %v469_v37  ;;  %v634_v54 = vmul.f32 %v10002_v16, %v10002_v16  ;;  %v528_v51 = vmul.f32 0.00390625, %v475_v43 }
  0xd6   : > { %15592 = vst [vmem:[#allocation61_spill] sm:$0xff] %v10011_v58  ;;  %15593 = vst [vmem:[#allocation62_spill] sm:$0xff] %v10013_v32  ;;  %v10016_v60 = vsub.f32 %v9438_v9, %v529_v44  ;;  %v10019_v45 = vsub.f32 %v9441_v13, %v529_v44  ;;  %7512 = vmatprep.subr.bf16.mxu1 %v10021_v62  ;;  %v637_v10 = vmul.f32 %v10024_v59, %v10024_v59  ;;  %v15601_v32 = vld [vmem:[#allocation4_spill] sm:$0xff] }
  0xd7   : > { %15594 = vst [vmem:[#allocation63_spill] sm:$0xff] %v10021_v62  ;;  %v481_v40 = vpop.xlane.xlu0 %480  ;;  %v638_v53 = vmul.f32 %v10027_v39, %v10027_v39  ;;  %v10043_v41 = vsub.f32 %v9412_v56, %v526_v18  ;;  %v10046_v37 = vsub.f32 %v9415_v57, %v526_v18  ;;  %v712_v38 = vadd.f32 %v634_v54, %v633_v27 }
  0xd8   : > { %701 = vadd.xlane.f32.xlu1 %v700_v21  ;;  %v647_v9 = vmul.f32 %v10016_v60, %v10016_v60  ;;  %v648_v13 = vmul.f32 %v10019_v45, %v10019_v45  ;;  %v10055_v21 = vsub.f32 %v9430_v63, %v528_v51 }
  0xd9   : > { %v718_v56 = vadd.f32 %v638_v53, %v637_v10  ;;  %v642_v63 = vmul.f32 %v10046_v37, %v10046_v37 }
  0xda   : > { %v733_v50 = vadd.f32 %v648_v13, %v647_v9  ;;  %v10058_v9 = vsub.f32 %v9433_v3, %v528_v51  ;;  %v645_v54 = vmul.f32 %v10055_v21, %v10055_v21  ;;  %v15595_v51 = vld [vmem:[#allocation2_spill] sm:$0xff] }
  0xdb   : > { %v484_v36 = vpop.xlane.xlu0 %483 }
  0xdc   : > { %v531_v12 = vmul.f32 0.00390625, %v484_v36  ;;  %707 = vadd.xlane.f32.xlu1 %v706_v29  ;;  %734 = vadd.xlane.f32.xlu0 %v733_v50  ;;  %v530_v29 = vmul.f32 0.00390625, %v481_v40  ;;  %v646_v50 = vmul.f32 %v10058_v9, %v10058_v9 }
  0xde   : > { %v10049_v44 = vsub.f32 %v9454_v28, %v531_v12  ;;  %v10052_v43 = vsub.f32 %v9457_v31, %v531_v12  ;;  %v641_v31 = vmul.f32 %v10043_v41, %v10043_v41  ;;  %v10069_v3 = vsub.f32 %v9446_v19, %v530_v29  ;;  %v15596_v12 = vld [vmem:[#allocation5_spill] sm:$0xff]  ;;  %v15598_v19 = vld [vmem:[#allocation6_spill] sm:$0xff] }
  0xdf   : > { %v487_v13 = vpop.xlane.xlu0 %486  ;;  %v10076_v36 = vsub.f32 %v15595_v51, %v530_v29  ;;  %v730_v0 = vadd.f32 %v646_v50, %v645_v54  ;;  %v15602_v51 = vld [vmem:[#allocation7_spill] sm:$0xff]  ;;  %v15603_v50 = vld [vmem:[#allocation8_spill] sm:$0xff] }
  0xe0   : > { %713 = vadd.xlane.f32.xlu1 %v712_v38  ;;  %v651_v57 = vmul.f32 %v10049_v44, %v10049_v44  ;;  %v652_v28 = vmul.f32 %v10052_v43, %v10052_v43  ;;  %v532_v40 = vmul.f32 0.00390625, %v487_v13  ;;  %v724_v53 = vadd.f32 %v642_v63, %v641_v31  ;;  %v15600_v13 = vld [vmem:[#allocation3_spill] sm:$0xff] }
  0xe1   : > { %v649_v29 = vmul.f32 %v10069_v3, %v10069_v3 }
  0xe2   : > { %v739_v27 = vadd.f32 %v652_v28, %v651_v57  ;;  %v10085_v28 = vsub.f32 %v15600_v13, %v532_v40  ;;  %v10088_v58 = vsub.f32 %v15601_v32, %v532_v40 }
  0xe3   : > { %v490_v18 = vpop.xlane.xlu0 %489 }
  0xe4   : > { %v533_v10 = vmul.f32 0.00390625, %v490_v18  ;;  %719 = vadd.xlane.f32.xlu1 %v718_v56  ;;  %740 = vadd.xlane.f32.xlu0 %v739_v27  ;;  %v650_v27 = vmul.f32 %v10076_v36, %v10076_v36  ;;  %v653_v54 = vmul.f32 %v10085_v28, %v10085_v28 }
  0xe6   : > { %v10079_v38 = vsub.f32 %v15596_v12, %v533_v10  ;;  %v10082_v57 = vsub.f32 %v15598_v19, %v533_v10  ;;  %v736_v12 = vadd.f32 %v650_v27, %v649_v29  ;;  %v15604_v19 = vld [vmem:[#allocation9_spill] sm:$0xff]  ;;  %v15608_v27 = vld [vmem:[#allocation11_spill] sm:$0xff] }
  0xe7   : > { %v493_v62 = vpop.xlane.xlu0 %492 }
  0xe8   : > { %15597 = vst [vmem:[#allocation2_spill] sm:$0xff] %v10079_v38  ;;  %15599 = vst [vmem:[#allocation5_spill] sm:$0xff] %v10082_v57  ;;  %v534_v56 = vmul.f32 0.00390625, %v493_v62  ;;  %725 = vadd.xlane.f32.xlu1 %v724_v53  ;;  %v655_v31 = vmul.f32 %v10079_v38, %v10079_v38  ;;  %v656_v63 = vmul.f32 %v10082_v57, %v10082_v57 }
  0xe9   : > { %v654_v62 = vmul.f32 %v10088_v58, %v10088_v58 }
  0xea   : > { %v745_v18 = vadd.f32 %v656_v63, %v655_v31  ;;  %v10099_v32 = vsub.f32 %v15602_v51, %v534_v56  ;;  %v10106_v10 = vsub.f32 %v15603_v50, %v534_v56  ;;  %v15606_v31 = vld [vmem:[#allocation10_spill] sm:$0xff] }
  0xeb   : > { %v496_v40 = vpop.xlane.xlu0 %495  ;;  %v742_v46 = vadd.f32 %v654_v62, %v653_v54 }
  0xec   : > { %v535_v53 = vmul.f32 0.00390625, %v496_v40  ;;  %731 = vadd.xlane.f32.xlu1 %v730_v0  ;;  %746 = vadd.xlane.f32.xlu0 %v745_v18  ;;  %v657_v38 = vmul.f32 %v10099_v32, %v10099_v32  ;;  %v658_v29 = vmul.f32 %v10106_v10, %v10106_v10  ;;  %v15610_v40 = vld [vmem:[#allocation12_spill] sm:$0xff] }
  0xee   : > { %v10109_v13 = vsub.f32 %v15604_v19, %v535_v53  ;;  %v10112_v63 = vsub.f32 %v15606_v31, %v535_v53 }
  0xef   : > { %v499_v51 = vpop.xlane.xlu0 %498 }
  0xf0   : > { %15605 = vst [vmem:[#allocation6_spill] sm:$0xff] %v10109_v13  ;;  %15607 = vst [vmem:[#allocation3_spill] sm:$0xff] %v10112_v63  ;;  %v536_v57 = vmul.f32 0.00390625, %v499_v51  ;;  %737 = vadd.xlane.f32.xlu1 %v736_v12  ;;  %v659_v56 = vmul.f32 %v10109_v13, %v10109_v13  ;;  %v660_v0 = vmul.f32 %v10112_v63, %v10112_v63  ;;  %v15612_v51 = vld [vmem:[#allocation13_spill] sm:$0xff] }
  0xf1   : > { %v748_v12 = vadd.f32 %v658_v29, %v657_v38 }
  0xf2   : > { %v10123_v18 = vsub.f32 %v15608_v27, %v536_v57  ;;  %v10126_v50 = vsub.f32 %v15610_v40, %v536_v57  ;;  %v751_v54 = vadd.f32 %v660_v0, %v659_v56  ;;  %v15614_v27 = vld [vmem:[#allocation14_spill] sm:$0xff]  ;;  %v15616_v0 = vld [vmem:[#allocation15_spill] sm:$0xff] }
  0xf3   : > { %v502_v62 = vpop.xlane.xlu0 %501 }
  0xf4   : > { %15609 = vst [vmem:[#allocation4_spill] sm:$0xff] %v10123_v18  ;;  %15611 = vst [vmem:[#allocation7_spill] sm:$0xff] %v10126_v50  ;;  %v537_v53 = vmul.f32 0.00390625, %v502_v62  ;;  %743 = vadd.xlane.f32.xlu1 %v742_v46  ;;  %752 = vadd.xlane.f32.xlu0 %v751_v54  ;;  %v661_v19 = vmul.f32 %v10123_v18, %v10123_v18  ;;  %v662_v31 = vmul.f32 %v10126_v50, %v10126_v50  ;;  %v15618_v54 = vld [vmem:[#allocation16_spill] sm:$0xff] }
  0xf5   : > { %v1158_v18 = vld [vmem:[%s14991_s1 + $0x90] sm:$0xff] }
  0xf6   : > { %v10133_v13 = vsub.f32 %v15612_v51, %v537_v53  ;;  %v10136_v63 = vsub.f32 %v15614_v27, %v537_v53  ;;  %v754_v56 = vadd.f32 %v662_v31, %v661_v19 }
  0xf7   : > { %v505_v57 = vpop.xlane.xlu0 %504 }
  0xf8   : > { %15613 = vst [vmem:[#allocation8_spill] sm:$0xff] %v10133_v13  ;;  %15615 = vst [vmem:[#allocation9_spill] sm:$0xff] %v10136_v63  ;;  %v538_v40 = vmul.f32 0.00390625, %v505_v57  ;;  %749 = vadd.xlane.f32.xlu1 %v748_v12  ;;  %v663_v46 = vmul.f32 %v10133_v13, %v10133_v13  ;;  %v664_v38 = vmul.f32 %v10136_v63, %v10136_v63 }
  0xfa   : > { %v10143_v29 = vsub.f32 %v15616_v0, %v538_v40  ;;  %v10146_v62 = vsub.f32 %v15618_v54, %v538_v40  ;;  %v757_v51 = vadd.f32 %v664_v38, %v663_v46  ;;  %v10156_v38 = vsub.s32 0, %v9981_v34 }
  0xfc   : > { %15617 = vst [vmem:[#allocation10_spill] sm:$0xff] %v10143_v29  ;;  %15619 = vst [vmem:[#allocation11_spill] sm:$0xff] %v10146_v62  ;;  %755 = vadd.xlane.f32.xlu1 %v754_v56  ;;  %758 = vadd.xlane.f32.xlu0 %v757_v51  ;;  %v665_v53 = vmul.f32 %v10143_v29, %v10143_v29  ;;  %v666_v12 = vmul.f32 %v10146_v62, %v10146_v62  ;;  %v10153_v56 = vsub.s32 1, %v9981_v34  ;;  %v341_v51 = vld [vmem:[%s14995_s5] sm:$0x3] }
  0xfd   : > { %15621 = vst [vmem:[#allocation13_spill] sm:$0xff] %v10156_v38 }
  0xfe   : > { %v760_v19 = vadd.f32 %v666_v12, %v665_v53  ;;  %15620 = vst [vmem:[#allocation12_spill] sm:$0xff] %v10153_v56 }
 0x100   : > { %761 = vadd.xlane.f32.xlu1 %v760_v19  ;;  %v10168_v19 = vrot.slane %v341_v51, %v10156_v38 }
 0x139   : > { %v669_v31 = vpop.xlane.xlu1 %668 }
 0x13a   : > { %v763_v27 = vmul.f32 0.00390625, %v669_v31 }
 0x13c   : > { %v795_v57 = vadd.f32 1e-05, %v763_v27 }
 0x13d   : > { %v672_v13 = vpop.xlane.xlu1 %671 }
 0x13e   : > { %8991 = vrsqrt.f32 %v795_v57  ;;  %v764_v0 = vmul.f32 0.00390625, %v672_v13  ;;  %v342_v13 = vld [vmem:[%s14996_s6] sm:$0x3] }
 0x140   : > { %v796_v63 = vadd.f32 1e-05, %v764_v0  ;;  %v10172_v0 = vrot.slane %v342_v13, %v10153_v56 }
 0x141   : > { %v675_v40 = vpop.xlane.xlu1 %674 }
 0x142   : > { %8993 = vrsqrt.f32 %v796_v63  ;;  %v765_v46 = vmul.f32 0.00390625, %v675_v40  ;;  %v10165_v63 = vrot.slane %v341_v51, %v10153_v56  ;;  %v15622_v40 = vld [vmem:[#allocation38_spill] sm:$0xff]  ;;  %v1154_v51 = vld [vmem:[%s14991_s1 + $0x50] sm:$0xff] }
 0x144   : > { %v797_v54 = vadd.f32 1e-05, %v765_v46 }
 0x145   : > { %v678_v53 = vpop.xlane.xlu1 %677 }
 0x146   : > { %8995 = vrsqrt.f32 %v797_v54  ;;  %v766_v12 = vmul.f32 0.00390625, %v678_v53  ;;  %v10176_v54 = vrot.slane %v342_v13, %v10156_v38  ;;  %v1150_v53 = vld [vmem:[%s14991_s1 + $0x10] sm:$0xff]  ;;  %v1163_v13 = vld [vmem:[%s14991_s1 + $0xd8] sm:$0xff] }
 0x147   : > { %v10192_v29 = vpack.c.bf16 %v1154_v51, %v1150_v53  ;;  %v1162_v53 = vld [vmem:[%s14991_s1 + $0xd0] sm:$0xff] }
 0x148   : > { %v8992_v34 = vpop.eup %8991  ;;  %v798_v31 = vadd.f32 1e-05, %v766_v12 }
 0x149   : > { %v681_v27 = vpop.xlane.xlu1 %680  ;;  %v860_v57 = vmul.f32 %v8992_v34, %v9714_v61  ;;  %v859_v46 = vmul.f32 %v8992_v34, %v15622_v40  ;;  %v1159_v34 = vld [vmem:[%s14991_s1 + $0x98] sm:$0xff]  ;;  %15623 = vst [vmem:[#allocation14_spill] sm:$0xff] %v10192_v29 }
 0x14a   : > { %8997 = vrsqrt.f32 %v798_v31  ;;  %v767_v12 = vmul.f32 0.00390625, %v681_v27 }
 0x14b   : > { %v935_v61 = vmul.f32 %v10165_v63, %v860_v57  ;;  %v934_v56 = vmul.f32 %v10168_v19, %v859_v46 }
 0x14c   : > { %v8994_v40 = vpop.eup %8993  ;;  %v799_v38 = vadd.f32 1e-05, %v767_v12  ;;  %v10208_v12 = vpack.c.bf16 %v1163_v13, %v1159_v34 }
 0x14d   : > { %v684_v62 = vpop.xlane.xlu1 %683  ;;  %v10195_v31 = vadd.f32 %v10172_v0, %v935_v61  ;;  %v10198_v27 = vadd.f32 %v10176_v54, %v934_v56  ;;  %v862_v57 = vmul.f32 %v8994_v40, %v9734_v6  ;;  %v861_v46 = vmul.f32 %v8994_v40, %v9731_v5  ;;  %v1167_v5 = vld [vmem:[%s14991_s1 + $0x118] sm:$0xff] }
 0x14e   : > { %8999 = vrsqrt.f32 %v799_v38  ;;  %v768_v51 = vmul.f32 0.00390625, %v684_v62  ;;  %15626 = vst [vmem:[#allocation38_spill] sm:$0xff] %v10208_v12  ;;  %v1171_v61 = vld [vmem:[%s14991_s1 + $0x158] sm:$0xff]  ;;  %v10220_v62 = vpack.c.bf16 %v1162_v53, %v1158_v18  ;;  %v1170_v18 = vld [vmem:[%s14991_s1 + $0x150] sm:$0xff] }
 0x14f   : > { %15624 = vst [vmem:[#allocation15_spill] sm:$0xff] %v10195_v31  ;;  %15625 = vst [vmem:[#allocation16_spill] sm:$0xff] %v10198_v27  ;;  %1362 = vmatprep.mubr.f32.mxu1 %v10195_v31  ;;  %v937_v56 = vmul.f32 %v10165_v63, %v862_v57  ;;  %v936_v6 = vmul.f32 %v10168_v19, %v861_v46 }
 0x150   : > { %v8996_v40 = vpop.eup %8995  ;;  %v800_v50 = vadd.f32 1e-05, %v768_v51  ;;  %1363 = vmatmul.mubr.f32.vlgmr.msra.gmra.mrb[0].mxu1 %v10198_v27  ;;  %15627 = vst [vmem:[#allocation64_spill] sm:$0xff] %v10220_v62  ;;  %v1166_v51 = vld [vmem:[%s14991_s1 + $0x110] sm:$0xff] }
 0x151   : > { %7514 = vmatpush1.bf16.msra.mxu1 %v10192_v29  ;;  %v687_v38 = vpop.xlane.xlu1 %686  ;;  %v10224_v34 = vadd.f32 %v10172_v0, %v937_v56  ;;  %v10227_v13 = vadd.f32 %v10176_v54, %v936_v6  ;;  %v864_v57 = vmul.f32 %v8996_v40, %v9720_v25  ;;  %v863_v46 = vmul.f32 %v8996_v40, %v9717_v7  ;;  %v1175_v6 = vld [vmem:[%s14991_s1 + $0x198] sm:$0xff] }
 0x152   : > { %9001 = vrsqrt.f32 %v800_v50  ;;  %v769_v53 = vmul.f32 0.00390625, %v687_v38  ;;  %7516 = vmatprep.subr.bf16.mxu1 %v10208_v12  ;;  %v10238_v56 = vpack.c.bf16 %v1171_v61, %v1167_v5  ;;  %v1179_v40 = vld [vmem:[%s14991_s1 + $0x1d8] sm:$0xff]  ;;  %v10250_v5 = vpack.c.bf16 %v1170_v18, %v1166_v51  ;;  %v1178_v51 = vld [vmem:[%s14991_s1 + $0x1d0] sm:$0xff] }
 0x153   : > { %15628 = vst [vmem:[#allocation65_spill] sm:$0xff] %v10224_v34  ;;  %15629 = vst [vmem:[#allocation66_spill] sm:$0xff] %v10227_v13  ;;  %1368 = vmatprep.mubr.f32.mxu1 %v10224_v34  ;;  %v939_v25 = vmul.f32 %v10165_v63, %v864_v57  ;;  %v938_v7 = vmul.f32 %v10168_v19, %v863_v46 }
 0x154   : > { %15630 = vst [vmem:[#allocation67_spill] sm:$0xff] %v10238_v56  ;;  %v8998_v50 = vpop.eup %8997  ;;  %v801_v38 = vadd.f32 1e-05, %v769_v53  ;;  %1369 = vmatmul.mubr.f32.gmra.mrb[2].mxu1 %v10227_v13  ;;  %15631 = vst [vmem:[#allocation68_spill] sm:$0xff] %v10250_v5  ;;  %v1174_v53 = vld [vmem:[%s14991_s1 + $0x190] sm:$0xff] }
 0x155   : > { %v690_v61 = vpop.xlane.xlu1 %689  ;;  %v10253_v12 = vadd.f32 %v10172_v0, %v939_v25  ;;  %v10256_v57 = vadd.f32 %v10176_v54, %v938_v7  ;;  %7518 = vmatpush1.bf16.msra.mxu1 %v10220_v62  ;;  %v866_v46 = vmul.f32 %v8998_v50, %v9744_v49  ;;  %v865_v29 = vmul.f32 %v8998_v50, %v9737_v52  ;;  %v1183_v7 = vld [vmem:[%s14991_s1 + $0x218] sm:$0xff]  ;;  %v15638_v13 = vld [vmem:[#allocation40_spill] sm:$0xff] }
 0x156   : > { %9003 = vrsqrt.f32 %v801_v38  ;;  %v770_v18 = vmul.f32 0.00390625, %v690_v61  ;;  %7520 = vmatprep.subr.bf16.mxu1 %v10238_v56  ;;  %v10268_v25 = vpack.c.bf16 %v1179_v40, %v1175_v6  ;;  %v1187_v50 = vld [vmem:[%s14991_s1 + $0x258] sm:$0xff]  ;;  %v10280_v6 = vpack.c.bf16 %v1178_v51, %v1174_v53  ;;  %v705_v40 = vpop.xlane.xlu0 %704  ;;  %v1186_v53 = vld [vmem:[%s14991_s1 + $0x250] sm:$0xff] }
 0x157   : > { %15632 = vst [vmem:[#allocation69_spill] sm:$0xff] %v10253_v12  ;;  %15633 = vst [vmem:[#allocation70_spill] sm:$0xff] %v10256_v57  ;;  %1374 = vmatprep.mubr.f32.mxu1 %v10253_v12  ;;  %v941_v49 = vmul.f32 %v10165_v63, %v866_v46  ;;  %v940_v52 = vmul.f32 %v10168_v19, %v865_v29  ;;  %v15637_v62 = vld [vmem:[#allocation41_spill] sm:$0xff] }
 0x158   : > { %15634 = vst [vmem:[#allocation71_spill] sm:$0xff] %v10268_v25  ;;  %v9000_v38 = vpop.eup %8999  ;;  %v802_v61 = vadd.f32 1e-05, %v770_v18  ;;  %1375 = vmatmul.mubr.f32.gmra.mrb[4].mxu1 %v10256_v57  ;;  %15635 = vst [vmem:[#allocation72_spill] sm:$0xff] %v10280_v6  ;;  %v1182_v18 = vld [vmem:[%s14991_s1 + $0x210] sm:$0xff]  ;;  %v15643_v57 = vld [vmem:[#allocation42_spill] sm:$0xff] }
 0x159   : > { %v693_v56 = vpop.xlane.xlu1 %692  ;;  %v10283_v46 = vadd.f32 %v10172_v0, %v941_v49  ;;  %v10286_v29 = vadd.f32 %v10176_v54, %v940_v52  ;;  %v868_v12 = vmul.f32 %v9000_v38, %v15637_v62  ;;  %v867_v34 = vmul.f32 %v9000_v38, %v15638_v13  ;;  %7522 = vmatpush1.bf16.msra.mxu1 %v10250_v5  ;;  %v1191_v52 = vld [vmem:[%s14991_s1 + $0x298] sm:$0xff] }
 0x15a   : > { %9005 = vrsqrt.f32 %v802_v61  ;;  %v771_v51 = vmul.f32 0.00390625, %v693_v56  ;;  %7524 = vmatprep.subr.bf16.mxu1 %v10268_v25  ;;  %v10298_v49 = vpack.c.bf16 %v1187_v50, %v1183_v7  ;;  %v1195_v38 = vld [vmem:[%s14991_s1 + $0x2d8] sm:$0xff]  ;;  %v775_v56 = vmul.f32 0.00390625, %v705_v40  ;;  %v15642_v25 = vld [vmem:[#allocation43_spill] sm:$0xff]  ;;  %v1190_v40 = vld [vmem:[%s14991_s1 + $0x290] sm:$0xff] }
 0x15b   : > { %15636 = vst [vmem:[#allocation73_spill] sm:$0xff] %v10283_v46  ;;  %1380 = vmatprep.mubr.f32.mxu1 %v10283_v46  ;;  %v943_v62 = vmul.f32 %v10165_v63, %v868_v12  ;;  %v942_v13 = vmul.f32 %v10168_v19, %v867_v34  ;;  %v10310_v7 = vpack.c.bf16 %v1186_v53, %v1182_v18  ;;  %v1194_v18 = vld [vmem:[%s14991_s1 + $0x2d0] sm:$0xff] }
 0x15c   : > { %15639 = vst [vmem:[#allocation41_spill] sm:$0xff] %v10298_v49  ;;  %v9002_v61 = vpop.eup %9001  ;;  %v803_v5 = vadd.f32 1e-05, %v771_v51  ;;  %1381 = vmatmul.mubr.f32.gmra.mrb[6].mxu1 %v10286_v29  ;;  %v10328_v51 = vpack.c.bf16 %v1195_v38, %v1191_v52  ;;  %v10340_v52 = vpack.c.bf16 %v1194_v18, %v1190_v40  ;;  %v711_v38 = vpop.xlane.xlu0 %710  ;;  %v1202_v40 = vld [vmem:[%s14991_s1 + $0x350] sm:$0xff] }
 0x15d   : > { %15640 = vst [vmem:[#allocation40_spill] sm:$0xff] %v10310_v7  ;;  %v696_v50 = vpop.xlane.xlu1 %695  ;;  %v10313_v12 = vadd.f32 %v10172_v0, %v943_v62  ;;  %v10316_v34 = vadd.f32 %v10176_v54, %v942_v13  ;;  %v870_v46 = vmul.f32 %v9002_v61, %v15642_v25  ;;  %v869_v27 = vmul.f32 %v9002_v61, %v15643_v57  ;;  %v1199_v62 = vld [vmem:[%s14991_s1 + $0x318] sm:$0xff] }
 0x15e   : > { %7526 = vmatpush1.bf16.msra.mxu1 %v10280_v6  ;;  %9007 = vrsqrt.f32 %v803_v5  ;;  %v772_v53 = vmul.f32 0.00390625, %v696_v50  ;;  %15644 = vst [vmem:[#allocation43_spill] sm:$0xff] %v10328_v51  ;;  %v1203_v13 = vld [vmem:[%s14991_s1 + $0x358] sm:$0xff]  ;;  %v807_v61 = vadd.f32 1e-05, %v775_v56  ;;  %15645 = vst [vmem:[#allocation42_spill] sm:$0xff] %v10340_v52 }
 0x15f   : > { %15641 = vst [vmem:[#allocation74_spill] sm:$0xff] %v10313_v12  ;;  %7528 = vmatprep.subr.bf16.mxu1 %v10298_v49  ;;  %1386 = vmatprep.mubr.f32.mxu1 %v10313_v12  ;;  %v945_v57 = vmul.f32 %v10165_v63, %v870_v46  ;;  %v944_v25 = vmul.f32 %v10168_v19, %v869_v27  ;;  %v1198_v56 = vld [vmem:[%s14991_s1 + $0x310] sm:$0xff] }
 0x160   : > { %v9004_v5 = vpop.eup %9003  ;;  %v804_v50 = vadd.f32 1e-05, %v772_v53  ;;  %1387 = vmatmul.mubr.f32.gmra.mrb[8].mxu1 %v10316_v34  ;;  %v10358_v53 = vpack.c.bf16 %v1203_v13, %v1199_v62  ;;  %v10370_v62 = vpack.c.bf16 %v1202_v40, %v1198_v56 }
 0x161   : > { %v699_v49 = vpop.xlane.xlu1 %698  ;;  %v10343_v46 = vadd.f32 %v10172_v0, %v945_v57  ;;  %v10346_v27 = vadd.f32 %v10176_v54, %v944_v25  ;;  %v872_v6 = vmul.f32 %v9004_v5, %v9777_v15  ;;  %v871_v12 = vmul.f32 %v9004_v5, %v9774_v14  ;;  %v1207_v57 = vld [vmem:[%s14991_s1 + $0x398] sm:$0xff] }
 0x162   : > { %7530 = vmatpush1.bf16.msra.mxu1 %v10310_v7  ;;  %9009 = vrsqrt.f32 %v804_v50  ;;  %v773_v18 = vmul.f32 0.00390625, %v699_v49  ;;  %15646 = vst [vmem:[#allocation75_spill] sm:$0xff] %v10358_v53  ;;  %v1211_v25 = vld [vmem:[%s14991_s1 + $0x3d8] sm:$0xff]  ;;  %v777_v49 = vmul.f32 0.00390625, %v711_v38  ;;  %15647 = vst [vmem:[#allocation76_spill] sm:$0xff] %v10370_v62  ;;  %v1210_v38 = vld [vmem:[%s14991_s1 + $0x3d0] sm:$0xff] }
 0x163   : > { %7532 = vmatprep.subr.bf16.mxu1 %v10328_v51  ;;  %1392 = vmatprep.mubr.f32.mxu1 %v10343_v46  ;;  %v947_v14 = vmul.f32 %v10165_v63, %v872_v6  ;;  %v946_v15 = vmul.f32 %v10168_v19, %v871_v12  ;;  %9011 = vrsqrt.f32 %v807_v61  ;;  %v1206_v61 = vld [vmem:[%s14991_s1 + $0x390] sm:$0xff]  ;;  %v10388_v40 = vpack.c.bf16 %v1211_v25, %v1207_v57 }
 0x164   : > { %v9006_v5 = vpop.eup %9005  ;;  %v805_v50 = vadd.f32 1e-05, %v773_v18  ;;  %1393 = vmatmul.mubr.f32.gmra.mrb[10].mxu1 %v10346_v27  ;;  %v1215_v18 = vld [vmem:[%s14991_s1 + $0x418] sm:$0xff]  ;;  %v10400_v57 = vpack.c.bf16 %v1210_v38, %v1206_v61  ;;  %v1218_v61 = vld [vmem:[%s14991_s1 + $0x450] sm:$0xff] }
 0x165   : > { %v702_v13 = vpop.xlane.xlu1 %701  ;;  %v10373_v6 = vadd.f32 %v10172_v0, %v947_v14  ;;  %v10376_v12 = vadd.f32 %v10176_v54, %v946_v15  ;;  %v874_v51 = vmul.f32 %v9006_v5, %v9799_v22  ;;  %v873_v7 = vmul.f32 %v9006_v5, %v9788_v17  ;;  %15648 = vst [vmem:[#allocation77_spill] sm:$0xff] %v10388_v40  ;;  %v1219_v14 = vld [vmem:[%s14991_s1 + $0x458] sm:$0xff] }
 0x166   : > { %7534 = vmatpush1.bf16.msra.mxu1 %v10340_v52  ;;  %9013 = vrsqrt.f32 %v805_v50  ;;  %v774_v56 = vmul.f32 0.00390625, %v702_v13  ;;  %v809_v5 = vadd.f32 1e-05, %v777_v49  ;;  %15649 = vst [vmem:[#allocation78_spill] sm:$0xff] %v10400_v57  ;;  %v1214_v49 = vld [vmem:[%s14991_s1 + $0x410] sm:$0xff] }
 0x167   : > { %7536 = vmatprep.subr.bf16.mxu1 %v10358_v53  ;;  %1398 = vmatprep.mubr.f32.mxu1 %v10373_v6  ;;  %v949_v17 = vmul.f32 %v10165_v63, %v874_v51  ;;  %v948_v22 = vmul.f32 %v10168_v19, %v873_v7 }
 0x168   : > { %v9008_v15 = vpop.eup %9007  ;;  %v806_v50 = vadd.f32 1e-05, %v774_v56  ;;  %1399 = vmatmul.mubr.f32.gmra.mrb[12].mxu1 %v10376_v12  ;;  %v10418_v56 = vpack.c.bf16 %v1219_v14, %v1215_v18  ;;  %v10430_v18 = vpack.c.bf16 %v1218_v61, %v1214_v49  ;;  %v1226_v49 = vld [vmem:[%s14991_s1 + $0x4d0] sm:$0xff] }
 0x169   : > { %v708_v25 = vpop.xlane.xlu1 %707  ;;  %v10403_v51 = vadd.f32 %v10172_v0, %v949_v17  ;;  %v10406_v7 = vadd.f32 %v10176_v54, %v948_v22  ;;  %v876_v13 = vmul.f32 %v9008_v15, %v9835_v35  ;;  %v875_v53 = vmul.f32 %v9008_v15, %v9832_v11  ;;  %v717_v17 = vpop.xlane.xlu0 %716  ;;  %v1223_v22 = vld [vmem:[%s14991_s1 + $0x498] sm:$0xff] }
 0x16a   : > { %7538 = vmatpush1.bf16.msra.mxu1 %v10370_v62  ;;  %9015 = vrsqrt.f32 %v806_v50  ;;  %v776_v38 = vmul.f32 0.00390625, %v708_v25  ;;  %15650 = vst [vmem:[#allocation79_spill] sm:$0xff] %v10418_v56  ;;  %v1227_v15 = vld [vmem:[%s14991_s1 + $0x4d8] sm:$0xff]  ;;  %15651 = vst [vmem:[#allocation80_spill] sm:$0xff] %v10430_v18 }
 0x16b   : > { %7540 = vmatprep.subr.bf16.mxu1 %v10388_v40  ;;  %1404 = vmatprep.mubr.f32.mxu1 %v10403_v51  ;;  %v951_v11 = vmul.f32 %v10165_v63, %v876_v13  ;;  %v950_v35 = vmul.f32 %v10168_v19, %v875_v53  ;;  %9017 = vrsqrt.f32 %v809_v5  ;;  %v1222_v5 = vld [vmem:[%s14991_s1 + $0x490] sm:$0xff] }
 0x16c   : > { %v9010_v50 = vpop.eup %9009  ;;  %v808_v25 = vadd.f32 1e-05, %v776_v38  ;;  %1405 = vmatmul.mubr.f32.gmra.mrb[14].mxu1 %v10406_v7  ;;  %v779_v38 = vmul.f32 0.00390625, %v717_v17  ;;  %v1235_v17 = vld [vmem:[%s14991_s1 + $0x558] sm:$0xff] }
 0x16d   : > { %v714_v14 = vpop.xlane.xlu1 %713  ;;  %v10433_v13 = vadd.f32 %v10172_v0, %v951_v11  ;;  %v10436_v53 = vadd.f32 %v10176_v54, %v950_v35  ;;  %v878_v40 = vmul.f32 %v9010_v50, %v9850_v24  ;;  %v877_v62 = vmul.f32 %v9010_v50, %v9847_v23  ;;  %v9012_v61 = vpop.eup %9011  ;;  %v1231_v50 = vld [vmem:[%s14991_s1 + $0x518] sm:$0xff] }
 0x16e   : > { %7542 = vmatpush1.bf16.msra.mxu1 %v10400_v57  ;;  %9019 = vrsqrt.f32 %v808_v25  ;;  %v778_v11 = vmul.f32 0.00390625, %v714_v14  ;;  %v10448_v35 = vpack.c.bf16 %v1227_v15, %v1223_v22  ;;  %v10460_v22 = vpack.c.bf16 %v1226_v49, %v1222_v5  ;;  %v723_v15 = vpop.xlane.xlu0 %722  ;;  %v1234_v5 = vld [vmem:[%s14991_s1 + $0x550] sm:$0xff] }
 0x16f   : > { %15652 = vst [vmem:[#allocation81_spill] sm:$0xff] %v10436_v53  ;;  %7544 = vmatprep.subr.bf16.mxu1 %v10418_v56  ;;  %1410 = vmatprep.mubr.f32.mxu1 %v10433_v13  ;;  %v953_v23 = vmul.f32 %v10165_v63, %v878_v40  ;;  %v952_v24 = vmul.f32 %v10168_v19, %v877_v62  ;;  %v811_v49 = vadd.f32 1e-05, %v779_v38 }
 0x170   : > { %15653 = vst [vmem:[#allocation82_spill] sm:$0xff] %v10448_v35  ;;  %v9014_v25 = vpop.eup %9013  ;;  %v810_v14 = vadd.f32 1e-05, %v778_v11  ;;  %1411 = vmatmul.mubr.f32.gmra.mrb[16].mxu1 %v10436_v53  ;;  %15654 = vst [vmem:[#allocation83_spill] sm:$0xff] %v10460_v22  ;;  %v1230_v11 = vld [vmem:[%s14991_s1 + $0x510] sm:$0xff] }
 0x171   : > { %v720_v56 = vpop.xlane.xlu1 %719  ;;  %v10463_v40 = vadd.f32 %v10172_v0, %v953_v23  ;;  %v10466_v62 = vadd.f32 %v10176_v54, %v952_v24  ;;  %v880_v57 = vmul.f32 %v9014_v25, %v9911_v47  ;;  %v879_v52 = vmul.f32 %v9014_v25, %v9908_v55 }
 0x172   : > { %7546 = vmatpush1.bf16.msra.mxu1 %v10430_v18  ;;  %9021 = vrsqrt.f32 %v810_v14  ;;  %v780_v23 = vmul.f32 0.00390625, %v720_v56  ;;  %v10478_v24 = vpack.c.bf16 %v1235_v17, %v1231_v50  ;;  %v884_v25 = vmul.f32 %v9012_v61, %v9819_v8  ;;  %v1239_v18 = vld [vmem:[%s14991_s1 + $0x598] sm:$0xff] }
 0x173   : > { %15655 = vst [vmem:[#allocation84_spill] sm:$0xff] %v10463_v40  ;;  %15656 = vst [vmem:[#allocation85_spill] sm:$0xff] %v10466_v62  ;;  %7548 = vmatprep.subr.bf16.mxu1 %v10448_v35  ;;  %1416 = vmatprep.mubr.f32.mxu1 %v10463_v40  ;;  %v955_v55 = vmul.f32 %v10165_v63, %v880_v57  ;;  %v954_v47 = vmul.f32 %v10168_v19, %v879_v52  ;;  %v1243_v56 = vld [vmem:[%s14991_s1 + $0x5d8] sm:$0xff]  ;;  %v781_v14 = vmul.f32 0.00390625, %v723_v15  ;;  %v1238_v52 = vld [vmem:[%s14991_s1 + $0x590] sm:$0xff] }
 0x174   : > { %15657 = vst [vmem:[#allocation86_spill] sm:$0xff] %v10478_v24  ;;  %v9016_v38 = vpop.eup %9015  ;;  %1417 = vmatmul.mubr.f32.gmra.mrb[18].mxu1 %v10466_v62  ;;  %v10491_v50 = vpack.c.bf16 %v1234_v5, %v1230_v11  ;;  %v1242_v15 = vld [vmem:[%s14991_s1 + $0x5d0] sm:$0xff]  ;;  %v1941_v11 = vld [vmem:[%s14993_s3 + $0x8] sm:$0xff]  ;;  %v1943_v5 = vld [vmem:[%s14993_s3 + $0x18] sm:$0xff]  ;;  %9023 = vrsqrt.f32 %v811_v49  ;;  %v959_v40 = vmul.f32 %v10165_v63, %v884_v25 }
 0x175   : > { %v10497_v8 = vadd.f32 %v10172_v0, %v955_v55  ;;  %v10500_v57 = vadd.f32 %v10176_v54, %v954_v47  ;;  %v882_v17 = vmul.f32 %v9016_v38, %v9925_v30  ;;  %v881_v35 = vmul.f32 %v9016_v38, %v9922_v42  ;;  %v9018_v55 = vpop.eup %9017  ;;  %v726_v38 = vpop.xlane.xlu1 %725 }
 0x176   : > { %15658 = vst [vmem:[#allocation87_spill] sm:$0xff] %v10491_v50  ;;  %7550 = vmatpush1.bf16.msra.mxu1 %v10460_v22  ;;  %v812_v47 = vadd.f32 1e-05, %v780_v23  ;;  %v883_v30 = vmul.f32 %v9012_v61, %v9816_v4  ;;  %v10516_v42 = vpack.c.bf16 %v1243_v56, %v1239_v18  ;;  %v10523_v49 = vpack.c.bf16 %v1242_v15, %v1238_v52  ;;  %v1247_v4 = vld [vmem:[%s14991_s1 + $0x618] sm:$0xff]  ;;  %v729_v56 = vpop.xlane.xlu0 %728  ;;  %v1940_v15 = vld [vmem:[%s14993_s3] sm:$0xff] }
 0x177   : > { %15659 = vst [vmem:[#allocation88_spill] sm:$0xff] %v10497_v8  ;;  %15660 = vst [vmem:[#allocation89_spill] sm:$0xff] %v10500_v57  ;;  %7552 = vmatprep.subr.bf16.mxu1 %v10478_v24  ;;  %1422 = vmatprep.mubr.f32.mxu1 %v10497_v8  ;;  %v957_v22 = vmul.f32 %v10165_v63, %v882_v17  ;;  %v956_v62 = vmul.f32 %v10168_v19, %v881_v35  ;;  %v1251_v18 = vld [vmem:[%s14991_s1 + $0x658] sm:$0xff]  ;;  %v813_v23 = vadd.f32 1e-05, %v781_v14  ;;  %v1246_v17 = vld [vmem:[%s14991_s1 + $0x610] sm:$0xff] }
 0x178   : > { %15661 = vst [vmem:[#allocation90_spill] sm:$0xff] %v10516_v42  ;;  %v9020_v53 = vpop.eup %9019  ;;  %1423 = vmatmul.mubr.f32.gmra.mrb[20].mxu1 %v10500_v57  ;;  %15662 = vst [vmem:[#allocation91_spill] sm:$0xff] %v10523_v49  ;;  %v10531_v61 = vpack.c.bf16 %v1943_v5, %v1941_v11  ;;  %9025 = vrsqrt.f32 %v812_v47  ;;  %v782_v14 = vmul.f32 0.00390625, %v726_v38  ;;  %v1250_v11 = vld [vmem:[%s14991_s1 + $0x650] sm:$0xff]  ;;  %v1255_v5 = vld [vmem:[%s14991_s1 + $0x698] sm:$0xff]  ;;  %v888_v47 = vmul.f32 %v9018_v55, %v9863_v1 }
 0x179   : > { %v10534_v35 = vadd.f32 %v10172_v0, %v957_v22  ;;  %v10537_v25 = vadd.f32 %v10176_v54, %v956_v62  ;;  %v886_v52 = vmul.f32 %v9020_v53, %v9971_v33  ;;  %v1942_v22 = vld [vmem:[%s14993_s3 + $0x10] sm:$0xff]  ;;  %v958_v62 = vmul.f32 %v10168_v19, %v883_v30 }
 0x17a   : > { %15663 = vst [vmem:[#allocation92_spill] sm:$0xff] %v10531_v61  ;;  %7554 = vmatpush1.bf16.msra.mxu1 %v10491_v50  ;;  %v885_v33 = vmul.f32 %v9020_v53, %v9967_v2  ;;  %v1259_v50 = vld [vmem:[%s14991_s1 + $0x6d8] sm:$0xff]  ;;  %7576 = vmatprep.subr.bf16.mxu0 %v10531_v61  ;;  %v10565_v2 = vadd.f32 %v10172_v0, %v959_v40  ;;  %v1945_v61 = vld [vmem:[%s14993_s3 + $0x28] sm:$0xff]  ;;  %9027 = vrsqrt.f32 %v813_v23 }
 0x17b   : > { %15664 = vst [vmem:[#allocation93_spill] sm:$0xff] %v10534_v35  ;;  %15665 = vst [vmem:[#allocation94_spill] sm:$0xff] %v10537_v25  ;;  %7556 = vmatprep.subr.bf16.mxu1 %v10516_v42  ;;  %1428 = vmatprep.mubr.f32.mxu1 %v10534_v35  ;;  %v961_v53 = vmul.f32 %v10165_v63, %v886_v52  ;;  %v10569_v30 = vpack.c.bf16 %v1251_v18, %v1247_v4  ;;  %v783_v42 = vmul.f32 0.00390625, %v729_v56  ;;  %v1947_v40 = vld [vmem:[%s14993_s3 + $0x38] sm:$0xff]  ;;  %v15669_v52 = vld [vmem:[#allocation48_spill] sm:$0xff] }
 0x17c   : > { %15666 = vst [vmem:[#allocation95_spill] sm:$0xff] %v10565_v2  ;;  %v9022_v38 = vpop.eup %9021  ;;  %1429 = vmatmul.mubr.f32.gmra.mrb[22].mxu1 %v10537_v25  ;;  %v10572_v24 = vpack.c.bf16 %v1942_v22, %v1940_v15  ;;  %v887_v1 = vmul.f32 %v9018_v55, %v15669_v52  ;;  %v10582_v4 = vpack.c.bf16 %v1250_v11, %v1246_v17  ;;  %v1254_v56 = vld [vmem:[%s14991_s1 + $0x690] sm:$0xff]  ;;  %v1944_v15 = vld [vmem:[%s14993_s3 + $0x20] sm:$0xff]  ;;  %v1263_v11 = vld [vmem:[%s14991_s1 + $0x718] sm:$0xff] }
 0x17d   : > { %15667 = vst [vmem:[#allocation96_spill] sm:$0xff] %v10569_v30  ;;  %1434 = vmatprep.mubr.f32.mxu1 %v10565_v2  ;;  %v10584_v18 = vpack.c.bf16 %v1259_v50, %v1255_v5  ;;  %v1946_v22 = vld [vmem:[%s14993_s3 + $0x30] sm:$0xff]  ;;  %v814_v2 = vadd.f32 1e-05, %v782_v14  ;;  %v10596_v55 = vadd.f32 %v10176_v54, %v958_v62  ;;  %v960_v50 = vmul.f32 %v10168_v19, %v885_v33  ;;  %v1267_v23 = vld [vmem:[%s14991_s1 + $0x758] sm:$0xff]  ;;  %v732_v14 = vpop.xlane.xlu1 %731 }
 0x17e   : > { %15668 = vst [vmem:[#allocation97_spill] sm:$0xff] %v10572_v24  ;;  %15670 = vst [vmem:[#allocation48_spill] sm:$0xff] %v10582_v4  ;;  %7558 = vmatpush1.bf16.msra.mxu1 %v10523_v49  ;;  %v1258_v17 = vld [vmem:[%s14991_s1 + $0x6d0] sm:$0xff]  ;;  %7578 = vmatpush1.bf16.msra.mxu0 %v10572_v24  ;;  %v10611_v62 = vadd.f32 %v10172_v0, %v961_v53  ;;  %v963_v33 = vmul.f32 %v10165_v63, %v888_v47  ;;  %v9024_v49 = vpop.eup %9023  ;;  %v815_v25 = vadd.f32 1e-05, %v783_v42  ;;  %v735_v47 = vpop.xlane.xlu0 %734 }
 0x17f   : > { %15671 = vst [vmem:[#allocation98_spill] sm:$0xff] %v10584_v18  ;;  %v890_v5 = vmul.f32 %v9022_v38, %v10002_v16  ;;  %7560 = vmatprep.subr.bf16.mxu1 %v10569_v30  ;;  %v10616_v52 = vpack.c.bf16 %v1947_v40, %v1945_v61  ;;  %v10619_v35 = vpack.c.bf16 %v1946_v22, %v1944_v15  ;;  %9029 = vrsqrt.f32 %v814_v2  ;;  %v1262_v2 = vld [vmem:[%s14991_s1 + $0x710] sm:$0xff] }
 0x180   : > { %1435 = vmatmul.mubr.f32.gmra.mrb[24].mxu1 %v10596_v55  ;;  %v962_v24 = vmul.f32 %v10168_v19, %v887_v1  ;;  %v10623_v53 = vpack.c.bf16 %v1258_v17, %v1254_v56  ;;  %v10625_v57 = vpack.c.bf16 %v1267_v23, %v1263_v11  ;;  %v784_v16 = vmul.f32 0.00390625, %v732_v14  ;;  %v1270_v22 = vld [vmem:[%s14991_s1 + $0x790] sm:$0xff]  ;;  %v1948_v23 = vld [vmem:[%s14993_s3 + $0x40] sm:$0xff] }
 0x181   : > { %15672 = vst [vmem:[#allocation99_spill] sm:$0xff] %v10616_v52  ;;  %15673 = vst [vmem:[#allocation100_spill] sm:$0xff] %v10619_v35  ;;  %1440 = vmatprep.mubr.f32.mxu1 %v10611_v62  ;;  %v10628_v61 = vadd.f32 %v10176_v54, %v960_v50  ;;  %v889_v42 = vmul.f32 %v9022_v38, %v9987_v48  ;;  %7580 = vmatprep.subr.bf16.mxu0 %v10616_v52  ;;  %v1266_v48 = vld [vmem:[%s14991_s1 + $0x750] sm:$0xff]  ;;  %v1271_v38 = vld [vmem:[%s14991_s1 + $0x798] sm:$0xff]  ;;  %9031 = vrsqrt.f32 %v815_v25 }
 0x182   : > { %15674 = vst [vmem:[#allocation101_spill] sm:$0xff] %v10623_v53  ;;  %15675 = vst [vmem:[#allocation102_spill] sm:$0xff] %v10625_v57  ;;  %7562 = vmatpush1.bf16.msra.mxu1 %v10582_v4  ;;  %v10634_v40 = vadd.f32 %v10172_v0, %v963_v33  ;;  %v965_v1 = vmul.f32 %v10165_v63, %v890_v5  ;;  %v892_v56 = vmul.f32 %v9024_v49, %v9896_v26  ;;  %v9026_v15 = vpop.eup %9025  ;;  %v1275_v26 = vld [vmem:[%s14991_s1 + $0x7d8] sm:$0xff]  ;;  %v1949_v50 = vld [vmem:[%s14993_s3 + $0x48] sm:$0xff] }
 0x183   : > { %15676 = vst [vmem:[#allocation103_spill] sm:$0xff] %v10628_v61  ;;  %7564 = vmatprep.subr.bf16.mxu1 %v10584_v18  ;;  %7582 = vmatpush1.bf16.msra.mxu0 %v10619_v35  ;;  %v785_v17 = vmul.f32 0.00390625, %v735_v47  ;;  %v891_v11 = vmul.f32 %v9024_v49, %v9893_v20  ;;  %v1951_v25 = vld [vmem:[%s14993_s3 + $0x58] sm:$0xff]  ;;  %v1950_v14 = vld [vmem:[%s14993_s3 + $0x50] sm:$0xff]  ;;  %v816_v33 = vadd.f32 1e-05, %v784_v16  ;;  %v10671_v5 = vadd.f32 %v10176_v54, %v962_v24  ;;  %v738_v24 = vpop.xlane.xlu1 %737 }
 0x184   : > { %15677 = vst [vmem:[#allocation104_spill] sm:$0xff] %v10634_v40  ;;  %1441 = vmatmul.mubr.f32.gmra.mrb[26].mxu1 %v10628_v61  ;;  %v964_v47 = vmul.f32 %v10168_v19, %v889_v42  ;;  %v10675_v20 = vpack.c.bf16 %v1266_v48, %v1262_v2  ;;  %v1274_v49 = vld [vmem:[%s14991_s1 + $0x7d0] sm:$0xff]  ;;  %v2647_v18 = vld [vmem:[%s14991_s1 + $0x28] sm:$0xff]  ;;  %v10687_v4 = vadd.f32 %v10172_v0, %v965_v1 }
 0x185   : > { %1446 = vmatprep.mubr.f32.mxu1 %v10634_v40  ;;  %v2651_v16 = vld [vmem:[%s14991_s1 + $0x68] sm:$0xff]  ;;  %v967_v42 = vmul.f32 %v10165_v63, %v892_v56  ;;  %v894_v2 = vmul.f32 %v9026_v15, %v10027_v39  ;;  %v10692_v48 = vpack.c.bf16 %v1275_v26, %v1271_v38  ;;  %v10695_v30 = vpack.c.bf16 %v1951_v25, %v1949_v50  ;;  %v1955_v38 = vld [vmem:[%s14993_s3 + $0x78] sm:$0xff]  ;;  %v741_v26 = vpop.xlane.xlu0 %740  ;;  %v15684_v25 = vld [vmem:[#allocation54_spill] sm:$0xff] }
 0x186   : > { %7566 = vmatpush1.bf16.msra.mxu1 %v10623_v53  ;;  %15678 = vst [vmem:[#allocation105_spill] sm:$0xff] %v10675_v20  ;;  %v9028_v53 = vpop.eup %9027  ;;  %v10697_v35 = vpack.c.bf16 %v1950_v14, %v1948_v23  ;;  %v817_v52 = vadd.f32 1e-05, %v785_v17  ;;  %v966_v1 = vmul.f32 %v10168_v19, %v891_v11  ;;  %v10701_v40 = vpack.c.bf16 %v1274_v49, %v1270_v22  ;;  %v1953_v39 = vld [vmem:[%s14993_s3 + $0x68] sm:$0xff]  ;;  %v15686_v49 = vld [vmem:[#allocation53_spill] sm:$0xff] }
 0x187   : > { %7568 = vmatprep.subr.bf16.mxu1 %v10625_v57  ;;  %15679 = vst [vmem:[#allocation106_spill] sm:$0xff] %v10692_v48  ;;  %15680 = vst [vmem:[#allocation107_spill] sm:$0xff] %v10695_v30  ;;  %v10703_v56 = vpack.c.bf16 %v2651_v16, %v2647_v18  ;;  %9033 = vrsqrt.f32 %v816_v33  ;;  %v786_v50 = vmul.f32 0.00390625, %v738_v24  ;;  %v10712_v17 = vadd.f32 %v10176_v54, %v964_v47 }
 0x188   : > { %1447 = vmatmul.mubr.f32.gmra.mrb[28].mxu1 %v10671_v5  ;;  %15681 = vst [vmem:[#allocation108_spill] sm:$0xff] %v10697_v35  ;;  %15682 = vst [vmem:[#allocation109_spill] sm:$0xff] %v10701_v40  ;;  %v893_v11 = vmul.f32 %v9026_v15, %v10024_v59  ;;  %7584 = vmatprep.subr.bf16.mxu0 %v10695_v30  ;;  %v10718_v18 = vadd.f32 %v10172_v0, %v967_v42  ;;  %v1952_v59 = vld [vmem:[%s14993_s3 + $0x60] sm:$0xff]  ;;  %v1954_v15 = vld [vmem:[%s14993_s3 + $0x70] sm:$0xff]  ;;  %v787_v47 = vmul.f32 0.00390625, %v741_v26 }
 0x189   : > { %1452 = vmatprep.mubr.f32.mxu1 %v10687_v4  ;;  %15683 = vst [vmem:[#allocation110_spill] sm:$0xff] %v10703_v56  ;;  %v969_v22 = vmul.f32 %v10165_v63, %v894_v2  ;;  %v896_v23 = vmul.f32 %v9028_v53, %v15684_v25  ;;  %7586 = vmatpush1.bf16.msra.mxu0 %v10697_v35  ;;  %v9030_v14 = vpop.eup %9029  ;;  %9035 = vrsqrt.f32 %v817_v52  ;;  %v818_v42 = vadd.f32 1e-05, %v786_v50  ;;  %v744_v2 = vpop.xlane.xlu1 %743  ;;  %v1959_v50 = vld [vmem:[%s14993_s3 + $0x98] sm:$0xff] }
 0x18a   : > { %7570 = vmatpush1.bf16.msra.mxu1 %v10675_v20  ;;  %v10725_v33 = vpack.c.bf16 %v1955_v38, %v1953_v39  ;;  %v895_v16 = vmul.f32 %v9028_v53, %v15686_v49  ;;  %v10736_v39 = vadd.f32 %v10176_v54, %v966_v1  ;;  %v968_v38 = vmul.f32 %v10168_v19, %v893_v11  ;;  %v1957_v1 = vld [vmem:[%s14993_s3 + $0x88] sm:$0xff]  ;;  %v1956_v11 = vld [vmem:[%s14993_s3 + $0x80] sm:$0xff] }
 0x18b   : > { %7572 = vmatprep.subr.bf16.mxu1 %v10692_v48  ;;  %v9032_v24 = vpop.eup %9031  ;;  %v10742_v25 = vadd.f32 %v10172_v0, %v969_v22  ;;  %v971_v26 = vmul.f32 %v10165_v63, %v896_v23  ;;  %v898_v53 = vmul.f32 %v9030_v14, %v10046_v37  ;;  %v10747_v52 = vpack.c.bf16 %v1954_v15, %v1952_v59  ;;  %v1958_v37 = vld [vmem:[%s14993_s3 + $0x90] sm:$0xff]  ;;  %v1961_v22 = vld [vmem:[%s14993_s3 + $0xa8] sm:$0xff]  ;;  %v1963_v23 = vld [vmem:[%s14993_s3 + $0xb8] sm:$0xff]  ;;  %v747_v48 = vpop.xlane.xlu0 %746 }
 0x18c   : > { %1453 = vmatmul.mubr.f32.gmra.mrb[30].mxu1 %v10712_v17  ;;  %15685 = vst [vmem:[#allocation54_spill] sm:$0xff] %v10725_v33  ;;  %7588 = vmatprep.subr.bf16.mxu0 %v10725_v33  ;;  %v819_v59 = vadd.f32 1e-05, %v787_v47  ;;  %v788_v15 = vmul.f32 0.00390625, %v744_v2  ;;  %v970_v49 = vmul.f32 %v10168_v19, %v895_v16  ;;  %9037 = vrsqrt.f32 %v818_v42  ;;  %v1965_v42 = vld [vmem:[%s14993_s3 + $0xc8] sm:$0xff] }
 0x18d   : > { %1458 = vmatprep.mubr.f32.mxu1 %v10718_v18  ;;  %15687 = vst [vmem:[#allocation53_spill] sm:$0xff] %v10747_v52  ;;  %v10772_v20 = vadd.f32 %v10176_v54, %v968_v38  ;;  %v897_v57 = vmul.f32 %v9030_v14, %v10043_v41  ;;  %7590 = vmatpush1.bf16.msra.mxu0 %v10747_v52  ;;  %v1962_v41 = vld [vmem:[%s14993_s3 + $0xb0] sm:$0xff]  ;;  %v1967_v38 = vld [vmem:[%s14993_s3 + $0xd8] sm:$0xff] }
 0x18e   : > { %7574 = vmatpush1.bf16.msra.mxu1 %v10701_v40  ;;  %v10776_v33 = vpack.c.bf16 %v1959_v50, %v1957_v1  ;;  %v10779_v47 = vadd.f32 %v10172_v0, %v971_v26  ;;  %v973_v2 = vmul.f32 %v10165_v63, %v898_v53  ;;  %v10782_v35 = vpack.c.bf16 %v1958_v37, %v1956_v11  ;;  %v15692_v1 = vld [vmem:[#allocation57_spill] sm:$0xff] }
 0x18f   : > { %7704 = vmatprep.subr.bf16.mxu1 %v10703_v56  ;;  %v15688_v56 = vld [vmem:[#allocation58_spill] sm:$0xff]  ;;  %v10784_v16 = vpack.c.bf16 %v1963_v23, %v1961_v22  ;;  %v789_v26 = vmul.f32 0.00390625, %v747_v48  ;;  %v820_v53 = vadd.f32 1e-05, %v788_v15  ;;  %v899_v50 = vmul.f32 %v9032_v24, %v15692_v1  ;;  %v750_v23 = vpop.xlane.xlu1 %749 }
 0x190   : > { %1459 = vmatmul.mubr.f32.gmra.mrb[32].mxu1 %v10736_v39  ;;  %v900_v40 = vmul.f32 %v9032_v24, %v15688_v56  ;;  %15689 = vst [vmem:[#allocation58_spill] sm:$0xff] %v10776_v33  ;;  %15690 = vst [vmem:[#allocation111_spill] sm:$0xff] %v10782_v35  ;;  %v1960_v56 = vld [vmem:[%s14993_s3 + $0xa0] sm:$0xff]  ;;  %7592 = vmatprep.subr.bf16.mxu0 %v10776_v33  ;;  %9039 = vrsqrt.f32 %v819_v59  ;;  %v10803_v11 = vadd.f32 %v10176_v54, %v970_v49  ;;  %v1966_v59 = vld [vmem:[%s14993_s3 + $0xd0] sm:$0xff] }
 0x191   : > { %1464 = vmatprep.mubr.f32.mxu1 %v10742_v25  ;;  %15691 = vst [vmem:[#allocation112_spill] sm:$0xff] %v10784_v16  ;;  %v9034_v14 = vpop.eup %9033  ;;  %v972_v37 = vmul.f32 %v10168_v19, %v897_v57  ;;  %7594 = vmatpush1.bf16.msra.mxu0 %v10782_v35  ;;  %v10807_v22 = vpack.c.bf16 %v1962_v41, %v1960_v56  ;;  %v1964_v57 = vld [vmem:[%s14993_s3 + $0xc0] sm:$0xff]  ;;  %9041 = vrsqrt.f32 %v820_v53  ;;  %v753_v41 = vpop.xlane.xlu0 %752 }
 0x192   : > { %v10810_v33 = vadd.f32 %v10172_v0, %v973_v2  ;;  %v975_v48 = vmul.f32 %v10165_v63, %v900_v40  ;;  %v902_v15 = vmul.f32 %v9034_v14, %v10058_v9  ;;  %7596 = vmatprep.subr.bf16.mxu0 %v10784_v16  ;;  %v10815_v24 = vpack.c.bf16 %v1967_v38, %v1965_v42  ;;  %v1969_v40 = vld [vmem:[%s14993_s3 + $0xe8] sm:$0xff]  ;;  %v1971_v9 = vld [vmem:[%s14993_s3 + $0xf8] sm:$0xff] }
 0x193   : > { %15693 = vst [vmem:[#allocation57_spill] sm:$0xff] %v10807_v22  ;;  %v9036_v49 = vpop.eup %9035  ;;  %v821_v2 = vadd.f32 1e-05, %v789_v26  ;;  %v974_v56 = vmul.f32 %v10168_v19, %v899_v50  ;;  %v790_v42 = vmul.f32 0.00390625, %v750_v23  ;;  %v10833_v38 = vadd.f32 %v10176_v54, %v972_v37  ;;  %v1968_v37 = vld [vmem:[%s14993_s3 + $0xe0] sm:$0xff]  ;;  %v1973_v23 = vld [vmem:[%s14993_s3 + $0x108] sm:$0xff] }
 0x194   : > { %1465 = vmatmul.mubr.f32.gmra.mrb[34].mxu1 %v10772_v20  ;;  %15694 = vst [vmem:[#allocation113_spill] sm:$0xff] %v10815_v24  ;;  %v901_v1 = vmul.f32 %v9034_v14, %v10055_v21  ;;  %v10837_v16 = vpack.c.bf16 %v1966_v59, %v1964_v57  ;;  %v10840_v35 = vadd.f32 %v10172_v0, %v975_v48  ;;  %v1970_v21 = vld [vmem:[%s14993_s3 + $0xf0] sm:$0xff]  ;;  %v791_v48 = vmul.f32 0.00390625, %v753_v41 }
 0x195   : > { %1470 = vmatprep.mubr.f32.mxu1 %v10779_v47  ;;  %15695 = vst [vmem:[#allocation114_spill] sm:$0xff] %v10833_v38  ;;  %7598 = vmatpush1.bf16.msra.mxu0 %v10807_v22  ;;  %v977_v26 = vmul.f32 %v10165_v63, %v902_v15  ;;  %v904_v53 = vmul.f32 %v9036_v49, %v10019_v45  ;;  %v1975_v45 = vld [vmem:[%s14993_s3 + $0x118] sm:$0xff]  ;;  %9043 = vrsqrt.f32 %v821_v2  ;;  %v822_v59 = vadd.f32 1e-05, %v790_v42  ;;  %v1977_v42 = vld [vmem:[%s14993_s3 + $0x128] sm:$0xff] }
 0x196   : > { %15696 = vst [vmem:[#allocation115_spill] sm:$0xff] %v10837_v16  ;;  %15697 = vst [vmem:[#allocation116_spill] sm:$0xff] %v10840_v35  ;;  %7600 = vmatprep.subr.bf16.mxu0 %v10815_v24  ;;  %v10845_v50 = vpack.c.bf16 %v1971_v9, %v1969_v40  ;;  %v9038_v14 = vpop.eup %9037  ;;  %v10862_v15 = vadd.f32 %v10176_v54, %v974_v56  ;;  %v903_v57 = vmul.f32 %v9036_v49, %v10016_v60  ;;  %v756_v40 = vpop.xlane.xlu1 %755  ;;  %v1972_v60 = vld [vmem:[%s14993_s3 + $0x100] sm:$0xff]  ;;  %v1974_v49 = vld [vmem:[%s14993_s3 + $0x110] sm:$0xff] }
 0x197   : > { %v976_v9 = vmul.f32 %v10168_v19, %v901_v1  ;;  %v10867_v24 = vpack.c.bf16 %v1970_v21, %v1968_v37  ;;  %v10870_v22 = vadd.f32 %v10172_v0, %v977_v26  ;;  %v979_v41 = vmul.f32 %v10165_v63, %v904_v53  ;;  %v759_v37 = vpop.xlane.xlu0 %758 }
 0x198   : > { %1471 = vmatmul.mubr.f32.gmra.mrb[36].mxu1 %v10803_v11  ;;  %15698 = vst [vmem:[#allocation117_spill] sm:$0xff] %v10845_v50  ;;  %15699 = vst [vmem:[#allocation118_spill] sm:$0xff] %v10862_v15  ;;  %v906_v52 = vmul.f32 %v9038_v14, %v10076_v36  ;;  %v10875_v56 = vpack.c.bf16 %v1975_v45, %v1973_v23  ;;  %v1979_v36 = vld [vmem:[%s14993_s3 + $0x138] sm:$0xff]  ;;  %v823_v1 = vadd.f32 1e-05, %v791_v48  ;;  %v792_v26 = vmul.f32 0.00390625, %v756_v40 }
 0x199   : > { %1476 = vmatprep.mubr.f32.mxu1 %v10810_v33  ;;  %7602 = vmatpush1.bf16.msra.mxu0 %v10837_v16  ;;  %15700 = vst [vmem:[#allocation119_spill] sm:$0xff] %v10867_v24  ;;  %15701 = vst [vmem:[#allocation120_spill] sm:$0xff] %v10870_v22  ;;  %v978_v53 = vmul.f32 %v10168_v19, %v903_v57  ;;  %9045 = vrsqrt.f32 %v822_v59  ;;  %v10893_v21 = vadd.f32 %v10176_v54, %v976_v9 }
 0x19a   : > { %7604 = vmatprep.subr.bf16.mxu0 %v10845_v50  ;;  %15702 = vst [vmem:[#allocation121_spill] sm:$0xff] %v10875_v56  ;;  %v9040_v2 = vpop.eup %9039  ;;  %v905_v23 = vmul.f32 %v9038_v14, %v10069_v3  ;;  %v10897_v45 = vpack.c.bf16 %v1974_v49, %v1972_v60  ;;  %v10900_v16 = vadd.f32 %v10172_v0, %v979_v41  ;;  %v1976_v3 = vld [vmem:[%s14993_s3 + $0x120] sm:$0xff]  ;;  %v1978_v14 = vld [vmem:[%s14993_s3 + $0x130] sm:$0xff]  ;;  %v824_v59 = vadd.f32 1e-05, %v792_v26 }
 0x19b   : > { %15703 = vst [vmem:[#allocation122_spill] sm:$0xff] %v10893_v21  ;;  %v9042_v50 = vpop.eup %9041  ;;  %v981_v48 = vmul.f32 %v10165_v63, %v906_v52  ;;  %v908_v40 = vmul.f32 %v9040_v2, %v10052_v43  ;;  %v10905_v57 = vpack.c.bf16 %v1979_v36, %v1977_v42  ;;  %v1981_v52 = vld [vmem:[%s14993_s3 + $0x148] sm:$0xff]  ;;  %v1983_v43 = vld [vmem:[%s14993_s3 + $0x158] sm:$0xff]  ;;  %v793_v9 = vmul.f32 0.00390625, %v759_v37  ;;  %v762_v36 = vpop.xlane.xlu1 %761 }
 0x19c   : > { %1477 = vmatmul.mubr.f32.gmra.mrb[38].mxu1 %v10833_v38  ;;  %15704 = vst [vmem:[#allocation123_spill] sm:$0xff] %v10897_v45  ;;  %15705 = vst [vmem:[#allocation124_spill] sm:$0xff] %v10900_v16  ;;  %v907_v41 = vmul.f32 %v9040_v2, %v10049_v44  ;;  %9047 = vrsqrt.f32 %v823_v1  ;;  %v10923_v60 = vadd.f32 %v10176_v54, %v978_v53  ;;  %v1980_v2 = vld [vmem:[%s14993_s3 + $0x140] sm:$0xff]  ;;  %v1982_v1 = vld [vmem:[%s14993_s3 + $0x150] sm:$0xff] }
 0x19d   : > { %1482 = vmatprep.mubr.f32.mxu1 %v10840_v35  ;;  %7606 = vmatpush1.bf16.msra.mxu0 %v10867_v24  ;;  %15706 = vst [vmem:[#allocation125_spill] sm:$0xff] %v10905_v57  ;;  %v980_v49 = vmul.f32 %v10168_v19, %v905_v23  ;;  %v10927_v42 = vpack.c.bf16 %v1978_v14, %v1976_v3  ;;  %v1985_v23 = vld [vmem:[%s14993_s3 + $0x168] sm:$0xff]  ;;  %9049 = vrsqrt.f32 %v824_v59  ;;  %v794_v3 = vmul.f32 0.00390625, %v762_v36 }
 0x19e   : > { %7608 = vmatprep.subr.bf16.mxu0 %v10875_v56  ;;  %15707 = vst [vmem:[#allocation126_spill] sm:$0xff] %v10923_v60  ;;  %v10930_v56 = vadd.f32 %v10172_v0, %v981_v48  ;;  %v983_v26 = vmul.f32 %v10165_v63, %v908_v40  ;;  %v910_v37 = vmul.f32 %v9042_v50, %v10088_v58  ;;  %v1987_v58 = vld [vmem:[%s14993_s3 + $0x178] sm:$0xff]  ;;  %v825_v48 = vadd.f32 1e-05, %v793_v9  ;;  %v1989_v36 = vld [vmem:[%s14993_s3 + $0x188] sm:$0xff] }
 0x19f   : > { %15708 = vst [vmem:[#allocation127_spill] sm:$0xff] %v10927_v42  ;;  %v10935_v44 = vpack.c.bf16 %v1983_v43, %v1981_v52  ;;  %v9044_v53 = vpop.eup %9043  ;;  %v982_v40 = vmul.f32 %v10168_v19, %v907_v41  ;;  %v10953_v14 = vadd.f32 %v10176_v54, %v980_v49  ;;  %v909_v52 = vmul.f32 %v9042_v50, %v10085_v28  ;;  %v15712_v9 = vld [vmem:[#allocation5_spill] sm:$0xff]  ;;  %v1984_v49 = vld [vmem:[%s14993_s3 + $0x160] sm:$0xff]  ;;  %v1986_v28 = vld [vmem:[%s14993_s3 + $0x170] sm:$0xff] }
 0x1a0   : > { %1483 = vmatmul.mubr.f32.gmra.mrb[40].mxu1 %v10862_v15  ;;  %15709 = vst [vmem:[#allocation128_spill] sm:$0xff] %v10930_v56  ;;  %v10957_v43 = vpack.c.bf16 %v1982_v1, %v1980_v2  ;;  %v985_v59 = vmul.f32 %v10165_v63, %v910_v37  ;;  %v10965_v41 = vpack.c.bf16 %v1987_v58, %v1985_v23  ;;  %v15714_v2 = vld [vmem:[#allocation2_spill] sm:$0xff]  ;;  %9051 = vrsqrt.f32 %v825_v48  ;;  %v1990_v48 = vld [vmem:[%s14993_s3 + $0x190] sm:$0xff] }
 0x1a1   : > { %1488 = vmatprep.mubr.f32.mxu1 %v10870_v22  ;;  %7610 = vmatpush1.bf16.msra.mxu0 %v10897_v45  ;;  %15710 = vst [vmem:[#allocation129_spill] sm:$0xff] %v10935_v44  ;;  %v912_v45 = vmul.f32 %v9044_v53, %v15712_v9  ;;  %v10982_v37 = vadd.f32 %v10176_v54, %v982_v40  ;;  %v826_v23 = vadd.f32 1e-05, %v794_v3 }
 0x1a2   : > { %7612 = vmatprep.subr.bf16.mxu0 %v10905_v57  ;;  %15711 = vst [vmem:[#allocation130_spill] sm:$0xff] %v10957_v43  ;;  %v10960_v57 = vadd.f32 %v10172_v0, %v983_v26  ;;  %15713 = vst [vmem:[#allocation5_spill] sm:$0xff] %v10965_v41  ;;  %v1991_v26 = vld [vmem:[%s14993_s3 + $0x198] sm:$0xff]  ;;  %v911_v1 = vmul.f32 %v9044_v53, %v15714_v2  ;;  %v984_v58 = vmul.f32 %v10168_v19, %v909_v52  ;;  %v1988_v53 = vld [vmem:[%s14993_s3 + $0x180] sm:$0xff] }
 0x1a3   : > { %v9046_v50 = vpop.eup %9045  ;;  %v10987_v9 = vpack.c.bf16 %v1986_v28, %v1984_v49  ;;  %v10995_v40 = vpack.c.bf16 %v1991_v26, %v1989_v36  ;;  %9053 = vrsqrt.f32 %v826_v23  ;;  %v11017_v28 = vpack.c.bf16 %v1990_v48, %v1988_v53 }
 0x1a4   : > { %1489 = vmatmul.mubr.f32.gmra.mrb[42].mxu1 %v10893_v21  ;;  %v914_v24 = vmul.f32 %v9046_v50, %v10106_v10  ;;  %v1995_v10 = vld [vmem:[%s14993_s3 + $0x1b8] sm:$0xff]  ;;  %v986_v52 = vmul.f32 %v10168_v19, %v911_v1  ;;  %v913_v49 = vmul.f32 %v9046_v50, %v10099_v32  ;;  %v1992_v32 = vld [vmem:[%s14993_s3 + $0x1a0] sm:$0xff]  ;;  %v1994_v50 = vld [vmem:[%s14993_s3 + $0x1b0] sm:$0xff] }
 0x1a5   : > { %1494 = vmatprep.mubr.f32.mxu1 %v10900_v16  ;;  %7614 = vmatpush1.bf16.msra.mxu0 %v10927_v42  ;;  %15715 = vst [vmem:[#allocation2_spill] sm:$0xff] %v10987_v9  ;;  %v987_v42 = vmul.f32 %v10165_v63, %v912_v45  ;;  %15716 = vst [vmem:[#allocation131_spill] sm:$0xff] %v10995_v40  ;;  %v1993_v45 = vld [vmem:[%s14993_s3 + $0x1a8] sm:$0xff]  ;;  %v11047_v48 = vpack.c.bf16 %v1994_v50, %v1992_v32  ;;  %v15729_v50 = vld [vmem:[#allocation4_spill] sm:$0xff] }
 0x1a6   : > { %7616 = vmatprep.subr.bf16.mxu0 %v10935_v44  ;;  %v10990_v44 = vadd.f32 %v10172_v0, %v985_v59  ;;  %v9048_v3 = vpop.eup %9047  ;;  %v11013_v59 = vadd.f32 %v10176_v54, %v984_v58  ;;  %15718 = vst [vmem:[#allocation133_spill] sm:$0xff] %v11017_v28  ;;  %v989_v2 = vmul.f32 %v10165_v63, %v914_v24  ;;  %v1997_v24 = vld [vmem:[%s14993_s3 + $0x1c8] sm:$0xff]  ;;  %v15723_v58 = vld [vmem:[#allocation6_spill] sm:$0xff] }
 0x1a7   : > { %v9050_v36 = vpop.eup %9049  ;;  %v11020_v26 = vadd.f32 %v10172_v0, %v987_v42  ;;  %v11025_v1 = vpack.c.bf16 %v1995_v10, %v1993_v45  ;;  %v1999_v42 = vld [vmem:[%s14993_s3 + $0x1d8] sm:$0xff]  ;;  %v988_v23 = vmul.f32 %v10168_v19, %v913_v49  ;;  %v915_v53 = vmul.f32 %v9048_v3, %v15723_v58  ;;  %15724 = vst [vmem:[#allocation6_spill] sm:$0xff] %v11047_v48 }
 0x1a8   : > { %1495 = vmatmul.mubr.f32.gmra.mrb[44].mxu1 %v10923_v60  ;;  %15717 = vst [vmem:[#allocation132_spill] sm:$0xff] %v11013_v59  ;;  %v11050_v45 = vadd.f32 %v10172_v0, %v989_v2  ;;  %v11055_v30 = vpack.c.bf16 %v1999_v42, %v1997_v24  ;;  %v917_v24 = vmul.f32 %v9050_v36, %v15729_v50 }
 0x1a9   : > { %1500 = vmatprep.mubr.f32.mxu1 %v10930_v56  ;;  %7618 = vmatpush1.bf16.msra.mxu0 %v10957_v43  ;;  %15719 = vst [vmem:[#allocation134_spill] sm:$0xff] %v11020_v26  ;;  %v11072_v2 = vadd.f32 %v10176_v54, %v988_v23  ;;  %v990_v32 = vmul.f32 %v10168_v19, %v915_v53  ;;  %v2000_v23 = vld [vmem:[%s14993_s3 + $0x1e0] sm:$0xff] }
 0x1aa   : > { %7620 = vmatprep.subr.bf16.mxu0 %v10965_v41  ;;  %v15720_v41 = vld [vmem:[#allocation3_spill] sm:$0xff]  ;;  %15725 = vst [vmem:[#allocation136_spill] sm:$0xff] %v11050_v45  ;;  %v9052_v49 = vpop.eup %9051 }
 0x1ab   : > { %v916_v43 = vmul.f32 %v9048_v3, %v15720_v41  ;;  %15721 = vst [vmem:[#allocation3_spill] sm:$0xff] %v11025_v1  ;;  %v11042_v41 = vadd.f32 %v10176_v54, %v986_v52  ;;  %v1996_v52 = vld [vmem:[%s14993_s3 + $0x1c0] sm:$0xff]  ;;  %v1998_v3 = vld [vmem:[%s14993_s3 + $0x1d0] sm:$0xff]  ;;  %15728 = vst [vmem:[#allocation137_spill] sm:$0xff] %v11072_v2 }
 0x1ac   : > { %1501 = vmatmul.mubr.f32.gmra.mrb[46].mxu1 %v10953_v14  ;;  %v11077_v42 = vpack.c.bf16 %v1998_v3, %v1996_v52  ;;  %v992_v52 = vmul.f32 %v10168_v19, %v917_v24  ;;  %v15734_v3 = vld [vmem:[#allocation8_spill] sm:$0xff]  ;;  %v15738_v24 = vld [vmem:[#allocation10_spill] sm:$0xff] }
 0x1ad   : > { %1506 = vmatprep.mubr.f32.mxu1 %v10960_v57  ;;  %7622 = vmatpush1.bf16.msra.mxu0 %v10987_v9  ;;  %15722 = vst [vmem:[#allocation135_spill] sm:$0xff] %v11042_v41  ;;  %v991_v10 = vmul.f32 %v10165_v63, %v916_v43  ;;  %v2001_v43 = vld [vmem:[%s14993_s3 + $0x1e8] sm:$0xff]  ;;  %v9054_v53 = vpop.eup %9053 }
 0x1ae   : > { %7624 = vmatprep.subr.bf16.mxu0 %v10995_v40  ;;  %v15726_v40 = vld [vmem:[#allocation7_spill] sm:$0xff]  ;;  %15730 = vst [vmem:[#allocation4_spill] sm:$0xff] %v11077_v42 }
 0x1af   : > { %v918_v9 = vmul.f32 %v9050_v36, %v15726_v40  ;;  %15727 = vst [vmem:[#allocation7_spill] sm:$0xff] %v11055_v30  ;;  %v2003_v40 = vld [vmem:[%s14993_s3 + $0x1f8] sm:$0xff]  ;;  %v11080_v58 = vadd.f32 %v10172_v0, %v991_v10  ;;  %v2002_v36 = vld [vmem:[%s14993_s3 + $0x1f0] sm:$0xff]  ;;  %v11102_v10 = vadd.f32 %v10176_v54, %v990_v32 }
 0x1b0   : > { %1507 = vmatmul.mubr.f32.gmra.mrb[48].mxu1 %v10982_v37 }
 0x1b1   : > { %1512 = vmatprep.mubr.f32.mxu1 %v10990_v44  ;;  %7626 = vmatpush1.bf16.msra.mxu0 %v11017_v28  ;;  %15731 = vst [vmem:[#allocation138_spill] sm:$0xff] %v11080_v58  ;;  %v15732_v28 = vld [vmem:[#allocation9_spill] sm:$0xff] }
 0x1b2   : > { %7628 = vmatprep.subr.bf16.mxu0 %v11025_v1  ;;  %v993_v1 = vmul.f32 %v10165_v63, %v918_v9  ;;  %v2005_v9 = vld [vmem:[%s14993_s3 + $0x208] sm:$0xff] }
 0x1b4   : > { %1513 = vmatmul.mubr.f32.gmra.mrb[50].mxu1 %v11013_v59  ;;  %v11110_v50 = vadd.f32 %v10172_v0, %v993_v1  ;;  %v921_v1 = vmul.f32 %v9054_v53, %v15738_v24  ;;  %v15746_v24 = vld [vmem:[#allocation65_spill] sm:$0xff] }
 0x1b5   : > { %1518 = vmatprep.mubr.f32.mxu1 %v11020_v26  ;;  %7630 = vmatpush1.bf16.msra.mxu0 %v11047_v48  ;;  %v15736_v48 = vld [vmem:[#allocation11_spill] sm:$0xff] }
 0x1b6   : > { %7632 = vmatprep.subr.bf16.mxu0 %v11055_v30 }
 0x1b8   : > { %1519 = vmatmul.mubr.f32.gmra.mrb[52].mxu1 %v11042_v41  ;;  %v920_v41 = vmul.f32 %v9052_v49, %v15732_v28  ;;  %v2007_v28 = vld [vmem:[%s14993_s3 + $0x218] sm:$0xff] }
 0x1b9   : > { %1524 = vmatprep.mubr.f32.mxu1 %v11050_v45  ;;  %v11085_v45 = vpack.c.bf16 %v2003_v40, %v2001_v43  ;;  %v919_v43 = vmul.f32 %v9052_v49, %v15734_v3  ;;  %7634 = vmatpush1.bf16.msra.mxu0 %v11077_v42  ;;  %v11107_v40 = vpack.c.bf16 %v2002_v36, %v2000_v23  ;;  %v2663_v3 = vld [vmem:[%s14991_s1 + $0x128] sm:$0xff]  ;;  %v2730_v42 = vld [vmem:[%s14991_s1 + $0x560] sm:$0xff] }
 0x1ba   : > { %v995_v30 = vmul.f32 %v10165_v63, %v920_v41  ;;  %v11120_v49 = vadd.f32 %v10176_v54, %v992_v52  ;;  %v996_v36 = vmul.f32 %v10168_v19, %v921_v1  ;;  %v2658_v52 = vld [vmem:[%s14991_s1 + $0xe0] sm:$0xff] }
 0x1bb   : > { %15733 = vst [vmem:[#allocation9_spill] sm:$0xff] %v11085_v45  ;;  %15735 = vst [vmem:[#allocation8_spill] sm:$0xff] %v11107_v40  ;;  %7636 = vmatprep.subr.bf16.mxu0 %v11085_v45  ;;  %v994_v32 = vmul.f32 %v10168_v19, %v919_v43  ;;  %v2655_v19 = vld [vmem:[%s14991_s1 + $0xa8] sm:$0xff] }
 0x1bc   : > { %1525 = vmatmul.mubr.f32.gmra.mrb[54].mxu1 %v11072_v2  ;;  %v922_v2 = vmul.f32 %v9054_v53, %v15736_v48  ;;  %v11126_v41 = vadd.f32 %v10172_v0, %v995_v30  ;;  %v2646_v30 = vld [vmem:[%s14991_s1 + $0x20] sm:$0xff]  ;;  %v2667_v43 = vld [vmem:[%s14991_s1 + $0x168] sm:$0xff] }
 0x1bd   : > { %1530 = vmatprep.mubr.f32.mxu1 %v11080_v58  ;;  %v11115_v58 = vpack.c.bf16 %v2007_v28, %v2005_v9  ;;  %7638 = vmatpush1.bf16.msra.mxu0 %v11107_v40  ;;  %v11133_v23 = vadd.f32 %v10176_v54, %v994_v32  ;;  %v2654_v28 = vld [vmem:[%s14991_s1 + $0xa0] sm:$0xff]  ;;  %v15745_v32 = vld [vmem:[#allocation16_spill] sm:$0xff]  ;;  %v2687_v40 = vld [vmem:[%s14991_s1 + $0x2a8] sm:$0xff] }
 0x1be   : > { %15739 = vst [vmem:[#allocation10_spill] sm:$0xff] %v11126_v41  ;;  %v997_v48 = vmul.f32 %v10165_v63, %v922_v2  ;;  %v11142_v63 = vadd.f32 %v10176_v54, %v996_v36  ;;  %v2650_v2 = vld [vmem:[%s14991_s1 + $0x60] sm:$0xff]  ;;  %v11177_v1 = vpack.c.bf16 %v2658_v52, %v2654_v28  ;;  %v15750_v28 = vld [vmem:[#allocation69_spill] sm:$0xff]  ;;  %v2695_v45 = vld [vmem:[%s14991_s1 + $0x328] sm:$0xff] }
 0x1bf   : > { %15737 = vst [vmem:[#allocation11_spill] sm:$0xff] %v11115_v58  ;;  %7640 = vmatprep.subr.bf16.mxu0 %v11115_v58  ;;  %15740 = vst [vmem:[#allocation139_spill] sm:$0xff] %v11133_v23  ;;  %v11158_v54 = vpack.c.bf16 %v2650_v2, %v2646_v30  ;;  %v2662_v36 = vld [vmem:[%s14991_s1 + $0x120] sm:$0xff]  ;;  %v2671_v2 = vld [vmem:[%s14991_s1 + $0x1a8] sm:$0xff] }
 0x1c0   : > { %1531 = vmatmul.mubr.f32.gmra.mrb[56].mxu1 %v11102_v10  ;;  %v11137_v53 = vadd.f32 %v10172_v0, %v997_v48  ;;  %15742 = vst [vmem:[#allocation141_spill] sm:$0xff] %v11142_v63  ;;  %v2659_v0 = vld [vmem:[%s14991_s1 + $0xe8] sm:$0xff]  ;;  %15747 = vst [vmem:[#allocation16_spill] sm:$0xff] %v11177_v1  ;;  %v11180_v48 = vpack.c.bf16 %v2667_v43, %v2663_v3  ;;  %v2666_v30 = vld [vmem:[%s14991_s1 + $0x160] sm:$0xff] }
 0x1c1   : > { %1536 = vmatprep.mubr.f32.mxu1 %v11110_v50  ;;  %15743 = vst [vmem:[#allocation142_spill] sm:$0xff] %v11158_v54  ;;  %v11160_v9 = vpack.c.bf16 %v2659_v0, %v2655_v19  ;;  %v2675_v19 = vld [vmem:[%s14991_s1 + $0x1e8] sm:$0xff]  ;;  %v15749_v0 = vld [vmem:[#allocation66_spill] sm:$0xff]  ;;  %v11197_v52 = vpack.c.bf16 %v2666_v30, %v2662_v36 }
 0x1c2   : > { %15741 = vst [vmem:[#allocation140_spill] sm:$0xff] %v11137_v53  ;;  %15748 = vst [vmem:[#allocation65_spill] sm:$0xff] %v11180_v48  ;;  %v11200_v3 = vpack.c.bf16 %v2675_v19, %v2671_v2  ;;  %v2670_v43 = vld [vmem:[%s14991_s1 + $0x1a0] sm:$0xff]  ;;  %v2683_v36 = vld [vmem:[%s14991_s1 + $0x268] sm:$0xff] }
 0x1c3   : > { %15744 = vst [vmem:[#allocation143_spill] sm:$0xff] %v11160_v9  ;;  %15751 = vst [vmem:[#allocation66_spill] sm:$0xff] %v11197_v52  ;;  %v15753_v30 = vld [vmem:[#allocation70_spill] sm:$0xff]  ;;  %v15754_v2 = vld [vmem:[#allocation73_spill] sm:$0xff] }
 0x1c4   : > { %1537 = vmatmul.mubr.f32.gmra.mrb[58].mxu1 %v11120_v49  ;;  %15752 = vst [vmem:[#allocation144_spill] sm:$0xff] %v11200_v3  ;;  %v2682_v58 = vld [vmem:[%s14991_s1 + $0x260] sm:$0xff] }
 0x1c5   : > { %1542 = vmatprep.mubr.f32.mxu1 %v11126_v41 }
 0x1c8   : > { %1543 = vmatmul.mubr.f32.gmra.mrb[60].mxu1 %v11133_v23 }
 0x1c9   : > { %1548 = vmatprep.mubr.f32.mxu1 %v11137_v53 }
 0x1cc   : > { %1549 = vmatmul.mubr.f32.gmra.mrb[62].mxu1 %v11142_v63 }
 0x1cd   : > { %1619 = vmatprep.mubr.f32.mxu1 %v10195_v31 }
 0x1d0   : > { %1620 = vmatmul.mubr.f32.vlgmr.msra.gmra.mrb[64].mxu1 %v15745_v32 }
 0x1d1   : > { %7706 = vmatpush1.bf16.msra.mxu1 %v11158_v54  ;;  %1625 = vmatprep.mubr.f32.mxu1 %v15746_v24  ;;  %v2679_v54 = vld [vmem:[%s14991_s1 + $0x228] sm:$0xff] }
 0x1d2   : > { %7708 = vmatprep.subr.bf16.mxu1 %v11160_v9  ;;  %v2674_v9 = vld [vmem:[%s14991_s1 + $0x1e0] sm:$0xff] }
 0x1d3   : > { %v11217_v19 = vpack.c.bf16 %v2674_v9, %v2670_v43  ;;  %v2691_v9 = vld [vmem:[%s14991_s1 + $0x2e8] sm:$0xff] }
 0x1d4   : > { %1626 = vmatmul.mubr.f32.gmra.mrb[66].mxu1 %v15749_v0 }
 0x1d5   : > { %1631 = vmatprep.mubr.f32.mxu1 %v15750_v28  ;;  %7710 = vmatpush1.bf16.msra.mxu1 %v11177_v1  ;;  %15755 = vst [vmem:[#allocation70_spill] sm:$0xff] %v11217_v19  ;;  %v2678_v1 = vld [vmem:[%s14991_s1 + $0x220] sm:$0xff] }
 0x1d6   : > { %7712 = vmatprep.subr.bf16.mxu1 %v11180_v48  ;;  %v11220_v48 = vpack.c.bf16 %v2683_v36, %v2679_v54  ;;  %v15757_v54 = vld [vmem:[#allocation74_spill] sm:$0xff]  ;;  %v11237_v43 = vpack.c.bf16 %v2682_v58, %v2678_v1  ;;  %v11240_v36 = vpack.c.bf16 %v2691_v9, %v2687_v40  ;;  %v2699_v58 = vld [vmem:[%s14991_s1 + $0x368] sm:$0xff] }
 0x1d7   : > { %v11260_v1 = vpack.c.bf16 %v2699_v58, %v2695_v45  ;;  %v2694_v9 = vld [vmem:[%s14991_s1 + $0x320] sm:$0xff] }
 0x1d8   : > { %1632 = vmatmul.mubr.f32.gmra.mrb[68].mxu1 %v15753_v30  ;;  %15756 = vst [vmem:[#allocation73_spill] sm:$0xff] %v11220_v48  ;;  %15758 = vst [vmem:[#allocation74_spill] sm:$0xff] %v11237_v43  ;;  %v2702_v58 = vld [vmem:[%s14991_s1 + $0x3a0] sm:$0xff] }
 0x1d9   : > { %1637 = vmatprep.mubr.f32.mxu1 %v15754_v2  ;;  %7714 = vmatpush1.bf16.msra.mxu1 %v11197_v52  ;;  %15759 = vst [vmem:[#allocation145_spill] sm:$0xff] %v11240_v36  ;;  %v2690_v52 = vld [vmem:[%s14991_s1 + $0x2e0] sm:$0xff]  ;;  %15761 = vst [vmem:[#allocation147_spill] sm:$0xff] %v11260_v1 }
 0x1da   : > { %7716 = vmatprep.subr.bf16.mxu1 %v11200_v3  ;;  %v2686_v3 = vld [vmem:[%s14991_s1 + $0x2a0] sm:$0xff] }
 0x1db   : > { %v11257_v40 = vpack.c.bf16 %v2690_v52, %v2686_v3  ;;  %v2707_v52 = vld [vmem:[%s14991_s1 + $0x3e8] sm:$0xff] }
 0x1dc   : > { %1638 = vmatmul.mubr.f32.gmra.mrb[70].mxu1 %v10286_v29 }
 0x1dd   : > { %1643 = vmatprep.mubr.f32.mxu1 %v15757_v54  ;;  %7718 = vmatpush1.bf16.msra.mxu1 %v11217_v19  ;;  %15760 = vst [vmem:[#allocation146_spill] sm:$0xff] %v11257_v40  ;;  %v2703_v19 = vld [vmem:[%s14991_s1 + $0x3a8] sm:$0xff] }
 0x1de   : > { %7720 = vmatprep.subr.bf16.mxu1 %v11220_v48  ;;  %v2698_v48 = vld [vmem:[%s14991_s1 + $0x360] sm:$0xff]  ;;  %v11280_v3 = vpack.c.bf16 %v2707_v52, %v2703_v19 }
 0x1df   : > { %v11277_v45 = vpack.c.bf16 %v2698_v48, %v2694_v9  ;;  %v2715_v48 = vld [vmem:[%s14991_s1 + $0x468] sm:$0xff]  ;;  %v2710_v52 = vld [vmem:[%s14991_s1 + $0x420] sm:$0xff] }
 0x1e0   : > { %1644 = vmatmul.mubr.f32.gmra.mrb[72].mxu1 %v10316_v34  ;;  %15763 = vst [vmem:[#allocation149_spill] sm:$0xff] %v11280_v3 }
 0x1e1   : > { %1649 = vmatprep.mubr.f32.mxu1 %v10343_v46  ;;  %7722 = vmatpush1.bf16.msra.mxu1 %v11237_v43  ;;  %15762 = vst [vmem:[#allocation148_spill] sm:$0xff] %v11277_v45  ;;  %v2711_v43 = vld [vmem:[%s14991_s1 + $0x428] sm:$0xff] }
 0x1e2   : > { %7724 = vmatprep.subr.bf16.mxu1 %v11240_v36  ;;  %v2706_v36 = vld [vmem:[%s14991_s1 + $0x3e0] sm:$0xff]  ;;  %v11300_v9 = vpack.c.bf16 %v2715_v48, %v2711_v43 }
 0x1e3   : > { %v11297_v19 = vpack.c.bf16 %v2706_v36, %v2702_v58  ;;  %v2723_v36 = vld [vmem:[%s14991_s1 + $0x4e8] sm:$0xff]  ;;  %v2718_v48 = vld [vmem:[%s14991_s1 + $0x4a0] sm:$0xff] }
 0x1e4   : > { %1650 = vmatmul.mubr.f32.gmra.mrb[74].mxu1 %v10346_v27  ;;  %15765 = vst [vmem:[#allocation151_spill] sm:$0xff] %v11300_v9 }
 0x1e5   : > { %1655 = vmatprep.mubr.f32.mxu1 %v10373_v6  ;;  %7726 = vmatpush1.bf16.msra.mxu1 %v11257_v40  ;;  %15764 = vst [vmem:[#allocation150_spill] sm:$0xff] %v11297_v19  ;;  %v2719_v40 = vld [vmem:[%s14991_s1 + $0x4a8] sm:$0xff] }
 0x1e6   : > { %7728 = vmatprep.subr.bf16.mxu1 %v11260_v1  ;;  %v2714_v1 = vld [vmem:[%s14991_s1 + $0x460] sm:$0xff]  ;;  %v11320_v58 = vpack.c.bf16 %v2723_v36, %v2719_v40  ;;  %v15769_v40 = vld [vmem:[#allocation84_spill] sm:$0xff] }
 0x1e7   : > { %v11317_v43 = vpack.c.bf16 %v2714_v1, %v2710_v52  ;;  %v2731_v1 = vld [vmem:[%s14991_s1 + $0x568] sm:$0xff]  ;;  %v15768_v52 = vld [vmem:[#allocation81_spill] sm:$0xff] }
 0x1e8   : > { %1656 = vmatmul.mubr.f32.gmra.mrb[76].mxu1 %v10376_v12  ;;  %15767 = vst [vmem:[#allocation153_spill] sm:$0xff] %v11320_v58 }
 0x1e9   : > { %1661 = vmatprep.mubr.f32.mxu1 %v10403_v51  ;;  %7730 = vmatpush1.bf16.msra.mxu1 %v11277_v45  ;;  %15766 = vst [vmem:[#allocation152_spill] sm:$0xff] %v11317_v43  ;;  %v2727_v45 = vld [vmem:[%s14991_s1 + $0x528] sm:$0xff] }
 0x1ea   : > { %7732 = vmatprep.subr.bf16.mxu1 %v11280_v3  ;;  %v2722_v3 = vld [vmem:[%s14991_s1 + $0x4e0] sm:$0xff] }
 0x1eb   : > { %v11337_v36 = vpack.c.bf16 %v2722_v3, %v2718_v48  ;;  %v2739_v3 = vld [vmem:[%s14991_s1 + $0x5e8] sm:$0xff]  ;;  %v15772_v48 = vld [vmem:[#allocation85_spill] sm:$0xff] }
 0x1ec   : > { %1662 = vmatmul.mubr.f32.gmra.mrb[78].mxu1 %v10406_v7 }
 0x1ed   : > { %1667 = vmatprep.mubr.f32.mxu1 %v10433_v13  ;;  %7734 = vmatpush1.bf16.msra.mxu1 %v11297_v19  ;;  %15770 = vst [vmem:[#allocation81_spill] sm:$0xff] %v11337_v36  ;;  %v2726_v19 = vld [vmem:[%s14991_s1 + $0x520] sm:$0xff] }
 0x1ee   : > { %7736 = vmatprep.subr.bf16.mxu1 %v11300_v9  ;;  %v11340_v9 = vpack.c.bf16 %v2731_v1, %v2727_v45  ;;  %v11357_v45 = vpack.c.bf16 %v2730_v42, %v2726_v19  ;;  %v2747_v42 = vld [vmem:[%s14991_s1 + $0x668] sm:$0xff]  ;;  %v15775_v19 = vld [vmem:[#allocation89_spill] sm:$0xff] }
 0x1f0   : > { %1668 = vmatmul.mubr.f32.gmra.mrb[80].mxu1 %v15768_v52  ;;  %15771 = vst [vmem:[#allocation154_spill] sm:$0xff] %v11340_v9  ;;  %15773 = vst [vmem:[#allocation155_spill] sm:$0xff] %v11357_v45 }
 0x1f1   : > { %1673 = vmatprep.mubr.f32.mxu1 %v15769_v40  ;;  %7738 = vmatpush1.bf16.msra.mxu1 %v11317_v43  ;;  %v2735_v40 = vld [vmem:[%s14991_s1 + $0x5a8] sm:$0xff]  ;;  %v2738_v43 = vld [vmem:[%s14991_s1 + $0x5e0] sm:$0xff] }
 0x1f2   : > { %7740 = vmatprep.subr.bf16.mxu1 %v11320_v58  ;;  %v11360_v1 = vpack.c.bf16 %v2739_v3, %v2735_v40  ;;  %v2734_v58 = vld [vmem:[%s14991_s1 + $0x5a0] sm:$0xff]  ;;  %v15776_v40 = vld [vmem:[#allocation93_spill] sm:$0xff] }
 0x1f3   : > { %v11377_v3 = vpack.c.bf16 %v2738_v43, %v2734_v58  ;;  %v2755_v43 = vld [vmem:[%s14991_s1 + $0x6e8] sm:$0xff]  ;;  %v15779_v58 = vld [vmem:[#allocation94_spill] sm:$0xff] }
 0x1f4   : > { %1674 = vmatmul.mubr.f32.gmra.mrb[82].mxu1 %v15772_v48  ;;  %15774 = vst [vmem:[#allocation156_spill] sm:$0xff] %v11360_v1  ;;  %v2746_v48 = vld [vmem:[%s14991_s1 + $0x660] sm:$0xff] }
 0x1f5   : > { %1679 = vmatprep.mubr.f32.mxu1 %v10497_v8  ;;  %7742 = vmatpush1.bf16.msra.mxu1 %v11337_v36  ;;  %v2743_v8 = vld [vmem:[%s14991_s1 + $0x628] sm:$0xff]  ;;  %15777 = vst [vmem:[#allocation157_spill] sm:$0xff] %v11377_v3  ;;  %v2742_v36 = vld [vmem:[%s14991_s1 + $0x620] sm:$0xff] }
 0x1f6   : > { %7744 = vmatprep.subr.bf16.mxu1 %v11340_v9  ;;  %v11380_v9 = vpack.c.bf16 %v2747_v42, %v2743_v8  ;;  %v15780_v8 = vld [vmem:[#allocation95_spill] sm:$0xff]  ;;  %v11397_v42 = vpack.c.bf16 %v2746_v48, %v2742_v36 }
 0x1f7   : > { %v2763_v36 = vld [vmem:[%s14991_s1 + $0x768] sm:$0xff] }
 0x1f8   : > { %1680 = vmatmul.mubr.f32.gmra.mrb[84].mxu1 %v15775_v19  ;;  %15778 = vst [vmem:[#allocation158_spill] sm:$0xff] %v11380_v9  ;;  %15781 = vst [vmem:[#allocation159_spill] sm:$0xff] %v11397_v42  ;;  %v2754_v19 = vld [vmem:[%s14991_s1 + $0x6e0] sm:$0xff] }
 0x1f9   : > { %1685 = vmatprep.mubr.f32.mxu1 %v15776_v40  ;;  %7746 = vmatpush1.bf16.msra.mxu1 %v11357_v45  ;;  %v2751_v40 = vld [vmem:[%s14991_s1 + $0x6a8] sm:$0xff]  ;;  %v2750_v45 = vld [vmem:[%s14991_s1 + $0x6a0] sm:$0xff] }
 0x1fa   : > { %7748 = vmatprep.subr.bf16.mxu1 %v11360_v1  ;;  %v11400_v1 = vpack.c.bf16 %v2755_v43, %v2751_v40  ;;  %v11417_v48 = vpack.c.bf16 %v2754_v19, %v2750_v45  ;;  %v2758_v43 = vld [vmem:[%s14991_s1 + $0x720] sm:$0xff]  ;;  %v2771_v45 = vld [vmem:[%s14991_s1 + $0x7e8] sm:$0xff]  ;;  %v15785_v19 = vld [vmem:[#allocation104_spill] sm:$0xff] }
 0x1fc   : > { %1686 = vmatmul.mubr.f32.gmra.mrb[86].mxu1 %v15779_v58  ;;  %15782 = vst [vmem:[#allocation160_spill] sm:$0xff] %v11400_v1  ;;  %15783 = vst [vmem:[#allocation161_spill] sm:$0xff] %v11417_v48 }
 0x1fd   : > { %1691 = vmatprep.mubr.f32.mxu1 %v15780_v8  ;;  %7750 = vmatpush1.bf16.msra.mxu1 %v11377_v3  ;;  %v2759_v8 = vld [vmem:[%s14991_s1 + $0x728] sm:$0xff] }
 0x1fe   : > { %7752 = vmatprep.subr.bf16.mxu1 %v11380_v9  ;;  %v11420_v40 = vpack.c.bf16 %v2763_v36, %v2759_v8  ;;  %v2762_v9 = vld [vmem:[%s14991_s1 + $0x760] sm:$0xff]  ;;  %v2767_v3 = vld [vmem:[%s14991_s1 + $0x7a8] sm:$0xff] }
 0x1ff   : > { %v11437_v8 = vpack.c.bf16 %v2762_v9, %v2758_v43  ;;  %v11440_v36 = vpack.c.bf16 %v2771_v45, %v2767_v3  ;;  %v2653_v9 = vld [vmem:[%s14991_s1 + $0x78] sm:$0xff] }
 0x200   : > { %1692 = vmatmul.mubr.f32.gmra.mrb[88].mxu1 %v10596_v55  ;;  %15784 = vst [vmem:[#allocation162_spill] sm:$0xff] %v11420_v40 }
 0x201   : > { %1697 = vmatprep.mubr.f32.mxu1 %v10611_v62  ;;  %7754 = vmatpush1.bf16.msra.mxu1 %v11397_v42  ;;  %15786 = vst [vmem:[#allocation163_spill] sm:$0xff] %v11437_v8  ;;  %15787 = vst [vmem:[#allocation164_spill] sm:$0xff] %v11440_v36  ;;  %v2770_v42 = vld [vmem:[%s14991_s1 + $0x7e0] sm:$0xff] }
 0x202   : > { %7756 = vmatprep.subr.bf16.mxu1 %v11400_v1  ;;  %v2766_v1 = vld [vmem:[%s14991_s1 + $0x7a0] sm:$0xff] }
 0x203   : > { %v11457_v3 = vpack.c.bf16 %v2770_v42, %v2766_v1  ;;  %v9119_v1 = vld [vmem:[%s14992_s2] sm:$0xf]  ;;  %v15790_v42 = vld [vmem:[#allocation13_spill] sm:$0xff] }
 0x204   : > { %1698 = vmatmul.mubr.f32.gmra.mrb[90].mxu1 %v10628_v61  ;;  %v11478_v45 = vrot.slane %v9119_v1, %v15790_v42 }
 0x205   : > { %1703 = vmatprep.mubr.f32.mxu1 %v15785_v19  ;;  %7758 = vmatpush1.bf16.msra.mxu1 %v11417_v48  ;;  %v2649_v19 = vld [vmem:[%s14991_s1 + $0x38] sm:$0xff]  ;;  %15788 = vst [vmem:[#allocation165_spill] sm:$0xff] %v11457_v3  ;;  %v2009_v48 = vld [vmem:[%s14993_s3 + $0x228] sm:$0xff] }
 0x206   : > { %7760 = vmatprep.subr.bf16.mxu1 %v11420_v40  ;;  %v11460_v43 = vpack.c.bf16 %v2653_v9, %v2649_v19  ;;  %15791 = vst [vmem:[#allocation167_spill] sm:$0xff] %v11478_v45  ;;  %v15792_v19 = vld [vmem:[#allocation12_spill] sm:$0xff] }
 0x207   : > { %v11482_v9 = vrot.slane %v9119_v1, %v15792_v19  ;;  %v2006_v40 = vld [vmem:[%s14993_s3 + $0x210] sm:$0xff] }
 0x208   : > { %1704 = vmatmul.mubr.f32.gmra.mrb[92].mxu1 %v10671_v5  ;;  %15789 = vst [vmem:[#allocation166_spill] sm:$0xff] %v11460_v43 }
 0x209   : > { %1709 = vmatprep.mubr.f32.mxu1 %v10687_v4  ;;  %7762 = vmatpush1.bf16.msra.mxu1 %v11437_v8  ;;  %15793 = vst [vmem:[#allocation168_spill] sm:$0xff] %v11482_v9  ;;  %v2004_v8 = vld [vmem:[%s14993_s3 + $0x200] sm:$0xff] }
 0x20a   : > { %7764 = vmatprep.subr.bf16.mxu1 %v11440_v36 }
 0x20c   : > { %1710 = vmatmul.mubr.f32.gmra.mrb[94].mxu1 %v10712_v17 }
 0x20d   : > { %1715 = vmatprep.mubr.f32.mxu1 %v10718_v18  ;;  %7766 = vmatpush1.bf16.msra.mxu1 %v11457_v3 }
 0x20e   : > { %7768 = vmatprep.subr.bf16.mxu1 %v11460_v43 }
 0x210   : > { %1716 = vmatmul.mubr.f32.gmra.mrb[96].mxu1 %v10736_v39 }
 0x211   : > { %1721 = vmatprep.mubr.f32.mxu1 %v10742_v25 }
 0x214   : > { %1722 = vmatmul.mubr.f32.gmra.mrb[98].mxu1 %v10772_v20 }
 0x215   : > { %1727 = vmatprep.mubr.f32.mxu1 %v10779_v47 }
 0x218   : > { %1728 = vmatmul.mubr.f32.gmra.mrb[100].mxu1 %v10803_v11 }
 0x219   : > { %1733 = vmatprep.mubr.f32.mxu1 %v10810_v33 }
 0x21c   : > { %1734 = vmatmul.mubr.f32.gmra.mrb[102].mxu1 %v10833_v38  ;;  %v2010_v38 = vld [vmem:[%s14993_s3 + $0x230] sm:$0xff] }
 0x21d   : > { %1739 = vmatprep.mubr.f32.mxu1 %v10840_v35 }
 0x220   : > { %1740 = vmatmul.mubr.f32.gmra.mrb[104].mxu1 %v10862_v15 }
 0x221   : > { %1745 = vmatprep.mubr.f32.mxu1 %v10870_v22 }
 0x223   : > { %v1364_v43 = vpop.f32.mrb[0].mxu1 }
 0x224   : > { %v1365_v3 = vadd.f32 %v1364_v43, %v11478_v45  ;;  %v1366_v36 = vpop.f32.mrb[1].mxu1  ;;  %1746 = vmatmul.mubr.f32.gmra.mrb[106].mxu1 %v10893_v21  ;;  %v2011_v43 = vld [vmem:[%s14993_s3 + $0x238] sm:$0xff]  ;;  %v11501_v21 = vpack.c.bf16 %v2006_v40, %v2004_v8  ;;  %v2013_v40 = vld [vmem:[%s14993_s3 + $0x248] sm:$0xff] }
 0x225   : > { %1751 = vmatprep.mubr.f32.mxu1 %v10900_v16  ;;  %v1367_v1 = vadd.f32 %v1366_v36, %v11482_v9  ;;  %v11505_v35 = vpack.c.bf16 %v2011_v43, %v2009_v48  ;;  %v2008_v36 = vld [vmem:[%s14993_s3 + $0x220] sm:$0xff]  ;;  %v2015_v48 = vld [vmem:[%s14993_s3 + $0x258] sm:$0xff] }
 0x226   : > { %15794 = vst [vmem:[#allocation169_spill] sm:$0xff] %v11501_v21  ;;  %v1812_v16 = vmax.f32 %v1365_v3, 0.0 }
 0x227   : > { %v1370_v19 = vpop.f32.mrb[2].mxu1  ;;  %v1813_v42 = vmax.f32 %v1367_v1, 0.0  ;;  %15795 = vst [vmem:[#allocation170_spill] sm:$0xff] %v11505_v35 }
 0x228   : > { %v1371_v22 = vadd.f32 %v1370_v19, %v11478_v45  ;;  %v1372_v15 = vpop.f32.mrb[3].mxu1  ;;  %1752 = vmatmul.mubr.f32.gmra.mrb[108].mxu1 %v10923_v60  ;;  %v11522_v19 = vpack.c.bf16 %v2010_v38, %v2008_v36  ;;  %v2019_v36 = vld [vmem:[%s14993_s3 + $0x278] sm:$0xff] }
 0x229   : > { %v1373_v1 = vadd.f32 %v1372_v15, %v11482_v9  ;;  %1757 = vmatprep.mubr.f32.mxu1 %v10930_v56  ;;  %2132 = vmatprep.mubr.f32.mxu0 %v1813_v42  ;;  %v11527_v56 = vpack.c.bf16 %v2015_v48, %v2013_v40 }
 0x22a   : > { %2133 = vmatmul.mubr.f32.vlgmr.msra.gmra.mrb[0].mxu0 %v1812_v16  ;;  %15796 = vst [vmem:[#allocation171_spill] sm:$0xff] %v11522_v19  ;;  %v1816_v42 = vmax.f32 %v1371_v22, 0.0  ;;  %v2012_v16 = vld [vmem:[%s14993_s3 + $0x240] sm:$0xff]  ;;  %v2017_v22 = vld [vmem:[%s14993_s3 + $0x268] sm:$0xff] }
 0x22b   : > { %7642 = vmatpush1.bf16.msra.mxu0 %v11501_v21  ;;  %v1376_v8 = vpop.f32.mrb[4].mxu1  ;;  %v1817_v3 = vmax.f32 %v1373_v1, 0.0  ;;  %15797 = vst [vmem:[#allocation172_spill] sm:$0xff] %v11527_v56  ;;  %v2014_v1 = vld [vmem:[%s14993_s3 + $0x250] sm:$0xff]  ;;  %v11549_v21 = vpack.c.bf16 %v2019_v36, %v2017_v22 }
 0x22c   : > { %v1377_v15 = vadd.f32 %v1376_v8, %v11478_v45  ;;  %v1378_v43 = vpop.f32.mrb[5].mxu1  ;;  %1758 = vmatmul.mubr.f32.gmra.mrb[110].mxu1 %v10953_v14  ;;  %7644 = vmatprep.subr.bf16.mxu0 %v11505_v35  ;;  %v11544_v8 = vpack.c.bf16 %v2014_v1, %v2012_v16  ;;  %v2023_v1 = vld [vmem:[%s14993_s3 + $0x298] sm:$0xff] }
 0x22d   : > { %v1379_v38 = vadd.f32 %v1378_v43, %v11482_v9  ;;  %1763 = vmatprep.mubr.f32.mxu1 %v10960_v57  ;;  %2138 = vmatprep.mubr.f32.mxu0 %v1817_v3  ;;  %15799 = vst [vmem:[#allocation174_spill] sm:$0xff] %v11549_v21 }
 0x22e   : > { %2139 = vmatmul.mubr.f32.gmra.mrb[2].mxu0 %v1816_v42  ;;  %15798 = vst [vmem:[#allocation173_spill] sm:$0xff] %v11544_v8  ;;  %v1820_v3 = vmax.f32 %v1377_v15, 0.0  ;;  %v2016_v42 = vld [vmem:[%s14993_s3 + $0x260] sm:$0xff]  ;;  %v2021_v15 = vld [vmem:[%s14993_s3 + $0x288] sm:$0xff] }
 0x22f   : > { %v1382_v40 = vpop.f32.mrb[6].mxu1  ;;  %v1821_v48 = vmax.f32 %v1379_v38, 0.0  ;;  %7646 = vmatpush1.bf16.msra.mxu0 %v11522_v19  ;;  %v2018_v38 = vld [vmem:[%s14993_s3 + $0x270] sm:$0xff]  ;;  %v11571_v19 = vpack.c.bf16 %v2023_v1, %v2021_v15 }
 0x230   : > { %v1383_v43 = vadd.f32 %v1382_v40, %v11478_v45  ;;  %v1384_v35 = vpop.f32.mrb[7].mxu1  ;;  %1764 = vmatmul.mubr.f32.gmra.mrb[112].mxu1 %v10982_v37  ;;  %7648 = vmatprep.subr.bf16.mxu0 %v11527_v56  ;;  %v11566_v40 = vpack.c.bf16 %v2018_v38, %v2016_v42  ;;  %v2027_v38 = vld [vmem:[%s14993_s3 + $0x2b8] sm:$0xff] }
 0x231   : > { %v1385_v16 = vadd.f32 %v1384_v35, %v11482_v9  ;;  %1769 = vmatprep.mubr.f32.mxu1 %v10990_v44  ;;  %2144 = vmatprep.mubr.f32.mxu0 %v1821_v48  ;;  %15801 = vst [vmem:[#allocation176_spill] sm:$0xff] %v11571_v19 }
 0x232   : > { %2145 = vmatmul.mubr.f32.gmra.mrb[4].mxu0 %v1820_v3  ;;  %15800 = vst [vmem:[#allocation175_spill] sm:$0xff] %v11566_v40  ;;  %v1824_v48 = vmax.f32 %v1383_v43, 0.0  ;;  %v2020_v3 = vld [vmem:[%s14993_s3 + $0x280] sm:$0xff]  ;;  %v2025_v43 = vld [vmem:[%s14993_s3 + $0x2a8] sm:$0xff] }
 0x233   : > { %v1388_v22 = vpop.f32.mrb[8].mxu1  ;;  %v1825_v36 = vmax.f32 %v1385_v16, 0.0  ;;  %7650 = vmatpush1.bf16.msra.mxu0 %v11544_v8  ;;  %v2022_v16 = vld [vmem:[%s14993_s3 + $0x290] sm:$0xff]  ;;  %v15803_v8 = vld [vmem:[#allocation135_spill] sm:$0xff] }
 0x234   : > { %v1389_v35 = vadd.f32 %v1388_v22, %v11478_v45  ;;  %v1390_v56 = vpop.f32.mrb[9].mxu1  ;;  %1770 = vmatmul.mubr.f32.gmra.mrb[114].mxu1 %v11013_v59  ;;  %7652 = vmatprep.subr.bf16.mxu0 %v11549_v21  ;;  %v11588_v22 = vpack.c.bf16 %v2022_v16, %v2020_v3  ;;  %v15805_v16 = vld [vmem:[#allocation136_spill] sm:$0xff] }
 0x235   : > { %v1391_v42 = vadd.f32 %v1390_v56, %v11482_v9  ;;  %1775 = vmatprep.mubr.f32.mxu1 %v11020_v26  ;;  %2150 = vmatprep.mubr.f32.mxu0 %v1825_v36  ;;  %v11593_v26 = vpack.c.bf16 %v2027_v38, %v2025_v43  ;;  %v2031_v43 = vld [vmem:[%s14993_s3 + $0x2d8] sm:$0xff] }
 0x236   : > { %2151 = vmatmul.mubr.f32.gmra.mrb[6].mxu0 %v1824_v48  ;;  %15802 = vst [vmem:[#allocation177_spill] sm:$0xff] %v11588_v22  ;;  %v1828_v36 = vmax.f32 %v1389_v35, 0.0  ;;  %v2024_v48 = vld [vmem:[%s14993_s3 + $0x2a0] sm:$0xff]  ;;  %v2029_v35 = vld [vmem:[%s14993_s3 + $0x2c8] sm:$0xff] }
 0x237   : > { %v1394_v15 = vpop.f32.mrb[10].mxu1  ;;  %v1829_v1 = vmax.f32 %v1391_v42, 0.0  ;;  %7654 = vmatpush1.bf16.msra.mxu0 %v11566_v40  ;;  %15804 = vst [vmem:[#allocation178_spill] sm:$0xff] %v11593_v26  ;;  %v2026_v42 = vld [vmem:[%s14993_s3 + $0x2b0] sm:$0xff] }
 0x238   : > { %v1395_v56 = vadd.f32 %v1394_v15, %v11478_v45  ;;  %v1396_v21 = vpop.f32.mrb[11].mxu1  ;;  %1776 = vmatmul.mubr.f32.gmra.mrb[116].mxu1 %v15803_v8  ;;  %7656 = vmatprep.subr.bf16.mxu0 %v11571_v19  ;;  %v11610_v19 = vpack.c.bf16 %v2026_v42, %v2024_v48  ;;  %v11615_v8 = vpack.c.bf16 %v2031_v43, %v2029_v35  ;;  %v15809_v42 = vld [vmem:[#allocation138_spill] sm:$0xff]  ;;  %v2035_v35 = vld [vmem:[%s14993_s3 + $0x2f8] sm:$0xff] }
 0x239   : > { %v1397_v3 = vadd.f32 %v1396_v21, %v11482_v9  ;;  %1781 = vmatprep.mubr.f32.mxu1 %v15805_v16  ;;  %2156 = vmatprep.mubr.f32.mxu0 %v1829_v1  ;;  %v15807_v16 = vld [vmem:[#allocation137_spill] sm:$0xff] }
 0x23a   : > { %2157 = vmatmul.mubr.f32.gmra.mrb[8].mxu0 %v1828_v36  ;;  %15806 = vst [vmem:[#allocation179_spill] sm:$0xff] %v11610_v19  ;;  %v1832_v1 = vmax.f32 %v1395_v56, 0.0  ;;  %15808 = vst [vmem:[#allocation137_spill] sm:$0xff] %v11615_v8  ;;  %v2028_v36 = vld [vmem:[%s14993_s3 + $0x2c0] sm:$0xff]  ;;  %v2033_v56 = vld [vmem:[%s14993_s3 + $0x2e8] sm:$0xff] }
 0x23b   : > { %v1400_v38 = vpop.f32.mrb[12].mxu1  ;;  %v1833_v15 = vmax.f32 %v1397_v3, 0.0  ;;  %7658 = vmatpush1.bf16.msra.mxu0 %v11588_v22  ;;  %v2030_v3 = vld [vmem:[%s14993_s3 + $0x2d0] sm:$0xff] }
 0x23c   : > { %v1401_v21 = vadd.f32 %v1400_v38, %v11478_v45  ;;  %v1402_v40 = vpop.f32.mrb[13].mxu1  ;;  %1782 = vmatmul.mubr.f32.gmra.mrb[118].mxu1 %v15807_v16  ;;  %7660 = vmatprep.subr.bf16.mxu0 %v11593_v26  ;;  %v11632_v26 = vpack.c.bf16 %v2030_v3, %v2028_v36  ;;  %v2039_v3 = vld [vmem:[%s14993_s3 + $0x318] sm:$0xff] }
 0x23d   : > { %v1403_v48 = vadd.f32 %v1402_v40, %v11482_v9  ;;  %1787 = vmatprep.mubr.f32.mxu1 %v15809_v42  ;;  %2162 = vmatprep.mubr.f32.mxu0 %v1833_v15  ;;  %v11637_v42 = vpack.c.bf16 %v2035_v35, %v2033_v56 }
 0x23e   : > { %2163 = vmatmul.mubr.f32.gmra.mrb[10].mxu0 %v1832_v1  ;;  %15810 = vst [vmem:[#allocation180_spill] sm:$0xff] %v11632_v26  ;;  %v1836_v15 = vmax.f32 %v1401_v21, 0.0  ;;  %v2032_v1 = vld [vmem:[%s14993_s3 + $0x2e0] sm:$0xff]  ;;  %v2037_v21 = vld [vmem:[%s14993_s3 + $0x308] sm:$0xff] }
 0x23f   : > { %v1406_v43 = vpop.f32.mrb[14].mxu1  ;;  %v1837_v38 = vmax.f32 %v1403_v48, 0.0  ;;  %7662 = vmatpush1.bf16.msra.mxu0 %v11610_v19  ;;  %15811 = vst [vmem:[#allocation181_spill] sm:$0xff] %v11637_v42  ;;  %v2034_v48 = vld [vmem:[%s14993_s3 + $0x2f0] sm:$0xff]  ;;  %v11659_v19 = vpack.c.bf16 %v2039_v3, %v2037_v21 }
 0x240   : > { %v1407_v40 = vadd.f32 %v1406_v43, %v11478_v45  ;;  %v1408_v22 = vpop.f32.mrb[15].mxu1  ;;  %1788 = vmatmul.mubr.f32.gmra.mrb[120].mxu1 %v11102_v10  ;;  %7664 = vmatprep.subr.bf16.mxu0 %v11615_v8  ;;  %v11654_v43 = vpack.c.bf16 %v2034_v48, %v2032_v1  ;;  %v2043_v48 = vld [vmem:[%s14993_s3 + $0x338] sm:$0xff] }
 0x241   : > { %v1409_v36 = vadd.f32 %v1408_v22, %v11482_v9  ;;  %1793 = vmatprep.mubr.f32.mxu1 %v11110_v50  ;;  %2168 = vmatprep.mubr.f32.mxu0 %v1837_v38  ;;  %15813 = vst [vmem:[#allocation183_spill] sm:$0xff] %v11659_v19 }
 0x242   : > { %2169 = vmatmul.mubr.f32.gmra.mrb[12].mxu0 %v1836_v15  ;;  %15812 = vst [vmem:[#allocation182_spill] sm:$0xff] %v11654_v43  ;;  %v1840_v38 = vmax.f32 %v1407_v40, 0.0  ;;  %v2036_v15 = vld [vmem:[%s14993_s3 + $0x300] sm:$0xff]  ;;  %v2041_v40 = vld [vmem:[%s14993_s3 + $0x328] sm:$0xff] }
 0x243   : > { %v1412_v56 = vpop.f32.mrb[16].mxu1  ;;  %v1841_v35 = vmax.f32 %v1409_v36, 0.0  ;;  %7666 = vmatpush1.bf16.msra.mxu0 %v11632_v26  ;;  %v2038_v36 = vld [vmem:[%s14993_s3 + $0x310] sm:$0xff]  ;;  %v11681_v26 = vpack.c.bf16 %v2043_v48, %v2041_v40 }
 0x244   : > { %v1413_v22 = vadd.f32 %v1412_v56, %v11478_v45  ;;  %v1414_v8 = vpop.f32.mrb[17].mxu1  ;;  %1794 = vmatmul.mubr.f32.gmra.mrb[122].mxu1 %v11120_v49  ;;  %7668 = vmatprep.subr.bf16.mxu0 %v11637_v42  ;;  %v11676_v56 = vpack.c.bf16 %v2038_v36, %v2036_v15  ;;  %v2047_v36 = vld [vmem:[%s14993_s3 + $0x358] sm:$0xff]  ;;  %v2648_v40 = vld [vmem:[%s14991_s1 + $0x30] sm:$0xff] }
 0x245   : > { %v1415_v1 = vadd.f32 %v1414_v8, %v11482_v9  ;;  %1799 = vmatprep.mubr.f32.mxu1 %v11126_v41  ;;  %2174 = vmatprep.mubr.f32.mxu0 %v1841_v35  ;;  %15815 = vst [vmem:[#allocation185_spill] sm:$0xff] %v11681_v26 }
 0x246   : > { %2175 = vmatmul.mubr.f32.gmra.mrb[14].mxu0 %v1840_v38  ;;  %15814 = vst [vmem:[#allocation184_spill] sm:$0xff] %v11676_v56  ;;  %v1844_v35 = vmax.f32 %v1413_v22, 0.0  ;;  %v2040_v38 = vld [vmem:[%s14993_s3 + $0x320] sm:$0xff]  ;;  %v2045_v22 = vld [vmem:[%s14993_s3 + $0x348] sm:$0xff] }
 0x247   : > { %v1418_v21 = vpop.f32.mrb[18].mxu1  ;;  %v1845_v3 = vmax.f32 %v1415_v1, 0.0  ;;  %7670 = vmatpush1.bf16.msra.mxu0 %v11654_v43  ;;  %v2042_v1 = vld [vmem:[%s14993_s3 + $0x330] sm:$0xff] }
 0x248   : > { %v1419_v8 = vadd.f32 %v1418_v21, %v11478_v45  ;;  %v1420_v42 = vpop.f32.mrb[19].mxu1  ;;  %1800 = vmatmul.mubr.f32.gmra.mrb[124].mxu1 %v11133_v23  ;;  %7672 = vmatprep.subr.bf16.mxu0 %v11659_v19  ;;  %v11707_v19 = vpack.c.bf16 %v2042_v1, %v2040_v38  ;;  %v2661_v23 = vld [vmem:[%s14991_s1 + $0xf8] sm:$0xff]  ;;  %v2046_v38 = vld [vmem:[%s14993_s3 + $0x350] sm:$0xff] }
 0x249   : > { %v1421_v15 = vadd.f32 %v1420_v42, %v11482_v9  ;;  %1805 = vmatprep.mubr.f32.mxu1 %v11137_v53  ;;  %2180 = vmatprep.mubr.f32.mxu0 %v1845_v3  ;;  %v2652_v42 = vld [vmem:[%s14991_s1 + $0x70] sm:$0xff]  ;;  %v2657_v3 = vld [vmem:[%s14991_s1 + $0xb8] sm:$0xff] }
 0x24a   : > { %2181 = vmatmul.mubr.f32.gmra.mrb[16].mxu0 %v1844_v35  ;;  %15816 = vst [vmem:[#allocation186_spill] sm:$0xff] %v11707_v19  ;;  %v1848_v53 = vmax.f32 %v1419_v8, 0.0  ;;  %v11725_v8 = vpack.c.bf16 %v2652_v42, %v2648_v40  ;;  %v2660_v40 = vld [vmem:[%s14991_s1 + $0xf0] sm:$0xff]  ;;  %v2665_v42 = vld [vmem:[%s14991_s1 + $0x138] sm:$0xff] }
 0x24b   : > { %v1424_v48 = vpop.f32.mrb[20].mxu1  ;;  %v1849_v21 = vmax.f32 %v1421_v15, 0.0  ;;  %7674 = vmatpush1.bf16.msra.mxu0 %v11676_v56  ;;  %v11715_v15 = vpack.c.bf16 %v2047_v36, %v2045_v22  ;;  %v2044_v56 = vld [vmem:[%s14993_s3 + $0x340] sm:$0xff]  ;;  %v2049_v22 = vld [vmem:[%s14993_s3 + $0x368] sm:$0xff]  ;;  %v2051_v36 = vld [vmem:[%s14993_s3 + $0x378] sm:$0xff] }
 0x24c   : > { %v1425_v35 = vadd.f32 %v1424_v48, %v11478_v45  ;;  %v1426_v43 = vpop.f32.mrb[21].mxu1  ;;  %1806 = vmatmul.mubr.f32.gmra.mrb[126].mxu1 %v11142_v63  ;;  %7676 = vmatprep.subr.bf16.mxu0 %v11681_v26  ;;  %15818 = vst [vmem:[#allocation188_spill] sm:$0xff] %v11725_v8  ;;  %v11733_v63 = vpack.c.bf16 %v2661_v23, %v2657_v3 }
 0x24d   : > { %15817 = vst [vmem:[#allocation187_spill] sm:$0xff] %v11715_v15  ;;  %v1427_v1 = vadd.f32 %v1426_v43, %v11482_v9  ;;  %2186 = vmatprep.mubr.f32.mxu0 %v1849_v21  ;;  %2860 = vmatprep.mubr.f32.mxu1 %v10195_v31  ;;  %v2656_v43 = vld [vmem:[%s14991_s1 + $0xb0] sm:$0xff]  ;;  %v11745_v21 = vpack.c.bf16 %v2046_v38, %v2044_v56 }
 0x24e   : > { %2187 = vmatmul.mubr.f32.gmra.mrb[18].mxu0 %v1848_v53  ;;  %15819 = vst [vmem:[#allocation189_spill] sm:$0xff] %v11733_v63  ;;  %v1852_v3 = vmax.f32 %v1425_v35, 0.0  ;;  %v11753_v31 = vpack.c.bf16 %v2051_v36, %v2049_v22  ;;  %v2050_v56 = vld [vmem:[%s14993_s3 + $0x370] sm:$0xff]  ;;  %v2053_v35 = vld [vmem:[%s14993_s3 + $0x388] sm:$0xff]  ;;  %v2055_v22 = vld [vmem:[%s14993_s3 + $0x398] sm:$0xff]  ;;  %v11770_v36 = vpack.c.bf16 %v2660_v40, %v2656_v43 }
 0x24f   : > { %v1430_v48 = vpop.f32.mrb[22].mxu1  ;;  %v1853_v26 = vmax.f32 %v1427_v1, 0.0  ;;  %7678 = vmatpush1.bf16.msra.mxu0 %v11707_v19  ;;  %15820 = vst [vmem:[#allocation190_spill] sm:$0xff] %v11745_v21  ;;  %v2669_v1 = vld [vmem:[%s14991_s1 + $0x178] sm:$0xff]  ;;  %v2048_v19 = vld [vmem:[%s14993_s3 + $0x360] sm:$0xff] }
 0x250   : > { %v1431_v53 = vadd.f32 %v1430_v48, %v11478_v45  ;;  %v1432_v23 = vpop.f32.mrb[23].mxu1  ;;  %2861 = vmatmul.mubr.f32.vlgmr.msra.gmra.mrb[128].mxu1 %v15745_v32  ;;  %7680 = vmatprep.subr.bf16.mxu0 %v11715_v15  ;;  %15821 = vst [vmem:[#allocation191_spill] sm:$0xff] %v11753_v31  ;;  %15822 = vst [vmem:[#allocation192_spill] sm:$0xff] %v11770_v36  ;;  %v11785_v43 = vpack.c.bf16 %v2050_v56, %v2048_v19  ;;  %v2054_v19 = vld [vmem:[%s14993_s3 + $0x390] sm:$0xff] }
 0x251   : > { %v1433_v38 = vadd.f32 %v1432_v23, %v11482_v9  ;;  %7770 = vmatpush1.bf16.msra.mxu1 %v11725_v8  ;;  %2192 = vmatprep.mubr.f32.mxu0 %v1853_v26  ;;  %v11773_v23 = vpack.c.bf16 %v2669_v1, %v2665_v42  ;;  %v2664_v26 = vld [vmem:[%s14991_s1 + $0x130] sm:$0xff] }
 0x252   : > { %2866 = vmatprep.mubr.f32.mxu1 %v15746_v24  ;;  %2193 = vmatmul.mubr.f32.gmra.mrb[20].mxu0 %v1852_v3  ;;  %v2668_v8 = vld [vmem:[%s14991_s1 + $0x170] sm:$0xff]  ;;  %v2673_v3 = vld [vmem:[%s14991_s1 + $0x1b8] sm:$0xff]  ;;  %15824 = vst [vmem:[#allocation194_spill] sm:$0xff] %v11785_v43  ;;  %v1856_v1 = vmax.f32 %v1431_v53, 0.0  ;;  %v2057_v53 = vld [vmem:[%s14993_s3 + $0x3a8] sm:$0xff] }
 0x253   : > { %v1436_v48 = vpop.f32.mrb[24].mxu1  ;;  %v1857_v15 = vmax.f32 %v1433_v38, 0.0  ;;  %7772 = vmatprep.subr.bf16.mxu1 %v11733_v63  ;;  %15823 = vst [vmem:[#allocation193_spill] sm:$0xff] %v11773_v23  ;;  %7682 = vmatpush1.bf16.msra.mxu0 %v11745_v21  ;;  %v2677_v38 = vld [vmem:[%s14991_s1 + $0x1f8] sm:$0xff]  ;;  %v11793_v63 = vpack.c.bf16 %v2055_v22, %v2053_v35  ;;  %v2052_v21 = vld [vmem:[%s14993_s3 + $0x380] sm:$0xff]  ;;  %v11810_v22 = vpack.c.bf16 %v2668_v8, %v2664_v26 }
 0x254   : > { %v1437_v40 = vadd.f32 %v1436_v48, %v11478_v45  ;;  %v1438_v42 = vpop.f32.mrb[25].mxu1  ;;  %2867 = vmatmul.mubr.f32.gmra.mrb[130].mxu1 %v15749_v0  ;;  %7684 = vmatprep.subr.bf16.mxu0 %v11753_v31  ;;  %v2059_v35 = vld [vmem:[%s14993_s3 + $0x3b8] sm:$0xff]  ;;  %v11825_v8 = vpack.c.bf16 %v2054_v19, %v2052_v21  ;;  %v2058_v21 = vld [vmem:[%s14993_s3 + $0x3b0] sm:$0xff] }
 0x255   : > { %15825 = vst [vmem:[#allocation195_spill] sm:$0xff] %v11793_v63  ;;  %v1439_v56 = vadd.f32 %v1438_v42, %v11482_v9  ;;  %2198 = vmatprep.mubr.f32.mxu0 %v1857_v15  ;;  %2872 = vmatprep.mubr.f32.mxu1 %v15750_v28  ;;  %15826 = vst [vmem:[#allocation196_spill] sm:$0xff] %v11810_v22  ;;  %v11813_v15 = vpack.c.bf16 %v2677_v38, %v2673_v3  ;;  %v2672_v42 = vld [vmem:[%s14991_s1 + $0x1b0] sm:$0xff] }
 0x256   : > { %2199 = vmatmul.mubr.f32.gmra.mrb[22].mxu0 %v1856_v1  ;;  %7774 = vmatpush1.bf16.msra.mxu1 %v11770_v36  ;;  %v2676_v28 = vld [vmem:[%s14991_s1 + $0x1f0] sm:$0xff]  ;;  %v2681_v1 = vld [vmem:[%s14991_s1 + $0x238] sm:$0xff]  ;;  %15828 = vst [vmem:[#allocation198_spill] sm:$0xff] %v11825_v8  ;;  %v1860_v38 = vmax.f32 %v1437_v40, 0.0  ;;  %v2061_v40 = vld [vmem:[%s14993_s3 + $0x3c8] sm:$0xff] }
 0x257   : > { %v1442_v48 = vpop.f32.mrb[26].mxu1  ;;  %v1861_v31 = vmax.f32 %v1439_v56, 0.0  ;;  %7776 = vmatprep.subr.bf16.mxu1 %v11773_v23  ;;  %15827 = vst [vmem:[#allocation197_spill] sm:$0xff] %v11813_v15  ;;  %7686 = vmatpush1.bf16.msra.mxu0 %v11785_v43  ;;  %v2685_v56 = vld [vmem:[%s14991_s1 + $0x278] sm:$0xff]  ;;  %v11833_v23 = vpack.c.bf16 %v2059_v35, %v2057_v53  ;;  %v2056_v43 = vld [vmem:[%s14993_s3 + $0x3a0] sm:$0xff]  ;;  %v11850_v35 = vpack.c.bf16 %v2676_v28, %v2672_v42  ;;  %v2684_v36 = vld [vmem:[%s14991_s1 + $0x270] sm:$0xff] }
 0x258   : > { %v1443_v26 = vadd.f32 %v1442_v48, %v11478_v45  ;;  %v1444_v3 = vpop.f32.mrb[27].mxu1  ;;  %2873 = vmatmul.mubr.f32.gmra.mrb[132].mxu1 %v15753_v30  ;;  %7688 = vmatprep.subr.bf16.mxu0 %v11793_v63  ;;  %v2063_v53 = vld [vmem:[%s14993_s3 + $0x3d8] sm:$0xff]  ;;  %v11865_v28 = vpack.c.bf16 %v2058_v21, %v2056_v43  ;;  %v2062_v43 = vld [vmem:[%s14993_s3 + $0x3d0] sm:$0xff] }
 0x259   : > { %15829 = vst [vmem:[#allocation199_spill] sm:$0xff] %v11833_v23  ;;  %v1445_v19 = vadd.f32 %v1444_v3, %v11482_v9  ;;  %2204 = vmatprep.mubr.f32.mxu0 %v1861_v31  ;;  %2878 = vmatprep.mubr.f32.mxu1 %v15754_v2  ;;  %15830 = vst [vmem:[#allocation200_spill] sm:$0xff] %v11850_v35  ;;  %v11853_v31 = vpack.c.bf16 %v2685_v56, %v2681_v1  ;;  %v2680_v3 = vld [vmem:[%s14991_s1 + $0x230] sm:$0xff] }
 0x25a   : > { %2205 = vmatmul.mubr.f32.gmra.mrb[24].mxu0 %v1860_v38  ;;  %7778 = vmatpush1.bf16.msra.mxu1 %v11810_v22  ;;  %v2689_v38 = vld [vmem:[%s14991_s1 + $0x2b8] sm:$0xff]  ;;  %15832 = vst [vmem:[#allocation202_spill] sm:$0xff] %v11865_v28  ;;  %v1864_v56 = vmax.f32 %v1443_v26, 0.0  ;;  %v2065_v26 = vld [vmem:[%s14993_s3 + $0x3e8] sm:$0xff]  ;;  %v2692_v22 = vld [vmem:[%s14991_s1 + $0x2f0] sm:$0xff] }
 0x25b   : > { %v1448_v48 = vpop.f32.mrb[28].mxu1  ;;  %v1865_v63 = vmax.f32 %v1445_v19, 0.0  ;;  %7780 = vmatprep.subr.bf16.mxu1 %v11813_v15  ;;  %15831 = vst [vmem:[#allocation201_spill] sm:$0xff] %v11853_v31  ;;  %7690 = vmatpush1.bf16.msra.mxu0 %v11825_v8  ;;  %v2693_v19 = vld [vmem:[%s14991_s1 + $0x2f8] sm:$0xff]  ;;  %v11873_v15 = vpack.c.bf16 %v2063_v53, %v2061_v40  ;;  %v2060_v8 = vld [vmem:[%s14993_s3 + $0x3c0] sm:$0xff]  ;;  %v11890_v53 = vpack.c.bf16 %v2684_v36, %v2680_v3 }
 0x25c   : > { %v1449_v42 = vadd.f32 %v1448_v48, %v11478_v45  ;;  %v1450_v1 = vpop.f32.mrb[29].mxu1  ;;  %2879 = vmatmul.mubr.f32.gmra.mrb[134].mxu1 %v10286_v29  ;;  %7692 = vmatprep.subr.bf16.mxu0 %v11833_v23  ;;  %v2067_v40 = vld [vmem:[%s14993_s3 + $0x3f8] sm:$0xff]  ;;  %v11905_v36 = vpack.c.bf16 %v2062_v43, %v2060_v8  ;;  %v2066_v8 = vld [vmem:[%s14993_s3 + $0x3f0] sm:$0xff] }
 0x25d   : > { %15833 = vst [vmem:[#allocation203_spill] sm:$0xff] %v11873_v15  ;;  %v1451_v21 = vadd.f32 %v1450_v1, %v11482_v9  ;;  %2210 = vmatprep.mubr.f32.mxu0 %v1865_v63  ;;  %2884 = vmatprep.mubr.f32.mxu1 %v15757_v54  ;;  %15834 = vst [vmem:[#allocation204_spill] sm:$0xff] %v11890_v53  ;;  %v11893_v63 = vpack.c.bf16 %v2693_v19, %v2689_v38  ;;  %v2688_v1 = vld [vmem:[%s14991_s1 + $0x2b0] sm:$0xff] }
 0x25e   : > { %2211 = vmatmul.mubr.f32.gmra.mrb[26].mxu0 %v1864_v56  ;;  %7782 = vmatpush1.bf16.msra.mxu1 %v11850_v35  ;;  %v2697_v56 = vld [vmem:[%s14991_s1 + $0x338] sm:$0xff]  ;;  %15836 = vst [vmem:[#allocation206_spill] sm:$0xff] %v11905_v36  ;;  %v1868_v19 = vmax.f32 %v1449_v42, 0.0  ;;  %v3439_v42 = vld [vmem:[%s14993_s3 + $0x408] sm:$0xff]  ;;  %v2700_v35 = vld [vmem:[%s14991_s1 + $0x370] sm:$0xff] }
 0x25f   : > { %v1454_v48 = vpop.f32.mrb[30].mxu1  ;;  %v1869_v23 = vmax.f32 %v1451_v21, 0.0  ;;  %7784 = vmatprep.subr.bf16.mxu1 %v11853_v31  ;;  %15835 = vst [vmem:[#allocation205_spill] sm:$0xff] %v11893_v63  ;;  %7694 = vmatpush1.bf16.msra.mxu0 %v11865_v28  ;;  %v2701_v21 = vld [vmem:[%s14991_s1 + $0x378] sm:$0xff]  ;;  %v11913_v31 = vpack.c.bf16 %v2067_v40, %v2065_v26  ;;  %v2064_v28 = vld [vmem:[%s14993_s3 + $0x3e0] sm:$0xff]  ;;  %v11930_v40 = vpack.c.bf16 %v2692_v22, %v2688_v1 }
 0x260   : > { %v1455_v3 = vadd.f32 %v1454_v48, %v11478_v45  ;;  %v1456_v38 = vpop.f32.mrb[31].mxu1  ;;  %2885 = vmatmul.mubr.f32.gmra.mrb[136].mxu1 %v10316_v34  ;;  %7696 = vmatprep.subr.bf16.mxu0 %v11873_v15  ;;  %v3441_v26 = vld [vmem:[%s14993_s3 + $0x418] sm:$0xff] }
 0x261   : > { %15837 = vst [vmem:[#allocation207_spill] sm:$0xff] %v11913_v31  ;;  %v1457_v43 = vadd.f32 %v1456_v38, %v11482_v9  ;;  %2216 = vmatprep.mubr.f32.mxu0 %v1869_v23  ;;  %2890 = vmatprep.mubr.f32.mxu1 %v10343_v46  ;;  %15838 = vst [vmem:[#allocation208_spill] sm:$0xff] %v11930_v40  ;;  %v11933_v23 = vpack.c.bf16 %v2701_v21, %v2697_v56  ;;  %v2696_v38 = vld [vmem:[%s14991_s1 + $0x330] sm:$0xff]  ;;  %v2705_v56 = vld [vmem:[%s14991_s1 + $0x3b8] sm:$0xff] }
 0x262   : > { %2217 = vmatmul.mubr.f32.gmra.mrb[28].mxu0 %v1868_v19  ;;  %7786 = vmatpush1.bf16.msra.mxu1 %v11890_v53  ;;  %v11942_v19 = vpack.c.bf16 %v2066_v8, %v2064_v28  ;;  %v2709_v21 = vld [vmem:[%s14991_s1 + $0x3f8] sm:$0xff]  ;;  %v2744_v53 = vld [vmem:[%s14991_s1 + $0x630] sm:$0xff] }
 0x263   : > { %v1460_v48 = vpop.f32.mrb[32].mxu1  ;;  %v1873_v15 = vmax.f32 %v1457_v43, 0.0  ;;  %7788 = vmatprep.subr.bf16.mxu1 %v11893_v63  ;;  %15839 = vst [vmem:[#allocation209_spill] sm:$0xff] %v11933_v23  ;;  %7698 = vmatpush1.bf16.msra.mxu0 %v11905_v36  ;;  %v1872_v43 = vmax.f32 %v1455_v3, 0.0  ;;  %v11953_v63 = vpack.c.bf16 %v3441_v26, %v3439_v42  ;;  %v11958_v3 = vpack.c.bf16 %v2700_v35, %v2696_v38  ;;  %v2704_v42 = vld [vmem:[%s14991_s1 + $0x3b0] sm:$0xff] }
 0x264   : > { %15840 = vst [vmem:[#allocation210_spill] sm:$0xff] %v11942_v19  ;;  %v1461_v22 = vadd.f32 %v1460_v48, %v11478_v45  ;;  %v1462_v1 = vpop.f32.mrb[33].mxu1  ;;  %2891 = vmatmul.mubr.f32.gmra.mrb[138].mxu1 %v10346_v27  ;;  %7700 = vmatprep.subr.bf16.mxu0 %v11913_v31  ;;  %v11961_v36 = vpack.c.bf16 %v2709_v21, %v2705_v56 }
 0x265   : > { %15841 = vst [vmem:[#allocation211_spill] sm:$0xff] %v11953_v63  ;;  %v1463_v28 = vadd.f32 %v1462_v1, %v11482_v9  ;;  %2222 = vmatprep.mubr.f32.mxu0 %v1873_v15  ;;  %2896 = vmatprep.mubr.f32.mxu1 %v10373_v6  ;;  %15842 = vst [vmem:[#allocation212_spill] sm:$0xff] %v11958_v3  ;;  %v2708_v15 = vld [vmem:[%s14991_s1 + $0x3f0] sm:$0xff]  ;;  %v2713_v1 = vld [vmem:[%s14991_s1 + $0x438] sm:$0xff] }
 0x266   : > { %2223 = vmatmul.mubr.f32.gmra.mrb[30].mxu0 %v1872_v43  ;;  %7790 = vmatpush1.bf16.msra.mxu1 %v11930_v40  ;;  %15843 = vst [vmem:[#allocation213_spill] sm:$0xff] %v11961_v36  ;;  %v1876_v38 = vmax.f32 %v1461_v22, 0.0  ;;  %v2717_v43 = vld [vmem:[%s14991_s1 + $0x478] sm:$0xff]  ;;  %v11982_v21 = vpack.c.bf16 %v2708_v15, %v2704_v42  ;;  %v2736_v40 = vld [vmem:[%s14991_s1 + $0x5b0] sm:$0xff] }
 0x267   : > { %v1466_v8 = vpop.f32.mrb[34].mxu1  ;;  %v1877_v48 = vmax.f32 %v1463_v28, 0.0  ;;  %7792 = vmatprep.subr.bf16.mxu1 %v11933_v23  ;;  %7702 = vmatpush1.bf16.msra.mxu0 %v11942_v19  ;;  %v2721_v15 = vld [vmem:[%s14991_s1 + $0x4b8] sm:$0xff]  ;;  %v2728_v19 = vld [vmem:[%s14991_s1 + $0x530] sm:$0xff] }
 0x268   : > { %v1467_v26 = vadd.f32 %v1466_v8, %v11478_v45  ;;  %v1468_v35 = vpop.f32.mrb[35].mxu1  ;;  %2897 = vmatmul.mubr.f32.gmra.mrb[140].mxu1 %v10376_v12  ;;  %7832 = vmatprep.subr.bf16.mxu0 %v11953_v63  ;;  %15844 = vst [vmem:[#allocation214_spill] sm:$0xff] %v11982_v21  ;;  %v11985_v8 = vpack.c.bf16 %v2717_v43, %v2713_v1  ;;  %v2712_v63 = vld [vmem:[%s14991_s1 + $0x430] sm:$0xff]  ;;  %v2725_v1 = vld [vmem:[%s14991_s1 + $0x4f8] sm:$0xff] }
 0x269   : > { %v1469_v56 = vadd.f32 %v1468_v35, %v11482_v9  ;;  %2228 = vmatprep.mubr.f32.mxu0 %v1877_v48  ;;  %2902 = vmatprep.mubr.f32.mxu1 %v10403_v51  ;;  %v2716_v48 = vld [vmem:[%s14991_s1 + $0x470] sm:$0xff] }
 0x26a   : > { %2229 = vmatmul.mubr.f32.gmra.mrb[32].mxu0 %v1876_v38  ;;  %7794 = vmatpush1.bf16.msra.mxu1 %v11958_v3  ;;  %15845 = vst [vmem:[#allocation215_spill] sm:$0xff] %v11985_v8  ;;  %v1880_v42 = vmax.f32 %v1467_v26, 0.0  ;;  %v2720_v3 = vld [vmem:[%s14991_s1 + $0x4b0] sm:$0xff] }
 0x26b   : > { %v1472_v22 = vpop.f32.mrb[36].mxu1  ;;  %v1881_v28 = vmax.f32 %v1469_v56, 0.0  ;;  %7796 = vmatprep.subr.bf16.mxu1 %v11961_v36  ;;  %v12004_v56 = vpack.c.bf16 %v2716_v48, %v2712_v63  ;;  %v12007_v36 = vpack.c.bf16 %v2725_v1, %v2721_v15  ;;  %v2729_v48 = vld [vmem:[%s14991_s1 + $0x538] sm:$0xff] }
 0x26c   : > { %v1473_v35 = vadd.f32 %v1472_v22, %v11478_v45  ;;  %v1474_v38 = vpop.f32.mrb[37].mxu1  ;;  %2903 = vmatmul.mubr.f32.gmra.mrb[142].mxu1 %v10406_v7  ;;  %v2733_v15 = vld [vmem:[%s14991_s1 + $0x578] sm:$0xff] }
 0x26d   : > { %v1475_v43 = vadd.f32 %v1474_v38, %v11482_v9  ;;  %2234 = vmatprep.mubr.f32.mxu0 %v1881_v28  ;;  %2908 = vmatprep.mubr.f32.mxu1 %v10433_v13  ;;  %15846 = vst [vmem:[#allocation216_spill] sm:$0xff] %v12004_v56  ;;  %15847 = vst [vmem:[#allocation217_spill] sm:$0xff] %v12007_v36  ;;  %v2724_v28 = vld [vmem:[%s14991_s1 + $0x4f0] sm:$0xff] }
 0x26e   : > { %2235 = vmatmul.mubr.f32.gmra.mrb[34].mxu0 %v1880_v42  ;;  %7798 = vmatpush1.bf16.msra.mxu1 %v11982_v21  ;;  %v1884_v63 = vmax.f32 %v1473_v35, 0.0  ;;  %v12029_v21 = vpack.c.bf16 %v2733_v15, %v2729_v48  ;;  %v2741_v48 = vld [vmem:[%s14991_s1 + $0x5f8] sm:$0xff] }
 0x26f   : > { %v1478_v22 = vpop.f32.mrb[38].mxu1  ;;  %v1885_v26 = vmax.f32 %v1475_v43, 0.0  ;;  %7800 = vmatprep.subr.bf16.mxu1 %v11985_v8  ;;  %v15848_v43 = vld [vmem:[#allocation84_spill] sm:$0xff] }
 0x270   : > { %v1479_v38 = vadd.f32 %v1478_v22, %v11478_v45  ;;  %v1480_v42 = vpop.f32.mrb[39].mxu1  ;;  %2909 = vmatmul.mubr.f32.gmra.mrb[144].mxu1 %v15768_v52  ;;  %v12026_v22 = vpack.c.bf16 %v2724_v28, %v2720_v3  ;;  %15850 = vst [vmem:[#allocation218_spill] sm:$0xff] %v12029_v21  ;;  %v2737_v28 = vld [vmem:[%s14991_s1 + $0x5b8] sm:$0xff] }
 0x271   : > { %v1481_v1 = vadd.f32 %v1480_v42, %v11482_v9  ;;  %2240 = vmatprep.mubr.f32.mxu0 %v1885_v26  ;;  %2914 = vmatprep.mubr.f32.mxu1 %v15848_v43  ;;  %v2732_v26 = vld [vmem:[%s14991_s1 + $0x570] sm:$0xff]  ;;  %v12051_v23 = vpack.c.bf16 %v2741_v48, %v2737_v28  ;;  %v2749_v28 = vld [vmem:[%s14991_s1 + $0x678] sm:$0xff] }
 0x272   : > { %2241 = vmatmul.mubr.f32.gmra.mrb[36].mxu0 %v1884_v63  ;;  %7802 = vmatpush1.bf16.msra.mxu1 %v12004_v56  ;;  %15849 = vst [vmem:[#allocation84_spill] sm:$0xff] %v12026_v22  ;;  %v15851_v56 = vld [vmem:[#allocation85_spill] sm:$0xff]  ;;  %v1888_v3 = vmax.f32 %v1479_v38, 0.0 }
 0x273   : > { %v1484_v8 = vpop.f32.mrb[40].mxu1  ;;  %v1889_v35 = vmax.f32 %v1481_v1, 0.0  ;;  %7804 = vmatprep.subr.bf16.mxu1 %v12007_v36  ;;  %v15852_v1 = vld [vmem:[#allocation88_spill] sm:$0xff] }
 0x274   : > { %v1485_v42 = vadd.f32 %v1484_v8, %v11478_v45  ;;  %v1486_v63 = vpop.f32.mrb[41].mxu1  ;;  %2915 = vmatmul.mubr.f32.gmra.mrb[146].mxu1 %v15851_v56  ;;  %v12048_v8 = vpack.c.bf16 %v2732_v26, %v2728_v19  ;;  %15854 = vst [vmem:[#allocation88_spill] sm:$0xff] %v12051_v23  ;;  %v2745_v26 = vld [vmem:[%s14991_s1 + $0x638] sm:$0xff] }
 0x275   : > { %v1487_v15 = vadd.f32 %v1486_v63, %v11482_v9  ;;  %2246 = vmatprep.mubr.f32.mxu0 %v1889_v35  ;;  %2920 = vmatprep.mubr.f32.mxu1 %v15852_v1  ;;  %v2740_v35 = vld [vmem:[%s14991_s1 + $0x5f0] sm:$0xff]  ;;  %v12073_v31 = vpack.c.bf16 %v2749_v28, %v2745_v26  ;;  %v2757_v26 = vld [vmem:[%s14991_s1 + $0x6f8] sm:$0xff] }
 0x276   : > { %2247 = vmatmul.mubr.f32.gmra.mrb[38].mxu0 %v1888_v3  ;;  %7806 = vmatpush1.bf16.msra.mxu1 %v12026_v22  ;;  %15853 = vst [vmem:[#allocation85_spill] sm:$0xff] %v12048_v8  ;;  %v15855_v22 = vld [vmem:[#allocation89_spill] sm:$0xff]  ;;  %v1892_v19 = vmax.f32 %v1485_v42, 0.0 }
 0x277   : > { %v1490_v36 = vpop.f32.mrb[42].mxu1  ;;  %v1893_v38 = vmax.f32 %v1487_v15, 0.0  ;;  %7808 = vmatprep.subr.bf16.mxu1 %v12029_v21  ;;  %v15856_v15 = vld [vmem:[#allocation93_spill] sm:$0xff] }
 0x278   : > { %v1491_v63 = vadd.f32 %v1490_v36, %v11478_v45  ;;  %v1492_v3 = vpop.f32.mrb[43].mxu1  ;;  %2921 = vmatmul.mubr.f32.gmra.mrb[148].mxu1 %v15855_v22  ;;  %v12070_v36 = vpack.c.bf16 %v2740_v35, %v2736_v40  ;;  %15858 = vst [vmem:[#allocation93_spill] sm:$0xff] %v12073_v31  ;;  %v2753_v35 = vld [vmem:[%s14991_s1 + $0x6b8] sm:$0xff] }
 0x279   : > { %v1493_v48 = vadd.f32 %v1492_v3, %v11482_v9  ;;  %2252 = vmatprep.mubr.f32.mxu0 %v1893_v38  ;;  %2926 = vmatprep.mubr.f32.mxu1 %v15856_v15  ;;  %v2748_v38 = vld [vmem:[%s14991_s1 + $0x670] sm:$0xff] }
 0x27a   : > { %2253 = vmatmul.mubr.f32.gmra.mrb[40].mxu0 %v1892_v19  ;;  %7810 = vmatpush1.bf16.msra.mxu1 %v12048_v8  ;;  %15857 = vst [vmem:[#allocation89_spill] sm:$0xff] %v12070_v36  ;;  %v1896_v40 = vmax.f32 %v1491_v63, 0.0  ;;  %v12095_v8 = vpack.c.bf16 %v2757_v26, %v2753_v35  ;;  %v2765_v35 = vld [vmem:[%s14991_s1 + $0x778] sm:$0xff] }
 0x27b   : > { %v1496_v21 = vpop.f32.mrb[44].mxu1  ;;  %v1897_v42 = vmax.f32 %v1493_v48, 0.0  ;;  %7812 = vmatprep.subr.bf16.mxu1 %v12051_v23  ;;  %v15859_v48 = vld [vmem:[#allocation95_spill] sm:$0xff] }
 0x27c   : > { %v1497_v3 = vadd.f32 %v1496_v21, %v11478_v45  ;;  %v1498_v19 = vpop.f32.mrb[45].mxu1  ;;  %2927 = vmatmul.mubr.f32.gmra.mrb[150].mxu1 %v15779_v58  ;;  %v12092_v21 = vpack.c.bf16 %v2748_v38, %v2744_v53  ;;  %15861 = vst [vmem:[#allocation219_spill] sm:$0xff] %v12095_v8  ;;  %v2752_v58 = vld [vmem:[%s14991_s1 + $0x6b0] sm:$0xff]  ;;  %v2761_v38 = vld [vmem:[%s14991_s1 + $0x738] sm:$0xff] }
 0x27d   : > { %v1499_v28 = vadd.f32 %v1498_v19, %v11482_v9  ;;  %2258 = vmatprep.mubr.f32.mxu0 %v1897_v42  ;;  %2932 = vmatprep.mubr.f32.mxu1 %v15859_v48  ;;  %v2756_v42 = vld [vmem:[%s14991_s1 + $0x6f0] sm:$0xff] }
 0x27e   : > { %2259 = vmatmul.mubr.f32.gmra.mrb[42].mxu0 %v1896_v40  ;;  %7814 = vmatpush1.bf16.msra.mxu1 %v12070_v36  ;;  %15860 = vst [vmem:[#allocation95_spill] sm:$0xff] %v12092_v21  ;;  %v1900_v53 = vmax.f32 %v1497_v3, 0.0  ;;  %v2760_v36 = vld [vmem:[%s14991_s1 + $0x730] sm:$0xff] }
 0x27f   : > { %v1502_v23 = vpop.f32.mrb[46].mxu1  ;;  %v1901_v63 = vmax.f32 %v1499_v28, 0.0  ;;  %7816 = vmatprep.subr.bf16.mxu1 %v12073_v31  ;;  %v12117_v31 = vpack.c.bf16 %v2765_v35, %v2761_v38  ;;  %v2773_v38 = vld [vmem:[%s14991_s1 + $0x7f8] sm:$0xff] }
 0x280   : > { %v1503_v19 = vadd.f32 %v1502_v23, %v11478_v45  ;;  %v1504_v40 = vpop.f32.mrb[47].mxu1  ;;  %2933 = vmatmul.mubr.f32.gmra.mrb[152].mxu1 %v10596_v55  ;;  %v12114_v23 = vpack.c.bf16 %v2756_v42, %v2752_v58  ;;  %v2769_v42 = vld [vmem:[%s14991_s1 + $0x7b8] sm:$0xff] }
 0x281   : > { %v1505_v26 = vadd.f32 %v1504_v40, %v11482_v9  ;;  %2264 = vmatprep.mubr.f32.mxu0 %v1901_v63  ;;  %2938 = vmatprep.mubr.f32.mxu1 %v10611_v62  ;;  %15863 = vst [vmem:[#allocation221_spill] sm:$0xff] %v12117_v31  ;;  %v2764_v63 = vld [vmem:[%s14991_s1 + $0x770] sm:$0xff] }
 0x282   : > { %2265 = vmatmul.mubr.f32.gmra.mrb[44].mxu0 %v1900_v53  ;;  %7818 = vmatpush1.bf16.msra.mxu1 %v12092_v21  ;;  %15862 = vst [vmem:[#allocation220_spill] sm:$0xff] %v12114_v23  ;;  %v1904_v58 = vmax.f32 %v1503_v19, 0.0  ;;  %v12139_v21 = vpack.c.bf16 %v2773_v38, %v2769_v42 }
 0x283   : > { %v1508_v28 = vpop.f32.mrb[48].mxu1  ;;  %v1905_v3 = vmax.f32 %v1505_v26, 0.0  ;;  %7820 = vmatprep.subr.bf16.mxu1 %v12095_v8  ;;  %v15864_v26 = vld [vmem:[#allocation104_spill] sm:$0xff] }
 0x284   : > { %v1509_v40 = vadd.f32 %v1508_v28, %v11478_v45  ;;  %v1510_v53 = vpop.f32.mrb[49].mxu1  ;;  %2939 = vmatmul.mubr.f32.gmra.mrb[154].mxu1 %v10628_v61  ;;  %v12136_v28 = vpack.c.bf16 %v2764_v63, %v2760_v36  ;;  %15866 = vst [vmem:[#allocation222_spill] sm:$0xff] %v12139_v21  ;;  %v2768_v61 = vld [vmem:[%s14991_s1 + $0x7b0] sm:$0xff] }
 0x285   : > { %v1511_v35 = vadd.f32 %v1510_v53, %v11482_v9  ;;  %2270 = vmatprep.mubr.f32.mxu0 %v1905_v3  ;;  %2944 = vmatprep.mubr.f32.mxu1 %v15864_v26  ;;  %v2772_v3 = vld [vmem:[%s14991_s1 + $0x7f0] sm:$0xff] }
 0x286   : > { %2271 = vmatmul.mubr.f32.gmra.mrb[46].mxu0 %v1904_v58  ;;  %7822 = vmatpush1.bf16.msra.mxu1 %v12114_v23  ;;  %15865 = vst [vmem:[#allocation104_spill] sm:$0xff] %v12136_v28  ;;  %v1908_v36 = vmax.f32 %v1509_v40, 0.0  ;;  %v12152_v42 = vpack.c.bf16 %v2772_v3, %v2768_v61  ;;  %v15868_v3 = vld [vmem:[#allocation17_spill] sm:$0xff]  ;;  %v15872_v23 = vld [vmem:[#allocation120_spill] sm:$0xff] }
 0x287   : > { %v1514_v8 = vpop.f32.mrb[50].mxu1  ;;  %v1909_v19 = vmax.f32 %v1511_v35, 0.0  ;;  %7824 = vmatprep.subr.bf16.mxu1 %v12117_v31 }
 0x288   : > { %v1515_v53 = vadd.f32 %v1514_v8, %v11478_v45  ;;  %v1516_v58 = vpop.f32.mrb[51].mxu1  ;;  %2945 = vmatmul.mubr.f32.gmra.mrb[156].mxu1 %v10671_v5  ;;  %15867 = vst [vmem:[#allocation223_spill] sm:$0xff] %v12152_v42 }
 0x289   : > { %v1517_v63 = vadd.f32 %v1516_v58, %v11482_v9  ;;  %2276 = vmatprep.mubr.f32.mxu0 %v1909_v19  ;;  %2950 = vmatprep.mubr.f32.mxu1 %v10687_v4 }
 0x28a   : > { %2277 = vmatmul.mubr.f32.gmra.mrb[48].mxu0 %v1908_v36  ;;  %7826 = vmatpush1.bf16.msra.mxu1 %v12136_v28  ;;  %v1912_v40 = vmax.f32 %v1515_v53, 0.0 }
 0x28b   : > { %v1520_v38 = vpop.f32.mrb[52].mxu1  ;;  %v1913_v35 = vmax.f32 %v1517_v63, 0.0  ;;  %7828 = vmatprep.subr.bf16.mxu1 %v12139_v21  ;;  %v15870_v21 = vld [vmem:[#allocation116_spill] sm:$0xff] }
 0x28c   : > { %v1521_v8 = vadd.f32 %v1520_v38, %v11478_v45  ;;  %v1522_v31 = vpop.f32.mrb[53].mxu1  ;;  %2951 = vmatmul.mubr.f32.gmra.mrb[158].mxu1 %v10712_v17 }
 0x28d   : > { %v1523_v58 = vadd.f32 %v1522_v31, %v11482_v9  ;;  %2282 = vmatprep.mubr.f32.mxu0 %v1913_v35  ;;  %2956 = vmatprep.mubr.f32.mxu1 %v10718_v18 }
 0x28e   : > { %2283 = vmatmul.mubr.f32.gmra.mrb[50].mxu0 %v1912_v40  ;;  %7830 = vmatpush1.bf16.msra.mxu1 %v12152_v42  ;;  %v1916_v38 = vmax.f32 %v1521_v8, 0.0 }
 0x28f   : > { %v1526_v61 = vpop.f32.mrb[54].mxu1  ;;  %v1917_v19 = vmax.f32 %v1523_v58, 0.0  ;;  %7960 = vmatprep.subr.bf16.mxu1 %v15868_v3 }
 0x290   : > { %v1527_v36 = vadd.f32 %v1526_v61, %v11478_v45  ;;  %v1528_v63 = vpop.f32.mrb[55].mxu1  ;;  %2957 = vmatmul.mubr.f32.gmra.mrb[160].mxu1 %v10736_v39 }
 0x291   : > { %v1529_v53 = vadd.f32 %v1528_v63, %v11482_v9  ;;  %2288 = vmatprep.mubr.f32.mxu0 %v1917_v19  ;;  %2962 = vmatprep.mubr.f32.mxu1 %v10742_v25 }
 0x292   : > { %2289 = vmatmul.mubr.f32.gmra.mrb[52].mxu0 %v1916_v38  ;;  %v1920_v58 = vmax.f32 %v1527_v36, 0.0 }
 0x293   : > { %v1532_v31 = vpop.f32.mrb[56].mxu1  ;;  %v1921_v35 = vmax.f32 %v1529_v53, 0.0 }
 0x294   : > { %v1533_v40 = vadd.f32 %v1532_v31, %v11478_v45  ;;  %v1534_v42 = vpop.f32.mrb[57].mxu1  ;;  %2963 = vmatmul.mubr.f32.gmra.mrb[162].mxu1 %v10772_v20 }
 0x295   : > { %v1535_v61 = vadd.f32 %v1534_v42, %v11482_v9  ;;  %2294 = vmatprep.mubr.f32.mxu0 %v1921_v35  ;;  %2968 = vmatprep.mubr.f32.mxu1 %v10779_v47 }
 0x296   : > { %2295 = vmatmul.mubr.f32.gmra.mrb[54].mxu0 %v1920_v58  ;;  %v1924_v38 = vmax.f32 %v1533_v40, 0.0  ;;  %v15869_v58 = vld [vmem:[#allocation114_spill] sm:$0xff] }
 0x297   : > { %v1538_v8 = vpop.f32.mrb[58].mxu1  ;;  %v1925_v3 = vmax.f32 %v1535_v61, 0.0 }
 0x298   : > { %v1539_v19 = vadd.f32 %v1538_v8, %v11478_v45  ;;  %v1540_v63 = vpop.f32.mrb[59].mxu1  ;;  %2969 = vmatmul.mubr.f32.gmra.mrb[164].mxu1 %v10803_v11 }
 0x299   : > { %v1541_v53 = vadd.f32 %v1540_v63, %v11482_v9  ;;  %2300 = vmatprep.mubr.f32.mxu0 %v1925_v3  ;;  %2974 = vmatprep.mubr.f32.mxu1 %v10810_v33 }
 0x29a   : > { %2301 = vmatmul.mubr.f32.gmra.mrb[56].mxu0 %v1924_v38  ;;  %v1928_v61 = vmax.f32 %v1539_v19, 0.0  ;;  %v15871_v38 = vld [vmem:[#allocation118_spill] sm:$0xff] }
 0x29b   : > { %v1544_v36 = vpop.f32.mrb[60].mxu1  ;;  %v1929_v42 = vmax.f32 %v1541_v53, 0.0 }
 0x29c   : > { %v1545_v31 = vadd.f32 %v1544_v36, %v11478_v45  ;;  %v1546_v35 = vpop.f32.mrb[61].mxu1  ;;  %2975 = vmatmul.mubr.f32.gmra.mrb[166].mxu1 %v15869_v58 }
 0x29d   : > { %v1547_v8 = vadd.f32 %v1546_v35, %v11482_v9  ;;  %2306 = vmatprep.mubr.f32.mxu0 %v1929_v42  ;;  %2980 = vmatprep.mubr.f32.mxu1 %v15870_v21  ;;  %v15873_v42 = vld [vmem:[#allocation59_spill] sm:$0xff] }
 0x29e   : > { %2307 = vmatmul.mubr.f32.gmra.mrb[58].mxu0 %v1928_v61  ;;  %v1932_v53 = vmax.f32 %v1545_v31, 0.0  ;;  %v15874_v61 = vld [vmem:[#allocation122_spill] sm:$0xff]  ;;  %v15875_v31 = vld [vmem:[#allocation60_spill] sm:$0xff] }
 0x29f   : > { %v1550_v40 = vpop.f32.mrb[62].mxu1  ;;  %v1933_v63 = vmax.f32 %v1547_v8, 0.0 }
 0x2a0   : > { %v1551_v3 = vadd.f32 %v1550_v40, %v11478_v45  ;;  %v1552_v28 = vpop.f32.mrb[63].mxu1  ;;  %2981 = vmatmul.mubr.f32.gmra.mrb[168].mxu1 %v15871_v38  ;;  %v3438_v40 = vld [vmem:[%s14993_s3 + $0x400] sm:$0xff] }
 0x2a1   : > { %v1553_v36 = vadd.f32 %v1552_v28, %v11482_v9  ;;  %2312 = vmatprep.mubr.f32.mxu0 %v1933_v63  ;;  %2986 = vmatprep.mubr.f32.mxu1 %v15872_v23  ;;  %v3440_v28 = vld [vmem:[%s14993_s3 + $0x410] sm:$0xff] }
 0x2a2   : > { %2313 = vmatmul.mubr.f32.gmra.mrb[60].mxu0 %v1932_v53  ;;  %v1936_v8 = vmax.f32 %v1551_v3, 0.0  ;;  %v15876_v53 = vld [vmem:[#allocation124_spill] sm:$0xff]  ;;  %v3445_v3 = vld [vmem:[%s14993_s3 + $0x438] sm:$0xff]  ;;  %v12197_v45 = vpack.c.bf16 %v3440_v28, %v3438_v40 }
 0x2a3   : > { %v1621_v19 = vpop.f32.mrb[64].mxu1  ;;  %v1937_v35 = vmax.f32 %v1553_v36, 0.0  ;;  %v3443_v36 = vld [vmem:[%s14993_s3 + $0x428] sm:$0xff]  ;;  %v15879_v40 = vld [vmem:[#allocation128_spill] sm:$0xff]  ;;  %v3449_v28 = vld [vmem:[%s14993_s3 + $0x458] sm:$0xff] }
 0x2a4   : > { %v1622_v58 = vadd.f32 %v1621_v19, %v15873_v42  ;;  %v1623_v21 = vpop.f32.mrb[65].mxu1  ;;  %2987 = vmatmul.mubr.f32.gmra.mrb[170].mxu1 %v15874_v61  ;;  %15877 = vst [vmem:[#allocation17_spill] sm:$0xff] %v12197_v45 }
 0x2a5   : > { %v1624_v63 = vadd.f32 %v1623_v21, %v15875_v31  ;;  %2318 = vmatprep.mubr.f32.mxu0 %v1937_v35  ;;  %2992 = vmatprep.mubr.f32.mxu1 %v15876_v53  ;;  %v12201_v35 = vpack.c.bf16 %v3445_v3, %v3443_v36  ;;  %v3442_v53 = vld [vmem:[%s14993_s3 + $0x420] sm:$0xff] }
 0x2a6   : > { %2319 = vmatmul.mubr.f32.gmra.mrb[62].mxu0 %v1936_v8  ;;  %v1814_v61 = vmax.f32 %v1622_v58, 0.0  ;;  %v3444_v8 = vld [vmem:[%s14993_s3 + $0x430] sm:$0xff]  ;;  %v3447_v58 = vld [vmem:[%s14993_s3 + $0x448] sm:$0xff] }
 0x2a7   : > { %v1627_v19 = vpop.f32.mrb[66].mxu1  ;;  %v1815_v9 = vmax.f32 %v1624_v63, 0.0  ;;  %15878 = vst [vmem:[#allocation118_spill] sm:$0xff] %v12201_v35 }
 0x2a8   : > { %v1628_v23 = vadd.f32 %v1627_v19, %v15873_v42  ;;  %v1629_v21 = vpop.f32.mrb[67].mxu1  ;;  %2993 = vmatmul.mubr.f32.gmra.mrb[172].mxu1 %v10923_v60  ;;  %v12218_v19 = vpack.c.bf16 %v3444_v8, %v3442_v53  ;;  %v12223_v60 = vpack.c.bf16 %v3449_v28, %v3447_v58  ;;  %v3453_v8 = vld [vmem:[%s14993_s3 + $0x478] sm:$0xff] }
 0x2a9   : > { %v1630_v63 = vadd.f32 %v1629_v21, %v15875_v31  ;;  %2389 = vmatprep.mubr.f32.mxu0 %v1815_v9  ;;  %2998 = vmatprep.mubr.f32.mxu1 %v15879_v40 }
 0x2aa   : > { %2390 = vmatmul.mubr.f32.vlgmr.msra.gmra.mrb[0].mxu0 %v1814_v61  ;;  %15880 = vst [vmem:[#allocation224_spill] sm:$0xff] %v12218_v19  ;;  %v1818_v40 = vmax.f32 %v1628_v23, 0.0  ;;  %15881 = vst [vmem:[#allocation225_spill] sm:$0xff] %v12223_v60  ;;  %v3446_v61 = vld [vmem:[%s14993_s3 + $0x440] sm:$0xff]  ;;  %v3451_v23 = vld [vmem:[%s14993_s3 + $0x468] sm:$0xff] }
 0x2ab   : > { %7834 = vmatpush1.bf16.msra.mxu0 %v12197_v45  ;;  %v1633_v36 = vpop.f32.mrb[68].mxu1  ;;  %v1819_v3 = vmax.f32 %v1630_v63, 0.0  ;;  %v3448_v63 = vld [vmem:[%s14993_s3 + $0x450] sm:$0xff]  ;;  %v12245_v45 = vpack.c.bf16 %v3453_v8, %v3451_v23 }
 0x2ac   : > { %v1634_v21 = vadd.f32 %v1633_v36, %v15873_v42  ;;  %v1635_v9 = vpop.f32.mrb[69].mxu1  ;;  %2999 = vmatmul.mubr.f32.gmra.mrb[174].mxu1 %v10953_v14  ;;  %7836 = vmatprep.subr.bf16.mxu0 %v12201_v35  ;;  %v12240_v36 = vpack.c.bf16 %v3448_v63, %v3446_v61  ;;  %v3457_v63 = vld [vmem:[%s14993_s3 + $0x498] sm:$0xff] }
 0x2ad   : > { %v1636_v53 = vadd.f32 %v1635_v9, %v15875_v31  ;;  %2395 = vmatprep.mubr.f32.mxu0 %v1819_v3  ;;  %3004 = vmatprep.mubr.f32.mxu1 %v10960_v57  ;;  %15883 = vst [vmem:[#allocation227_spill] sm:$0xff] %v12245_v45 }
 0x2ae   : > { %2396 = vmatmul.mubr.f32.gmra.mrb[2].mxu0 %v1818_v40  ;;  %15882 = vst [vmem:[#allocation226_spill] sm:$0xff] %v12240_v36  ;;  %v1822_v35 = vmax.f32 %v1634_v21, 0.0  ;;  %v3450_v40 = vld [vmem:[%s14993_s3 + $0x460] sm:$0xff]  ;;  %v3455_v21 = vld [vmem:[%s14993_s3 + $0x488] sm:$0xff] }
 0x2af   : > { %v1639_v58 = vpop.f32.mrb[70].mxu1  ;;  %v1823_v28 = vmax.f32 %v1636_v53, 0.0  ;;  %7838 = vmatpush1.bf16.msra.mxu0 %v12218_v19  ;;  %v3452_v53 = vld [vmem:[%s14993_s3 + $0x470] sm:$0xff]  ;;  %v12267_v19 = vpack.c.bf16 %v3457_v63, %v3455_v21  ;;  %v3461_v21 = vld [vmem:[%s14993_s3 + $0x4b8] sm:$0xff] }
 0x2b0   : > { %v1640_v9 = vadd.f32 %v1639_v58, %v15873_v42  ;;  %v1641_v3 = vpop.f32.mrb[71].mxu1  ;;  %3005 = vmatmul.mubr.f32.gmra.mrb[176].mxu1 %v10982_v37  ;;  %7840 = vmatprep.subr.bf16.mxu0 %v12223_v60  ;;  %v12262_v58 = vpack.c.bf16 %v3452_v53, %v3450_v40  ;;  %v15886_v53 = vld [vmem:[#allocation134_spill] sm:$0xff] }
 0x2b1   : > { %v1642_v61 = vadd.f32 %v1641_v3, %v15875_v31  ;;  %2401 = vmatprep.mubr.f32.mxu0 %v1823_v28  ;;  %3010 = vmatprep.mubr.f32.mxu1 %v10990_v44  ;;  %15885 = vst [vmem:[#allocation229_spill] sm:$0xff] %v12267_v19 }
 0x2b2   : > { %2402 = vmatmul.mubr.f32.gmra.mrb[4].mxu0 %v1822_v35  ;;  %15884 = vst [vmem:[#allocation228_spill] sm:$0xff] %v12262_v58  ;;  %v1826_v60 = vmax.f32 %v1640_v9, 0.0  ;;  %v3454_v35 = vld [vmem:[%s14993_s3 + $0x480] sm:$0xff]  ;;  %v3459_v9 = vld [vmem:[%s14993_s3 + $0x4a8] sm:$0xff] }
 0x2b3   : > { %v1645_v23 = vpop.f32.mrb[72].mxu1  ;;  %v1827_v8 = vmax.f32 %v1642_v61, 0.0  ;;  %7842 = vmatpush1.bf16.msra.mxu0 %v12240_v36  ;;  %v3456_v61 = vld [vmem:[%s14993_s3 + $0x490] sm:$0xff]  ;;  %v15888_v36 = vld [vmem:[#allocation135_spill] sm:$0xff] }
 0x2b4   : > { %v1646_v3 = vadd.f32 %v1645_v23, %v15873_v42  ;;  %v1647_v28 = vpop.f32.mrb[73].mxu1  ;;  %3011 = vmatmul.mubr.f32.gmra.mrb[178].mxu1 %v11013_v59  ;;  %7844 = vmatprep.subr.bf16.mxu0 %v12245_v45  ;;  %v12284_v45 = vpack.c.bf16 %v3456_v61, %v3454_v35  ;;  %v12289_v59 = vpack.c.bf16 %v3461_v21, %v3459_v9  ;;  %v15890_v61 = vld [vmem:[#allocation136_spill] sm:$0xff]  ;;  %v3465_v9 = vld [vmem:[%s14993_s3 + $0x4d8] sm:$0xff] }
 0x2b5   : > { %v1648_v40 = vadd.f32 %v1647_v28, %v15875_v31  ;;  %2407 = vmatprep.mubr.f32.mxu0 %v1827_v8  ;;  %3016 = vmatprep.mubr.f32.mxu1 %v15886_v53 }
 0x2b6   : > { %2408 = vmatmul.mubr.f32.gmra.mrb[6].mxu0 %v1826_v60  ;;  %15887 = vst [vmem:[#allocation230_spill] sm:$0xff] %v12284_v45  ;;  %v1830_v53 = vmax.f32 %v1646_v3, 0.0  ;;  %15889 = vst [vmem:[#allocation135_spill] sm:$0xff] %v12289_v59  ;;  %v3458_v60 = vld [vmem:[%s14993_s3 + $0x4a0] sm:$0xff]  ;;  %v3463_v3 = vld [vmem:[%s14993_s3 + $0x4c8] sm:$0xff] }
 0x2b7   : > { %v1651_v63 = vpop.f32.mrb[74].mxu1  ;;  %v1831_v23 = vmax.f32 %v1648_v40, 0.0  ;;  %7846 = vmatpush1.bf16.msra.mxu0 %v12262_v58  ;;  %v3460_v40 = vld [vmem:[%s14993_s3 + $0x4b0] sm:$0xff] }
 0x2b8   : > { %v1652_v28 = vadd.f32 %v1651_v63, %v15873_v42  ;;  %v1653_v8 = vpop.f32.mrb[75].mxu1  ;;  %3017 = vmatmul.mubr.f32.gmra.mrb[180].mxu1 %v15888_v36  ;;  %7848 = vmatprep.subr.bf16.mxu0 %v12267_v19  ;;  %v12306_v19 = vpack.c.bf16 %v3460_v40, %v3458_v60  ;;  %v15893_v40 = vld [vmem:[#allocation138_spill] sm:$0xff] }
 0x2b9   : > { %v1654_v35 = vadd.f32 %v1653_v8, %v15875_v31  ;;  %2413 = vmatprep.mubr.f32.mxu0 %v1831_v23  ;;  %3022 = vmatprep.mubr.f32.mxu1 %v15890_v61  ;;  %v12311_v61 = vpack.c.bf16 %v3465_v9, %v3463_v3  ;;  %v3469_v3 = vld [vmem:[%s14993_s3 + $0x4f8] sm:$0xff] }
 0x2ba   : > { %2414 = vmatmul.mubr.f32.gmra.mrb[8].mxu0 %v1830_v53  ;;  %15891 = vst [vmem:[#allocation231_spill] sm:$0xff] %v12306_v19  ;;  %v1834_v58 = vmax.f32 %v1652_v28, 0.0  ;;  %v3462_v53 = vld [vmem:[%s14993_s3 + $0x4c0] sm:$0xff]  ;;  %v3467_v28 = vld [vmem:[%s14993_s3 + $0x4e8] sm:$0xff] }
 0x2bb   : > { %v1657_v21 = vpop.f32.mrb[76].mxu1  ;;  %v1835_v63 = vmax.f32 %v1654_v35, 0.0  ;;  %7850 = vmatpush1.bf16.msra.mxu0 %v12284_v45  ;;  %15892 = vst [vmem:[#allocation232_spill] sm:$0xff] %v12311_v61  ;;  %v3464_v35 = vld [vmem:[%s14993_s3 + $0x4d0] sm:$0xff] }
 0x2bc   : > { %v1658_v8 = vadd.f32 %v1657_v21, %v15873_v42  ;;  %v1659_v23 = vpop.f32.mrb[77].mxu1  ;;  %3023 = vmatmul.mubr.f32.gmra.mrb[182].mxu1 %v15807_v16  ;;  %7852 = vmatprep.subr.bf16.mxu0 %v12289_v59  ;;  %v12328_v59 = vpack.c.bf16 %v3464_v35, %v3462_v53  ;;  %v3473_v35 = vld [vmem:[%s14993_s3 + $0x518] sm:$0xff] }
 0x2bd   : > { %v1660_v60 = vadd.f32 %v1659_v23, %v15875_v31  ;;  %2419 = vmatprep.mubr.f32.mxu0 %v1835_v63  ;;  %3028 = vmatprep.mubr.f32.mxu1 %v15893_v40  ;;  %v12333_v40 = vpack.c.bf16 %v3469_v3, %v3467_v28 }
 0x2be   : > { %2420 = vmatmul.mubr.f32.gmra.mrb[10].mxu0 %v1834_v58  ;;  %15894 = vst [vmem:[#allocation233_spill] sm:$0xff] %v12328_v59  ;;  %v1838_v45 = vmax.f32 %v1658_v8, 0.0  ;;  %v3466_v58 = vld [vmem:[%s14993_s3 + $0x4e0] sm:$0xff]  ;;  %v3471_v8 = vld [vmem:[%s14993_s3 + $0x508] sm:$0xff] }
 0x2bf   : > { %v1663_v9 = vpop.f32.mrb[78].mxu1  ;;  %v1839_v21 = vmax.f32 %v1660_v60, 0.0  ;;  %7854 = vmatpush1.bf16.msra.mxu0 %v12306_v19  ;;  %15895 = vst [vmem:[#allocation234_spill] sm:$0xff] %v12333_v40  ;;  %v3468_v60 = vld [vmem:[%s14993_s3 + $0x4f0] sm:$0xff]  ;;  %v12355_v19 = vpack.c.bf16 %v3473_v35, %v3471_v8 }
 0x2c0   : > { %v1664_v23 = vadd.f32 %v1663_v9, %v15873_v42  ;;  %v1665_v63 = vpop.f32.mrb[79].mxu1  ;;  %3029 = vmatmul.mubr.f32.gmra.mrb[184].mxu1 %v11102_v10  ;;  %7856 = vmatprep.subr.bf16.mxu0 %v12311_v61  ;;  %v12350_v9 = vpack.c.bf16 %v3468_v60, %v3466_v58  ;;  %v3477_v60 = vld [vmem:[%s14993_s3 + $0x538] sm:$0xff] }
 0x2c1   : > { %v1666_v53 = vadd.f32 %v1665_v63, %v15875_v31  ;;  %2425 = vmatprep.mubr.f32.mxu0 %v1839_v21  ;;  %3034 = vmatprep.mubr.f32.mxu1 %v11110_v50  ;;  %15897 = vst [vmem:[#allocation236_spill] sm:$0xff] %v12355_v19 }
 0x2c2   : > { %2426 = vmatmul.mubr.f32.gmra.mrb[12].mxu0 %v1838_v45  ;;  %15896 = vst [vmem:[#allocation235_spill] sm:$0xff] %v12350_v9  ;;  %v1842_v61 = vmax.f32 %v1664_v23, 0.0  ;;  %v3470_v45 = vld [vmem:[%s14993_s3 + $0x500] sm:$0xff]  ;;  %v3475_v23 = vld [vmem:[%s14993_s3 + $0x528] sm:$0xff] }
 0x2c3   : > { %v1669_v28 = vpop.f32.mrb[80].mxu1  ;;  %v1843_v3 = vmax.f32 %v1666_v53, 0.0  ;;  %7858 = vmatpush1.bf16.msra.mxu0 %v12328_v59  ;;  %v3472_v53 = vld [vmem:[%s14993_s3 + $0x510] sm:$0xff] }
 0x2c4   : > { %v1670_v63 = vadd.f32 %v1669_v28, %v15873_v42  ;;  %v1671_v21 = vpop.f32.mrb[81].mxu1  ;;  %3035 = vmatmul.mubr.f32.gmra.mrb[186].mxu1 %v11120_v49  ;;  %7860 = vmatprep.subr.bf16.mxu0 %v12333_v40  ;;  %v12372_v28 = vpack.c.bf16 %v3472_v53, %v3470_v45  ;;  %v15899_v40 = vld [vmem:[#allocation139_spill] sm:$0xff]  ;;  %v15901_v53 = vld [vmem:[#allocation140_spill] sm:$0xff] }
 0x2c5   : > { %v1672_v58 = vadd.f32 %v1671_v21, %v15875_v31  ;;  %2431 = vmatprep.mubr.f32.mxu0 %v1843_v3  ;;  %3040 = vmatprep.mubr.f32.mxu1 %v11126_v41  ;;  %v12377_v41 = vpack.c.bf16 %v3477_v60, %v3475_v23  ;;  %v3481_v23 = vld [vmem:[%s14993_s3 + $0x558] sm:$0xff] }
 0x2c6   : > { %2432 = vmatmul.mubr.f32.gmra.mrb[14].mxu0 %v1842_v61  ;;  %15898 = vst [vmem:[#allocation237_spill] sm:$0xff] %v12372_v28  ;;  %v1846_v59 = vmax.f32 %v1670_v63, 0.0  ;;  %v3474_v61 = vld [vmem:[%s14993_s3 + $0x520] sm:$0xff]  ;;  %v3479_v63 = vld [vmem:[%s14993_s3 + $0x548] sm:$0xff] }
 0x2c7   : > { %v1675_v8 = vpop.f32.mrb[82].mxu1  ;;  %v1847_v35 = vmax.f32 %v1672_v58, 0.0  ;;  %7862 = vmatpush1.bf16.msra.mxu0 %v12350_v9  ;;  %15900 = vst [vmem:[#allocation238_spill] sm:$0xff] %v12377_v41  ;;  %v3476_v58 = vld [vmem:[%s14993_s3 + $0x530] sm:$0xff]  ;;  %v15903_v9 = vld [vmem:[#allocation141_spill] sm:$0xff] }
 0x2c8   : > { %v1676_v21 = vadd.f32 %v1675_v8, %v15873_v42  ;;  %v1677_v3 = vpop.f32.mrb[83].mxu1  ;;  %3041 = vmatmul.mubr.f32.gmra.mrb[188].mxu1 %v15899_v40  ;;  %7864 = vmatprep.subr.bf16.mxu0 %v12355_v19  ;;  %v12394_v19 = vpack.c.bf16 %v3476_v58, %v3474_v61  ;;  %v12399_v40 = vpack.c.bf16 %v3481_v23, %v3479_v63  ;;  %v15905_v58 = vld [vmem:[#allocation15_spill] sm:$0xff]  ;;  %v3485_v63 = vld [vmem:[%s14993_s3 + $0x578] sm:$0xff] }
 0x2c9   : > { %v1678_v45 = vadd.f32 %v1677_v3, %v15875_v31  ;;  %2437 = vmatprep.mubr.f32.mxu0 %v1847_v35  ;;  %3046 = vmatprep.mubr.f32.mxu1 %v15901_v53 }
 0x2ca   : > { %2438 = vmatmul.mubr.f32.gmra.mrb[16].mxu0 %v1846_v59  ;;  %15902 = vst [vmem:[#allocation239_spill] sm:$0xff] %v12394_v19  ;;  %v1850_v53 = vmax.f32 %v1676_v21, 0.0  ;;  %15904 = vst [vmem:[#allocation141_spill] sm:$0xff] %v12399_v40  ;;  %v3478_v59 = vld [vmem:[%s14993_s3 + $0x540] sm:$0xff]  ;;  %v3483_v21 = vld [vmem:[%s14993_s3 + $0x568] sm:$0xff] }
 0x2cb   : > { %v1681_v60 = vpop.f32.mrb[84].mxu1  ;;  %v1851_v8 = vmax.f32 %v1678_v45, 0.0  ;;  %7866 = vmatpush1.bf16.msra.mxu0 %v12372_v28  ;;  %v3480_v45 = vld [vmem:[%s14993_s3 + $0x550] sm:$0xff]  ;;  %v12421_v28 = vpack.c.bf16 %v3485_v63, %v3483_v21 }
 0x2cc   : > { %v1682_v3 = vadd.f32 %v1681_v60, %v15873_v42  ;;  %v1683_v35 = vpop.f32.mrb[85].mxu1  ;;  %3047 = vmatmul.mubr.f32.gmra.mrb[190].mxu1 %v15903_v9  ;;  %7868 = vmatprep.subr.bf16.mxu0 %v12377_v41  ;;  %v12416_v41 = vpack.c.bf16 %v3480_v45, %v3478_v59  ;;  %v15908_v45 = vld [vmem:[#allocation18_spill] sm:$0xff] }
 0x2cd   : > { %v1684_v61 = vadd.f32 %v1683_v35, %v15875_v31  ;;  %2443 = vmatprep.mubr.f32.mxu0 %v1851_v8  ;;  %3117 = vmatprep.mubr.f32.mxu1 %v15905_v58  ;;  %15907 = vst [vmem:[#allocation240_spill] sm:$0xff] %v12421_v28 }
 0x2ce   : > { %2444 = vmatmul.mubr.f32.gmra.mrb[18].mxu0 %v1850_v53  ;;  %15906 = vst [vmem:[#allocation15_spill] sm:$0xff] %v12416_v41  ;;  %v1854_v58 = vmax.f32 %v1682_v3, 0.0  ;;  %v3482_v53 = vld [vmem:[%s14993_s3 + $0x560] sm:$0xff]  ;;  %v3489_v3 = vld [vmem:[%s14993_s3 + $0x598] sm:$0xff] }
 0x2cf   : > { %v1687_v23 = vpop.f32.mrb[86].mxu1  ;;  %v1855_v60 = vmax.f32 %v1684_v61, 0.0  ;;  %7870 = vmatpush1.bf16.msra.mxu0 %v12394_v19  ;;  %v3484_v61 = vld [vmem:[%s14993_s3 + $0x570] sm:$0xff] }
 0x2d0   : > { %v1688_v35 = vadd.f32 %v1687_v23, %v15873_v42  ;;  %v1689_v8 = vpop.f32.mrb[87].mxu1  ;;  %3118 = vmatmul.mubr.f32.vlgmr.msra.gmra.mrb[192].mxu1 %v15745_v32  ;;  %7872 = vmatprep.subr.bf16.mxu0 %v12399_v40  ;;  %v3487_v32 = vld [vmem:[%s14993_s3 + $0x588] sm:$0xff]  ;;  %v12439_v23 = vpack.c.bf16 %v3484_v61, %v3482_v53  ;;  %v3488_v53 = vld [vmem:[%s14993_s3 + $0x590] sm:$0xff] }
 0x2d1   : > { %v1690_v59 = vadd.f32 %v1689_v8, %v15875_v31  ;;  %2449 = vmatprep.mubr.f32.mxu0 %v1855_v60  ;;  %3123 = vmatprep.mubr.f32.mxu1 %v15746_v24  ;;  %v15910_v60 = vld [vmem:[#allocation19_spill] sm:$0xff]  ;;  %v12445_v19 = vpack.c.bf16 %v3489_v3, %v3487_v32  ;;  %v15913_v32 = vld [vmem:[#allocation20_spill] sm:$0xff] }
 0x2d2   : > { %2450 = vmatmul.mubr.f32.gmra.mrb[20].mxu0 %v1854_v58  ;;  %7962 = vmatpush1.bf16.msra.mxu1 %v15908_v45  ;;  %15909 = vst [vmem:[#allocation18_spill] sm:$0xff] %v12439_v23  ;;  %v1858_v40 = vmax.f32 %v1688_v35, 0.0  ;;  %v3486_v58 = vld [vmem:[%s14993_s3 + $0x580] sm:$0xff]  ;;  %v3493_v35 = vld [vmem:[%s14993_s3 + $0x5b8] sm:$0xff] }
 0x2d3   : > { %v1693_v21 = vpop.f32.mrb[88].mxu1  ;;  %v1859_v63 = vmax.f32 %v1690_v59, 0.0  ;;  %7874 = vmatpush1.bf16.msra.mxu0 %v12416_v41  ;;  %7964 = vmatprep.subr.bf16.mxu1 %v15910_v60  ;;  %15911 = vst [vmem:[#allocation19_spill] sm:$0xff] %v12445_v19  ;;  %v15912_v59 = vld [vmem:[#allocation69_spill] sm:$0xff] }
 0x2d4   : > { %v1694_v24 = vadd.f32 %v1693_v21, %v15873_v42  ;;  %v1695_v8 = vpop.f32.mrb[89].mxu1  ;;  %3124 = vmatmul.mubr.f32.gmra.mrb[194].mxu1 %v15749_v0  ;;  %7876 = vmatprep.subr.bf16.mxu0 %v12421_v28  ;;  %v3491_v0 = vld [vmem:[%s14993_s3 + $0x5a8] sm:$0xff]  ;;  %v12463_v21 = vpack.c.bf16 %v3488_v53, %v3486_v58  ;;  %v3492_v58 = vld [vmem:[%s14993_s3 + $0x5b0] sm:$0xff] }
 0x2d5   : > { %v1696_v61 = vadd.f32 %v1695_v8, %v15875_v31  ;;  %2455 = vmatprep.mubr.f32.mxu0 %v1859_v63  ;;  %3129 = vmatprep.mubr.f32.mxu1 %v15912_v59  ;;  %v15915_v63 = vld [vmem:[#allocation21_spill] sm:$0xff]  ;;  %v12469_v28 = vpack.c.bf16 %v3493_v35, %v3491_v0 }
 0x2d6   : > { %2456 = vmatmul.mubr.f32.gmra.mrb[22].mxu0 %v1858_v40  ;;  %7966 = vmatpush1.bf16.msra.mxu1 %v15913_v32  ;;  %15914 = vst [vmem:[#allocation69_spill] sm:$0xff] %v12463_v21  ;;  %v1862_v59 = vmax.f32 %v1694_v24, 0.0  ;;  %v3490_v40 = vld [vmem:[%s14993_s3 + $0x5a0] sm:$0xff]  ;;  %v3497_v24 = vld [vmem:[%s14993_s3 + $0x5d8] sm:$0xff] }
 0x2d7   : > { %v1699_v3 = vpop.f32.mrb[90].mxu1  ;;  %v1863_v45 = vmax.f32 %v1696_v61, 0.0  ;;  %7878 = vmatpush1.bf16.msra.mxu0 %v12439_v23  ;;  %7968 = vmatprep.subr.bf16.mxu1 %v15915_v63  ;;  %15916 = vst [vmem:[#allocation20_spill] sm:$0xff] %v12469_v28  ;;  %v15917_v61 = vld [vmem:[#allocation22_spill] sm:$0xff]  ;;  %v12487_v32 = vpack.c.bf16 %v3492_v58, %v3490_v40  ;;  %v3496_v40 = vld [vmem:[%s14993_s3 + $0x5d0] sm:$0xff] }
 0x2d8   : > { %v1700_v60 = vadd.f32 %v1699_v3, %v15873_v42  ;;  %v1701_v8 = vpop.f32.mrb[91].mxu1  ;;  %3130 = vmatmul.mubr.f32.gmra.mrb[196].mxu1 %v15753_v30  ;;  %7880 = vmatprep.subr.bf16.mxu0 %v12445_v19  ;;  %v3495_v30 = vld [vmem:[%s14993_s3 + $0x5c8] sm:$0xff] }
 0x2d9   : > { %v1702_v53 = vadd.f32 %v1701_v8, %v15875_v31  ;;  %2461 = vmatprep.mubr.f32.mxu0 %v1863_v45  ;;  %3135 = vmatprep.mubr.f32.mxu1 %v15754_v2  ;;  %15918 = vst [vmem:[#allocation21_spill] sm:$0xff] %v12487_v32  ;;  %v15919_v3 = vld [vmem:[#allocation23_spill] sm:$0xff]  ;;  %v12493_v8 = vpack.c.bf16 %v3497_v24, %v3495_v30 }
 0x2da   : > { %2462 = vmatmul.mubr.f32.gmra.mrb[24].mxu0 %v1862_v59  ;;  %7970 = vmatpush1.bf16.msra.mxu1 %v15917_v61  ;;  %v1866_v63 = vmax.f32 %v1700_v60, 0.0  ;;  %v3494_v59 = vld [vmem:[%s14993_s3 + $0x5c0] sm:$0xff]  ;;  %v3501_v60 = vld [vmem:[%s14993_s3 + $0x5f8] sm:$0xff] }
 0x2db   : > { %v1705_v0 = vpop.f32.mrb[92].mxu1  ;;  %v1867_v35 = vmax.f32 %v1702_v53, 0.0  ;;  %7882 = vmatpush1.bf16.msra.mxu0 %v12463_v21  ;;  %7972 = vmatprep.subr.bf16.mxu1 %v15919_v3  ;;  %15920 = vst [vmem:[#allocation22_spill] sm:$0xff] %v12493_v8  ;;  %v15921_v53 = vld [vmem:[#allocation24_spill] sm:$0xff]  ;;  %v12511_v61 = vpack.c.bf16 %v3496_v40, %v3494_v59 }
 0x2dc   : > { %v1706_v2 = vadd.f32 %v1705_v0, %v15873_v42  ;;  %v1707_v45 = vpop.f32.mrb[93].mxu1  ;;  %3136 = vmatmul.mubr.f32.gmra.mrb[198].mxu1 %v10286_v29  ;;  %7884 = vmatprep.subr.bf16.mxu0 %v12469_v28  ;;  %v3499_v29 = vld [vmem:[%s14993_s3 + $0x5e8] sm:$0xff]  ;;  %v15923_v0 = vld [vmem:[#allocation25_spill] sm:$0xff]  ;;  %v3500_v59 = vld [vmem:[%s14993_s3 + $0x5f0] sm:$0xff] }
 0x2dd   : > { %v1708_v58 = vadd.f32 %v1707_v45, %v15875_v31  ;;  %2467 = vmatprep.mubr.f32.mxu0 %v1867_v35  ;;  %3141 = vmatprep.mubr.f32.mxu1 %v15757_v54  ;;  %15922 = vst [vmem:[#allocation23_spill] sm:$0xff] %v12511_v61  ;;  %v12517_v45 = vpack.c.bf16 %v3501_v60, %v3499_v29 }
 0x2de   : > { %2468 = vmatmul.mubr.f32.gmra.mrb[26].mxu0 %v1866_v63  ;;  %7974 = vmatpush1.bf16.msra.mxu1 %v15921_v53  ;;  %v1870_v3 = vmax.f32 %v1706_v2, 0.0  ;;  %v3498_v63 = vld [vmem:[%s14993_s3 + $0x5e0] sm:$0xff]  ;;  %v3505_v2 = vld [vmem:[%s14993_s3 + $0x618] sm:$0xff] }
 0x2df   : > { %v1711_v30 = vpop.f32.mrb[94].mxu1  ;;  %v1871_v24 = vmax.f32 %v1708_v58, 0.0  ;;  %7886 = vmatpush1.bf16.msra.mxu0 %v12487_v32  ;;  %7976 = vmatprep.subr.bf16.mxu1 %v15923_v0  ;;  %15924 = vst [vmem:[#allocation24_spill] sm:$0xff] %v12517_v45  ;;  %v15925_v58 = vld [vmem:[#allocation26_spill] sm:$0xff]  ;;  %v12535_v53 = vpack.c.bf16 %v3500_v59, %v3498_v63  ;;  %v15929_v63 = vld [vmem:[#allocation28_spill] sm:$0xff] }
 0x2e0   : > { %v1712_v54 = vadd.f32 %v1711_v30, %v15873_v42  ;;  %v1713_v35 = vpop.f32.mrb[95].mxu1  ;;  %3142 = vmatmul.mubr.f32.gmra.mrb[200].mxu1 %v10316_v34  ;;  %7888 = vmatprep.subr.bf16.mxu0 %v12493_v8  ;;  %v3503_v34 = vld [vmem:[%s14993_s3 + $0x608] sm:$0xff] }
 0x2e1   : > { %v1714_v40 = vadd.f32 %v1713_v35, %v15875_v31  ;;  %2473 = vmatprep.mubr.f32.mxu0 %v1871_v24  ;;  %3147 = vmatprep.mubr.f32.mxu1 %v10343_v46  ;;  %15926 = vst [vmem:[#allocation25_spill] sm:$0xff] %v12535_v53  ;;  %v15927_v30 = vld [vmem:[#allocation27_spill] sm:$0xff]  ;;  %v12541_v35 = vpack.c.bf16 %v3505_v2, %v3503_v34 }
 0x2e2   : > { %2474 = vmatmul.mubr.f32.gmra.mrb[28].mxu0 %v1870_v3  ;;  %7978 = vmatpush1.bf16.msra.mxu1 %v15925_v58  ;;  %v1874_v0 = vmax.f32 %v1712_v54, 0.0  ;;  %v15930_v58 = vld [vmem:[#allocation29_spill] sm:$0xff] }
 0x2e3   : > { %v1717_v29 = vpop.f32.mrb[96].mxu1  ;;  %v1875_v60 = vmax.f32 %v1714_v40, 0.0  ;;  %7890 = vmatpush1.bf16.msra.mxu0 %v12511_v61  ;;  %7980 = vmatprep.subr.bf16.mxu1 %v15927_v30  ;;  %15928 = vst [vmem:[#allocation26_spill] sm:$0xff] %v12541_v35  ;;  %v15932_v30 = vld [vmem:[#allocation31_spill] sm:$0xff] }
 0x2e4   : > { %v1718_v46 = vadd.f32 %v1717_v29, %v15873_v42  ;;  %v1719_v24 = vpop.f32.mrb[97].mxu1  ;;  %3148 = vmatmul.mubr.f32.gmra.mrb[202].mxu1 %v10346_v27  ;;  %7892 = vmatprep.subr.bf16.mxu0 %v12517_v45 }
 0x2e5   : > { %v1720_v3 = vadd.f32 %v1719_v24, %v15875_v31  ;;  %2479 = vmatprep.mubr.f32.mxu0 %v1875_v60  ;;  %3153 = vmatprep.mubr.f32.mxu1 %v10373_v6  ;;  %v15931_v6 = vld [vmem:[#allocation30_spill] sm:$0xff] }
 0x2e6   : > { %2480 = vmatmul.mubr.f32.gmra.mrb[30].mxu0 %v1874_v0  ;;  %7982 = vmatpush1.bf16.msra.mxu1 %v15929_v63  ;;  %v1878_v34 = vmax.f32 %v1718_v46, 0.0 }
 0x2e7   : > { %v1723_v59 = vpop.f32.mrb[98].mxu1  ;;  %v1879_v40 = vmax.f32 %v1720_v3, 0.0  ;;  %7894 = vmatpush1.bf16.msra.mxu0 %v12535_v53  ;;  %7984 = vmatprep.subr.bf16.mxu1 %v15930_v58 }
 0x2e8   : > { %v1724_v27 = vadd.f32 %v1723_v59, %v15873_v42  ;;  %v1725_v54 = vpop.f32.mrb[99].mxu1  ;;  %3154 = vmatmul.mubr.f32.gmra.mrb[204].mxu1 %v10376_v12  ;;  %7896 = vmatprep.subr.bf16.mxu0 %v12541_v35  ;;  %v15934_v59 = vld [vmem:[#allocation33_spill] sm:$0xff] }
 0x2e9   : > { %v1726_v2 = vadd.f32 %v1725_v54, %v15875_v31  ;;  %2485 = vmatprep.mubr.f32.mxu0 %v1879_v40  ;;  %3159 = vmatprep.mubr.f32.mxu1 %v10403_v51  ;;  %v15933_v51 = vld [vmem:[#allocation32_spill] sm:$0xff] }
 0x2ea   : > { %2486 = vmatmul.mubr.f32.gmra.mrb[32].mxu0 %v1878_v34  ;;  %7986 = vmatpush1.bf16.msra.mxu1 %v15931_v6  ;;  %v1882_v12 = vmax.f32 %v1724_v27, 0.0 }
 0x2eb   : > { %v1729_v29 = vpop.f32.mrb[100].mxu1  ;;  %v1883_v60 = vmax.f32 %v1726_v2, 0.0  ;;  %7988 = vmatprep.subr.bf16.mxu1 %v15932_v30  ;;  %v15936_v2 = vld [vmem:[#allocation35_spill] sm:$0xff] }
 0x2ec   : > { %v1730_v24 = vadd.f32 %v1729_v29, %v15873_v42  ;;  %v1731_v0 = vpop.f32.mrb[101].mxu1  ;;  %3160 = vmatmul.mubr.f32.gmra.mrb[206].mxu1 %v10406_v7 }
 0x2ed   : > { %v1732_v46 = vadd.f32 %v1731_v0, %v15875_v31  ;;  %2491 = vmatprep.mubr.f32.mxu0 %v1883_v60  ;;  %3165 = vmatprep.mubr.f32.mxu1 %v10433_v13  ;;  %v15935_v13 = vld [vmem:[#allocation34_spill] sm:$0xff]  ;;  %v15938_v0 = vld [vmem:[#allocation37_spill] sm:$0xff] }
 0x2ee   : > { %2492 = vmatmul.mubr.f32.gmra.mrb[34].mxu0 %v1882_v12  ;;  %7990 = vmatpush1.bf16.msra.mxu1 %v15933_v51  ;;  %v1886_v54 = vmax.f32 %v1730_v24, 0.0 }
 0x2ef   : > { %v1735_v3 = vpop.f32.mrb[102].mxu1  ;;  %v1887_v63 = vmax.f32 %v1732_v46, 0.0  ;;  %7992 = vmatprep.subr.bf16.mxu1 %v15934_v59  ;;  %v15940_v59 = vld [vmem:[#allocation44_spill] sm:$0xff] }
 0x2f0   : > { %v1736_v40 = vadd.f32 %v1735_v3, %v15873_v42  ;;  %v1737_v58 = vpop.f32.mrb[103].mxu1  ;;  %3166 = vmatmul.mubr.f32.gmra.mrb[208].mxu1 %v15768_v52 }
 0x2f1   : > { %v1738_v7 = vadd.f32 %v1737_v58, %v15875_v31  ;;  %2497 = vmatprep.mubr.f32.mxu0 %v1887_v63  ;;  %3171 = vmatprep.mubr.f32.mxu1 %v15848_v43  ;;  %v15937_v43 = vld [vmem:[#allocation36_spill] sm:$0xff] }
 0x2f2   : > { %2498 = vmatmul.mubr.f32.gmra.mrb[36].mxu0 %v1886_v54  ;;  %7994 = vmatpush1.bf16.msra.mxu1 %v15935_v13  ;;  %v1890_v60 = vmax.f32 %v1736_v40, 0.0  ;;  %v15941_v54 = vld [vmem:[#allocation94_spill] sm:$0xff] }
 0x2f3   : > { %v1741_v27 = vpop.f32.mrb[104].mxu1  ;;  %v1891_v34 = vmax.f32 %v1738_v7, 0.0  ;;  %7996 = vmatprep.subr.bf16.mxu1 %v15936_v2 }
 0x2f4   : > { %v1742_v6 = vadd.f32 %v1741_v27, %v15873_v42  ;;  %v1743_v29 = vpop.f32.mrb[105].mxu1  ;;  %3172 = vmatmul.mubr.f32.gmra.mrb[210].mxu1 %v15851_v56 }
 0x2f5   : > { %v1744_v52 = vadd.f32 %v1743_v29, %v15875_v31  ;;  %2503 = vmatprep.mubr.f32.mxu0 %v1891_v34  ;;  %3177 = vmatprep.mubr.f32.mxu1 %v15852_v1  ;;  %v15939_v1 = vld [vmem:[#allocation39_spill] sm:$0xff]  ;;  %v15943_v34 = vld [vmem:[#allocation46_spill] sm:$0xff] }
 0x2f6   : > { %2504 = vmatmul.mubr.f32.gmra.mrb[38].mxu0 %v1890_v60  ;;  %7998 = vmatpush1.bf16.msra.mxu1 %v15937_v43  ;;  %v1894_v51 = vmax.f32 %v1742_v6, 0.0 }
 0x2f7   : > { %v1747_v30 = vpop.f32.mrb[106].mxu1  ;;  %v1895_v24 = vmax.f32 %v1744_v52, 0.0  ;;  %8000 = vmatprep.subr.bf16.mxu1 %v15938_v0 }
 0x2f8   : > { %v1748_v12 = vadd.f32 %v1747_v30, %v15873_v42  ;;  %v1749_v46 = vpop.f32.mrb[107].mxu1  ;;  %3178 = vmatmul.mubr.f32.gmra.mrb[212].mxu1 %v15855_v22  ;;  %v15945_v30 = vld [vmem:[#allocation49_spill] sm:$0xff] }
 0x2f9   : > { %v1750_v56 = vadd.f32 %v1749_v46, %v15875_v31  ;;  %2509 = vmatprep.mubr.f32.mxu0 %v1895_v24  ;;  %3183 = vmatprep.mubr.f32.mxu1 %v15856_v15  ;;  %v15942_v15 = vld [vmem:[#allocation45_spill] sm:$0xff] }
 0x2fa   : > { %2510 = vmatmul.mubr.f32.gmra.mrb[40].mxu0 %v1894_v51  ;;  %8002 = vmatpush1.bf16.msra.mxu1 %v15939_v1  ;;  %v1898_v7 = vmax.f32 %v1748_v12, 0.0  ;;  %v15946_v12 = vld [vmem:[#allocation103_spill] sm:$0xff] }
 0x2fb   : > { %v1753_v3 = vpop.f32.mrb[108].mxu1  ;;  %v1899_v63 = vmax.f32 %v1750_v56, 0.0  ;;  %8004 = vmatprep.subr.bf16.mxu1 %v15940_v59  ;;  %v15948_v1 = vld [vmem:[#allocation51_spill] sm:$0xff] }
 0x2fc   : > { %v1754_v40 = vadd.f32 %v1753_v3, %v15873_v42  ;;  %v1755_v58 = vpop.f32.mrb[109].mxu1  ;;  %3184 = vmatmul.mubr.f32.gmra.mrb[214].mxu1 %v15941_v54 }
 0x2fd   : > { %v1756_v22 = vadd.f32 %v1755_v58, %v15875_v31  ;;  %2515 = vmatprep.mubr.f32.mxu0 %v1899_v63  ;;  %3189 = vmatprep.mubr.f32.mxu1 %v15859_v48  ;;  %v15944_v48 = vld [vmem:[#allocation47_spill] sm:$0xff] }
 0x2fe   : > { %2516 = vmatmul.mubr.f32.gmra.mrb[42].mxu0 %v1898_v7  ;;  %8006 = vmatpush1.bf16.msra.mxu1 %v15942_v15  ;;  %v1902_v29 = vmax.f32 %v1754_v40, 0.0  ;;  %v15950_v7 = vld [vmem:[#allocation55_spill] sm:$0xff] }
 0x2ff   : > { %v1759_v13 = vpop.f32.mrb[110].mxu1  ;;  %v1903_v27 = vmax.f32 %v1756_v22, 0.0  ;;  %8008 = vmatprep.subr.bf16.mxu1 %v15943_v34 }
 0x300   : > { %v1760_v2 = vadd.f32 %v1759_v13, %v15873_v42  ;;  %v1761_v6 = vpop.f32.mrb[111].mxu1  ;;  %3190 = vmatmul.mubr.f32.gmra.mrb[216].mxu1 %v10596_v55 }
 0x301   : > { %v1762_v60 = vadd.f32 %v1761_v6, %v15875_v31  ;;  %2521 = vmatprep.mubr.f32.mxu0 %v1903_v27  ;;  %3195 = vmatprep.mubr.f32.mxu1 %v10611_v62  ;;  %v15947_v62 = vld [vmem:[#allocation50_spill] sm:$0xff] }
 0x302   : > { %2522 = vmatmul.mubr.f32.gmra.mrb[44].mxu0 %v1902_v29  ;;  %8010 = vmatpush1.bf16.msra.mxu1 %v15944_v48  ;;  %v1906_v46 = vmax.f32 %v1760_v2, 0.0  ;;  %v15952_v2 = vld [vmem:[#allocation63_spill] sm:$0xff] }
 0x303   : > { %v1765_v52 = vpop.f32.mrb[112].mxu1  ;;  %v1907_v43 = vmax.f32 %v1762_v60, 0.0  ;;  %8012 = vmatprep.subr.bf16.mxu1 %v15945_v30 }
 0x304   : > { %v1766_v24 = vadd.f32 %v1765_v52, %v15873_v42  ;;  %v1767_v0 = vpop.f32.mrb[113].mxu1  ;;  %3196 = vmatmul.mubr.f32.gmra.mrb[218].mxu1 %v15946_v12 }
 0x305   : > { %v1768_v55 = vadd.f32 %v1767_v0, %v15875_v31  ;;  %2527 = vmatprep.mubr.f32.mxu0 %v1907_v43  ;;  %3201 = vmatprep.mubr.f32.mxu1 %v15864_v26  ;;  %v15949_v26 = vld [vmem:[#allocation52_spill] sm:$0xff] }
 0x306   : > { %2528 = vmatmul.mubr.f32.gmra.mrb[46].mxu0 %v1906_v46  ;;  %8014 = vmatpush1.bf16.msra.mxu1 %v15947_v62  ;;  %v1910_v59 = vmax.f32 %v1766_v24, 0.0 }
 0x307   : > { %v1771_v51 = vpop.f32.mrb[114].mxu1  ;;  %v1911_v56 = vmax.f32 %v1768_v55, 0.0  ;;  %8016 = vmatprep.subr.bf16.mxu1 %v15948_v1 }
 0x308   : > { %v1772_v3 = vadd.f32 %v1771_v51, %v15873_v42  ;;  %v1773_v63 = vpop.f32.mrb[115].mxu1  ;;  %3202 = vmatmul.mubr.f32.gmra.mrb[220].mxu1 %v10671_v5 }
 0x309   : > { %v1774_v40 = vadd.f32 %v1773_v63, %v15875_v31  ;;  %2533 = vmatprep.mubr.f32.mxu0 %v1911_v56  ;;  %3207 = vmatprep.mubr.f32.mxu1 %v10687_v4  ;;  %v15951_v4 = vld [vmem:[#allocation56_spill] sm:$0xff]  ;;  %v15953_v56 = vld [vmem:[#allocation114_spill] sm:$0xff] }
 0x30a   : > { %2534 = vmatmul.mubr.f32.gmra.mrb[48].mxu0 %v1910_v59  ;;  %8018 = vmatpush1.bf16.msra.mxu1 %v15949_v26  ;;  %v1914_v13 = vmax.f32 %v1772_v3, 0.0  ;;  %v15954_v63 = vld [vmem:[#allocation116_spill] sm:$0xff] }
 0x30b   : > { %v1777_v58 = vpop.f32.mrb[116].mxu1  ;;  %v1915_v54 = vmax.f32 %v1774_v40, 0.0  ;;  %8020 = vmatprep.subr.bf16.mxu1 %v15950_v7  ;;  %v15955_v40 = vld [vmem:[#allocation13_spill] sm:$0xff] }
 0x30c   : > { %v1778_v22 = vadd.f32 %v1777_v58, %v15873_v42  ;;  %v1779_v15 = vpop.f32.mrb[117].mxu1  ;;  %3208 = vmatmul.mubr.f32.gmra.mrb[222].mxu1 %v10712_v17 }
 0x30d   : > { %v1780_v5 = vadd.f32 %v1779_v15, %v15875_v31  ;;  %2539 = vmatprep.mubr.f32.mxu0 %v1915_v54  ;;  %3213 = vmatprep.mubr.f32.mxu1 %v10718_v18 }
 0x30e   : > { %2540 = vmatmul.mubr.f32.gmra.mrb[50].mxu0 %v1914_v13  ;;  %8022 = vmatpush1.bf16.msra.mxu1 %v15951_v4  ;;  %v1918_v60 = vmax.f32 %v1778_v22, 0.0  ;;  %v15957_v22 = vld [vmem:[#allocation12_spill] sm:$0xff] }
 0x30f   : > { %v1783_v27 = vpop.f32.mrb[118].mxu1  ;;  %v1919_v34 = vmax.f32 %v1780_v5, 0.0  ;;  %8024 = vmatprep.subr.bf16.mxu1 %v15952_v2  ;;  %v15959_v5 = vld [vmem:[#allocation120_spill] sm:$0xff] }
 0x310   : > { %v1784_v6 = vadd.f32 %v1783_v27, %v15873_v42  ;;  %v1785_v29 = vpop.f32.mrb[119].mxu1  ;;  %3214 = vmatmul.mubr.f32.gmra.mrb[224].mxu1 %v10736_v39 }
 0x311   : > { %v1786_v17 = vadd.f32 %v1785_v29, %v15875_v31  ;;  %2545 = vmatprep.mubr.f32.mxu0 %v1919_v34  ;;  %3219 = vmatprep.mubr.f32.mxu1 %v10742_v25 }
 0x312   : > { %2546 = vmatmul.mubr.f32.gmra.mrb[52].mxu0 %v1918_v60  ;;  %v1922_v30 = vmax.f32 %v1784_v6, 0.0  ;;  %v15960_v6 = vld [vmem:[#allocation122_spill] sm:$0xff]  ;;  %v3504_v60 = vld [vmem:[%s14993_s3 + $0x610] sm:$0xff] }
 0x313   : > { %v1789_v18 = vpop.f32.mrb[120].mxu1  ;;  %v1923_v48 = vmax.f32 %v1786_v17, 0.0 }
 0x314   : > { %v1790_v52 = vadd.f32 %v1789_v18, %v15873_v42  ;;  %v1791_v43 = vpop.f32.mrb[121].mxu1  ;;  %3220 = vmatmul.mubr.f32.gmra.mrb[226].mxu1 %v10772_v20  ;;  %v15961_v18 = vld [vmem:[#allocation124_spill] sm:$0xff] }
 0x315   : > { %v1792_v24 = vadd.f32 %v1791_v43, %v15875_v31  ;;  %2551 = vmatprep.mubr.f32.mxu0 %v1923_v48  ;;  %3225 = vmatprep.mubr.f32.mxu1 %v10779_v47  ;;  %v3507_v48 = vld [vmem:[%s14993_s3 + $0x628] sm:$0xff] }
 0x316   : > { %2552 = vmatmul.mubr.f32.gmra.mrb[54].mxu0 %v1922_v30  ;;  %v1926_v46 = vmax.f32 %v1790_v52, 0.0  ;;  %v3509_v52 = vld [vmem:[%s14993_s3 + $0x638] sm:$0xff] }
 0x317   : > { %v1795_v39 = vpop.f32.mrb[122].mxu1  ;;  %v1927_v0 = vmax.f32 %v1792_v24, 0.0 }
 0x318   : > { %v1796_v12 = vadd.f32 %v1795_v39, %v15873_v42  ;;  %v1797_v25 = vpop.f32.mrb[123].mxu1  ;;  %3226 = vmatmul.mubr.f32.gmra.mrb[228].mxu1 %v10803_v11 }
 0x319   : > { %v1798_v55 = vadd.f32 %v1797_v25, %v15875_v31  ;;  %2557 = vmatprep.mubr.f32.mxu0 %v1927_v0  ;;  %3231 = vmatprep.mubr.f32.mxu1 %v10810_v33  ;;  %v9120_v33 = vld [vmem:[%s14992_s2 + $0x4] sm:$0xf] }
 0x31a   : > { %2558 = vmatmul.mubr.f32.gmra.mrb[56].mxu0 %v1926_v46  ;;  %v1930_v1 = vmax.f32 %v1796_v12, 0.0  ;;  %v12629_v26 = vrot.slane %v9120_v33, %v15955_v40  ;;  %v12634_v15 = vrot.slane %v9120_v33, %v15957_v22  ;;  %v15963_v25 = vld [vmem:[#allocation126_spill] sm:$0xff]  ;;  %v12658_v46 = vpack.c.bf16 %v3509_v52, %v3507_v48 }
 0x31b   : > { %v1801_v20 = vpop.f32.mrb[124].mxu1  ;;  %v1931_v62 = vmax.f32 %v1798_v55, 0.0  ;;  %v3506_v55 = vld [vmem:[%s14993_s3 + $0x620] sm:$0xff] }
 0x31c   : > { %v1802_v51 = vadd.f32 %v1801_v20, %v15873_v42  ;;  %v1803_v47 = vpop.f32.mrb[125].mxu1  ;;  %3232 = vmatmul.mubr.f32.gmra.mrb[230].mxu1 %v15953_v56  ;;  %15956 = vst [vmem:[#allocation27_spill] sm:$0xff] %v12629_v26  ;;  %15958 = vst [vmem:[#allocation28_spill] sm:$0xff] %v12634_v15  ;;  %v3508_v20 = vld [vmem:[%s14993_s3 + $0x630] sm:$0xff]  ;;  %v3513_v56 = vld [vmem:[%s14993_s3 + $0x658] sm:$0xff] }
 0x31d   : > { %v1804_v3 = vadd.f32 %v1803_v47, %v15875_v31  ;;  %2563 = vmatprep.mubr.f32.mxu0 %v1931_v62  ;;  %3237 = vmatprep.mubr.f32.mxu1 %v15954_v63  ;;  %15964 = vst [vmem:[#allocation30_spill] sm:$0xff] %v12658_v46  ;;  %v3511_v47 = vld [vmem:[%s14993_s3 + $0x648] sm:$0xff]  ;;  %v12675_v63 = vpack.c.bf16 %v3508_v20, %v3506_v55  ;;  %v3520_v55 = vld [vmem:[%s14993_s3 + $0x690] sm:$0xff] }
 0x31e   : > { %2564 = vmatmul.mubr.f32.gmra.mrb[58].mxu0 %v1930_v1  ;;  %v1934_v7 = vmax.f32 %v1802_v51, 0.0  ;;  %v15965_v51 = vld [vmem:[#allocation128_spill] sm:$0xff] }
 0x31f   : > { %v1807_v11 = vpop.f32.mrb[126].mxu1  ;;  %v1935_v59 = vmax.f32 %v1804_v3, 0.0  ;;  %15966 = vst [vmem:[#allocation31_spill] sm:$0xff] %v12675_v63 }
 0x320   : > { %v1808_v58 = vadd.f32 %v1807_v11, %v15873_v42  ;;  %v1809_v54 = vpop.f32.mrb[127].mxu1  ;;  %3238 = vmatmul.mubr.f32.gmra.mrb[232].mxu1 %v15871_v38  ;;  %v3502_v38 = vld [vmem:[%s14993_s3 + $0x600] sm:$0xff] }
 0x321   : > { %v1810_v13 = vadd.f32 %v1809_v54, %v15875_v31  ;;  %2569 = vmatprep.mubr.f32.mxu0 %v1935_v59  ;;  %3243 = vmatprep.mubr.f32.mxu1 %v15959_v5  ;;  %v12654_v24 = vpack.c.bf16 %v3504_v60, %v3502_v38  ;;  %v3510_v54 = vld [vmem:[%s14993_s3 + $0x640] sm:$0xff]  ;;  %v3517_v5 = vld [vmem:[%s14993_s3 + $0x678] sm:$0xff]  ;;  %v3516_v60 = vld [vmem:[%s14993_s3 + $0x670] sm:$0xff] }
 0x322   : > { %2570 = vmatmul.mubr.f32.gmra.mrb[60].mxu0 %v1934_v7  ;;  %v1938_v29 = vmax.f32 %v1808_v58, 0.0  ;;  %v12680_v58 = vpack.c.bf16 %v3513_v56, %v3511_v47  ;;  %v3512_v7 = vld [vmem:[%s14993_s3 + $0x650] sm:$0xff]  ;;  %v3514_v38 = vld [vmem:[%s14993_s3 + $0x660] sm:$0xff]  ;;  %v3525_v47 = vld [vmem:[%s14993_s3 + $0x6b8] sm:$0xff] }
 0x323   : > { %v2862_v4 = vpop.f32.mrb[128].mxu1  ;;  %v1939_v27 = vmax.f32 %v1810_v13, 0.0  ;;  %15962 = vst [vmem:[#allocation29_spill] sm:$0xff] %v12654_v24 }
 0x324   : > { %v2863_v34 = vadd.f32 %v2862_v4, %v12629_v26  ;;  %v2864_v2 = vpop.f32.mrb[129].mxu1  ;;  %3244 = vmatmul.mubr.f32.gmra.mrb[234].mxu1 %v15960_v6  ;;  %15967 = vst [vmem:[#allocation32_spill] sm:$0xff] %v12680_v58 }
 0x325   : > { %v2865_v17 = vadd.f32 %v2864_v2, %v12634_v15  ;;  %2575 = vmatprep.mubr.f32.mxu0 %v1939_v27  ;;  %3249 = vmatprep.mubr.f32.mxu1 %v15961_v18  ;;  %v3521_v18 = vld [vmem:[%s14993_s3 + $0x698] sm:$0xff] }
 0x326   : > { %2576 = vmatmul.mubr.f32.gmra.mrb[62].mxu0 %v1938_v29  ;;  %v3310_v39 = vmax.f32 %v2863_v34, 0.0  ;;  %v12697_v34 = vpack.c.bf16 %v3512_v7, %v3510_v54  ;;  %v3522_v7 = vld [vmem:[%s14993_s3 + $0x6a0] sm:$0xff] }
 0x327   : > { %v2868_v43 = vpop.f32.mrb[130].mxu1  ;;  %v3311_v30 = vmax.f32 %v2865_v17, 0.0 }
 0x328   : > { %v2869_v0 = vadd.f32 %v2868_v43, %v12629_v26  ;;  %v2870_v12 = vpop.f32.mrb[131].mxu1  ;;  %3250 = vmatmul.mubr.f32.gmra.mrb[236].mxu1 %v15963_v25  ;;  %15968 = vst [vmem:[#allocation33_spill] sm:$0xff] %v12697_v34  ;;  %v12719_v43 = vpack.c.bf16 %v3516_v60, %v3514_v38  ;;  %v3518_v25 = vld [vmem:[%s14993_s3 + $0x680] sm:$0xff] }
 0x329   : > { %v2871_v62 = vadd.f32 %v2870_v12, %v12634_v15  ;;  %3255 = vmatprep.mubr.f32.mxu1 %v15965_v51  ;;  %3630 = vmatprep.mubr.f32.mxu0 %v3311_v30  ;;  %v3523_v51 = vld [vmem:[%s14993_s3 + $0x6a8] sm:$0xff] }
 0x32a   : > { %3631 = vmatmul.mubr.f32.vlgmr.msra.gmra.mrb[0].mxu0 %v3310_v39  ;;  %v3314_v33 = vmax.f32 %v2869_v0, 0.0  ;;  %15970 = vst [vmem:[#allocation35_spill] sm:$0xff] %v12719_v43  ;;  %v12746_v54 = vpack.c.bf16 %v3525_v47, %v3523_v51  ;;  %v3530_v51 = vld [vmem:[%s14993_s3 + $0x6e0] sm:$0xff]  ;;  %v3532_v47 = vld [vmem:[%s14993_s3 + $0x6f0] sm:$0xff] }
 0x32b   : > { %7898 = vmatpush1.bf16.msra.mxu0 %v12654_v24  ;;  %v2874_v1 = vpop.f32.mrb[132].mxu1  ;;  %v3315_v3 = vmax.f32 %v2871_v62, 0.0  ;;  %v15973_v62 = vld [vmem:[#allocation134_spill] sm:$0xff] }
 0x32c   : > { %v2875_v11 = vadd.f32 %v2874_v1, %v12629_v26  ;;  %v2876_v59 = vpop.f32.mrb[133].mxu1  ;;  %3256 = vmatmul.mubr.f32.gmra.mrb[238].mxu1 %v10953_v14  ;;  %7900 = vmatprep.subr.bf16.mxu0 %v12658_v46  ;;  %v3515_v14 = vld [vmem:[%s14993_s3 + $0x668] sm:$0xff]  ;;  %15975 = vst [vmem:[#allocation39_spill] sm:$0xff] %v12746_v54 }
 0x32d   : > { %v2877_v13 = vadd.f32 %v2876_v59, %v12634_v15  ;;  %3261 = vmatprep.mubr.f32.mxu1 %v10960_v57  ;;  %3636 = vmatprep.mubr.f32.mxu0 %v3315_v3  ;;  %v12702_v29 = vpack.c.bf16 %v3517_v5, %v3515_v14  ;;  %v12741_v3 = vpack.c.bf16 %v3520_v55, %v3518_v25  ;;  %v15976_v5 = vld [vmem:[#allocation136_spill] sm:$0xff] }
 0x32e   : > { %3637 = vmatmul.mubr.f32.gmra.mrb[2].mxu0 %v3314_v33  ;;  %v3318_v57 = vmax.f32 %v2875_v11, 0.0 }
 0x32f   : > { %v2880_v4 = vpop.f32.mrb[134].mxu1  ;;  %v3319_v27 = vmax.f32 %v2877_v13, 0.0  ;;  %7902 = vmatpush1.bf16.msra.mxu0 %v12675_v63  ;;  %15969 = vst [vmem:[#allocation34_spill] sm:$0xff] %v12702_v29  ;;  %15974 = vst [vmem:[#allocation37_spill] sm:$0xff] %v12741_v3  ;;  %v3524_v13 = vld [vmem:[%s14993_s3 + $0x6b0] sm:$0xff] }
 0x330   : > { %v2881_v2 = vadd.f32 %v2880_v4, %v12629_v26  ;;  %v2882_v6 = vpop.f32.mrb[135].mxu1  ;;  %3262 = vmatmul.mubr.f32.gmra.mrb[240].mxu1 %v10982_v37  ;;  %7904 = vmatprep.subr.bf16.mxu0 %v12680_v58  ;;  %v3519_v37 = vld [vmem:[%s14993_s3 + $0x688] sm:$0xff]  ;;  %v3529_v4 = vld [vmem:[%s14993_s3 + $0x6d8] sm:$0xff] }
 0x331   : > { %v2883_v17 = vadd.f32 %v2882_v6, %v12634_v15  ;;  %3267 = vmatprep.mubr.f32.mxu1 %v10990_v44  ;;  %3642 = vmatprep.mubr.f32.mxu0 %v3319_v27  ;;  %v15971_v44 = vld [vmem:[#allocation132_spill] sm:$0xff]  ;;  %v12724_v12 = vpack.c.bf16 %v3521_v18, %v3519_v37  ;;  %v12763_v6 = vpack.c.bf16 %v3524_v13, %v3522_v7  ;;  %v3526_v37 = vld [vmem:[%s14993_s3 + $0x6c0] sm:$0xff] }
 0x332   : > { %3643 = vmatmul.mubr.f32.gmra.mrb[4].mxu0 %v3318_v57  ;;  %v3322_v0 = vmax.f32 %v2881_v2, 0.0  ;;  %v3528_v18 = vld [vmem:[%s14993_s3 + $0x6d0] sm:$0xff] }
 0x333   : > { %v2886_v48 = vpop.f32.mrb[136].mxu1  ;;  %v3323_v52 = vmax.f32 %v2883_v17, 0.0  ;;  %7906 = vmatpush1.bf16.msra.mxu0 %v12697_v34  ;;  %15972 = vst [vmem:[#allocation36_spill] sm:$0xff] %v12724_v12  ;;  %15977 = vst [vmem:[#allocation44_spill] sm:$0xff] %v12763_v6 }
 0x334   : > { %v2887_v30 = vadd.f32 %v2886_v48, %v12629_v26  ;;  %v2888_v39 = vpop.f32.mrb[137].mxu1  ;;  %3268 = vmatmul.mubr.f32.gmra.mrb[242].mxu1 %v15971_v44  ;;  %7908 = vmatprep.subr.bf16.mxu0 %v12702_v29 }
 0x335   : > { %v2889_v20 = vadd.f32 %v2888_v39, %v12634_v15  ;;  %3273 = vmatprep.mubr.f32.mxu1 %v15973_v62  ;;  %3648 = vmatprep.mubr.f32.mxu0 %v3323_v52  ;;  %v15979_v52 = vld [vmem:[#allocation138_spill] sm:$0xff] }
 0x336   : > { %3649 = vmatmul.mubr.f32.gmra.mrb[6].mxu0 %v3322_v0  ;;  %v3326_v33 = vmax.f32 %v2887_v30, 0.0  ;;  %v3533_v30 = vld [vmem:[%s14993_s3 + $0x6f8] sm:$0xff]  ;;  %v12785_v0 = vpack.c.bf16 %v3528_v18, %v3526_v37 }
 0x337   : > { %v2892_v56 = vpop.f32.mrb[138].mxu1  ;;  %v3327_v1 = vmax.f32 %v2889_v20, 0.0  ;;  %7910 = vmatpush1.bf16.msra.mxu0 %v12719_v43 }
 0x338   : > { %v2893_v11 = vadd.f32 %v2892_v56, %v12629_v26  ;;  %v2894_v59 = vpop.f32.mrb[139].mxu1  ;;  %3274 = vmatmul.mubr.f32.gmra.mrb[244].mxu1 %v15888_v36  ;;  %7912 = vmatprep.subr.bf16.mxu0 %v12724_v12  ;;  %v3527_v36 = vld [vmem:[%s14993_s3 + $0x6c8] sm:$0xff]  ;;  %15980 = vst [vmem:[#allocation45_spill] sm:$0xff] %v12785_v0 }
 0x339   : > { %v2895_v14 = vadd.f32 %v2894_v59, %v12634_v15  ;;  %3279 = vmatprep.mubr.f32.mxu1 %v15976_v5  ;;  %3654 = vmatprep.mubr.f32.mxu0 %v3327_v1  ;;  %v12768_v17 = vpack.c.bf16 %v3529_v4, %v3527_v36  ;;  %v3537_v1 = vld [vmem:[%s14993_s3 + $0x718] sm:$0xff]  ;;  %v3534_v5 = vld [vmem:[%s14993_s3 + $0x700] sm:$0xff]  ;;  %v3536_v36 = vld [vmem:[%s14993_s3 + $0x710] sm:$0xff] }
 0x33a   : > { %3655 = vmatmul.mubr.f32.gmra.mrb[8].mxu0 %v3326_v33  ;;  %v3330_v60 = vmax.f32 %v2893_v11, 0.0  ;;  %v12807_v33 = vpack.c.bf16 %v3532_v47, %v3530_v51 }
 0x33b   : > { %v2898_v27 = vpop.f32.mrb[140].mxu1  ;;  %v3331_v2 = vmax.f32 %v2895_v14, 0.0  ;;  %7914 = vmatpush1.bf16.msra.mxu0 %v12741_v3  ;;  %15978 = vst [vmem:[#allocation94_spill] sm:$0xff] %v12768_v17 }
 0x33c   : > { %v2899_v57 = vadd.f32 %v2898_v27, %v12629_v26  ;;  %v2900_v38 = vpop.f32.mrb[141].mxu1  ;;  %3280 = vmatmul.mubr.f32.gmra.mrb[246].mxu1 %v15807_v16  ;;  %7916 = vmatprep.subr.bf16.mxu0 %v12746_v54  ;;  %v3531_v16 = vld [vmem:[%s14993_s3 + $0x6e8] sm:$0xff]  ;;  %15982 = vst [vmem:[#allocation47_spill] sm:$0xff] %v12807_v33  ;;  %v15984_v27 = vld [vmem:[#allocation10_spill] sm:$0xff] }
 0x33d   : > { %v2901_v48 = vadd.f32 %v2900_v38, %v12634_v15  ;;  %3285 = vmatprep.mubr.f32.mxu1 %v15979_v52  ;;  %3660 = vmatprep.mubr.f32.mxu0 %v3331_v2  ;;  %v12790_v62 = vpack.c.bf16 %v3533_v30, %v3531_v16  ;;  %v3541_v2 = vld [vmem:[%s14993_s3 + $0x738] sm:$0xff]  ;;  %v3538_v30 = vld [vmem:[%s14993_s3 + $0x720] sm:$0xff] }
 0x33e   : > { %3661 = vmatmul.mubr.f32.gmra.mrb[10].mxu0 %v3330_v60  ;;  %v3334_v20 = vmax.f32 %v2899_v57, 0.0  ;;  %v12829_v60 = vpack.c.bf16 %v3536_v36, %v3534_v5  ;;  %v3549_v5 = vld [vmem:[%s14993_s3 + $0x778] sm:$0xff] }
 0x33f   : > { %v2904_v39 = vpop.f32.mrb[142].mxu1  ;;  %v3335_v44 = vmax.f32 %v2901_v48, 0.0  ;;  %7918 = vmatpush1.bf16.msra.mxu0 %v12763_v6  ;;  %15981 = vst [vmem:[#allocation46_spill] sm:$0xff] %v12790_v62  ;;  %v15986_v48 = vld [vmem:[#allocation139_spill] sm:$0xff] }
 0x340   : > { %v2905_v25 = vadd.f32 %v2904_v39, %v12629_v26  ;;  %v2906_v55 = vpop.f32.mrb[143].mxu1  ;;  %3286 = vmatmul.mubr.f32.gmra.mrb[248].mxu1 %v11102_v10  ;;  %7920 = vmatprep.subr.bf16.mxu0 %v12768_v17  ;;  %v3535_v10 = vld [vmem:[%s14993_s3 + $0x708] sm:$0xff]  ;;  %15985 = vst [vmem:[#allocation103_spill] sm:$0xff] %v12829_v60  ;;  %v3540_v39 = vld [vmem:[%s14993_s3 + $0x730] sm:$0xff] }
 0x341   : > { %v2907_v56 = vadd.f32 %v2906_v55, %v12634_v15  ;;  %3291 = vmatprep.mubr.f32.mxu1 %v11110_v50  ;;  %3666 = vmatprep.mubr.f32.mxu0 %v3335_v44  ;;  %v12812_v14 = vpack.c.bf16 %v3537_v1, %v3535_v10  ;;  %v3543_v55 = vld [vmem:[%s14993_s3 + $0x748] sm:$0xff] }
 0x342   : > { %3667 = vmatmul.mubr.f32.gmra.mrb[12].mxu0 %v3334_v20  ;;  %v3338_v50 = vmax.f32 %v2905_v25, 0.0  ;;  %v15988_v25 = vld [vmem:[#allocation140_spill] sm:$0xff]  ;;  %v3545_v20 = vld [vmem:[%s14993_s3 + $0x758] sm:$0xff] }
 0x343   : > { %v2910_v11 = vpop.f32.mrb[144].mxu1  ;;  %v3339_v59 = vmax.f32 %v2907_v56, 0.0  ;;  %7922 = vmatpush1.bf16.msra.mxu0 %v12785_v0  ;;  %15983 = vst [vmem:[#allocation49_spill] sm:$0xff] %v12812_v14  ;;  %v12851_v56 = vpack.c.bf16 %v3540_v39, %v3538_v30  ;;  %v3553_v30 = vld [vmem:[%s14993_s3 + $0x798] sm:$0xff] }
 0x344   : > { %v2911_v7 = vadd.f32 %v2910_v11, %v12629_v26  ;;  %v2912_v13 = vpop.f32.mrb[145].mxu1  ;;  %3292 = vmatmul.mubr.f32.gmra.mrb[250].mxu1 %v11120_v49  ;;  %7924 = vmatprep.subr.bf16.mxu0 %v12790_v62  ;;  %v3539_v49 = vld [vmem:[%s14993_s3 + $0x728] sm:$0xff] }
 0x345   : > { %v2913_v4 = vadd.f32 %v2912_v13, %v12634_v15  ;;  %3297 = vmatprep.mubr.f32.mxu1 %v15984_v27  ;;  %3672 = vmatprep.mubr.f32.mxu0 %v3339_v59  ;;  %v12834_v16 = vpack.c.bf16 %v3541_v2, %v3539_v49  ;;  %15989 = vst [vmem:[#allocation51_spill] sm:$0xff] %v12851_v56  ;;  %v3544_v13 = vld [vmem:[%s14993_s3 + $0x750] sm:$0xff] }
 0x346   : > { %3673 = vmatmul.mubr.f32.gmra.mrb[14].mxu0 %v3338_v50  ;;  %v3342_v52 = vmax.f32 %v2911_v7, 0.0  ;;  %v12856_v59 = vpack.c.bf16 %v3545_v20, %v3543_v55  ;;  %v3542_v7 = vld [vmem:[%s14993_s3 + $0x740] sm:$0xff] }
 0x347   : > { %v2916_v57 = vpop.f32.mrb[146].mxu1  ;;  %v3343_v38 = vmax.f32 %v2913_v4, 0.0  ;;  %7926 = vmatpush1.bf16.msra.mxu0 %v12807_v33  ;;  %15987 = vst [vmem:[#allocation50_spill] sm:$0xff] %v12834_v16  ;;  %v12872_v27 = vpack.c.bf16 %v3544_v13, %v3542_v7  ;;  %v3555_v7 = vld [vmem:[%s14993_s3 + $0x7a8] sm:$0xff]  ;;  %v3557_v13 = vld [vmem:[%s14993_s3 + $0x7b8] sm:$0xff] }
 0x348   : > { %v2917_v37 = vadd.f32 %v2916_v57, %v12629_v26  ;;  %v2918_v18 = vpop.f32.mrb[147].mxu1  ;;  %3298 = vmatmul.mubr.f32.gmra.mrb[252].mxu1 %v15986_v48  ;;  %7928 = vmatprep.subr.bf16.mxu0 %v12812_v14  ;;  %15990 = vst [vmem:[#allocation52_spill] sm:$0xff] %v12856_v59 }
 0x349   : > { %v2919_v44 = vadd.f32 %v2918_v18, %v12634_v15  ;;  %3303 = vmatprep.mubr.f32.mxu1 %v15988_v25  ;;  %3678 = vmatprep.mubr.f32.mxu0 %v3343_v38  ;;  %15991 = vst [vmem:[#allocation55_spill] sm:$0xff] %v12872_v27  ;;  %v3548_v18 = vld [vmem:[%s14993_s3 + $0x770] sm:$0xff] }
 0x34a   : > { %3679 = vmatmul.mubr.f32.gmra.mrb[16].mxu0 %v3342_v52  ;;  %v3346_v11 = vmax.f32 %v2917_v37, 0.0  ;;  %v3546_v37 = vld [vmem:[%s14993_s3 + $0x760] sm:$0xff]  ;;  %v3551_v52 = vld [vmem:[%s14993_s3 + $0x788] sm:$0xff] }
 0x34b   : > { %v2922_v51 = vpop.f32.mrb[148].mxu1  ;;  %v3347_v47 = vmax.f32 %v2919_v44, 0.0  ;;  %7930 = vmatpush1.bf16.msra.mxu0 %v12829_v60  ;;  %v12892_v25 = vpack.c.bf16 %v3548_v18, %v3546_v37  ;;  %v3556_v37 = vld [vmem:[%s14993_s3 + $0x7b0] sm:$0xff] }
 0x34c   : > { %v2923_v10 = vadd.f32 %v2922_v51, %v12629_v26  ;;  %v2924_v1 = vpop.f32.mrb[149].mxu1  ;;  %3304 = vmatmul.mubr.f32.gmra.mrb[254].mxu1 %v15903_v9  ;;  %7932 = vmatprep.subr.bf16.mxu0 %v12834_v16  ;;  %v3547_v9 = vld [vmem:[%s14993_s3 + $0x768] sm:$0xff] }
 0x34d   : > { %v2925_v50 = vadd.f32 %v2924_v1, %v12634_v15  ;;  %3684 = vmatprep.mubr.f32.mxu0 %v3347_v47  ;;  %v12876_v38 = vpack.c.bf16 %v3549_v5, %v3547_v9  ;;  %15993 = vst [vmem:[#allocation63_spill] sm:$0xff] %v12892_v25  ;;  %v12896_v47 = vpack.c.bf16 %v3553_v30, %v3551_v52  ;;  %v3552_v1 = vld [vmem:[%s14993_s3 + $0x790] sm:$0xff]  ;;  %v3561_v52 = vld [vmem:[%s14993_s3 + $0x7d8] sm:$0xff] }
 0x34e   : > { %3685 = vmatmul.mubr.f32.gmra.mrb[18].mxu0 %v3346_v11  ;;  %v3350_v57 = vmax.f32 %v2923_v10, 0.0  ;;  %v3550_v10 = vld [vmem:[%s14993_s3 + $0x780] sm:$0xff] }
 0x34f   : > { %v2928_v36 = vpop.f32.mrb[150].mxu1  ;;  %v3351_v4 = vmax.f32 %v2925_v50, 0.0  ;;  %7934 = vmatpush1.bf16.msra.mxu0 %v12851_v56  ;;  %15992 = vst [vmem:[#allocation56_spill] sm:$0xff] %v12876_v38  ;;  %15994 = vst [vmem:[#allocation114_spill] sm:$0xff] %v12896_v47  ;;  %v12912_v5 = vpack.c.bf16 %v3552_v1, %v3550_v10  ;;  %v3558_v1 = vld [vmem:[%s14993_s3 + $0x7c0] sm:$0xff] }
 0x350   : > { %v2929_v49 = vadd.f32 %v2928_v36, %v12629_v26  ;;  %v2930_v2 = vpop.f32.mrb[151].mxu1  ;;  %7936 = vmatprep.subr.bf16.mxu0 %v12856_v59 }
 0x351   : > { %v2931_v48 = vadd.f32 %v2930_v2, %v12634_v15  ;;  %3690 = vmatprep.mubr.f32.mxu0 %v3351_v4  ;;  %15995 = vst [vmem:[#allocation116_spill] sm:$0xff] %v12912_v5  ;;  %v12916_v2 = vpack.c.bf16 %v3557_v13, %v3555_v7  ;;  %v3563_v13 = vld [vmem:[%s14993_s3 + $0x7e8] sm:$0xff] }
 0x352   : > { %3691 = vmatmul.mubr.f32.gmra.mrb[20].mxu0 %v3350_v57  ;;  %v3354_v51 = vmax.f32 %v2929_v49, 0.0  ;;  %v3554_v57 = vld [vmem:[%s14993_s3 + $0x7a0] sm:$0xff] }
 0x353   : > { %v2934_v39 = vpop.f32.mrb[152].mxu1  ;;  %v3355_v44 = vmax.f32 %v2931_v48, 0.0  ;;  %7938 = vmatpush1.bf16.msra.mxu0 %v12872_v27  ;;  %15996 = vst [vmem:[#allocation120_spill] sm:$0xff] %v12916_v2  ;;  %v3559_v48 = vld [vmem:[%s14993_s3 + $0x7c8] sm:$0xff] }
 0x354   : > { %v2935_v55 = vadd.f32 %v2934_v39, %v12629_v26  ;;  %v2936_v20 = vpop.f32.mrb[153].mxu1  ;;  %7940 = vmatprep.subr.bf16.mxu0 %v12876_v38  ;;  %v12936_v10 = vpack.c.bf16 %v3561_v52, %v3559_v48  ;;  %v3562_v48 = vld [vmem:[%s14993_s3 + $0x7e0] sm:$0xff]  ;;  %v3564_v52 = vld [vmem:[%s14993_s3 + $0x7f0] sm:$0xff] }
 0x355   : > { %v2937_v11 = vadd.f32 %v2936_v20, %v12634_v15  ;;  %3696 = vmatprep.mubr.f32.mxu0 %v3355_v44  ;;  %v12932_v44 = vpack.c.bf16 %v3556_v37, %v3554_v57 }
 0x356   : > { %3697 = vmatmul.mubr.f32.gmra.mrb[22].mxu0 %v3354_v51  ;;  %v3358_v49 = vmax.f32 %v2935_v55, 0.0  ;;  %15998 = vst [vmem:[#allocation124_spill] sm:$0xff] %v12936_v10 }
 0x357   : > { %v2940_v50 = vpop.f32.mrb[154].mxu1  ;;  %v3359_v9 = vmax.f32 %v2937_v11, 0.0  ;;  %7942 = vmatpush1.bf16.msra.mxu0 %v12892_v25  ;;  %15997 = vst [vmem:[#allocation122_spill] sm:$0xff] %v12932_v44  ;;  %v3560_v11 = vld [vmem:[%s14993_s3 + $0x7d0] sm:$0xff] }
 0x358   : > { %v2941_v36 = vadd.f32 %v2940_v50, %v12629_v26  ;;  %v2942_v4 = vpop.f32.mrb[155].mxu1  ;;  %7944 = vmatprep.subr.bf16.mxu0 %v12896_v47  ;;  %v3565_v50 = vld [vmem:[%s14993_s3 + $0x7f8] sm:$0xff] }
 0x359   : > { %v2943_v18 = vadd.f32 %v2942_v4, %v12634_v15  ;;  %3702 = vmatprep.mubr.f32.mxu0 %v3359_v9  ;;  %v12952_v4 = vpack.c.bf16 %v3560_v11, %v3558_v1 }
 0x35a   : > { %3703 = vmatmul.mubr.f32.gmra.mrb[24].mxu0 %v3358_v49  ;;  %v3362_v51 = vmax.f32 %v2941_v36, 0.0 }
 0x35b   : > { %v2946_v30 = vpop.f32.mrb[156].mxu1  ;;  %v3363_v39 = vmax.f32 %v2943_v18, 0.0  ;;  %7946 = vmatpush1.bf16.msra.mxu0 %v12912_v5  ;;  %15999 = vst [vmem:[#allocation126_spill] sm:$0xff] %v12952_v4  ;;  %v12956_v18 = vpack.c.bf16 %v3565_v50, %v3563_v13 }
 0x35c   : > { %v2947_v55 = vadd.f32 %v2946_v30, %v12629_v26  ;;  %v2948_v20 = vpop.f32.mrb[157].mxu1  ;;  %7948 = vmatprep.subr.bf16.mxu0 %v12916_v2 }
 0x35d   : > { %v2949_v7 = vadd.f32 %v2948_v20, %v12634_v15  ;;  %3708 = vmatprep.mubr.f32.mxu0 %v3363_v39  ;;  %16000 = vst [vmem:[#allocation128_spill] sm:$0xff] %v12956_v18 }
 0x35e   : > { %3709 = vmatmul.mubr.f32.gmra.mrb[26].mxu0 %v3362_v51  ;;  %v3366_v37 = vmax.f32 %v2947_v55, 0.0  ;;  %v12966_v55 = vpack.c.bf16 %v3564_v52, %v3562_v48 }
 0x35f   : > { %v2952_v9 = vpop.f32.mrb[158].mxu1  ;;  %v3367_v36 = vmax.f32 %v2949_v7, 0.0  ;;  %7950 = vmatpush1.bf16.msra.mxu0 %v12932_v44 }
 0x360   : > { %v2953_v49 = vadd.f32 %v2952_v9, %v12629_v26  ;;  %v2954_v57 = vpop.f32.mrb[159].mxu1  ;;  %7952 = vmatprep.subr.bf16.mxu0 %v12936_v10  ;;  %16001 = vst [vmem:[#allocation132_spill] sm:$0xff] %v12966_v55 }
 0x361   : > { %v2955_v30 = vadd.f32 %v2954_v57, %v12634_v15  ;;  %3714 = vmatprep.mubr.f32.mxu0 %v3367_v36 }
 0x362   : > { %3715 = vmatmul.mubr.f32.gmra.mrb[28].mxu0 %v3366_v37  ;;  %v3370_v11 = vmax.f32 %v2953_v49, 0.0  ;;  %v16002_v37 = vld [vmem:[#allocation92_spill] sm:$0xff] }
 0x363   : > { %v2958_v39 = vpop.f32.mrb[160].mxu1  ;;  %v3371_v20 = vmax.f32 %v2955_v30, 0.0  ;;  %7954 = vmatpush1.bf16.msra.mxu0 %v12952_v4 }
 0x364   : > { %v2959_v51 = vadd.f32 %v2958_v39, %v12629_v26  ;;  %v2960_v1 = vpop.f32.mrb[161].mxu1  ;;  %7956 = vmatprep.subr.bf16.mxu0 %v12956_v18  ;;  %v16004_v18 = vld [vmem:[#allocation62_spill] sm:$0xff] }
 0x365   : > { %v2961_v7 = vadd.f32 %v2960_v1, %v12634_v15  ;;  %3720 = vmatprep.mubr.f32.mxu0 %v3371_v20 }
 0x366   : > { %3721 = vmatmul.mubr.f32.gmra.mrb[30].mxu0 %v3370_v11  ;;  %v3374_v57 = vmax.f32 %v2959_v51, 0.0 }
 0x367   : > { %v2964_v13 = vpop.f32.mrb[162].mxu1  ;;  %v3375_v50 = vmax.f32 %v2961_v7, 0.0  ;;  %7958 = vmatpush1.bf16.msra.mxu0 %v12966_v55 }
 0x368   : > { %v2965_v9 = vadd.f32 %v2964_v13, %v12629_v26  ;;  %v2966_v36 = vpop.f32.mrb[163].mxu1  ;;  %8088 = vmatprep.subr.bf16.mxu0 %v16002_v37 }
 0x369   : > { %v2967_v48 = vadd.f32 %v2966_v36, %v12634_v15  ;;  %3726 = vmatprep.mubr.f32.mxu0 %v3375_v50 }
 0x36a   : > { %3727 = vmatmul.mubr.f32.gmra.mrb[32].mxu0 %v3374_v57  ;;  %v3378_v20 = vmax.f32 %v2965_v9, 0.0 }
 0x36b   : > { %v2970_v49 = vpop.f32.mrb[164].mxu1  ;;  %v3379_v52 = vmax.f32 %v2967_v48, 0.0 }
 0x36c   : > { %v2971_v30 = vadd.f32 %v2970_v49, %v12629_v26  ;;  %v2972_v39 = vpop.f32.mrb[165].mxu1 }
 0x36d   : > { %v2973_v1 = vadd.f32 %v2972_v39, %v12634_v15  ;;  %3732 = vmatprep.mubr.f32.mxu0 %v3379_v52 }
 0x36e   : > { %3733 = vmatmul.mubr.f32.gmra.mrb[34].mxu0 %v3378_v20  ;;  %v3382_v37 = vmax.f32 %v2971_v30, 0.0 }
 0x36f   : > { %v2976_v11 = vpop.f32.mrb[166].mxu1  ;;  %v3383_v7 = vmax.f32 %v2973_v1, 0.0 }
 0x370   : > { %v2977_v51 = vadd.f32 %v2976_v11, %v12629_v26  ;;  %v2978_v13 = vpop.f32.mrb[167].mxu1 }
 0x371   : > { %v2979_v36 = vadd.f32 %v2978_v13, %v12634_v15  ;;  %3738 = vmatprep.mubr.f32.mxu0 %v3383_v7 }
 0x372   : > { %3739 = vmatmul.mubr.f32.gmra.mrb[36].mxu0 %v3382_v37  ;;  %v3386_v9 = vmax.f32 %v2977_v51, 0.0 }
 0x373   : > { %v2982_v50 = vpop.f32.mrb[168].mxu1  ;;  %v3387_v57 = vmax.f32 %v2979_v36, 0.0 }
 0x374   : > { %v2983_v48 = vadd.f32 %v2982_v50, %v12629_v26  ;;  %v2984_v49 = vpop.f32.mrb[169].mxu1 }
 0x375   : > { %v2985_v39 = vadd.f32 %v2984_v49, %v12634_v15  ;;  %3744 = vmatprep.mubr.f32.mxu0 %v3387_v57 }
 0x376   : > { %3745 = vmatmul.mubr.f32.gmra.mrb[38].mxu0 %v3386_v9  ;;  %v3390_v30 = vmax.f32 %v2983_v48, 0.0 }
 0x377   : > { %v2988_v52 = vpop.f32.mrb[170].mxu1  ;;  %v3391_v20 = vmax.f32 %v2985_v39, 0.0 }
 0x378   : > { %v2989_v1 = vadd.f32 %v2988_v52, %v12629_v26  ;;  %v2990_v11 = vpop.f32.mrb[171].mxu1 }
 0x379   : > { %v2991_v13 = vadd.f32 %v2990_v11, %v12634_v15  ;;  %3750 = vmatprep.mubr.f32.mxu0 %v3391_v20 }
 0x37a   : > { %3751 = vmatmul.mubr.f32.gmra.mrb[40].mxu0 %v3390_v30  ;;  %v3394_v51 = vmax.f32 %v2989_v1, 0.0 }
 0x37b   : > { %v2994_v7 = vpop.f32.mrb[172].mxu1  ;;  %v3395_v37 = vmax.f32 %v2991_v13, 0.0 }
 0x37c   : > { %v2995_v36 = vadd.f32 %v2994_v7, %v12629_v26  ;;  %v2996_v50 = vpop.f32.mrb[173].mxu1 }
 0x37d   : > { %v2997_v49 = vadd.f32 %v2996_v50, %v12634_v15  ;;  %3756 = vmatprep.mubr.f32.mxu0 %v3395_v37 }
 0x37e   : > { %3757 = vmatmul.mubr.f32.gmra.mrb[42].mxu0 %v3394_v51  ;;  %v3398_v48 = vmax.f32 %v2995_v36, 0.0 }
 0x37f   : > { %v3000_v57 = vpop.f32.mrb[174].mxu1  ;;  %v3399_v9 = vmax.f32 %v2997_v49, 0.0 }
 0x380   : > { %v3001_v39 = vadd.f32 %v3000_v57, %v12629_v26  ;;  %v3002_v52 = vpop.f32.mrb[175].mxu1 }
 0x381   : > { %v3003_v11 = vadd.f32 %v3002_v52, %v12634_v15  ;;  %3762 = vmatprep.mubr.f32.mxu0 %v3399_v9 }
 0x382   : > { %3763 = vmatmul.mubr.f32.gmra.mrb[44].mxu0 %v3398_v48  ;;  %v3402_v1 = vmax.f32 %v3001_v39, 0.0 }
 0x383   : > { %v3006_v20 = vpop.f32.mrb[176].mxu1  ;;  %v3403_v30 = vmax.f32 %v3003_v11, 0.0 }
 0x384   : > { %v3007_v13 = vadd.f32 %v3006_v20, %v12629_v26  ;;  %v3008_v7 = vpop.f32.mrb[177].mxu1 }
 0x385   : > { %v3009_v50 = vadd.f32 %v3008_v7, %v12634_v15  ;;  %3768 = vmatprep.mubr.f32.mxu0 %v3403_v30 }
 0x386   : > { %3769 = vmatmul.mubr.f32.gmra.mrb[46].mxu0 %v3402_v1  ;;  %v3406_v36 = vmax.f32 %v3007_v13, 0.0 }
 0x387   : > { %v3012_v37 = vpop.f32.mrb[178].mxu1  ;;  %v3407_v51 = vmax.f32 %v3009_v50, 0.0 }
 0x388   : > { %v3013_v49 = vadd.f32 %v3012_v37, %v12629_v26  ;;  %v3014_v57 = vpop.f32.mrb[179].mxu1 }
 0x389   : > { %v3015_v52 = vadd.f32 %v3014_v57, %v12634_v15  ;;  %3774 = vmatprep.mubr.f32.mxu0 %v3407_v51 }
 0x38a   : > { %3775 = vmatmul.mubr.f32.gmra.mrb[48].mxu0 %v3406_v36  ;;  %v3410_v39 = vmax.f32 %v3013_v49, 0.0 }
 0x38b   : > { %v3018_v9 = vpop.f32.mrb[180].mxu1  ;;  %v3411_v48 = vmax.f32 %v3015_v52, 0.0 }
 0x38c   : > { %v3019_v11 = vadd.f32 %v3018_v9, %v12629_v26  ;;  %v3020_v20 = vpop.f32.mrb[181].mxu1 }
 0x38d   : > { %v3021_v7 = vadd.f32 %v3020_v20, %v12634_v15  ;;  %3780 = vmatprep.mubr.f32.mxu0 %v3411_v48 }
 0x38e   : > { %3781 = vmatmul.mubr.f32.gmra.mrb[50].mxu0 %v3410_v39  ;;  %v3414_v13 = vmax.f32 %v3019_v11, 0.0 }
 0x38f   : > { %v3024_v30 = vpop.f32.mrb[182].mxu1  ;;  %v3415_v1 = vmax.f32 %v3021_v7, 0.0 }
 0x390   : > { %v3025_v50 = vadd.f32 %v3024_v30, %v12629_v26  ;;  %v3026_v37 = vpop.f32.mrb[183].mxu1 }
 0x391   : > { %v3027_v57 = vadd.f32 %v3026_v37, %v12634_v15  ;;  %3786 = vmatprep.mubr.f32.mxu0 %v3415_v1 }
 0x392   : > { %3787 = vmatmul.mubr.f32.gmra.mrb[52].mxu0 %v3414_v13  ;;  %v3418_v49 = vmax.f32 %v3025_v50, 0.0 }
 0x393   : > { %v3030_v51 = vpop.f32.mrb[184].mxu1  ;;  %v3419_v36 = vmax.f32 %v3027_v57, 0.0 }
 0x394   : > { %v3031_v52 = vadd.f32 %v3030_v51, %v12629_v26  ;;  %v3032_v9 = vpop.f32.mrb[185].mxu1 }
 0x395   : > { %v3033_v20 = vadd.f32 %v3032_v9, %v12634_v15  ;;  %3792 = vmatprep.mubr.f32.mxu0 %v3419_v36 }
 0x396   : > { %3793 = vmatmul.mubr.f32.gmra.mrb[54].mxu0 %v3418_v49  ;;  %v3422_v11 = vmax.f32 %v3031_v52, 0.0 }
 0x397   : > { %v3036_v48 = vpop.f32.mrb[186].mxu1  ;;  %v3423_v39 = vmax.f32 %v3033_v20, 0.0 }
 0x398   : > { %v3037_v7 = vadd.f32 %v3036_v48, %v12629_v26  ;;  %v3038_v30 = vpop.f32.mrb[187].mxu1 }
 0x399   : > { %v3039_v37 = vadd.f32 %v3038_v30, %v12634_v15  ;;  %3798 = vmatprep.mubr.f32.mxu0 %v3423_v39 }
 0x39a   : > { %3799 = vmatmul.mubr.f32.gmra.mrb[56].mxu0 %v3422_v11  ;;  %v3426_v50 = vmax.f32 %v3037_v7, 0.0 }
 0x39b   : > { %v3042_v1 = vpop.f32.mrb[188].mxu1  ;;  %v3427_v13 = vmax.f32 %v3039_v37, 0.0  ;;  %v16003_v37 = vld [vmem:[#allocation61_spill] sm:$0xff] }
 0x39c   : > { %v3043_v57 = vadd.f32 %v3042_v1, %v12629_v26  ;;  %v3044_v51 = vpop.f32.mrb[189].mxu1 }
 0x39d   : > { %v3045_v9 = vadd.f32 %v3044_v51, %v12634_v15  ;;  %3804 = vmatprep.mubr.f32.mxu0 %v3427_v13 }
 0x39e   : > { %3805 = vmatmul.mubr.f32.gmra.mrb[58].mxu0 %v3426_v50  ;;  %v3430_v52 = vmax.f32 %v3043_v57, 0.0 }
 0x39f   : > { %v3048_v36 = vpop.f32.mrb[190].mxu1  ;;  %v3431_v49 = vmax.f32 %v3045_v9, 0.0 }
 0x3a0   : > { %v3049_v20 = vadd.f32 %v3048_v36, %v12629_v26  ;;  %v3050_v48 = vpop.f32.mrb[191].mxu1 }
 0x3a1   : > { %v3051_v30 = vadd.f32 %v3050_v48, %v12634_v15  ;;  %3810 = vmatprep.mubr.f32.mxu0 %v3431_v49 }
 0x3a2   : > { %3811 = vmatmul.mubr.f32.gmra.mrb[60].mxu0 %v3430_v52  ;;  %v3434_v7 = vmax.f32 %v3049_v20, 0.0 }
 0x3a3   : > { %v3119_v39 = vpop.f32.mrb[192].mxu1  ;;  %v3435_v11 = vmax.f32 %v3051_v30, 0.0  ;;  %v16005_v30 = vld [vmem:[#allocation97_spill] sm:$0xff] }
 0x3a4   : > { %v3120_v1 = vadd.f32 %v3119_v39, %v16003_v37  ;;  %v3121_v55 = vpop.f32.mrb[193].mxu1 }
 0x3a5   : > { %v3122_v51 = vadd.f32 %v3121_v55, %v16004_v18  ;;  %3816 = vmatprep.mubr.f32.mxu0 %v3435_v11  ;;  %v16006_v11 = vld [vmem:[#allocation99_spill] sm:$0xff] }
 0x3a6   : > { %3817 = vmatmul.mubr.f32.gmra.mrb[62].mxu0 %v3434_v7  ;;  %v3312_v9 = vmax.f32 %v3120_v1, 0.0 }
 0x3a7   : > { %v3125_v13 = vpop.f32.mrb[194].mxu1  ;;  %v3313_v50 = vmax.f32 %v3122_v51, 0.0 }
 0x3a8   : > { %v3126_v36 = vadd.f32 %v3125_v13, %v16003_v37  ;;  %v3127_v57 = vpop.f32.mrb[195].mxu1  ;;  %v16007_v13 = vld [vmem:[#allocation100_spill] sm:$0xff] }
 0x3a9   : > { %v3128_v48 = vadd.f32 %v3127_v57, %v16004_v18  ;;  %3887 = vmatprep.mubr.f32.mxu0 %v3313_v50 }
 0x3aa   : > { %3888 = vmatmul.mubr.f32.vlgmr.msra.gmra.mrb[0].mxu0 %v3312_v9  ;;  %v3316_v55 = vmax.f32 %v3126_v36, 0.0 }
 0x3ab   : > { %v3131_v49 = vpop.f32.mrb[196].mxu1  ;;  %v3317_v52 = vmax.f32 %v3128_v48, 0.0  ;;  %8090 = vmatpush1.bf16.msra.mxu0 %v16005_v30  ;;  %v16008_v48 = vld [vmem:[#allocation107_spill] sm:$0xff] }
 0x3ac   : > { %v3132_v20 = vadd.f32 %v3131_v49, %v16003_v37  ;;  %v3133_v39 = vpop.f32.mrb[197].mxu1  ;;  %8092 = vmatprep.subr.bf16.mxu0 %v16006_v11  ;;  %v16009_v11 = vld [vmem:[#allocation108_spill] sm:$0xff] }
 0x3ad   : > { %v3134_v7 = vadd.f32 %v3133_v39, %v16004_v18  ;;  %3893 = vmatprep.mubr.f32.mxu0 %v3317_v52 }
 0x3ae   : > { %3894 = vmatmul.mubr.f32.gmra.mrb[2].mxu0 %v3316_v55  ;;  %v3320_v57 = vmax.f32 %v3132_v20, 0.0 }
 0x3af   : > { %v3137_v1 = vpop.f32.mrb[198].mxu1  ;;  %v3321_v51 = vmax.f32 %v3134_v7, 0.0  ;;  %8094 = vmatpush1.bf16.msra.mxu0 %v16007_v13  ;;  %v16010_v7 = vld [vmem:[#allocation54_spill] sm:$0xff] }
 0x3b0   : > { %v3138_v50 = vadd.f32 %v3137_v1, %v16003_v37  ;;  %v3139_v9 = vpop.f32.mrb[199].mxu1  ;;  %8096 = vmatprep.subr.bf16.mxu0 %v16008_v48  ;;  %v16011_v48 = vld [vmem:[#allocation53_spill] sm:$0xff] }
 0x3b1   : > { %v3140_v49 = vadd.f32 %v3139_v9, %v16004_v18  ;;  %3899 = vmatprep.mubr.f32.mxu0 %v3321_v51 }
 0x3b2   : > { %3900 = vmatmul.mubr.f32.gmra.mrb[4].mxu0 %v3320_v57  ;;  %v3324_v55 = vmax.f32 %v3138_v50, 0.0 }
 0x3b3   : > { %v3143_v36 = vpop.f32.mrb[200].mxu1  ;;  %v3325_v30 = vmax.f32 %v3140_v49, 0.0  ;;  %8098 = vmatpush1.bf16.msra.mxu0 %v16009_v11  ;;  %v16012_v49 = vld [vmem:[#allocation58_spill] sm:$0xff] }
 0x3b4   : > { %v3144_v52 = vadd.f32 %v3143_v36, %v16003_v37  ;;  %v3145_v39 = vpop.f32.mrb[201].mxu1  ;;  %8100 = vmatprep.subr.bf16.mxu0 %v16010_v7  ;;  %v16013_v7 = vld [vmem:[#allocation111_spill] sm:$0xff] }
 0x3b5   : > { %v3146_v1 = vadd.f32 %v3145_v39, %v16004_v18  ;;  %3905 = vmatprep.mubr.f32.mxu0 %v3325_v30 }
 0x3b6   : > { %3906 = vmatmul.mubr.f32.gmra.mrb[6].mxu0 %v3324_v55  ;;  %v3328_v57 = vmax.f32 %v3144_v52, 0.0 }
 0x3b7   : > { %v3149_v20 = vpop.f32.mrb[202].mxu1  ;;  %v3329_v13 = vmax.f32 %v3146_v1, 0.0  ;;  %8102 = vmatpush1.bf16.msra.mxu0 %v16011_v48  ;;  %v16014_v1 = vld [vmem:[#allocation112_spill] sm:$0xff] }
 0x3b8   : > { %v3150_v51 = vadd.f32 %v3149_v20, %v16003_v37  ;;  %v3151_v9 = vpop.f32.mrb[203].mxu1  ;;  %8104 = vmatprep.subr.bf16.mxu0 %v16012_v49  ;;  %v16015_v49 = vld [vmem:[#allocation57_spill] sm:$0xff] }
 0x3b9   : > { %v3152_v36 = vadd.f32 %v3151_v9, %v16004_v18  ;;  %3911 = vmatprep.mubr.f32.mxu0 %v3329_v13 }
 0x3ba   : > { %3912 = vmatmul.mubr.f32.gmra.mrb[8].mxu0 %v3328_v57  ;;  %v3332_v55 = vmax.f32 %v3150_v51, 0.0 }
 0x3bb   : > { %v3155_v50 = vpop.f32.mrb[204].mxu1  ;;  %v3333_v11 = vmax.f32 %v3152_v36, 0.0  ;;  %8106 = vmatpush1.bf16.msra.mxu0 %v16013_v7  ;;  %v16016_v36 = vld [vmem:[#allocation113_spill] sm:$0xff] }
 0x3bc   : > { %v3156_v30 = vadd.f32 %v3155_v50, %v16003_v37  ;;  %v3157_v39 = vpop.f32.mrb[205].mxu1  ;;  %8108 = vmatprep.subr.bf16.mxu0 %v16014_v1  ;;  %v16017_v1 = vld [vmem:[#allocation115_spill] sm:$0xff] }
 0x3bd   : > { %v3158_v20 = vadd.f32 %v3157_v39, %v16004_v18  ;;  %3917 = vmatprep.mubr.f32.mxu0 %v3333_v11 }
 0x3be   : > { %3918 = vmatmul.mubr.f32.gmra.mrb[10].mxu0 %v3332_v55  ;;  %v3336_v57 = vmax.f32 %v3156_v30, 0.0 }
 0x3bf   : > { %v3161_v52 = vpop.f32.mrb[206].mxu1  ;;  %v3337_v48 = vmax.f32 %v3158_v20, 0.0  ;;  %8110 = vmatpush1.bf16.msra.mxu0 %v16015_v49  ;;  %v16018_v20 = vld [vmem:[#allocation117_spill] sm:$0xff] }
 0x3c0   : > { %v3162_v13 = vadd.f32 %v3161_v52, %v16003_v37  ;;  %v3163_v9 = vpop.f32.mrb[207].mxu1  ;;  %8112 = vmatprep.subr.bf16.mxu0 %v16016_v36  ;;  %v16019_v36 = vld [vmem:[#allocation119_spill] sm:$0xff] }
 0x3c1   : > { %v3164_v50 = vadd.f32 %v3163_v9, %v16004_v18  ;;  %3923 = vmatprep.mubr.f32.mxu0 %v3337_v48 }
 0x3c2   : > { %3924 = vmatmul.mubr.f32.gmra.mrb[12].mxu0 %v3336_v57  ;;  %v3340_v55 = vmax.f32 %v3162_v13, 0.0 }
 0x3c3   : > { %v3167_v51 = vpop.f32.mrb[208].mxu1  ;;  %v3341_v7 = vmax.f32 %v3164_v50, 0.0  ;;  %8114 = vmatpush1.bf16.msra.mxu0 %v16017_v1  ;;  %v16020_v50 = vld [vmem:[#allocation121_spill] sm:$0xff] }
 0x3c4   : > { %v3168_v11 = vadd.f32 %v3167_v51, %v16003_v37  ;;  %v3169_v39 = vpop.f32.mrb[209].mxu1  ;;  %8116 = vmatprep.subr.bf16.mxu0 %v16018_v20  ;;  %v16021_v20 = vld [vmem:[#allocation123_spill] sm:$0xff] }
 0x3c5   : > { %v3170_v52 = vadd.f32 %v3169_v39, %v16004_v18  ;;  %3929 = vmatprep.mubr.f32.mxu0 %v3341_v7 }
 0x3c6   : > { %3930 = vmatmul.mubr.f32.gmra.mrb[14].mxu0 %v3340_v55  ;;  %v3344_v57 = vmax.f32 %v3168_v11, 0.0 }
 0x3c7   : > { %v3173_v30 = vpop.f32.mrb[210].mxu1  ;;  %v3345_v49 = vmax.f32 %v3170_v52, 0.0  ;;  %8118 = vmatpush1.bf16.msra.mxu0 %v16019_v36  ;;  %v16022_v52 = vld [vmem:[#allocation125_spill] sm:$0xff] }
 0x3c8   : > { %v3174_v48 = vadd.f32 %v3173_v30, %v16003_v37  ;;  %v3175_v9 = vpop.f32.mrb[211].mxu1  ;;  %8120 = vmatprep.subr.bf16.mxu0 %v16020_v50  ;;  %v16023_v50 = vld [vmem:[#allocation127_spill] sm:$0xff] }
 0x3c9   : > { %v3176_v51 = vadd.f32 %v3175_v9, %v16004_v18  ;;  %3935 = vmatprep.mubr.f32.mxu0 %v3345_v49 }
 0x3ca   : > { %3936 = vmatmul.mubr.f32.gmra.mrb[16].mxu0 %v3344_v57  ;;  %v3348_v55 = vmax.f32 %v3174_v48, 0.0 }
 0x3cb   : > { %v3179_v13 = vpop.f32.mrb[212].mxu1  ;;  %v3349_v1 = vmax.f32 %v3176_v51, 0.0  ;;  %8122 = vmatpush1.bf16.msra.mxu0 %v16021_v20  ;;  %v16024_v51 = vld [vmem:[#allocation129_spill] sm:$0xff] }
 0x3cc   : > { %v3180_v7 = vadd.f32 %v3179_v13, %v16003_v37  ;;  %v3181_v39 = vpop.f32.mrb[213].mxu1  ;;  %8124 = vmatprep.subr.bf16.mxu0 %v16022_v52  ;;  %v16025_v52 = vld [vmem:[#allocation130_spill] sm:$0xff] }
 0x3cd   : > { %v3182_v30 = vadd.f32 %v3181_v39, %v16004_v18  ;;  %3941 = vmatprep.mubr.f32.mxu0 %v3349_v1 }
 0x3ce   : > { %3942 = vmatmul.mubr.f32.gmra.mrb[18].mxu0 %v3348_v55  ;;  %v3352_v57 = vmax.f32 %v3180_v7, 0.0 }
 0x3cf   : > { %v3185_v11 = vpop.f32.mrb[214].mxu1  ;;  %v3353_v36 = vmax.f32 %v3182_v30, 0.0  ;;  %8126 = vmatpush1.bf16.msra.mxu0 %v16023_v50  ;;  %v16026_v30 = vld [vmem:[#allocation5_spill] sm:$0xff] }
 0x3d0   : > { %v3186_v49 = vadd.f32 %v3185_v11, %v16003_v37  ;;  %v3187_v9 = vpop.f32.mrb[215].mxu1  ;;  %8128 = vmatprep.subr.bf16.mxu0 %v16024_v51  ;;  %v16027_v51 = vld [vmem:[#allocation2_spill] sm:$0xff] }
 0x3d1   : > { %v3188_v13 = vadd.f32 %v3187_v9, %v16004_v18  ;;  %3947 = vmatprep.mubr.f32.mxu0 %v3353_v36 }
 0x3d2   : > { %3948 = vmatmul.mubr.f32.gmra.mrb[20].mxu0 %v3352_v57  ;;  %v3356_v55 = vmax.f32 %v3186_v49, 0.0 }
 0x3d3   : > { %v3191_v48 = vpop.f32.mrb[216].mxu1  ;;  %v3357_v20 = vmax.f32 %v3188_v13, 0.0  ;;  %8130 = vmatpush1.bf16.msra.mxu0 %v16025_v52  ;;  %v16028_v13 = vld [vmem:[#allocation131_spill] sm:$0xff] }
 0x3d4   : > { %v3192_v1 = vadd.f32 %v3191_v48, %v16003_v37  ;;  %v3193_v39 = vpop.f32.mrb[217].mxu1  ;;  %8132 = vmatprep.subr.bf16.mxu0 %v16026_v30  ;;  %v16029_v30 = vld [vmem:[#allocation133_spill] sm:$0xff] }
 0x3d5   : > { %v3194_v11 = vadd.f32 %v3193_v39, %v16004_v18  ;;  %3953 = vmatprep.mubr.f32.mxu0 %v3357_v20 }
 0x3d6   : > { %3954 = vmatmul.mubr.f32.gmra.mrb[22].mxu0 %v3356_v55  ;;  %v3360_v57 = vmax.f32 %v3192_v1, 0.0 }
 0x3d7   : > { %v3197_v7 = vpop.f32.mrb[218].mxu1  ;;  %v3361_v50 = vmax.f32 %v3194_v11, 0.0  ;;  %8134 = vmatpush1.bf16.msra.mxu0 %v16027_v51  ;;  %v16030_v11 = vld [vmem:[#allocation3_spill] sm:$0xff] }
 0x3d8   : > { %v3198_v36 = vadd.f32 %v3197_v7, %v16003_v37  ;;  %v3199_v9 = vpop.f32.mrb[219].mxu1  ;;  %8136 = vmatprep.subr.bf16.mxu0 %v16028_v13  ;;  %v16031_v13 = vld [vmem:[#allocation6_spill] sm:$0xff] }
 0x3d9   : > { %v3200_v48 = vadd.f32 %v3199_v9, %v16004_v18  ;;  %3959 = vmatprep.mubr.f32.mxu0 %v3361_v50 }
 0x3da   : > { %3960 = vmatmul.mubr.f32.gmra.mrb[24].mxu0 %v3360_v57  ;;  %v3364_v55 = vmax.f32 %v3198_v36, 0.0 }
 0x3db   : > { %v3203_v49 = vpop.f32.mrb[220].mxu1  ;;  %v3365_v52 = vmax.f32 %v3200_v48, 0.0  ;;  %8138 = vmatpush1.bf16.msra.mxu0 %v16029_v30  ;;  %v16032_v48 = vld [vmem:[#allocation7_spill] sm:$0xff] }
 0x3dc   : > { %v3204_v20 = vadd.f32 %v3203_v49, %v16003_v37  ;;  %v3205_v39 = vpop.f32.mrb[221].mxu1  ;;  %8140 = vmatprep.subr.bf16.mxu0 %v16030_v11  ;;  %v16033_v11 = vld [vmem:[#allocation4_spill] sm:$0xff] }
 0x3dd   : > { %v3206_v7 = vadd.f32 %v3205_v39, %v16004_v18  ;;  %3965 = vmatprep.mubr.f32.mxu0 %v3365_v52 }
 0x3de   : > { %3966 = vmatmul.mubr.f32.gmra.mrb[26].mxu0 %v3364_v55  ;;  %v3368_v57 = vmax.f32 %v3204_v20, 0.0 }
 0x3df   : > { %v3209_v1 = vpop.f32.mrb[222].mxu1  ;;  %v3369_v51 = vmax.f32 %v3206_v7, 0.0  ;;  %8142 = vmatpush1.bf16.msra.mxu0 %v16031_v13  ;;  %v16034_v7 = vld [vmem:[#allocation9_spill] sm:$0xff] }
 0x3e0   : > { %v3210_v50 = vadd.f32 %v3209_v1, %v16003_v37  ;;  %v3211_v9 = vpop.f32.mrb[223].mxu1  ;;  %8144 = vmatprep.subr.bf16.mxu0 %v16032_v48  ;;  %v16035_v48 = vld [vmem:[#allocation8_spill] sm:$0xff] }
 0x3e1   : > { %v3212_v49 = vadd.f32 %v3211_v9, %v16004_v18  ;;  %3971 = vmatprep.mubr.f32.mxu0 %v3369_v51 }
 0x3e2   : > { %3972 = vmatmul.mubr.f32.gmra.mrb[28].mxu0 %v3368_v57  ;;  %v3372_v55 = vmax.f32 %v3210_v50, 0.0 }
 0x3e3   : > { %v3215_v36 = vpop.f32.mrb[224].mxu1  ;;  %v3373_v30 = vmax.f32 %v3212_v49, 0.0  ;;  %8146 = vmatpush1.bf16.msra.mxu0 %v16033_v11  ;;  %v16036_v49 = vld [vmem:[#allocation11_spill] sm:$0xff] }
 0x3e4   : > { %v3216_v52 = vadd.f32 %v3215_v36, %v16003_v37  ;;  %v3217_v39 = vpop.f32.mrb[225].mxu1  ;;  %8148 = vmatprep.subr.bf16.mxu0 %v16034_v7 }
 0x3e5   : > { %v3218_v1 = vadd.f32 %v3217_v39, %v16004_v18  ;;  %3977 = vmatprep.mubr.f32.mxu0 %v3373_v30 }
 0x3e6   : > { %3978 = vmatmul.mubr.f32.gmra.mrb[30].mxu0 %v3372_v55  ;;  %v3376_v57 = vmax.f32 %v3216_v52, 0.0 }
 0x3e7   : > { %v3221_v20 = vpop.f32.mrb[226].mxu1  ;;  %v3377_v13 = vmax.f32 %v3218_v1, 0.0  ;;  %8150 = vmatpush1.bf16.msra.mxu0 %v16035_v48 }
 0x3e8   : > { %v3222_v51 = vadd.f32 %v3221_v20, %v16003_v37  ;;  %v3223_v9 = vpop.f32.mrb[227].mxu1  ;;  %8152 = vmatprep.subr.bf16.mxu0 %v16036_v49 }
 0x3e9   : > { %v3224_v36 = vadd.f32 %v3223_v9, %v16004_v18  ;;  %3983 = vmatprep.mubr.f32.mxu0 %v3377_v13 }
 0x3ea   : > { %3984 = vmatmul.mubr.f32.gmra.mrb[32].mxu0 %v3376_v57  ;;  %v3380_v55 = vmax.f32 %v3222_v51, 0.0 }
 0x3eb   : > { %v3227_v50 = vpop.f32.mrb[228].mxu1  ;;  %v3381_v11 = vmax.f32 %v3224_v36, 0.0 }
 0x3ec   : > { %v3228_v39 = vadd.f32 %v3227_v50, %v16003_v37  ;;  %v3229_v30 = vpop.f32.mrb[229].mxu1 }
 0x3ed   : > { %v3230_v7 = vadd.f32 %v3229_v30, %v16004_v18  ;;  %3989 = vmatprep.mubr.f32.mxu0 %v3381_v11 }
 0x3ee   : > { %3990 = vmatmul.mubr.f32.gmra.mrb[34].mxu0 %v3380_v55  ;;  %v3384_v49 = vmax.f32 %v3228_v39, 0.0 }
 0x3ef   : > { %v3233_v1 = vpop.f32.mrb[230].mxu1  ;;  %v3385_v20 = vmax.f32 %v3230_v7, 0.0 }
 0x3f0   : > { %v3234_v52 = vadd.f32 %v3233_v1, %v16003_v37  ;;  %v3235_v48 = vpop.f32.mrb[231].mxu1 }
 0x3f1   : > { %v3236_v9 = vadd.f32 %v3235_v48, %v16004_v18  ;;  %3995 = vmatprep.mubr.f32.mxu0 %v3385_v20 }
 0x3f2   : > { %3996 = vmatmul.mubr.f32.gmra.mrb[36].mxu0 %v3384_v49  ;;  %v3388_v51 = vmax.f32 %v3234_v52, 0.0 }
 0x3f3   : > { %v3239_v13 = vpop.f32.mrb[232].mxu1  ;;  %v3389_v57 = vmax.f32 %v3236_v9, 0.0 }
 0x3f4   : > { %v3240_v36 = vadd.f32 %v3239_v13, %v16003_v37  ;;  %v3241_v50 = vpop.f32.mrb[233].mxu1 }
 0x3f5   : > { %v3242_v30 = vadd.f32 %v3241_v50, %v16004_v18  ;;  %4001 = vmatprep.mubr.f32.mxu0 %v3389_v57 }
 0x3f6   : > { %4002 = vmatmul.mubr.f32.gmra.mrb[38].mxu0 %v3388_v51  ;;  %v3392_v39 = vmax.f32 %v3240_v36, 0.0 }
 0x3f7   : > { %v3245_v11 = vpop.f32.mrb[234].mxu1  ;;  %v3393_v55 = vmax.f32 %v3242_v30, 0.0 }
 0x3f8   : > { %v3246_v7 = vadd.f32 %v3245_v11, %v16003_v37  ;;  %v3247_v1 = vpop.f32.mrb[235].mxu1 }
 0x3f9   : > { %v3248_v48 = vadd.f32 %v3247_v1, %v16004_v18  ;;  %4007 = vmatprep.mubr.f32.mxu0 %v3393_v55 }
 0x3fa   : > { %4008 = vmatmul.mubr.f32.gmra.mrb[40].mxu0 %v3392_v39  ;;  %v3396_v52 = vmax.f32 %v3246_v7, 0.0 }
 0x3fb   : > { %v3251_v20 = vpop.f32.mrb[236].mxu1  ;;  %v3397_v49 = vmax.f32 %v3248_v48, 0.0 }
 0x3fc   : > { %v3252_v9 = vadd.f32 %v3251_v20, %v16003_v37  ;;  %v3253_v13 = vpop.f32.mrb[237].mxu1 }
 0x3fd   : > { %v3254_v50 = vadd.f32 %v3253_v13, %v16004_v18  ;;  %4013 = vmatprep.mubr.f32.mxu0 %v3397_v49 }
 0x3fe   : > { %4014 = vmatmul.mubr.f32.gmra.mrb[42].mxu0 %v3396_v52  ;;  %v3400_v36 = vmax.f32 %v3252_v9, 0.0 }
 0x3ff   : > { %v3257_v57 = vpop.f32.mrb[238].mxu1  ;;  %v3401_v51 = vmax.f32 %v3254_v50, 0.0 }
 0x400   : > { %v3258_v30 = vadd.f32 %v3257_v57, %v16003_v37  ;;  %v3259_v11 = vpop.f32.mrb[239].mxu1 }
 0x401   : > { %v3260_v1 = vadd.f32 %v3259_v11, %v16004_v18  ;;  %4019 = vmatprep.mubr.f32.mxu0 %v3401_v51 }
 0x402   : > { %4020 = vmatmul.mubr.f32.gmra.mrb[44].mxu0 %v3400_v36  ;;  %v3404_v7 = vmax.f32 %v3258_v30, 0.0 }
 0x403   : > { %v3263_v55 = vpop.f32.mrb[240].mxu1  ;;  %v3405_v39 = vmax.f32 %v3260_v1, 0.0 }
 0x404   : > { %v3264_v48 = vadd.f32 %v3263_v55, %v16003_v37  ;;  %v3265_v20 = vpop.f32.mrb[241].mxu1 }
 0x405   : > { %v3266_v13 = vadd.f32 %v3265_v20, %v16004_v18  ;;  %4025 = vmatprep.mubr.f32.mxu0 %v3405_v39 }
 0x406   : > { %4026 = vmatmul.mubr.f32.gmra.mrb[46].mxu0 %v3404_v7  ;;  %v3408_v9 = vmax.f32 %v3264_v48, 0.0 }
 0x407   : > { %v3269_v49 = vpop.f32.mrb[242].mxu1  ;;  %v3409_v52 = vmax.f32 %v3266_v13, 0.0 }
 0x408   : > { %v3270_v50 = vadd.f32 %v3269_v49, %v16003_v37  ;;  %v3271_v57 = vpop.f32.mrb[243].mxu1 }
 0x409   : > { %v3272_v11 = vadd.f32 %v3271_v57, %v16004_v18  ;;  %4031 = vmatprep.mubr.f32.mxu0 %v3409_v52 }
 0x40a   : > { %4032 = vmatmul.mubr.f32.gmra.mrb[48].mxu0 %v3408_v9  ;;  %v3412_v30 = vmax.f32 %v3270_v50, 0.0 }
 0x40b   : > { %v3275_v51 = vpop.f32.mrb[244].mxu1  ;;  %v3413_v36 = vmax.f32 %v3272_v11, 0.0 }
 0x40c   : > { %v3276_v1 = vadd.f32 %v3275_v51, %v16003_v37  ;;  %v3277_v55 = vpop.f32.mrb[245].mxu1 }
 0x40d   : > { %v3278_v20 = vadd.f32 %v3277_v55, %v16004_v18  ;;  %4037 = vmatprep.mubr.f32.mxu0 %v3413_v36 }
 0x40e   : > { %4038 = vmatmul.mubr.f32.gmra.mrb[50].mxu0 %v3412_v30  ;;  %v3416_v48 = vmax.f32 %v3276_v1, 0.0 }
 0x40f   : > { %v3281_v39 = vpop.f32.mrb[246].mxu1  ;;  %v3417_v7 = vmax.f32 %v3278_v20, 0.0 }
 0x410   : > { %v3282_v13 = vadd.f32 %v3281_v39, %v16003_v37  ;;  %v3283_v49 = vpop.f32.mrb[247].mxu1 }
 0x411   : > { %v3284_v57 = vadd.f32 %v3283_v49, %v16004_v18  ;;  %4043 = vmatprep.mubr.f32.mxu0 %v3417_v7 }
 0x412   : > { %4044 = vmatmul.mubr.f32.gmra.mrb[52].mxu0 %v3416_v48  ;;  %v3420_v50 = vmax.f32 %v3282_v13, 0.0 }
 0x413   : > { %v3287_v52 = vpop.f32.mrb[248].mxu1  ;;  %v3421_v9 = vmax.f32 %v3284_v57, 0.0 }
 0x414   : > { %v3288_v11 = vadd.f32 %v3287_v52, %v16003_v37  ;;  %v3289_v51 = vpop.f32.mrb[249].mxu1 }
 0x415   : > { %v3290_v55 = vadd.f32 %v3289_v51, %v16004_v18  ;;  %4049 = vmatprep.mubr.f32.mxu0 %v3421_v9 }
 0x416   : > { %4050 = vmatmul.mubr.f32.gmra.mrb[54].mxu0 %v3420_v50  ;;  %v3424_v1 = vmax.f32 %v3288_v11, 0.0 }
 0x417   : > { %v3293_v36 = vpop.f32.mrb[250].mxu1  ;;  %v3425_v30 = vmax.f32 %v3290_v55, 0.0 }
 0x418   : > { %v3294_v20 = vadd.f32 %v3293_v36, %v16003_v37  ;;  %v3295_v39 = vpop.f32.mrb[251].mxu1 }
 0x419   : > { %v3296_v49 = vadd.f32 %v3295_v39, %v16004_v18  ;;  %4055 = vmatprep.mubr.f32.mxu0 %v3425_v30 }
 0x41a   : > { %4056 = vmatmul.mubr.f32.gmra.mrb[56].mxu0 %v3424_v1  ;;  %v3428_v13 = vmax.f32 %v3294_v20, 0.0  ;;  %v345_v20 = vld [vmem:[%s14994_s4] sm:$0x3] }
 0x41b   : > { %v3299_v7 = vpop.f32.mrb[252].mxu1  ;;  %v3429_v48 = vmax.f32 %v3296_v49, 0.0  ;;  %v13103_v49 = vrot.slane %v345_v20, %v15955_v40 }
 0x41c   : > { %v3300_v57 = vadd.f32 %v3299_v7, %v16003_v37  ;;  %v3301_v52 = vpop.f32.mrb[253].mxu1  ;;  %v13106_v7 = vrot.slane %v345_v20, %v15957_v22 }
 0x41d   : > { %v3302_v51 = vadd.f32 %v3301_v52, %v16004_v18  ;;  %4061 = vmatprep.mubr.f32.mxu0 %v3429_v48  ;;  %16037 = vst [vmem:[#allocation134_spill] sm:$0xff] %v13103_v49  ;;  %v9121_v48 = vld [vmem:[%s9259_s15] sm:$0xff]  ;;  %v9122_v52 = vld [vmem:[%s9259_s15 + $0x8] sm:$0xff] }
 0x41e   : > { %4062 = vmatmul.mubr.f32.gmra.mrb[58].mxu0 %v3428_v13  ;;  %v3432_v36 = vmax.f32 %v3300_v57, 0.0  ;;  %16038 = vst [vmem:[#allocation136_spill] sm:$0xff] %v13106_v7  ;;  %v1084_v57 = vadd.f32 %v9121_v48, %v13103_v49  ;;  %v1085_v13 = vadd.f32 %v9122_v52, %v13106_v7 }
 0x41f   : > { %v3305_v9 = vpop.f32.mrb[254].mxu1  ;;  %v3433_v50 = vmax.f32 %v3302_v51, 0.0 }
 0x420   : > { %v3306_v11 = vadd.f32 %v3305_v9, %v16003_v37  ;;  %v3307_v55 = vpop.f32.mrb[255].mxu1 }
 0x421   : > { %v3308_v30 = vadd.f32 %v3307_v55, %v16004_v18  ;;  %4067 = vmatprep.mubr.f32.mxu0 %v3433_v50 }
 0x422   : > { %4068 = vmatmul.mubr.f32.gmra.mrb[60].mxu0 %v3432_v36  ;;  %v3436_v1 = vmax.f32 %v3306_v11, 0.0  ;;  %v9123_v11 = vld [vmem:[%s9259_s15 + $0x10] sm:$0xff] }
 0x423   : > { %v3437_v39 = vmax.f32 %v3308_v30, 0.0  ;;  %v1086_v55 = vadd.f32 %v9123_v11, %v13103_v49  ;;  %v9124_v30 = vld [vmem:[%s9259_s15 + $0x18] sm:$0xff] }
 0x425   : > { %4073 = vmatprep.mubr.f32.mxu0 %v3437_v39  ;;  %v1087_v39 = vadd.f32 %v9124_v30, %v13106_v7 }
 0x426   : > { %4074 = vmatmul.mubr.f32.gmra.mrb[62].mxu0 %v3436_v1 }
 0x47d   : > { %v3889_v51 = vpop.f32.mrb[0].mxu0 }
 0x47e   : > { %v13112_v9 = vadd.f32 %v3889_v51, %v1084_v57  ;;  %v3891_v50 = vpop.f32.mrb[1].mxu0  ;;  %v9125_v57 = vld [vmem:[%s9259_s15 + $0x20] sm:$0xff] }
 0x47f   : > { %v13116_v36 = vadd.f32 %v3891_v50, %v1085_v13  ;;  %v1088_v51 = vadd.f32 %v9125_v57, %v13103_v49  ;;  %v9126_v13 = vld [vmem:[%s9259_s15 + $0x28] sm:$0xff] }
 0x480   : > { %16039 = vst [vmem:[#allocation138_spill] sm:$0xff] %v13112_v9  ;;  %v1089_v50 = vadd.f32 %v9126_v13, %v13106_v7 }
 0x481   : > { %16040 = vst [vmem:[#allocation10_spill] sm:$0xff] %v13116_v36  ;;  %v3895_v1 = vpop.f32.mrb[2].mxu0  ;;  %v4144_v20 = vadd.f32 %v13116_v36, %v13112_v9 }
 0x482   : > { %v13122_v48 = vadd.f32 %v3895_v1, %v1086_v55  ;;  %v3897_v52 = vpop.f32.mrb[3].mxu0  ;;  %v9127_v1 = vld [vmem:[%s9259_s15 + $0x30] sm:$0xff] }
 0x483   : > { %v13126_v18 = vadd.f32 %v3897_v52, %v1087_v39  ;;  %4145 = vadd.xlane.f32.xlu0 %v4144_v20  ;;  %v1090_v4 = vadd.f32 %v9127_v1, %v13103_v49  ;;  %v9128_v39 = vld [vmem:[%s9259_s15 + $0x38] sm:$0xff] }
 0x484   : > { %16041 = vst [vmem:[#allocation139_spill] sm:$0xff] %v13122_v48  ;;  %v1091_v20 = vadd.f32 %v9128_v39, %v13106_v7 }
 0x485   : > { %16042 = vst [vmem:[#allocation140_spill] sm:$0xff] %v13126_v18  ;;  %v3901_v11 = vpop.f32.mrb[4].mxu0  ;;  %v4147_v30 = vadd.f32 %v13126_v18, %v13122_v48 }
 0x486   : > { %v13132_v37 = vadd.f32 %v3901_v11, %v1088_v51  ;;  %v3903_v55 = vpop.f32.mrb[5].mxu0  ;;  %v9129_v11 = vld [vmem:[%s9259_s15 + $0x40] sm:$0xff] }
 0x487   : > { %v13136_v10 = vadd.f32 %v3903_v55, %v1089_v50  ;;  %4148 = vadd.xlane.f32.xlu1 %v4147_v30  ;;  %v1092_v44 = vadd.f32 %v9129_v11, %v13103_v49  ;;  %v9130_v50 = vld [vmem:[%s9259_s15 + $0x48] sm:$0xff] }
 0x488   : > { %16043 = vst [vmem:[#allocation92_spill] sm:$0xff] %v13132_v37  ;;  %v1093_v30 = vadd.f32 %v9130_v50, %v13106_v7 }
 0x489   : > { %16044 = vst [vmem:[#allocation97_spill] sm:$0xff] %v13136_v10  ;;  %v3907_v52 = vpop.f32.mrb[6].mxu0  ;;  %v4150_v57 = vadd.f32 %v13136_v10, %v13132_v37 }
 0x48a   : > { %v13142_v13 = vadd.f32 %v3907_v52, %v1090_v4  ;;  %v3909_v51 = vpop.f32.mrb[7].mxu0  ;;  %v9131_v52 = vld [vmem:[%s9259_s15 + $0x50] sm:$0xff] }
 0x48b   : > { %v13146_v2 = vadd.f32 %v3909_v51, %v1091_v20  ;;  %4151 = vadd.xlane.f32.xlu0 %v4150_v57  ;;  %v1094_v5 = vadd.f32 %v9131_v52, %v13103_v49  ;;  %v9132_v20 = vld [vmem:[%s9259_s15 + $0x58] sm:$0xff] }
 0x48c   : > { %16045 = vst [vmem:[#allocation99_spill] sm:$0xff] %v13142_v13  ;;  %v1095_v57 = vadd.f32 %v9132_v20, %v13106_v7 }
 0x48d   : > { %16046 = vst [vmem:[#allocation100_spill] sm:$0xff] %v13146_v2  ;;  %v3913_v55 = vpop.f32.mrb[8].mxu0  ;;  %v4153_v1 = vadd.f32 %v13146_v2, %v13142_v13 }
 0x48e   : > { %v13152_v39 = vadd.f32 %v3913_v55, %v1092_v44  ;;  %v3915_v4 = vpop.f32.mrb[9].mxu0  ;;  %v9133_v55 = vld [vmem:[%s9259_s15 + $0x60] sm:$0xff] }
 0x48f   : > { %v13156_v47 = vadd.f32 %v3915_v4, %v1093_v30  ;;  %4154 = vadd.xlane.f32.xlu1 %v4153_v1  ;;  %v1096_v25 = vadd.f32 %v9133_v55, %v13103_v49  ;;  %v9134_v30 = vld [vmem:[%s9259_s15 + $0x68] sm:$0xff] }
 0x490   : > { %16047 = vst [vmem:[#allocation107_spill] sm:$0xff] %v13152_v39  ;;  %v1097_v1 = vadd.f32 %v9134_v30, %v13106_v7 }
 0x491   : > { %16048 = vst [vmem:[#allocation108_spill] sm:$0xff] %v13156_v47  ;;  %v3919_v51 = vpop.f32.mrb[10].mxu0  ;;  %v4156_v11 = vadd.f32 %v13156_v47, %v13152_v39 }
 0x492   : > { %v13162_v50 = vadd.f32 %v3919_v51, %v1094_v5  ;;  %v3921_v44 = vpop.f32.mrb[11].mxu0  ;;  %v9135_v51 = vld [vmem:[%s9259_s15 + $0x70] sm:$0xff] }
 0x493   : > { %v13166_v38 = vadd.f32 %v3921_v44, %v1095_v57  ;;  %4157 = vadd.xlane.f32.xlu0 %v4156_v11  ;;  %v1098_v27 = vadd.f32 %v9135_v51, %v13103_v49  ;;  %v9136_v57 = vld [vmem:[%s9259_s15 + $0x78] sm:$0xff] }
 0x494   : > { %16049 = vst [vmem:[#allocation54_spill] sm:$0xff] %v13162_v50  ;;  %v1099_v11 = vadd.f32 %v9136_v57, %v13106_v7 }
 0x495   : > { %16050 = vst [vmem:[#allocation53_spill] sm:$0xff] %v13166_v38  ;;  %v3925_v4 = vpop.f32.mrb[12].mxu0  ;;  %v4159_v52 = vadd.f32 %v13166_v38, %v13162_v50 }
 0x496   : > { %v13172_v20 = vadd.f32 %v3925_v4, %v1096_v25  ;;  %v3927_v5 = vpop.f32.mrb[13].mxu0  ;;  %v9137_v4 = vld [vmem:[%s9259_s15 + $0x80] sm:$0xff] }
 0x497   : > { %v13176_v59 = vadd.f32 %v3927_v5, %v1097_v1  ;;  %4160 = vadd.xlane.f32.xlu1 %v4159_v52  ;;  %v1100_v56 = vadd.f32 %v9137_v4, %v13103_v49  ;;  %v9138_v1 = vld [vmem:[%s9259_s15 + $0x88] sm:$0xff] }
 0x498   : > { %16051 = vst [vmem:[#allocation58_spill] sm:$0xff] %v13172_v20  ;;  %v1101_v52 = vadd.f32 %v9138_v1, %v13106_v7 }
 0x499   : > { %16052 = vst [vmem:[#allocation111_spill] sm:$0xff] %v13176_v59  ;;  %v3931_v44 = vpop.f32.mrb[14].mxu0  ;;  %v4162_v55 = vadd.f32 %v13176_v59, %v13172_v20 }
 0x49a   : > { %v13182_v30 = vadd.f32 %v3931_v44, %v1098_v27  ;;  %v3933_v25 = vpop.f32.mrb[15].mxu0  ;;  %v9139_v44 = vld [vmem:[%s9259_s15 + $0x90] sm:$0xff] }
 0x49b   : > { %v13186_v16 = vadd.f32 %v3933_v25, %v1099_v11  ;;  %4163 = vadd.xlane.f32.xlu0 %v4162_v55  ;;  %v1102_v60 = vadd.f32 %v9139_v44, %v13103_v49  ;;  %v9140_v11 = vld [vmem:[%s9259_s15 + $0x98] sm:$0xff] }
 0x49c   : > { %16053 = vst [vmem:[#allocation112_spill] sm:$0xff] %v13182_v30  ;;  %v1103_v55 = vadd.f32 %v9140_v11, %v13106_v7 }
 0x49d   : > { %16054 = vst [vmem:[#allocation57_spill] sm:$0xff] %v13186_v16  ;;  %v3937_v5 = vpop.f32.mrb[16].mxu0  ;;  %v4165_v51 = vadd.f32 %v13186_v16, %v13182_v30 }
 0x49e   : > { %v13192_v57 = vadd.f32 %v3937_v5, %v1100_v56  ;;  %v3939_v27 = vpop.f32.mrb[17].mxu0  ;;  %v9141_v5 = vld [vmem:[%s9259_s15 + $0xa0] sm:$0xff] }
 0x49f   : > { %v13196_v14 = vadd.f32 %v3939_v27, %v1101_v52  ;;  %4166 = vadd.xlane.f32.xlu1 %v4165_v51  ;;  %v1104_v33 = vadd.f32 %v9141_v5, %v13103_v49  ;;  %v9142_v52 = vld [vmem:[%s9259_s15 + $0xa8] sm:$0xff] }
 0x4a0   : > { %16055 = vst [vmem:[#allocation113_spill] sm:$0xff] %v13192_v57  ;;  %v1105_v51 = vadd.f32 %v9142_v52, %v13106_v7 }
 0x4a1   : > { %16056 = vst [vmem:[#allocation115_spill] sm:$0xff] %v13196_v14  ;;  %v3943_v25 = vpop.f32.mrb[18].mxu0  ;;  %v4168_v4 = vadd.f32 %v13196_v14, %v13192_v57 }
 0x4a2   : > { %v13202_v1 = vadd.f32 %v3943_v25, %v1102_v60  ;;  %v3945_v56 = vpop.f32.mrb[19].mxu0  ;;  %v9143_v25 = vld [vmem:[%s9259_s15 + $0xb0] sm:$0xff] }
 0x4a3   : > { %v13206_v62 = vadd.f32 %v3945_v56, %v1103_v55  ;;  %4169 = vadd.xlane.f32.xlu0 %v4168_v4  ;;  %v1106_v0 = vadd.f32 %v9143_v25, %v13103_v49  ;;  %v9144_v55 = vld [vmem:[%s9259_s15 + $0xb8] sm:$0xff] }
 0x4a4   : > { %16057 = vst [vmem:[#allocation117_spill] sm:$0xff] %v13202_v1  ;;  %v1107_v4 = vadd.f32 %v9144_v55, %v13106_v7 }
 0x4a5   : > { %16058 = vst [vmem:[#allocation119_spill] sm:$0xff] %v13206_v62  ;;  %v3949_v27 = vpop.f32.mrb[20].mxu0  ;;  %v4171_v44 = vadd.f32 %v13206_v62, %v13202_v1 }
 0x4a6   : > { %v13212_v11 = vadd.f32 %v3949_v27, %v1104_v33  ;;  %v3951_v60 = vpop.f32.mrb[21].mxu0  ;;  %v9145_v27 = vld [vmem:[%s9259_s15 + $0xc0] sm:$0xff] }
 0x4a7   : > { %v13216_v17 = vadd.f32 %v3951_v60, %v1105_v51  ;;  %4172 = vadd.xlane.f32.xlu1 %v4171_v44  ;;  %v1108_v6 = vadd.f32 %v9145_v27, %v13103_v49  ;;  %v9146_v51 = vld [vmem:[%s9259_s15 + $0xc8] sm:$0xff] }
 0x4a8   : > { %16059 = vst [vmem:[#allocation121_spill] sm:$0xff] %v13212_v11  ;;  %v1109_v44 = vadd.f32 %v9146_v51, %v13106_v7 }
 0x4a9   : > { %16060 = vst [vmem:[#allocation123_spill] sm:$0xff] %v13216_v17  ;;  %v3955_v56 = vpop.f32.mrb[22].mxu0  ;;  %v4174_v5 = vadd.f32 %v13216_v17, %v13212_v11 }
 0x4aa   : > { %v13222_v52 = vadd.f32 %v3955_v56, %v1106_v0  ;;  %v3957_v33 = vpop.f32.mrb[23].mxu0  ;;  %v9147_v56 = vld [vmem:[%s9259_s15 + $0xd0] sm:$0xff] }
 0x4ab   : > { %v13226_v54 = vadd.f32 %v3957_v33, %v1107_v4  ;;  %4175 = vadd.xlane.f32.xlu0 %v4174_v5  ;;  %v1110_v3 = vadd.f32 %v9147_v56, %v13103_v49  ;;  %v9148_v4 = vld [vmem:[%s9259_s15 + $0xd8] sm:$0xff] }
 0x4ac   : > { %16061 = vst [vmem:[#allocation125_spill] sm:$0xff] %v13222_v52  ;;  %v1111_v5 = vadd.f32 %v9148_v4, %v13106_v7 }
 0x4ad   : > { %16062 = vst [vmem:[#allocation127_spill] sm:$0xff] %v13226_v54  ;;  %v3961_v60 = vpop.f32.mrb[24].mxu0  ;;  %v4177_v25 = vadd.f32 %v13226_v54, %v13222_v52 }
 0x4ae   : > { %v13232_v55 = vadd.f32 %v3961_v60, %v1108_v6  ;;  %v3963_v0 = vpop.f32.mrb[25].mxu0  ;;  %v9149_v60 = vld [vmem:[%s9259_s15 + $0xe0] sm:$0xff] }
 0x4af   : > { %v13236_v12 = vadd.f32 %v3963_v0, %v1109_v44  ;;  %4178 = vadd.xlane.f32.xlu1 %v4177_v25  ;;  %v1112_v43 = vadd.f32 %v9149_v60, %v13103_v49  ;;  %v9150_v44 = vld [vmem:[%s9259_s15 + $0xe8] sm:$0xff] }
 0x4b0   : > { %16063 = vst [vmem:[#allocation129_spill] sm:$0xff] %v13232_v55  ;;  %v1113_v25 = vadd.f32 %v9150_v44, %v13106_v7 }
 0x4b1   : > { %16064 = vst [vmem:[#allocation130_spill] sm:$0xff] %v13236_v12  ;;  %v3967_v33 = vpop.f32.mrb[26].mxu0  ;;  %v4180_v27 = vadd.f32 %v13236_v12, %v13232_v55 }
 0x4b2   : > { %v13242_v51 = vadd.f32 %v3967_v33, %v1110_v3  ;;  %v3969_v6 = vpop.f32.mrb[27].mxu0  ;;  %v9151_v33 = vld [vmem:[%s9259_s15 + $0xf0] sm:$0xff] }
 0x4b3   : > { %v13246_v29 = vadd.f32 %v3969_v6, %v1111_v5  ;;  %4181 = vadd.xlane.f32.xlu0 %v4180_v27  ;;  %v1114_v34 = vadd.f32 %v9151_v33, %v13103_v49  ;;  %v9152_v5 = vld [vmem:[%s9259_s15 + $0xf8] sm:$0xff] }
 0x4b4   : > { %16065 = vst [vmem:[#allocation5_spill] sm:$0xff] %v13242_v51  ;;  %v1115_v27 = vadd.f32 %v9152_v5, %v13106_v7 }
 0x4b5   : > { %16066 = vst [vmem:[#allocation2_spill] sm:$0xff] %v13246_v29  ;;  %v3973_v0 = vpop.f32.mrb[28].mxu0  ;;  %v4183_v56 = vadd.f32 %v13246_v29, %v13242_v51 }
 0x4b6   : > { %v13252_v4 = vadd.f32 %v3973_v0, %v1112_v43  ;;  %v3975_v3 = vpop.f32.mrb[29].mxu0  ;;  %v9153_v0 = vld [vmem:[%s9259_s15 + $0x100] sm:$0xff] }
 0x4b7   : > { %v13256_v58 = vadd.f32 %v3975_v3, %v1113_v25  ;;  %4184 = vadd.xlane.f32.xlu1 %v4183_v56  ;;  %v1116_v63 = vadd.f32 %v9153_v0, %v13103_v49  ;;  %v9154_v25 = vld [vmem:[%s9259_s15 + $0x108] sm:$0xff] }
 0x4b8   : > { %16067 = vst [vmem:[#allocation131_spill] sm:$0xff] %v13252_v4  ;;  %v1117_v56 = vadd.f32 %v9154_v25, %v13106_v7 }
 0x4b9   : > { %16068 = vst [vmem:[#allocation133_spill] sm:$0xff] %v13256_v58  ;;  %v3979_v6 = vpop.f32.mrb[30].mxu0  ;;  %v4186_v60 = vadd.f32 %v13256_v58, %v13252_v4 }
 0x4ba   : > { %v13262_v44 = vadd.f32 %v3979_v6, %v1114_v34  ;;  %v3981_v43 = vpop.f32.mrb[31].mxu0  ;;  %v9155_v6 = vld [vmem:[%s9259_s15 + $0x110] sm:$0xff] }
 0x4bb   : > { %v13266_v46 = vadd.f32 %v3981_v43, %v1115_v27  ;;  %4187 = vadd.xlane.f32.xlu0 %v4186_v60  ;;  %v1118_v24 = vadd.f32 %v9155_v6, %v13103_v49  ;;  %v9156_v27 = vld [vmem:[%s9259_s15 + $0x118] sm:$0xff] }
 0x4bc   : > { %16069 = vst [vmem:[#allocation3_spill] sm:$0xff] %v13262_v44  ;;  %v1119_v60 = vadd.f32 %v9156_v27, %v13106_v7 }
 0x4bd   : > { %16070 = vst [vmem:[#allocation6_spill] sm:$0xff] %v13266_v46  ;;  %v3985_v3 = vpop.f32.mrb[32].mxu0  ;;  %v4189_v33 = vadd.f32 %v13266_v46, %v13262_v44 }
 0x4be   : > { %v13272_v5 = vadd.f32 %v3985_v3, %v1116_v63  ;;  %v3987_v34 = vpop.f32.mrb[33].mxu0  ;;  %v9157_v3 = vld [vmem:[%s9259_s15 + $0x120] sm:$0xff] }
 0x4bf   : > { %v13276_v15 = vadd.f32 %v3987_v34, %v1117_v56  ;;  %4190 = vadd.xlane.f32.xlu1 %v4189_v33  ;;  %v1120_v26 = vadd.f32 %v9157_v3, %v13103_v49  ;;  %v9158_v56 = vld [vmem:[%s9259_s15 + $0x128] sm:$0xff] }
 0x4c0   : > { %16071 = vst [vmem:[#allocation7_spill] sm:$0xff] %v13272_v5  ;;  %v1121_v33 = vadd.f32 %v9158_v56, %v13106_v7 }
 0x4c1   : > { %16072 = vst [vmem:[#allocation4_spill] sm:$0xff] %v13276_v15  ;;  %v3991_v43 = vpop.f32.mrb[34].mxu0  ;;  %v4192_v0 = vadd.f32 %v13276_v15, %v13272_v5 }
 0x4c2   : > { %v13282_v25 = vadd.f32 %v3991_v43, %v1118_v24  ;;  %v3993_v63 = vpop.f32.mrb[35].mxu0  ;;  %v9159_v43 = vld [vmem:[%s9259_s15 + $0x130] sm:$0xff] }
 0x4c3   : > { %v13286_v35 = vadd.f32 %v3993_v63, %v1119_v60  ;;  %4193 = vadd.xlane.f32.xlu0 %v4192_v0  ;;  %v1122_v53 = vadd.f32 %v9159_v43, %v13103_v49  ;;  %v9160_v60 = vld [vmem:[%s9259_s15 + $0x138] sm:$0xff] }
 0x4c4   : > { %16073 = vst [vmem:[#allocation9_spill] sm:$0xff] %v13282_v25  ;;  %v1123_v0 = vadd.f32 %v9160_v60, %v13106_v7 }
 0x4c5   : > { %16074 = vst [vmem:[#allocation8_spill] sm:$0xff] %v13286_v35  ;;  %v3997_v34 = vpop.f32.mrb[36].mxu0  ;;  %v4195_v6 = vadd.f32 %v13286_v35, %v13282_v25 }
 0x4c6   : > { %v13292_v27 = vadd.f32 %v3997_v34, %v1120_v26  ;;  %v3999_v24 = vpop.f32.mrb[37].mxu0  ;;  %v9161_v34 = vld [vmem:[%s9259_s15 + $0x140] sm:$0xff] }
 0x4c7   : > { %v13296_v45 = vadd.f32 %v3999_v24, %v1121_v33  ;;  %4196 = vadd.xlane.f32.xlu1 %v4195_v6  ;;  %v1124_v61 = vadd.f32 %v9161_v34, %v13103_v49  ;;  %v9162_v33 = vld [vmem:[%s9259_s15 + $0x148] sm:$0xff] }
 0x4c8   : > { %16075 = vst [vmem:[#allocation11_spill] sm:$0xff] %v13292_v27  ;;  %v1125_v6 = vadd.f32 %v9162_v33, %v13106_v7 }
 0x4c9   : > { %16076 = vst [vmem:[#allocation241_spill] sm:$0xff] %v13296_v45  ;;  %v4003_v63 = vpop.f32.mrb[38].mxu0  ;;  %v4198_v3 = vadd.f32 %v13296_v45, %v13292_v27 }
 0x4ca   : > { %v13302_v56 = vadd.f32 %v4003_v63, %v1122_v53  ;;  %v4005_v26 = vpop.f32.mrb[39].mxu0  ;;  %v9163_v63 = vld [vmem:[%s9259_s15 + $0x150] sm:$0xff] }
 0x4cb   : > { %v13306_v8 = vadd.f32 %v4005_v26, %v1123_v0  ;;  %4199 = vadd.xlane.f32.xlu0 %v4198_v3  ;;  %v1126_v32 = vadd.f32 %v9163_v63, %v13103_v49  ;;  %v9164_v0 = vld [vmem:[%s9259_s15 + $0x158] sm:$0xff] }
 0x4cc   : > { %16077 = vst [vmem:[#allocation242_spill] sm:$0xff] %v13302_v56  ;;  %v1127_v3 = vadd.f32 %v9164_v0, %v13106_v7 }
 0x4cd   : > { %16078 = vst [vmem:[#allocation243_spill] sm:$0xff] %v13306_v8  ;;  %v4009_v24 = vpop.f32.mrb[40].mxu0  ;;  %v4201_v43 = vadd.f32 %v13306_v8, %v13302_v56 }
 0x4ce   : > { %v13312_v60 = vadd.f32 %v4009_v24, %v1124_v61  ;;  %v4011_v53 = vpop.f32.mrb[41].mxu0  ;;  %v9165_v24 = vld [vmem:[%s9259_s15 + $0x160] sm:$0xff] }
 0x4cf   : > { %v13316_v28 = vadd.f32 %v4011_v53, %v1125_v6  ;;  %4202 = vadd.xlane.f32.xlu1 %v4201_v43  ;;  %v1128_v21 = vadd.f32 %v9165_v24, %v13103_v49  ;;  %v9166_v6 = vld [vmem:[%s9259_s15 + $0x168] sm:$0xff] }
 0x4d0   : > { %16079 = vst [vmem:[#allocation244_spill] sm:$0xff] %v13312_v60  ;;  %v1129_v43 = vadd.f32 %v9166_v6, %v13106_v7 }
 0x4d1   : > { %16080 = vst [vmem:[#allocation245_spill] sm:$0xff] %v13316_v28  ;;  %v4015_v26 = vpop.f32.mrb[42].mxu0  ;;  %v4204_v34 = vadd.f32 %v13316_v28, %v13312_v60 }
 0x4d2   : > { %v13322_v33 = vadd.f32 %v4015_v26, %v1126_v32  ;;  %v4017_v61 = vpop.f32.mrb[43].mxu0  ;;  %v9167_v26 = vld [vmem:[%s9259_s15 + $0x170] sm:$0xff] }
 0x4d3   : > { %v13326_v19 = vadd.f32 %v4017_v61, %v1127_v3  ;;  %4205 = vadd.xlane.f32.xlu0 %v4204_v34  ;;  %v1130_v23 = vadd.f32 %v9167_v26, %v13103_v49  ;;  %v9168_v3 = vld [vmem:[%s9259_s15 + $0x178] sm:$0xff] }
 0x4d4   : > { %16081 = vst [vmem:[#allocation246_spill] sm:$0xff] %v13322_v33  ;;  %v1131_v34 = vadd.f32 %v9168_v3, %v13106_v7 }
 0x4d5   : > { %16082 = vst [vmem:[#allocation247_spill] sm:$0xff] %v13326_v19  ;;  %v4021_v53 = vpop.f32.mrb[44].mxu0  ;;  %v4207_v63 = vadd.f32 %v13326_v19, %v13322_v33 }
 0x4d6   : > { %v13332_v0 = vadd.f32 %v4021_v53, %v1128_v21  ;;  %v4023_v32 = vpop.f32.mrb[45].mxu0  ;;  %v9169_v53 = vld [vmem:[%s9259_s15 + $0x180] sm:$0xff] }
 0x4d7   : > { %v13336_v41 = vadd.f32 %v4023_v32, %v1129_v43  ;;  %4208 = vadd.xlane.f32.xlu0 %v4207_v63  ;;  %v1132_v31 = vadd.f32 %v9169_v53, %v13103_v49  ;;  %v9170_v43 = vld [vmem:[%s9259_s15 + $0x188] sm:$0xff] }
 0x4d8   : > { %16083 = vst [vmem:[#allocation248_spill] sm:$0xff] %v13332_v0  ;;  %v1133_v63 = vadd.f32 %v9170_v43, %v13106_v7 }
 0x4d9   : > { %16084 = vst [vmem:[#allocation249_spill] sm:$0xff] %v13336_v41  ;;  %v4027_v61 = vpop.f32.mrb[46].mxu0  ;;  %v4210_v24 = vadd.f32 %v13336_v41, %v13332_v0 }
 0x4da   : > { %v13342_v6 = vadd.f32 %v4027_v61, %v1130_v23  ;;  %v4029_v21 = vpop.f32.mrb[47].mxu0  ;;  %v9171_v61 = vld [vmem:[%s9259_s15 + $0x190] sm:$0xff] }
 0x4db   : > { %v13346_v42 = vadd.f32 %v4029_v21, %v1131_v34  ;;  %4211 = vadd.xlane.f32.xlu0 %v4210_v24  ;;  %v1134_v22 = vadd.f32 %v9171_v61, %v13103_v49  ;;  %v9172_v34 = vld [vmem:[%s9259_s15 + $0x198] sm:$0xff] }
 0x4dc   : > { %16085 = vst [vmem:[#allocation250_spill] sm:$0xff] %v13342_v6  ;;  %v1135_v24 = vadd.f32 %v9172_v34, %v13106_v7 }
 0x4dd   : > { %16086 = vst [vmem:[#allocation251_spill] sm:$0xff] %v13346_v42  ;;  %v4033_v32 = vpop.f32.mrb[48].mxu0  ;;  %v4213_v26 = vadd.f32 %v13346_v42, %v13342_v6 }
 0x4de   : > { %v13352_v3 = vadd.f32 %v4033_v32, %v1132_v31  ;;  %v4035_v23 = vpop.f32.mrb[49].mxu0  ;;  %v9173_v32 = vld [vmem:[%s9259_s15 + $0x1a0] sm:$0xff] }
 0x4df   : > { %v13356_v40 = vadd.f32 %v4035_v23, %v1133_v63  ;;  %4214 = vadd.xlane.f32.xlu0 %v4213_v26  ;;  %v1136_v42 = vadd.f32 %v9173_v32, %v13103_v49  ;;  %v9174_v63 = vld [vmem:[%s9259_s15 + $0x1a8] sm:$0xff] }
 0x4e0   : > { %16087 = vst [vmem:[#allocation252_spill] sm:$0xff] %v13352_v3  ;;  %v1137_v26 = vadd.f32 %v9174_v63, %v13106_v7 }
 0x4e1   : > { %16088 = vst [vmem:[#allocation253_spill] sm:$0xff] %v13356_v40  ;;  %v4039_v21 = vpop.f32.mrb[50].mxu0  ;;  %v4216_v53 = vadd.f32 %v13356_v40, %v13352_v3 }
 0x4e2   : > { %v13362_v43 = vadd.f32 %v4039_v21, %v1134_v22  ;;  %v4041_v31 = vpop.f32.mrb[51].mxu0  ;;  %v9175_v21 = vld [vmem:[%s9259_s15 + $0x1b0] sm:$0xff] }
 0x4e3   : > { %v13366_v6 = vadd.f32 %v4041_v31, %v1135_v24  ;;  %4217 = vadd.xlane.f32.xlu0 %v4216_v53  ;;  %v1138_v40 = vadd.f32 %v9175_v21, %v13103_v49  ;;  %v9176_v24 = vld [vmem:[%s9259_s15 + $0x1b8] sm:$0xff] }
 0x4e4   : > { %16089 = vst [vmem:[#allocation254_spill] sm:$0xff] %v13362_v43  ;;  %v1139_v53 = vadd.f32 %v9176_v24, %v13106_v7 }
 0x4e5   : > { %16090 = vst [vmem:[#allocation255_spill] sm:$0xff] %v13366_v6  ;;  %v4045_v23 = vpop.f32.mrb[52].mxu0  ;;  %v4219_v61 = vadd.f32 %v13366_v6, %v13362_v43 }
 0x4e6   : > { %v13372_v34 = vadd.f32 %v4045_v23, %v1136_v42  ;;  %v4047_v22 = vpop.f32.mrb[53].mxu0  ;;  %v9177_v23 = vld [vmem:[%s9259_s15 + $0x1c0] sm:$0xff] }
 0x4e7   : > { %v13376_v3 = vadd.f32 %v4047_v22, %v1137_v26  ;;  %4220 = vadd.xlane.f32.xlu0 %v4219_v61  ;;  %v1140_v6 = vadd.f32 %v9177_v23, %v13103_v49  ;;  %v9178_v26 = vld [vmem:[%s9259_s15 + $0x1c8] sm:$0xff] }
 0x4e8   : > { %16091 = vst [vmem:[#allocation256_spill] sm:$0xff] %v13372_v34  ;;  %v1141_v61 = vadd.f32 %v9178_v26, %v13106_v7 }
 0x4e9   : > { %16092 = vst [vmem:[#allocation257_spill] sm:$0xff] %v13376_v3  ;;  %v4051_v31 = vpop.f32.mrb[54].mxu0  ;;  %v4222_v32 = vadd.f32 %v13376_v3, %v13372_v34 }
 0x4ea   : > { %v13382_v63 = vadd.f32 %v4051_v31, %v1138_v40  ;;  %v4053_v42 = vpop.f32.mrb[55].mxu0  ;;  %v9179_v31 = vld [vmem:[%s9259_s15 + $0x1d0] sm:$0xff] }
 0x4eb   : > { %v13386_v43 = vadd.f32 %v4053_v42, %v1139_v53  ;;  %4223 = vadd.xlane.f32.xlu0 %v4222_v32  ;;  %v1142_v3 = vadd.f32 %v9179_v31, %v13103_v49  ;;  %v9180_v53 = vld [vmem:[%s9259_s15 + $0x1d8] sm:$0xff] }
 0x4ec   : > { %16093 = vst [vmem:[#allocation258_spill] sm:$0xff] %v13382_v63  ;;  %v1143_v32 = vadd.f32 %v9180_v53, %v13106_v7 }
 0x4ed   : > { %16094 = vst [vmem:[#allocation259_spill] sm:$0xff] %v13386_v43  ;;  %v4057_v22 = vpop.f32.mrb[56].mxu0  ;;  %v4225_v21 = vadd.f32 %v13386_v43, %v13382_v63 }
 0x4ee   : > { %v13392_v24 = vadd.f32 %v4057_v22, %v1140_v6  ;;  %v4059_v40 = vpop.f32.mrb[57].mxu0  ;;  %v9181_v22 = vld [vmem:[%s9259_s15 + $0x1e0] sm:$0xff] }
 0x4ef   : > { %v13396_v34 = vadd.f32 %v4059_v40, %v1141_v61  ;;  %4226 = vadd.xlane.f32.xlu0 %v4225_v21  ;;  %v1144_v43 = vadd.f32 %v9181_v22, %v13103_v49  ;;  %v9182_v61 = vld [vmem:[%s9259_s15 + $0x1e8] sm:$0xff]  ;;  %v9184_v22 = vld [vmem:[%s9259_s15 + $0x1f8] sm:$0xff] }
 0x4f0   : > { %16095 = vst [vmem:[#allocation260_spill] sm:$0xff] %v13392_v24  ;;  %v1145_v21 = vadd.f32 %v9182_v61, %v13106_v7 }
 0x4f1   : > { %16096 = vst [vmem:[#allocation261_spill] sm:$0xff] %v13396_v34  ;;  %v4063_v42 = vpop.f32.mrb[58].mxu0  ;;  %v4228_v23 = vadd.f32 %v13396_v34, %v13392_v24 }
 0x4f2   : > { %v13402_v26 = vadd.f32 %v4063_v42, %v1142_v3  ;;  %v4065_v6 = vpop.f32.mrb[59].mxu0  ;;  %v9183_v3 = vld [vmem:[%s9259_s15 + $0x1f0] sm:$0xff] }
 0x4f3   : > { %v13406_v63 = vadd.f32 %v4065_v6, %v1143_v32  ;;  %4229 = vadd.xlane.f32.xlu0 %v4228_v23  ;;  %v1146_v42 = vadd.f32 %v9183_v3, %v13103_v49  ;;  %v1147_v32 = vadd.f32 %v9184_v22, %v13106_v7 }
 0x4f4   : > { %16097 = vst [vmem:[#allocation262_spill] sm:$0xff] %v13402_v26 }
 0x4f5   : > { %16098 = vst [vmem:[#allocation263_spill] sm:$0xff] %v13406_v63  ;;  %v4069_v40 = vpop.f32.mrb[60].mxu0  ;;  %v4231_v31 = vadd.f32 %v13406_v63, %v13402_v26 }
 0x4f6   : > { %v13412_v53 = vadd.f32 %v4069_v40, %v1144_v43  ;;  %v4071_v34 = vpop.f32.mrb[61].mxu0 }
 0x4f7   : > { %v13416_v24 = vadd.f32 %v4071_v34, %v1145_v21  ;;  %4232 = vadd.xlane.f32.xlu0 %v4231_v31 }
 0x4f8   : > { %16099 = vst [vmem:[#allocation264_spill] sm:$0xff] %v13412_v53 }
 0x4f9   : > { %16100 = vst [vmem:[#allocation265_spill] sm:$0xff] %v13416_v24  ;;  %v4075_v23 = vpop.f32.mrb[62].mxu0  ;;  %v4234_v6 = vadd.f32 %v13416_v24, %v13412_v53 }
 0x4fa   : > { %v13422_v61 = vadd.f32 %v4075_v23, %v1146_v42  ;;  %v4077_v41 = vpop.f32.mrb[63].mxu0 }
 0x4fb   : > { %v13424_v63 = vadd.f32 %v4077_v41, %v1147_v32  ;;  %4235 = vadd.xlane.f32.xlu0 %v4234_v6 }
 0x4fc   : > { %16101 = vst [vmem:[#allocation266_spill] sm:$0xff] %v13422_v61 }
 0x4fd   : > { %16102 = vst [vmem:[#allocation267_spill] sm:$0xff] %v13424_v63  ;;  %v4237_v43 = vadd.f32 %v13424_v63, %v13422_v61 }
 0x4ff   : > { %4238 = vadd.xlane.f32.xlu0 %v4237_v43 }
 0x510   : > { %v4146_v34 = vpop.xlane.xlu0 %4145 }
 0x511   : > { %v4240_v21 = vmul.f32 0.00390625, %v4146_v34 }
 0x513   : > { %v13429_v40 = vsub.f32 %v13112_v9, %v4240_v21  ;;  %v13432_v31 = vsub.f32 %v13116_v36, %v4240_v21 }
 0x514   : > { %v4149_v3 = vpop.xlane.xlu1 %4148 }
 0x515   : > { %v4241_v22 = vmul.f32 0.00390625, %v4149_v3  ;;  %v4336_v42 = vmul.f32 %v13429_v40, %v13429_v40  ;;  %v4337_v41 = vmul.f32 %v13432_v31, %v13432_v31 }
 0x517   : > { %v13439_v32 = vsub.f32 %v13122_v48, %v4241_v22  ;;  %v13442_v23 = vsub.f32 %v13126_v18, %v4241_v22  ;;  %v4400_v6 = vadd.f32 %v4337_v41, %v4336_v42 }
 0x518   : > { %v4152_v43 = vpop.xlane.xlu0 %4151 }
 0x519   : > { %v4242_v34 = vmul.f32 0.00390625, %v4152_v43  ;;  %4401 = vadd.xlane.f32.xlu1 %v4400_v6  ;;  %v4338_v21 = vmul.f32 %v13439_v32, %v13439_v32  ;;  %v4339_v3 = vmul.f32 %v13442_v23, %v13442_v23 }
 0x51b   : > { %v13449_v36 = vsub.f32 %v13132_v37, %v4242_v34  ;;  %v13452_v7 = vsub.f32 %v13136_v10, %v4242_v34  ;;  %v4403_v48 = vadd.f32 %v4339_v3, %v4338_v21 }
 0x51c   : > { %v4155_v9 = vpop.xlane.xlu1 %4154 }
 0x51d   : > { %v4243_v22 = vmul.f32 0.00390625, %v4155_v9  ;;  %4404 = vadd.xlane.f32.xlu1 %v4403_v48  ;;  %v4340_v42 = vmul.f32 %v13449_v36, %v13449_v36  ;;  %v4341_v41 = vmul.f32 %v13452_v7, %v13452_v7 }
 0x51f   : > { %v13459_v6 = vsub.f32 %v13142_v13, %v4243_v22  ;;  %v13462_v43 = vsub.f32 %v13146_v2, %v4243_v22  ;;  %v4406_v37 = vadd.f32 %v4341_v41, %v4340_v42 }
 0x520   : > { %v4158_v18 = vpop.xlane.xlu0 %4157 }
 0x521   : > { %v4244_v34 = vmul.f32 0.00390625, %v4158_v18  ;;  %4407 = vadd.xlane.f32.xlu1 %v4406_v37  ;;  %v4342_v9 = vmul.f32 %v13459_v6, %v13459_v6  ;;  %v4343_v48 = vmul.f32 %v13462_v43, %v13462_v43 }
 0x523   : > { %v13469_v21 = vsub.f32 %v13152_v39, %v4244_v34  ;;  %v13472_v3 = vsub.f32 %v13156_v47, %v4244_v34  ;;  %v4409_v13 = vadd.f32 %v4343_v48, %v4342_v9 }
 0x524   : > { %v4161_v10 = vpop.xlane.xlu1 %4160 }
 0x525   : > { %v4245_v22 = vmul.f32 0.00390625, %v4161_v10  ;;  %4410 = vadd.xlane.f32.xlu1 %v4409_v13  ;;  %v4344_v18 = vmul.f32 %v13469_v21, %v13469_v21  ;;  %v4345_v37 = vmul.f32 %v13472_v3, %v13472_v3 }
 0x527   : > { %v13479_v42 = vsub.f32 %v13162_v50, %v4245_v22  ;;  %v13482_v41 = vsub.f32 %v13166_v38, %v4245_v22  ;;  %v4412_v39 = vadd.f32 %v4345_v37, %v4344_v18 }
 0x528   : > { %v4164_v2 = vpop.xlane.xlu0 %4163 }
 0x529   : > { %v4246_v34 = vmul.f32 0.00390625, %v4164_v2  ;;  %4413 = vadd.xlane.f32.xlu1 %v4412_v39  ;;  %v4346_v10 = vmul.f32 %v13479_v42, %v13479_v42  ;;  %v4347_v13 = vmul.f32 %v13482_v41, %v13482_v41 }
 0x52b   : > { %v13489_v9 = vsub.f32 %v13172_v20, %v4246_v34  ;;  %v13492_v48 = vsub.f32 %v13176_v59, %v4246_v34  ;;  %v4415_v50 = vadd.f32 %v4347_v13, %v4346_v10 }
 0x52c   : > { %v4167_v47 = vpop.xlane.xlu1 %4166 }
 0x52d   : > { %v4247_v22 = vmul.f32 0.00390625, %v4167_v47  ;;  %4416 = vadd.xlane.f32.xlu1 %v4415_v50  ;;  %v4348_v2 = vmul.f32 %v13489_v9, %v13489_v9  ;;  %v4349_v39 = vmul.f32 %v13492_v48, %v13492_v48 }
 0x52f   : > { %v13499_v18 = vsub.f32 %v13182_v30, %v4247_v22  ;;  %v13502_v37 = vsub.f32 %v13186_v16, %v4247_v22  ;;  %v4418_v20 = vadd.f32 %v4349_v39, %v4348_v2 }
 0x530   : > { %v4170_v38 = vpop.xlane.xlu0 %4169 }
 0x531   : > { %v4350_v34 = vmul.f32 %v13499_v18, %v13499_v18  ;;  %v4351_v47 = vmul.f32 %v13502_v37, %v13502_v37  ;;  %v4248_v50 = vmul.f32 0.00390625, %v4170_v38  ;;  %4419 = vadd.xlane.f32.xlu1 %v4418_v20 }
 0x533   : > { %v13509_v10 = vsub.f32 %v13192_v57, %v4248_v50  ;;  %v13512_v13 = vsub.f32 %v13196_v14, %v4248_v50  ;;  %v4421_v30 = vadd.f32 %v4351_v47, %v4350_v34 }
 0x534   : > { %v4173_v59 = vpop.xlane.xlu1 %4172 }
 0x535   : > { %v4352_v22 = vmul.f32 %v13509_v10, %v13509_v10  ;;  %v4353_v2 = vmul.f32 %v13512_v13, %v13512_v13  ;;  %v4249_v39 = vmul.f32 0.00390625, %v4173_v59  ;;  %4422 = vadd.xlane.f32.xlu1 %v4421_v30 }
 0x537   : > { %v13519_v16 = vsub.f32 %v13202_v1, %v4249_v39  ;;  %v13522_v38 = vsub.f32 %v13206_v62, %v4249_v39  ;;  %v4424_v20 = vadd.f32 %v4353_v2, %v4352_v22 }
 0x538   : > { %v4176_v57 = vpop.xlane.xlu0 %4175 }
 0x539   : > { %v4354_v34 = vmul.f32 %v13519_v16, %v13519_v16  ;;  %v4355_v47 = vmul.f32 %v13522_v38, %v13522_v38  ;;  %v4250_v50 = vmul.f32 0.00390625, %v4176_v57  ;;  %4425 = vadd.xlane.f32.xlu1 %v4424_v20 }
 0x53b   : > { %v13529_v14 = vsub.f32 %v13212_v11, %v4250_v50  ;;  %v13532_v59 = vsub.f32 %v13216_v17, %v4250_v50  ;;  %v4427_v30 = vadd.f32 %v4355_v47, %v4354_v34 }
 0x53c   : > { %v4179_v1 = vpop.xlane.xlu1 %4178 }
 0x53d   : > { %v4356_v22 = vmul.f32 %v13529_v14, %v13529_v14  ;;  %v4357_v2 = vmul.f32 %v13532_v59, %v13532_v59  ;;  %v4251_v39 = vmul.f32 0.00390625, %v4179_v1  ;;  %4428 = vadd.xlane.f32.xlu1 %v4427_v30 }
 0x53f   : > { %v13539_v62 = vsub.f32 %v13222_v52, %v4251_v39  ;;  %v13542_v57 = vsub.f32 %v13226_v54, %v4251_v39  ;;  %v4430_v20 = vadd.f32 %v4357_v2, %v4356_v22 }
 0x540   : > { %v4182_v11 = vpop.xlane.xlu0 %4181 }
 0x541   : > { %v4358_v34 = vmul.f32 %v13539_v62, %v13539_v62  ;;  %v4359_v47 = vmul.f32 %v13542_v57, %v13542_v57  ;;  %v4252_v50 = vmul.f32 0.00390625, %v4182_v11  ;;  %4431 = vadd.xlane.f32.xlu1 %v4430_v20 }
 0x543   : > { %v13549_v17 = vsub.f32 %v13232_v55, %v4252_v50  ;;  %v13552_v1 = vsub.f32 %v13236_v12, %v4252_v50  ;;  %v4433_v30 = vadd.f32 %v4359_v47, %v4358_v34 }
 0x544   : > { %v4185_v52 = vpop.xlane.xlu1 %4184 }
 0x545   : > { %v4360_v22 = vmul.f32 %v13549_v17, %v13549_v17  ;;  %v4361_v2 = vmul.f32 %v13552_v1, %v13552_v1  ;;  %v4253_v39 = vmul.f32 0.00390625, %v4185_v52  ;;  %4434 = vadd.xlane.f32.xlu1 %v4433_v30 }
 0x547   : > { %v13559_v54 = vsub.f32 %v13242_v51, %v4253_v39  ;;  %v13562_v11 = vsub.f32 %v13246_v29, %v4253_v39  ;;  %v4436_v20 = vadd.f32 %v4361_v2, %v4360_v22 }
 0x548   : > { %v4188_v55 = vpop.xlane.xlu0 %4187 }
 0x549   : > { %v4362_v34 = vmul.f32 %v13559_v54, %v13559_v54  ;;  %v4363_v47 = vmul.f32 %v13562_v11, %v13562_v11  ;;  %v4254_v50 = vmul.f32 0.00390625, %v4188_v55  ;;  %4437 = vadd.xlane.f32.xlu0 %v4436_v20 }
 0x54b   : > { %v13569_v12 = vsub.f32 %v13252_v4, %v4254_v50  ;;  %v13572_v52 = vsub.f32 %v13256_v58, %v4254_v50  ;;  %v4439_v30 = vadd.f32 %v4363_v47, %v4362_v34 }
 0x54c   : > { %v4191_v51 = vpop.xlane.xlu1 %4190 }
 0x54d   : > { %v4364_v22 = vmul.f32 %v13569_v12, %v13569_v12  ;;  %v4365_v2 = vmul.f32 %v13572_v52, %v13572_v52  ;;  %v4255_v39 = vmul.f32 0.00390625, %v4191_v51  ;;  %4440 = vadd.xlane.f32.xlu1 %v4439_v30 }
 0x54f   : > { %v13579_v29 = vsub.f32 %v13262_v44, %v4255_v39  ;;  %v13582_v55 = vsub.f32 %v13266_v46, %v4255_v39  ;;  %v4442_v20 = vadd.f32 %v4365_v2, %v4364_v22 }
 0x550   : > { %v4194_v4 = vpop.xlane.xlu0 %4193 }
 0x551   : > { %v4366_v34 = vmul.f32 %v13579_v29, %v13579_v29  ;;  %v4367_v47 = vmul.f32 %v13582_v55, %v13582_v55  ;;  %v4256_v50 = vmul.f32 0.00390625, %v4194_v4  ;;  %4443 = vadd.xlane.f32.xlu0 %v4442_v20 }
 0x553   : > { %v13589_v58 = vsub.f32 %v13272_v5, %v4256_v50  ;;  %v13592_v51 = vsub.f32 %v13276_v15, %v4256_v50  ;;  %v4445_v30 = vadd.f32 %v4367_v47, %v4366_v34 }
 0x554   : > { %v4197_v44 = vpop.xlane.xlu1 %4196 }
 0x555   : > { %v4368_v22 = vmul.f32 %v13589_v58, %v13589_v58  ;;  %v4369_v2 = vmul.f32 %v13592_v51, %v13592_v51  ;;  %v4257_v39 = vmul.f32 0.00390625, %v4197_v44  ;;  %4446 = vadd.xlane.f32.xlu1 %v4445_v30 }
 0x557   : > { %v13599_v46 = vsub.f32 %v13282_v25, %v4257_v39  ;;  %v13602_v4 = vsub.f32 %v13286_v35, %v4257_v39  ;;  %v4448_v20 = vadd.f32 %v4369_v2, %v4368_v22 }
 0x558   : > { %v4200_v5 = vpop.xlane.xlu0 %4199 }
 0x559   : > { %v4370_v34 = vmul.f32 %v13599_v46, %v13599_v46  ;;  %v4371_v47 = vmul.f32 %v13602_v4, %v13602_v4  ;;  %v4258_v50 = vmul.f32 0.00390625, %v4200_v5  ;;  %4449 = vadd.xlane.f32.xlu0 %v4448_v20 }
 0x55b   : > { %v13609_v15 = vsub.f32 %v13292_v27, %v4258_v50  ;;  %v13612_v44 = vsub.f32 %v13296_v45, %v4258_v50  ;;  %v4451_v30 = vadd.f32 %v4371_v47, %v4370_v34 }
 0x55c   : > { %v4203_v25 = vpop.xlane.xlu1 %4202 }
 0x55d   : > { %v4372_v22 = vmul.f32 %v13609_v15, %v13609_v15  ;;  %v4373_v2 = vmul.f32 %v13612_v44, %v13612_v44  ;;  %v4259_v39 = vmul.f32 0.00390625, %v4203_v25  ;;  %4452 = vadd.xlane.f32.xlu1 %v4451_v30 }
 0x55f   : > { %v13619_v35 = vsub.f32 %v13302_v56, %v4259_v39  ;;  %v13622_v5 = vsub.f32 %v13306_v8, %v4259_v39  ;;  %v4454_v20 = vadd.f32 %v4373_v2, %v4372_v22 }
 0x560   : > { %v4206_v27 = vpop.xlane.xlu0 %4205 }
 0x561   : > { %v4374_v34 = vmul.f32 %v13619_v35, %v13619_v35  ;;  %v4375_v47 = vmul.f32 %v13622_v5, %v13622_v5  ;;  %v4260_v50 = vmul.f32 0.00390625, %v4206_v27  ;;  %4455 = vadd.xlane.f32.xlu0 %v4454_v20 }
 0x563   : > { %v13629_v45 = vsub.f32 %v13312_v60, %v4260_v50  ;;  %v13632_v25 = vsub.f32 %v13316_v28, %v4260_v50  ;;  %v4457_v30 = vadd.f32 %v4375_v47, %v4374_v34 }
 0x564   : > { %v4209_v56 = vpop.xlane.xlu0 %4208 }
 0x565   : > { %v4376_v22 = vmul.f32 %v13629_v45, %v13629_v45  ;;  %v4377_v2 = vmul.f32 %v13632_v25, %v13632_v25  ;;  %v4261_v39 = vmul.f32 0.00390625, %v4209_v56  ;;  %4458 = vadd.xlane.f32.xlu1 %v4457_v30  ;;  %v16106_v56 = vld [vmem:[#allocation249_spill] sm:$0xff] }
 0x567   : > { %v13639_v8 = vsub.f32 %v13322_v33, %v4261_v39  ;;  %v13642_v27 = vsub.f32 %v13326_v19, %v4261_v39  ;;  %v4460_v20 = vadd.f32 %v4377_v2, %v4376_v22  ;;  %v16108_v19 = vld [vmem:[#allocation250_spill] sm:$0xff] }
 0x568   : > { %v4212_v60 = vpop.xlane.xlu0 %4211 }
 0x569   : > { %16103 = vst [vmem:[#allocation268_spill] sm:$0xff] %v13639_v8  ;;  %16104 = vst [vmem:[#allocation269_spill] sm:$0xff] %v13642_v27  ;;  %v4378_v34 = vmul.f32 %v13639_v8, %v13639_v8  ;;  %v4379_v47 = vmul.f32 %v13642_v27, %v13642_v27  ;;  %v4262_v50 = vmul.f32 0.00390625, %v4212_v60  ;;  %4461 = vadd.xlane.f32.xlu0 %v4460_v20  ;;  %v16110_v60 = vld [vmem:[#allocation251_spill] sm:$0xff] }
 0x56b   : > { %v13649_v28 = vsub.f32 %v13332_v0, %v4262_v50  ;;  %v13652_v30 = vsub.f32 %v16106_v56, %v4262_v50  ;;  %v4463_v33 = vadd.f32 %v4379_v47, %v4378_v34  ;;  %v16112_v56 = vld [vmem:[#allocation252_spill] sm:$0xff] }
 0x56c   : > { %v4215_v49 = vpop.xlane.xlu0 %4214 }
 0x56d   : > { %16105 = vst [vmem:[#allocation270_spill] sm:$0xff] %v13649_v28  ;;  %16107 = vst [vmem:[#allocation271_spill] sm:$0xff] %v13652_v30  ;;  %v4380_v22 = vmul.f32 %v13649_v28, %v13649_v28  ;;  %v4381_v2 = vmul.f32 %v13652_v30, %v13652_v30  ;;  %v4263_v39 = vmul.f32 0.00390625, %v4215_v49  ;;  %4464 = vadd.xlane.f32.xlu1 %v4463_v33  ;;  %v16114_v49 = vld [vmem:[#allocation253_spill] sm:$0xff] }
 0x56f   : > { %v13659_v27 = vsub.f32 %v16108_v19, %v4263_v39  ;;  %v13662_v20 = vsub.f32 %v16110_v60, %v4263_v39  ;;  %v4466_v0 = vadd.f32 %v4381_v2, %v4380_v22  ;;  %v16116_v60 = vld [vmem:[#allocation254_spill] sm:$0xff] }
 0x570   : > { %v4218_v8 = vpop.xlane.xlu0 %4217 }
 0x571   : > { %16109 = vst [vmem:[#allocation272_spill] sm:$0xff] %v13659_v27  ;;  %16111 = vst [vmem:[#allocation273_spill] sm:$0xff] %v13662_v20  ;;  %v4382_v34 = vmul.f32 %v13659_v27, %v13659_v27  ;;  %v4383_v47 = vmul.f32 %v13662_v20, %v13662_v20  ;;  %v4264_v50 = vmul.f32 0.00390625, %v4218_v8  ;;  %4467 = vadd.xlane.f32.xlu0 %v4466_v0  ;;  %v16118_v8 = vld [vmem:[#allocation255_spill] sm:$0xff] }
 0x573   : > { %v13669_v30 = vsub.f32 %v16112_v56, %v4264_v50  ;;  %v13672_v33 = vsub.f32 %v16114_v49, %v4264_v50  ;;  %v4469_v19 = vadd.f32 %v4383_v47, %v4382_v34  ;;  %v16120_v49 = vld [vmem:[#allocation256_spill] sm:$0xff] }
 0x574   : > { %v4221_v28 = vpop.xlane.xlu0 %4220 }
 0x575   : > { %16113 = vst [vmem:[#allocation274_spill] sm:$0xff] %v13669_v30  ;;  %16115 = vst [vmem:[#allocation275_spill] sm:$0xff] %v13672_v33  ;;  %v4384_v22 = vmul.f32 %v13669_v30, %v13669_v30  ;;  %v4385_v2 = vmul.f32 %v13672_v33, %v13672_v33  ;;  %v4265_v39 = vmul.f32 0.00390625, %v4221_v28  ;;  %4470 = vadd.xlane.f32.xlu1 %v4469_v19  ;;  %v16122_v19 = vld [vmem:[#allocation257_spill] sm:$0xff] }
 0x577   : > { %v13679_v20 = vsub.f32 %v16116_v60, %v4265_v39  ;;  %v13682_v0 = vsub.f32 %v16118_v8, %v4265_v39  ;;  %v4472_v56 = vadd.f32 %v4385_v2, %v4384_v22  ;;  %v16124_v8 = vld [vmem:[#allocation258_spill] sm:$0xff] }
 0x578   : > { %v4224_v27 = vpop.xlane.xlu0 %4223 }
 0x579   : > { %16117 = vst [vmem:[#allocation276_spill] sm:$0xff] %v13679_v20  ;;  %16119 = vst [vmem:[#allocation277_spill] sm:$0xff] %v13682_v0  ;;  %v4386_v34 = vmul.f32 %v13679_v20, %v13679_v20  ;;  %v4387_v47 = vmul.f32 %v13682_v0, %v13682_v0  ;;  %v4266_v50 = vmul.f32 0.00390625, %v4224_v27  ;;  %4473 = vadd.xlane.f32.xlu0 %v4472_v56  ;;  %v16125_v27 = vld [vmem:[#allocation259_spill] sm:$0xff] }
 0x57b   : > { %v13689_v33 = vsub.f32 %v16120_v49, %v4266_v50  ;;  %v13692_v28 = vsub.f32 %v16122_v19, %v4266_v50  ;;  %v4475_v60 = vadd.f32 %v4387_v47, %v4386_v34  ;;  %v16127_v19 = vld [vmem:[#allocation260_spill] sm:$0xff] }
 0x57c   : > { %v4227_v30 = vpop.xlane.xlu0 %4226 }
 0x57d   : > { %16121 = vst [vmem:[#allocation278_spill] sm:$0xff] %v13689_v33  ;;  %16123 = vst [vmem:[#allocation279_spill] sm:$0xff] %v13692_v28  ;;  %v4388_v22 = vmul.f32 %v13689_v33, %v13689_v33  ;;  %v4389_v2 = vmul.f32 %v13692_v28, %v13692_v28  ;;  %v4267_v39 = vmul.f32 0.00390625, %v4227_v30  ;;  %4476 = vadd.xlane.f32.xlu1 %v4475_v60  ;;  %v16128_v30 = vld [vmem:[#allocation261_spill] sm:$0xff] }
 0x57f   : > { %v13699_v0 = vsub.f32 %v16124_v8, %v4267_v39  ;;  %v13702_v56 = vsub.f32 %v16125_v27, %v4267_v39  ;;  %v4478_v49 = vadd.f32 %v4389_v2, %v4388_v22 }
 0x580   : > { %v4230_v20 = vpop.xlane.xlu0 %4229 }
 0x581   : > { %16126 = vst [vmem:[#allocation280_spill] sm:$0xff] %v13702_v56  ;;  %v4390_v34 = vmul.f32 %v13699_v0, %v13699_v0  ;;  %v4391_v47 = vmul.f32 %v13702_v56, %v13702_v56  ;;  %v4268_v50 = vmul.f32 0.00390625, %v4230_v20  ;;  %4479 = vadd.xlane.f32.xlu0 %v4478_v49  ;;  %v16130_v20 = vld [vmem:[#allocation263_spill] sm:$0xff] }
 0x583   : > { %v13709_v28 = vsub.f32 %v16127_v19, %v4268_v50  ;;  %v13712_v60 = vsub.f32 %v16128_v30, %v4268_v50  ;;  %v4481_v8 = vadd.f32 %v4391_v47, %v4390_v34 }
 0x584   : > { %v4233_v33 = vpop.xlane.xlu0 %4232 }
 0x585   : > { %v4392_v22 = vmul.f32 %v13709_v28, %v13709_v28  ;;  %v4393_v2 = vmul.f32 %v13712_v60, %v13712_v60  ;;  %v4269_v39 = vmul.f32 0.00390625, %v4233_v33  ;;  %4482 = vadd.xlane.f32.xlu1 %v4481_v8 }
 0x587   : > { %v13719_v27 = vsub.f32 %v13402_v26, %v4269_v39  ;;  %v13722_v49 = vsub.f32 %v16130_v20, %v4269_v39  ;;  %v4484_v19 = vadd.f32 %v4393_v2, %v4392_v22 }
 0x588   : > { %v4236_v56 = vpop.xlane.xlu0 %4235 }
 0x589   : > { %16129 = vst [vmem:[#allocation281_spill] sm:$0xff] %v13719_v27  ;;  %16131 = vst [vmem:[#allocation282_spill] sm:$0xff] %v13722_v49  ;;  %v4394_v34 = vmul.f32 %v13719_v27, %v13719_v27  ;;  %v4395_v47 = vmul.f32 %v13722_v49, %v13722_v49  ;;  %v4270_v50 = vmul.f32 0.00390625, %v4236_v56  ;;  %4485 = vadd.xlane.f32.xlu0 %v4484_v19 }
 0x58b   : > { %v13729_v30 = vsub.f32 %v13412_v53, %v4270_v50  ;;  %v13732_v33 = vsub.f32 %v13416_v24, %v4270_v50  ;;  %v4487_v8 = vadd.f32 %v4395_v47, %v4394_v34 }
 0x58c   : > { %v4239_v26 = vpop.xlane.xlu0 %4238 }
 0x58d   : > { %16132 = vst [vmem:[#allocation283_spill] sm:$0xff] %v13729_v30  ;;  %16133 = vst [vmem:[#allocation284_spill] sm:$0xff] %v13732_v33  ;;  %v4396_v22 = vmul.f32 %v13729_v30, %v13729_v30  ;;  %v4397_v2 = vmul.f32 %v13732_v33, %v13732_v33  ;;  %v4271_v39 = vmul.f32 0.00390625, %v4239_v26  ;;  %4488 = vadd.xlane.f32.xlu1 %v4487_v8 }
 0x58f   : > { %v13739_v20 = vsub.f32 %v13422_v61, %v4271_v39  ;;  %v13742_v19 = vsub.f32 %v13424_v63, %v4271_v39  ;;  %v4490_v56 = vadd.f32 %v4397_v2, %v4396_v22  ;;  %v343_v22 = vld [vmem:[%s14997_s7] sm:$0x3] }
 0x591   : > { %16134 = vst [vmem:[#allocation285_spill] sm:$0xff] %v13739_v20  ;;  %16135 = vst [vmem:[#allocation286_spill] sm:$0xff] %v13742_v19  ;;  %v4398_v50 = vmul.f32 %v13739_v20, %v13739_v20  ;;  %v4399_v34 = vmul.f32 %v13742_v19, %v13742_v19  ;;  %4491 = vadd.xlane.f32.xlu0 %v4490_v56  ;;  %v344_v56 = vld [vmem:[%s14998_s8] sm:$0x3] }
 0x593   : > { %v4493_v47 = vadd.f32 %v4399_v34, %v4398_v50  ;;  %v16137_v34 = vld [vmem:[#allocation12_spill] sm:$0xff] }
 0x594   : > { %v13766_v19 = vrot.slane %v344_v56, %v16137_v34 }
 0x595   : > { %4494 = vadd.xlane.f32.xlu1 %v4493_v47 }
 0x5a6   : > { %v4402_v24 = vpop.xlane.xlu1 %4401 }
 0x5a7   : > { %v4496_v53 = vmul.f32 0.00390625, %v4402_v24 }
 0x5a9   : > { %v4528_v26 = vadd.f32 1e-05, %v4496_v53  ;;  %v16136_v53 = vld [vmem:[#allocation13_spill] sm:$0xff] }
 0x5aa   : > { %v4405_v8 = vpop.xlane.xlu1 %4404  ;;  %v13755_v50 = vrot.slane %v343_v22, %v16136_v53  ;;  %v13761_v47 = vrot.slane %v344_v56, %v16136_v53 }
 0x5ab   : > { %9055 = vrsqrt.f32 %v4528_v26  ;;  %v4497_v61 = vmul.f32 0.00390625, %v4405_v8 }
 0x5ad   : > { %v4529_v33 = vadd.f32 1e-05, %v4497_v61  ;;  %v13758_v61 = vrot.slane %v343_v22, %v16137_v34 }
 0x5ae   : > { %v4408_v30 = vpop.xlane.xlu1 %4407 }
 0x5af   : > { %9057 = vrsqrt.f32 %v4529_v33  ;;  %v4498_v39 = vmul.f32 0.00390625, %v4408_v30 }
 0x5b1   : > { %v4530_v2 = vadd.f32 1e-05, %v4498_v39 }
 0x5b2   : > { %v4411_v63 = vpop.xlane.xlu1 %4410 }
 0x5b3   : > { %9059 = vrsqrt.f32 %v4530_v2  ;;  %v4499_v24 = vmul.f32 0.00390625, %v4411_v63 }
 0x5b5   : > { %v9056_v33 = vpop.eup %9055  ;;  %v4531_v30 = vadd.f32 1e-05, %v4499_v24 }
 0x5b6   : > { %v4592_v26 = vmul.f32 %v9056_v33, %v13429_v40  ;;  %v4414_v8 = vpop.xlane.xlu1 %4413  ;;  %v4593_v39 = vmul.f32 %v9056_v33, %v13432_v31 }
 0x5b7   : > { %9061 = vrsqrt.f32 %v4531_v30  ;;  %v4500_v63 = vmul.f32 0.00390625, %v4414_v8  ;;  %v16138_v8 = vld [vmem:[#allocation14_spill] sm:$0xff] }
 0x5b8   : > { %v4667_v2 = vmul.f32 %v13755_v50, %v4592_v26  ;;  %v4668_v22 = vmul.f32 %v13758_v61, %v4593_v39 }
 0x5b9   : > { %v9058_v20 = vpop.eup %9057  ;;  %v4532_v49 = vadd.f32 1e-05, %v4500_v63 }
 0x5ba   : > { %v13771_v24 = vadd.f32 %v13761_v47, %v4667_v2  ;;  %v4594_v53 = vmul.f32 %v9058_v20, %v13439_v32  ;;  %v4417_v40 = vpop.xlane.xlu1 %4416  ;;  %v13775_v27 = vadd.f32 %v13766_v19, %v4668_v22  ;;  %v4595_v31 = vmul.f32 %v9058_v20, %v13442_v23  ;;  %v16139_v2 = vld [vmem:[#allocation38_spill] sm:$0xff] }
 0x5bb   : > { %9063 = vrsqrt.f32 %v4532_v49  ;;  %v4501_v56 = vmul.f32 0.00390625, %v4417_v40 }
 0x5bc   : > { %4934 = vmatprep.mubr.f32.mxu1 %v13775_v27  ;;  %v4670_v34 = vmul.f32 %v13758_v61, %v4595_v31  ;;  %v4669_v33 = vmul.f32 %v13755_v50, %v4594_v53 }
 0x5bd   : > { %v9060_v30 = vpop.eup %9059  ;;  %v4533_v26 = vadd.f32 1e-05, %v4501_v56  ;;  %4935 = vmatmul.mubr.f32.vlgmr.msra.gmra.mrb[0].mxu1 %v13771_v24 }
 0x5be   : > { %v4596_v32 = vmul.f32 %v9060_v30, %v13449_v36  ;;  %8026 = vmatpush1.bf16.msra.mxu1 %v16138_v8  ;;  %v4420_v39 = vpop.xlane.xlu1 %4419  ;;  %v13785_v63 = vadd.f32 %v13766_v19, %v4670_v34  ;;  %v13788_v23 = vadd.f32 %v13761_v47, %v4669_v33  ;;  %v4597_v20 = vmul.f32 %v9060_v30, %v13452_v7  ;;  %v16140_v33 = vld [vmem:[#allocation64_spill] sm:$0xff] }
 0x5bf   : > { %9065 = vrsqrt.f32 %v4533_v26  ;;  %v4502_v49 = vmul.f32 0.00390625, %v4420_v39  ;;  %8028 = vmatprep.subr.bf16.mxu1 %v16139_v2 }
 0x5c0   : > { %4940 = vmatprep.mubr.f32.mxu1 %v13785_v63  ;;  %v4672_v22 = vmul.f32 %v13758_v61, %v4597_v20  ;;  %v4671_v36 = vmul.f32 %v13755_v50, %v4596_v32  ;;  %v16141_v32 = vld [vmem:[#allocation67_spill] sm:$0xff] }
 0x5c1   : > { %v9062_v53 = vpop.eup %9061  ;;  %v4534_v40 = vadd.f32 1e-05, %v4502_v49  ;;  %4941 = vmatmul.mubr.f32.gmra.mrb[2].mxu1 %v13788_v23 }
 0x5c2   : > { %v4598_v31 = vmul.f32 %v9062_v53, %v13459_v6  ;;  %v4423_v56 = vpop.xlane.xlu1 %4422  ;;  %v13798_v34 = vadd.f32 %v13766_v19, %v4672_v22  ;;  %v13801_v7 = vadd.f32 %v13761_v47, %v4671_v36  ;;  %8030 = vmatpush1.bf16.msra.mxu1 %v16140_v33  ;;  %v4599_v30 = vmul.f32 %v9062_v53, %v13462_v43  ;;  %v16142_v53 = vld [vmem:[#allocation68_spill] sm:$0xff] }
 0x5c3   : > { %9067 = vrsqrt.f32 %v4534_v40  ;;  %v4503_v26 = vmul.f32 0.00390625, %v4423_v56  ;;  %8032 = vmatprep.subr.bf16.mxu1 %v16141_v32 }
 0x5c4   : > { %4946 = vmatprep.mubr.f32.mxu1 %v13798_v34  ;;  %v4674_v8 = vmul.f32 %v13758_v61, %v4599_v30  ;;  %v4673_v6 = vmul.f32 %v13755_v50, %v4598_v31  ;;  %v16143_v31 = vld [vmem:[#allocation71_spill] sm:$0xff] }
 0x5c5   : > { %v9064_v39 = vpop.eup %9063  ;;  %v4535_v20 = vadd.f32 1e-05, %v4503_v26  ;;  %4947 = vmatmul.mubr.f32.gmra.mrb[4].mxu1 %v13801_v7 }
 0x5c6   : > { %v4600_v49 = vmul.f32 %v9064_v39, %v13469_v21  ;;  %v4426_v2 = vpop.xlane.xlu1 %4425  ;;  %v13812_v22 = vadd.f32 %v13766_v19, %v4674_v8  ;;  %v13815_v43 = vadd.f32 %v13761_v47, %v4673_v6  ;;  %v4601_v36 = vmul.f32 %v9064_v39, %v13472_v3  ;;  %8034 = vmatpush1.bf16.msra.mxu1 %v16142_v53  ;;  %v16144_v39 = vld [vmem:[#allocation72_spill] sm:$0xff] }
 0x5c7   : > { %9069 = vrsqrt.f32 %v4535_v20  ;;  %v4504_v40 = vmul.f32 0.00390625, %v4426_v2  ;;  %8036 = vmatprep.subr.bf16.mxu1 %v16143_v31 }
 0x5c8   : > { %4952 = vmatprep.mubr.f32.mxu1 %v13812_v22  ;;  %v4676_v56 = vmul.f32 %v13758_v61, %v4601_v36  ;;  %v4675_v21 = vmul.f32 %v13755_v50, %v4600_v49  ;;  %v16145_v49 = vld [vmem:[#allocation41_spill] sm:$0xff] }
 0x5c9   : > { %v9066_v33 = vpop.eup %9065  ;;  %v4536_v30 = vadd.f32 1e-05, %v4504_v40  ;;  %4953 = vmatmul.mubr.f32.gmra.mrb[6].mxu1 %v13815_v43 }
 0x5ca   : > { %v4602_v26 = vmul.f32 %v9066_v33, %v13479_v42  ;;  %v4429_v32 = vpop.xlane.xlu1 %4428  ;;  %v13826_v3 = vadd.f32 %v13766_v19, %v4676_v56  ;;  %v13829_v8 = vadd.f32 %v13761_v47, %v4675_v21  ;;  %v4603_v6 = vmul.f32 %v9066_v33, %v13482_v41  ;;  %8038 = vmatpush1.bf16.msra.mxu1 %v16144_v39  ;;  %v16146_v33 = vld [vmem:[#allocation40_spill] sm:$0xff] }
 0x5cb   : > { %9071 = vrsqrt.f32 %v4536_v30  ;;  %v4505_v20 = vmul.f32 0.00390625, %v4429_v32  ;;  %8040 = vmatprep.subr.bf16.mxu1 %v16145_v49 }
 0x5cc   : > { %4958 = vmatprep.mubr.f32.mxu1 %v13826_v3  ;;  %v4678_v2 = vmul.f32 %v13758_v61, %v4603_v6  ;;  %v4677_v42 = vmul.f32 %v13755_v50, %v4602_v26  ;;  %v16147_v26 = vld [vmem:[#allocation43_spill] sm:$0xff] }
 0x5cd   : > { %v9068_v36 = vpop.eup %9067  ;;  %v4537_v53 = vadd.f32 1e-05, %v4505_v20  ;;  %4959 = vmatmul.mubr.f32.gmra.mrb[8].mxu1 %v13829_v8 }
 0x5ce   : > { %v4604_v40 = vmul.f32 %v9068_v36, %v13489_v9  ;;  %v4432_v31 = vpop.xlane.xlu1 %4431  ;;  %v13840_v41 = vadd.f32 %v13766_v19, %v4678_v2  ;;  %v13843_v56 = vadd.f32 %v13761_v47, %v4677_v42  ;;  %v4605_v21 = vmul.f32 %v9068_v36, %v13492_v48  ;;  %8042 = vmatpush1.bf16.msra.mxu1 %v16146_v33  ;;  %v16148_v36 = vld [vmem:[#allocation42_spill] sm:$0xff] }
 0x5cf   : > { %9073 = vrsqrt.f32 %v4537_v53  ;;  %v4506_v30 = vmul.f32 0.00390625, %v4432_v31  ;;  %8044 = vmatprep.subr.bf16.mxu1 %v16147_v26 }
 0x5d0   : > { %4964 = vmatprep.mubr.f32.mxu1 %v13840_v41  ;;  %v4680_v32 = vmul.f32 %v13758_v61, %v4605_v21  ;;  %v4679_v9 = vmul.f32 %v13755_v50, %v4604_v40  ;;  %v16149_v40 = vld [vmem:[#allocation75_spill] sm:$0xff] }
 0x5d1   : > { %v9070_v6 = vpop.eup %9069  ;;  %v4538_v39 = vadd.f32 1e-05, %v4506_v30  ;;  %4965 = vmatmul.mubr.f32.gmra.mrb[10].mxu1 %v13843_v56 }
 0x5d2   : > { %v4606_v20 = vmul.f32 %v9070_v6, %v13499_v18  ;;  %v4435_v49 = vpop.xlane.xlu1 %4434  ;;  %v13854_v48 = vadd.f32 %v13766_v19, %v4680_v32  ;;  %v13857_v2 = vadd.f32 %v13761_v47, %v4679_v9  ;;  %v4607_v42 = vmul.f32 %v9070_v6, %v13502_v37  ;;  %8046 = vmatpush1.bf16.msra.mxu1 %v16148_v36  ;;  %v16150_v6 = vld [vmem:[#allocation76_spill] sm:$0xff] }
 0x5d3   : > { %9075 = vrsqrt.f32 %v4538_v39  ;;  %v4507_v53 = vmul.f32 0.00390625, %v4435_v49  ;;  %8048 = vmatprep.subr.bf16.mxu1 %v16149_v40 }
 0x5d4   : > { %4970 = vmatprep.mubr.f32.mxu1 %v13854_v48  ;;  %v4682_v31 = vmul.f32 %v13758_v61, %v4607_v42  ;;  %v4681_v18 = vmul.f32 %v13755_v50, %v4606_v20  ;;  %v16151_v20 = vld [vmem:[#allocation77_spill] sm:$0xff] }
 0x5d5   : > { %v9072_v21 = vpop.eup %9071  ;;  %v4539_v33 = vadd.f32 1e-05, %v4507_v53  ;;  %4971 = vmatmul.mubr.f32.gmra.mrb[12].mxu1 %v13857_v2 }
 0x5d6   : > { %v4608_v30 = vmul.f32 %v9072_v21, %v13509_v10  ;;  %v4438_v26 = vpop.xlane.xlu0 %4437  ;;  %v13868_v37 = vadd.f32 %v13766_v19, %v4682_v31  ;;  %v13871_v32 = vadd.f32 %v13761_v47, %v4681_v18  ;;  %v4609_v9 = vmul.f32 %v9072_v21, %v13512_v13  ;;  %8050 = vmatpush1.bf16.msra.mxu1 %v16150_v6  ;;  %v16152_v21 = vld [vmem:[#allocation78_spill] sm:$0xff] }
 0x5d7   : > { %9077 = vrsqrt.f32 %v4539_v33  ;;  %v4508_v39 = vmul.f32 0.00390625, %v4438_v26  ;;  %8052 = vmatprep.subr.bf16.mxu1 %v16151_v20 }
 0x5d8   : > { %4976 = vmatprep.mubr.f32.mxu1 %v13868_v37  ;;  %v4684_v49 = vmul.f32 %v13758_v61, %v4609_v9  ;;  %v4683_v10 = vmul.f32 %v13755_v50, %v4608_v30  ;;  %v16153_v30 = vld [vmem:[#allocation79_spill] sm:$0xff] }
 0x5d9   : > { %v9074_v42 = vpop.eup %9073  ;;  %v4540_v36 = vadd.f32 1e-05, %v4508_v39  ;;  %4977 = vmatmul.mubr.f32.gmra.mrb[14].mxu1 %v13871_v32 }
 0x5da   : > { %v4610_v53 = vmul.f32 %v9074_v42, %v13519_v16  ;;  %v4441_v40 = vpop.xlane.xlu1 %4440  ;;  %v13882_v13 = vadd.f32 %v13766_v19, %v4684_v49  ;;  %v13885_v31 = vadd.f32 %v13761_v47, %v4683_v10  ;;  %v4611_v18 = vmul.f32 %v9074_v42, %v13522_v38  ;;  %8054 = vmatpush1.bf16.msra.mxu1 %v16152_v21  ;;  %v16154_v42 = vld [vmem:[#allocation80_spill] sm:$0xff] }
 0x5db   : > { %9079 = vrsqrt.f32 %v4540_v36  ;;  %v4509_v33 = vmul.f32 0.00390625, %v4441_v40  ;;  %8056 = vmatprep.subr.bf16.mxu1 %v16153_v30 }
 0x5dc   : > { %4982 = vmatprep.mubr.f32.mxu1 %v13882_v13  ;;  %v4686_v26 = vmul.f32 %v13758_v61, %v4611_v18  ;;  %v4685_v16 = vmul.f32 %v13755_v50, %v4610_v53  ;;  %v16155_v53 = vld [vmem:[#allocation82_spill] sm:$0xff] }
 0x5dd   : > { %v9076_v9 = vpop.eup %9075  ;;  %v4541_v6 = vadd.f32 1e-05, %v4509_v33  ;;  %4983 = vmatmul.mubr.f32.gmra.mrb[16].mxu1 %v13885_v31 }
 0x5de   : > { %v4612_v39 = vmul.f32 %v9076_v9, %v13529_v14  ;;  %v4444_v20 = vpop.xlane.xlu0 %4443  ;;  %v13896_v38 = vadd.f32 %v13766_v19, %v4686_v26  ;;  %v13899_v49 = vadd.f32 %v13761_v47, %v4685_v16  ;;  %v4613_v10 = vmul.f32 %v9076_v9, %v13532_v59  ;;  %8058 = vmatpush1.bf16.msra.mxu1 %v16154_v42  ;;  %v16156_v9 = vld [vmem:[#allocation83_spill] sm:$0xff] }
 0x5df   : > { %9081 = vrsqrt.f32 %v4541_v6  ;;  %v4510_v36 = vmul.f32 0.00390625, %v4444_v20  ;;  %8060 = vmatprep.subr.bf16.mxu1 %v16155_v53 }
 0x5e0   : > { %4988 = vmatprep.mubr.f32.mxu1 %v13896_v38  ;;  %v4688_v40 = vmul.f32 %v13758_v61, %v4613_v10  ;;  %v4687_v14 = vmul.f32 %v13755_v50, %v4612_v39  ;;  %v16157_v39 = vld [vmem:[#allocation86_spill] sm:$0xff] }
 0x5e1   : > { %v9078_v18 = vpop.eup %9077  ;;  %v4542_v21 = vadd.f32 1e-05, %v4510_v36  ;;  %4989 = vmatmul.mubr.f32.gmra.mrb[18].mxu1 %v13899_v49 }
 0x5e2   : > { %v4614_v33 = vmul.f32 %v9078_v18, %v13539_v62  ;;  %v4447_v30 = vpop.xlane.xlu1 %4446  ;;  %v13910_v59 = vadd.f32 %v13766_v19, %v4688_v40  ;;  %v13913_v26 = vadd.f32 %v13761_v47, %v4687_v14  ;;  %v4615_v16 = vmul.f32 %v9078_v18, %v13542_v57  ;;  %8062 = vmatpush1.bf16.msra.mxu1 %v16156_v9  ;;  %v16158_v18 = vld [vmem:[#allocation87_spill] sm:$0xff] }
 0x5e3   : > { %9083 = vrsqrt.f32 %v4542_v21  ;;  %v4511_v6 = vmul.f32 0.00390625, %v4447_v30  ;;  %8064 = vmatprep.subr.bf16.mxu1 %v16157_v39 }
 0x5e4   : > { %4994 = vmatprep.mubr.f32.mxu1 %v13910_v59  ;;  %v4690_v20 = vmul.f32 %v13758_v61, %v4615_v16  ;;  %v4689_v62 = vmul.f32 %v13755_v50, %v4614_v33  ;;  %v16159_v33 = vld [vmem:[#allocation90_spill] sm:$0xff] }
 0x5e5   : > { %v9080_v10 = vpop.eup %9079  ;;  %v4543_v42 = vadd.f32 1e-05, %v4511_v6  ;;  %4995 = vmatmul.mubr.f32.gmra.mrb[20].mxu1 %v13913_v26 }
 0x5e6   : > { %v4616_v36 = vmul.f32 %v9080_v10, %v13549_v17  ;;  %v4450_v53 = vpop.xlane.xlu0 %4449  ;;  %v13924_v57 = vadd.f32 %v13766_v19, %v4690_v20  ;;  %v13927_v40 = vadd.f32 %v13761_v47, %v4689_v62  ;;  %v4617_v14 = vmul.f32 %v9080_v10, %v13552_v1  ;;  %8066 = vmatpush1.bf16.msra.mxu1 %v16158_v18  ;;  %v16160_v10 = vld [vmem:[#allocation91_spill] sm:$0xff] }
 0x5e7   : > { %9085 = vrsqrt.f32 %v4543_v42  ;;  %v4512_v21 = vmul.f32 0.00390625, %v4450_v53  ;;  %8068 = vmatprep.subr.bf16.mxu1 %v16159_v33 }
 0x5e8   : > { %5000 = vmatprep.mubr.f32.mxu1 %v13924_v57  ;;  %v4692_v30 = vmul.f32 %v13758_v61, %v4617_v14  ;;  %v4691_v17 = vmul.f32 %v13755_v50, %v4616_v36  ;;  %v16161_v36 = vld [vmem:[#allocation96_spill] sm:$0xff] }
 0x5e9   : > { %v9082_v16 = vpop.eup %9081  ;;  %v4544_v9 = vadd.f32 1e-05, %v4512_v21  ;;  %5001 = vmatmul.mubr.f32.gmra.mrb[22].mxu1 %v13927_v40 }
 0x5ea   : > { %v4618_v6 = vmul.f32 %v9082_v16, %v13559_v54  ;;  %v4453_v39 = vpop.xlane.xlu1 %4452  ;;  %v13938_v1 = vadd.f32 %v13766_v19, %v4692_v30  ;;  %v13941_v20 = vadd.f32 %v13761_v47, %v4691_v17  ;;  %v4619_v62 = vmul.f32 %v9082_v16, %v13562_v11  ;;  %8070 = vmatpush1.bf16.msra.mxu1 %v16160_v10  ;;  %v16162_v16 = vld [vmem:[#allocation48_spill] sm:$0xff] }
 0x5eb   : > { %9087 = vrsqrt.f32 %v4544_v9  ;;  %v4513_v42 = vmul.f32 0.00390625, %v4453_v39  ;;  %8072 = vmatprep.subr.bf16.mxu1 %v16161_v36 }
 0x5ec   : > { %5006 = vmatprep.mubr.f32.mxu1 %v13938_v1  ;;  %v4694_v53 = vmul.f32 %v13758_v61, %v4619_v62  ;;  %v4693_v54 = vmul.f32 %v13755_v50, %v4618_v6  ;;  %v16163_v6 = vld [vmem:[#allocation98_spill] sm:$0xff] }
 0x5ed   : > { %v9084_v14 = vpop.eup %9083  ;;  %v4545_v18 = vadd.f32 1e-05, %v4513_v42  ;;  %5007 = vmatmul.mubr.f32.gmra.mrb[24].mxu1 %v13941_v20 }
 0x5ee   : > { %v4620_v21 = vmul.f32 %v9084_v14, %v13569_v12  ;;  %v4456_v33 = vpop.xlane.xlu0 %4455  ;;  %v13952_v11 = vadd.f32 %v13766_v19, %v4694_v53  ;;  %v13955_v30 = vadd.f32 %v13761_v47, %v4693_v54  ;;  %v4621_v17 = vmul.f32 %v9084_v14, %v13572_v52  ;;  %8074 = vmatpush1.bf16.msra.mxu1 %v16162_v16  ;;  %v16164_v14 = vld [vmem:[#allocation101_spill] sm:$0xff] }
 0x5ef   : > { %9089 = vrsqrt.f32 %v4545_v18  ;;  %v4514_v9 = vmul.f32 0.00390625, %v4456_v33  ;;  %8076 = vmatprep.subr.bf16.mxu1 %v16163_v6 }
 0x5f0   : > { %5012 = vmatprep.mubr.f32.mxu1 %v13952_v11  ;;  %v4696_v39 = vmul.f32 %v13758_v61, %v4621_v17  ;;  %v4695_v12 = vmul.f32 %v13755_v50, %v4620_v21  ;;  %v16165_v21 = vld [vmem:[#allocation102_spill] sm:$0xff] }
 0x5f1   : > { %v9086_v62 = vpop.eup %9085  ;;  %v4546_v10 = vadd.f32 1e-05, %v4514_v9  ;;  %5013 = vmatmul.mubr.f32.gmra.mrb[26].mxu1 %v13955_v30 }
 0x5f2   : > { %v4622_v42 = vmul.f32 %v9086_v62, %v13579_v29  ;;  %v4459_v36 = vpop.xlane.xlu1 %4458  ;;  %v13966_v52 = vadd.f32 %v13766_v19, %v4696_v39  ;;  %v13969_v53 = vadd.f32 %v13761_v47, %v4695_v12  ;;  %v4623_v54 = vmul.f32 %v9086_v62, %v13582_v55  ;;  %8078 = vmatpush1.bf16.msra.mxu1 %v16164_v14  ;;  %v16166_v62 = vld [vmem:[#allocation105_spill] sm:$0xff] }
 0x5f3   : > { %9091 = vrsqrt.f32 %v4546_v10  ;;  %v4515_v18 = vmul.f32 0.00390625, %v4459_v36  ;;  %8080 = vmatprep.subr.bf16.mxu1 %v16165_v21 }
 0x5f4   : > { %5018 = vmatprep.mubr.f32.mxu1 %v13966_v52  ;;  %v4698_v33 = vmul.f32 %v13758_v61, %v4623_v54  ;;  %v4697_v29 = vmul.f32 %v13755_v50, %v4622_v42  ;;  %v16167_v42 = vld [vmem:[#allocation106_spill] sm:$0xff] }
 0x5f5   : > { %v9088_v17 = vpop.eup %9087  ;;  %v4547_v16 = vadd.f32 1e-05, %v4515_v18  ;;  %5019 = vmatmul.mubr.f32.gmra.mrb[28].mxu1 %v13969_v53 }
 0x5f6   : > { %v4624_v9 = vmul.f32 %v9088_v17, %v13589_v58  ;;  %v4462_v6 = vpop.xlane.xlu0 %4461  ;;  %v13980_v55 = vadd.f32 %v13766_v19, %v4698_v33  ;;  %v13983_v39 = vadd.f32 %v13761_v47, %v4697_v29  ;;  %v4625_v12 = vmul.f32 %v9088_v17, %v13592_v51  ;;  %8082 = vmatpush1.bf16.msra.mxu1 %v16166_v62  ;;  %v16169_v17 = vld [vmem:[#allocation109_spill] sm:$0xff] }
 0x5f7   : > { %9093 = vrsqrt.f32 %v4547_v16  ;;  %v4516_v10 = vmul.f32 0.00390625, %v4462_v6  ;;  %8084 = vmatprep.subr.bf16.mxu1 %v16167_v42 }
 0x5f8   : > { %5024 = vmatprep.mubr.f32.mxu1 %v13980_v55  ;;  %v4700_v36 = vmul.f32 %v13758_v61, %v4625_v12  ;;  %v4699_v58 = vmul.f32 %v13755_v50, %v4624_v9  ;;  %v16170_v9 = vld [vmem:[#allocation110_spill] sm:$0xff] }
 0x5f9   : > { %v9090_v54 = vpop.eup %9089  ;;  %v4548_v14 = vadd.f32 1e-05, %v4516_v10  ;;  %5025 = vmatmul.mubr.f32.gmra.mrb[30].mxu1 %v13983_v39 }
 0x5fa   : > { %v4626_v18 = vmul.f32 %v9090_v54, %v13599_v46  ;;  %v4465_v21 = vpop.xlane.xlu1 %4464  ;;  %v13994_v51 = vadd.f32 %v13766_v19, %v4700_v36  ;;  %v13997_v33 = vadd.f32 %v13761_v47, %v4699_v58  ;;  %v4627_v29 = vmul.f32 %v9090_v54, %v13602_v4  ;;  %8086 = vmatpush1.bf16.msra.mxu1 %v16169_v17 }
 0x5fb   : > { %9095 = vrsqrt.f32 %v4548_v14  ;;  %v4517_v16 = vmul.f32 0.00390625, %v4465_v21  ;;  %8216 = vmatprep.subr.bf16.mxu1 %v16170_v9 }
 0x5fc   : > { %16168 = vst [vmem:[#allocation13_spill] sm:$0xff] %v13997_v33  ;;  %5030 = vmatprep.mubr.f32.mxu1 %v13994_v51  ;;  %v4702_v6 = vmul.f32 %v13758_v61, %v4627_v29  ;;  %v4701_v46 = vmul.f32 %v13755_v50, %v4626_v18 }
 0x5fd   : > { %v9092_v12 = vpop.eup %9091  ;;  %v4549_v62 = vadd.f32 1e-05, %v4517_v16  ;;  %5031 = vmatmul.mubr.f32.gmra.mrb[32].mxu1 %v13997_v33 }
 0x5fe   : > { %v4628_v10 = vmul.f32 %v9092_v12, %v13609_v15  ;;  %v4468_v42 = vpop.xlane.xlu0 %4467  ;;  %v14008_v4 = vadd.f32 %v13766_v19, %v4702_v6  ;;  %v14011_v36 = vadd.f32 %v13761_v47, %v4701_v46  ;;  %v4629_v58 = vmul.f32 %v9092_v12, %v13612_v44 }
 0x5ff   : > { %9097 = vrsqrt.f32 %v4549_v62  ;;  %v4518_v54 = vmul.f32 0.00390625, %v4468_v42 }
 0x600   : > { %16171 = vst [vmem:[#allocation12_spill] sm:$0xff] %v14008_v4  ;;  %16172 = vst [vmem:[#allocation14_spill] sm:$0xff] %v14011_v36  ;;  %5036 = vmatprep.mubr.f32.mxu1 %v14008_v4  ;;  %v4704_v14 = vmul.f32 %v13758_v61, %v4629_v58  ;;  %v4703_v18 = vmul.f32 %v13755_v50, %v4628_v10 }
 0x601   : > { %v9094_v21 = vpop.eup %9093  ;;  %v4550_v29 = vadd.f32 1e-05, %v4518_v54  ;;  %5037 = vmatmul.mubr.f32.gmra.mrb[34].mxu1 %v14011_v36 }
 0x602   : > { %v4630_v15 = vmul.f32 %v9094_v21, %v13619_v35  ;;  %v4471_v17 = vpop.xlane.xlu1 %4470  ;;  %v14020_v16 = vadd.f32 %v13766_v19, %v4704_v14  ;;  %v14023_v44 = vadd.f32 %v13761_v47, %v4703_v18  ;;  %v4631_v9 = vmul.f32 %v9094_v21, %v13622_v5 }
 0x603   : > { %9099 = vrsqrt.f32 %v4550_v29  ;;  %v4519_v6 = vmul.f32 0.00390625, %v4471_v17 }
 0x604   : > { %16173 = vst [vmem:[#allocation38_spill] sm:$0xff] %v14020_v16  ;;  %16174 = vst [vmem:[#allocation64_spill] sm:$0xff] %v14023_v44  ;;  %5042 = vmatprep.mubr.f32.mxu1 %v14020_v16  ;;  %v4706_v46 = vmul.f32 %v13758_v61, %v4631_v9  ;;  %v4705_v12 = vmul.f32 %v13755_v50, %v4630_v15 }
 0x605   : > { %v9096_v62 = vpop.eup %9095  ;;  %v4551_v10 = vadd.f32 1e-05, %v4519_v6  ;;  %5043 = vmatmul.mubr.f32.gmra.mrb[36].mxu1 %v14023_v44 }
 0x606   : > { %v4632_v35 = vmul.f32 %v9096_v62, %v13629_v45  ;;  %v4474_v42 = vpop.xlane.xlu0 %4473  ;;  %v14032_v58 = vadd.f32 %v13766_v19, %v4706_v46  ;;  %v14035_v5 = vadd.f32 %v13761_v47, %v4705_v12  ;;  %v4633_v54 = vmul.f32 %v9096_v62, %v13632_v25  ;;  %v16177_v45 = vld [vmem:[#allocation268_spill] sm:$0xff]  ;;  %v16180_v46 = vld [vmem:[#allocation269_spill] sm:$0xff] }
 0x607   : > { %9101 = vrsqrt.f32 %v4551_v10  ;;  %v4520_v14 = vmul.f32 0.00390625, %v4474_v42 }
 0x608   : > { %16175 = vst [vmem:[#allocation67_spill] sm:$0xff] %v14032_v58  ;;  %16176 = vst [vmem:[#allocation68_spill] sm:$0xff] %v14035_v5  ;;  %5048 = vmatprep.mubr.f32.mxu1 %v14032_v58  ;;  %v4708_v18 = vmul.f32 %v13758_v61, %v4633_v54  ;;  %v4707_v21 = vmul.f32 %v13755_v50, %v4632_v35 }
 0x609   : > { %v9098_v29 = vpop.eup %9097  ;;  %v4552_v15 = vadd.f32 1e-05, %v4520_v14  ;;  %5049 = vmatmul.mubr.f32.gmra.mrb[38].mxu1 %v14035_v5  ;;  %v16181_v14 = vld [vmem:[#allocation270_spill] sm:$0xff] }
 0x60a   : > { %v4634_v17 = vmul.f32 %v9098_v29, %v16177_v45  ;;  %v4477_v9 = vpop.xlane.xlu1 %4476  ;;  %v14044_v6 = vadd.f32 %v13766_v19, %v4708_v18  ;;  %v14047_v25 = vadd.f32 %v13761_v47, %v4707_v21  ;;  %v4635_v12 = vmul.f32 %v9098_v29, %v16180_v46 }
 0x60b   : > { %9103 = vrsqrt.f32 %v4552_v15  ;;  %v4521_v62 = vmul.f32 0.00390625, %v4477_v9  ;;  %v16184_v15 = vld [vmem:[#allocation271_spill] sm:$0xff] }
 0x60c   : > { %16178 = vst [vmem:[#allocation71_spill] sm:$0xff] %v14044_v6  ;;  %16179 = vst [vmem:[#allocation72_spill] sm:$0xff] %v14047_v25  ;;  %5054 = vmatprep.mubr.f32.mxu1 %v14044_v6  ;;  %v4710_v10 = vmul.f32 %v13758_v61, %v4635_v12  ;;  %v4709_v35 = vmul.f32 %v13755_v50, %v4634_v17 }
 0x60d   : > { %v9100_v42 = vpop.eup %9099  ;;  %v4553_v54 = vadd.f32 1e-05, %v4521_v62  ;;  %5055 = vmatmul.mubr.f32.gmra.mrb[40].mxu1 %v14047_v25 }
 0x60e   : > { %v4636_v18 = vmul.f32 %v9100_v42, %v16181_v14  ;;  %v4480_v45 = vpop.xlane.xlu0 %4479  ;;  %v14056_v21 = vadd.f32 %v13766_v19, %v4710_v10  ;;  %v14059_v29 = vadd.f32 %v13761_v47, %v4709_v35  ;;  %v4637_v9 = vmul.f32 %v9100_v42, %v16184_v15  ;;  %v16185_v14 = vld [vmem:[#allocation272_spill] sm:$0xff] }
 0x60f   : > { %9105 = vrsqrt.f32 %v4553_v54  ;;  %v4522_v46 = vmul.f32 0.00390625, %v4480_v45  ;;  %v16188_v54 = vld [vmem:[#allocation273_spill] sm:$0xff] }
 0x610   : > { %16182 = vst [vmem:[#allocation41_spill] sm:$0xff] %v14056_v21  ;;  %16183 = vst [vmem:[#allocation40_spill] sm:$0xff] %v14059_v29  ;;  %5060 = vmatprep.mubr.f32.mxu1 %v14056_v21  ;;  %v4712_v17 = vmul.f32 %v13758_v61, %v4637_v9  ;;  %v4711_v12 = vmul.f32 %v13755_v50, %v4636_v18 }
 0x611   : > { %v9102_v62 = vpop.eup %9101  ;;  %v4554_v25 = vadd.f32 1e-05, %v4522_v46  ;;  %5061 = vmatmul.mubr.f32.gmra.mrb[42].mxu1 %v14059_v29 }
 0x612   : > { %v4638_v10 = vmul.f32 %v9102_v62, %v16185_v14  ;;  %v4483_v6 = vpop.xlane.xlu1 %4482  ;;  %v14068_v35 = vadd.f32 %v13766_v19, %v4712_v17  ;;  %v14071_v42 = vadd.f32 %v13761_v47, %v4711_v12  ;;  %v4639_v45 = vmul.f32 %v9102_v62, %v16188_v54  ;;  %v16189_v14 = vld [vmem:[#allocation274_spill] sm:$0xff] }
 0x613   : > { %9107 = vrsqrt.f32 %v4554_v25  ;;  %v4523_v15 = vmul.f32 0.00390625, %v4483_v6  ;;  %v16192_v6 = vld [vmem:[#allocation275_spill] sm:$0xff] }
 0x614   : > { %16186 = vst [vmem:[#allocation43_spill] sm:$0xff] %v14068_v35  ;;  %16187 = vst [vmem:[#allocation42_spill] sm:$0xff] %v14071_v42  ;;  %5066 = vmatprep.mubr.f32.mxu1 %v14068_v35  ;;  %v4714_v18 = vmul.f32 %v13758_v61, %v4639_v45  ;;  %v4713_v9 = vmul.f32 %v13755_v50, %v4638_v10 }
 0x615   : > { %v9104_v46 = vpop.eup %9103  ;;  %v4555_v29 = vadd.f32 1e-05, %v4523_v15  ;;  %5067 = vmatmul.mubr.f32.gmra.mrb[44].mxu1 %v14071_v42 }
 0x616   : > { %v4640_v17 = vmul.f32 %v9104_v46, %v16189_v14  ;;  %v4486_v21 = vpop.xlane.xlu0 %4485  ;;  %v14080_v12 = vadd.f32 %v13766_v19, %v4714_v18  ;;  %v14083_v62 = vadd.f32 %v13761_v47, %v4713_v9  ;;  %v4641_v25 = vmul.f32 %v9104_v46, %v16192_v6  ;;  %v16193_v14 = vld [vmem:[#allocation276_spill] sm:$0xff] }
 0x617   : > { %9109 = vrsqrt.f32 %v4555_v29  ;;  %v4524_v54 = vmul.f32 0.00390625, %v4486_v21  ;;  %v16196_v21 = vld [vmem:[#allocation277_spill] sm:$0xff] }
 0x618   : > { %16190 = vst [vmem:[#allocation75_spill] sm:$0xff] %v14080_v12  ;;  %16191 = vst [vmem:[#allocation76_spill] sm:$0xff] %v14083_v62  ;;  %5072 = vmatprep.mubr.f32.mxu1 %v14080_v12  ;;  %v4716_v10 = vmul.f32 %v13758_v61, %v4641_v25  ;;  %v4715_v45 = vmul.f32 %v13755_v50, %v4640_v17 }
 0x619   : > { %v9106_v15 = vpop.eup %9105  ;;  %v4556_v42 = vadd.f32 1e-05, %v4524_v54  ;;  %5073 = vmatmul.mubr.f32.gmra.mrb[46].mxu1 %v14083_v62 }
 0x61a   : > { %v4642_v18 = vmul.f32 %v9106_v15, %v16193_v14  ;;  %v4489_v35 = vpop.xlane.xlu1 %4488  ;;  %v14092_v9 = vadd.f32 %v13766_v19, %v4716_v10  ;;  %v14095_v46 = vadd.f32 %v13761_v47, %v4715_v45  ;;  %v4643_v29 = vmul.f32 %v9106_v15, %v16196_v21  ;;  %v16197_v14 = vld [vmem:[#allocation278_spill] sm:$0xff] }
 0x61b   : > { %9111 = vrsqrt.f32 %v4556_v42  ;;  %v4525_v6 = vmul.f32 0.00390625, %v4489_v35  ;;  %v16200_v35 = vld [vmem:[#allocation279_spill] sm:$0xff] }
 0x61c   : > { %16194 = vst [vmem:[#allocation77_spill] sm:$0xff] %v14092_v9  ;;  %16195 = vst [vmem:[#allocation78_spill] sm:$0xff] %v14095_v46  ;;  %5078 = vmatprep.mubr.f32.mxu1 %v14092_v9  ;;  %v4718_v17 = vmul.f32 %v13758_v61, %v4643_v29  ;;  %v4717_v25 = vmul.f32 %v13755_v50, %v4642_v18 }
 0x61d   : > { %v9108_v54 = vpop.eup %9107  ;;  %v4557_v62 = vadd.f32 1e-05, %v4525_v6  ;;  %5079 = vmatmul.mubr.f32.gmra.mrb[48].mxu1 %v14095_v46 }
 0x61e   : > { %v4644_v10 = vmul.f32 %v9108_v54, %v16197_v14  ;;  %v4492_v12 = vpop.xlane.xlu0 %4491  ;;  %v14104_v45 = vadd.f32 %v13766_v19, %v4718_v17  ;;  %v14107_v15 = vadd.f32 %v13761_v47, %v4717_v25  ;;  %v4645_v42 = vmul.f32 %v9108_v54, %v16200_v35 }
 0x61f   : > { %9113 = vrsqrt.f32 %v4557_v62  ;;  %v4526_v21 = vmul.f32 0.00390625, %v4492_v12  ;;  %v16203_v12 = vld [vmem:[#allocation280_spill] sm:$0xff] }
 0x620   : > { %16198 = vst [vmem:[#allocation79_spill] sm:$0xff] %v14104_v45  ;;  %16199 = vst [vmem:[#allocation80_spill] sm:$0xff] %v14107_v15  ;;  %5084 = vmatprep.mubr.f32.mxu1 %v14104_v45  ;;  %v4720_v18 = vmul.f32 %v13758_v61, %v4645_v42  ;;  %v4719_v29 = vmul.f32 %v13755_v50, %v4644_v10 }
 0x621   : > { %v9110_v6 = vpop.eup %9109  ;;  %v4558_v46 = vadd.f32 1e-05, %v4526_v21  ;;  %5085 = vmatmul.mubr.f32.gmra.mrb[50].mxu1 %v14107_v15 }
 0x622   : > { %v4646_v17 = vmul.f32 %v9110_v6, %v13699_v0  ;;  %v4495_v14 = vpop.xlane.xlu1 %4494  ;;  %v14116_v25 = vadd.f32 %v13766_v19, %v4720_v18  ;;  %v14119_v54 = vadd.f32 %v13761_v47, %v4719_v29  ;;  %v4647_v62 = vmul.f32 %v9110_v6, %v16203_v12  ;;  %v16206_v12 = vld [vmem:[#allocation281_spill] sm:$0xff] }
 0x623   : > { %9115 = vrsqrt.f32 %v4558_v46  ;;  %v4527_v35 = vmul.f32 0.00390625, %v4495_v14 }
 0x624   : > { %16201 = vst [vmem:[#allocation82_spill] sm:$0xff] %v14116_v25  ;;  %16202 = vst [vmem:[#allocation83_spill] sm:$0xff] %v14119_v54  ;;  %5090 = vmatprep.mubr.f32.mxu1 %v14116_v25  ;;  %v4722_v10 = vmul.f32 %v13758_v61, %v4647_v62  ;;  %v4721_v42 = vmul.f32 %v13755_v50, %v4646_v17 }
 0x625   : > { %v9112_v21 = vpop.eup %9111  ;;  %v4559_v15 = vadd.f32 1e-05, %v4527_v35  ;;  %5091 = vmatmul.mubr.f32.gmra.mrb[52].mxu1 %v14119_v54 }
 0x626   : > { %v4648_v0 = vmul.f32 %v9112_v21, %v13709_v28  ;;  %v14128_v18 = vadd.f32 %v13766_v19, %v4722_v10  ;;  %v14131_v29 = vadd.f32 %v13761_v47, %v4721_v42  ;;  %v4649_v46 = vmul.f32 %v9112_v21, %v13712_v60  ;;  %v16209_v10 = vld [vmem:[#allocation282_spill] sm:$0xff] }
 0x627   : > { %9117 = vrsqrt.f32 %v4559_v15 }
 0x628   : > { %16204 = vst [vmem:[#allocation86_spill] sm:$0xff] %v14128_v18  ;;  %16205 = vst [vmem:[#allocation87_spill] sm:$0xff] %v14131_v29  ;;  %5096 = vmatprep.mubr.f32.mxu1 %v14128_v18  ;;  %v4724_v6 = vmul.f32 %v13758_v61, %v4649_v46  ;;  %v4723_v17 = vmul.f32 %v13755_v50, %v4648_v0  ;;  %v16210_v0 = vld [vmem:[#allocation283_spill] sm:$0xff] }
 0x629   : > { %v9114_v14 = vpop.eup %9113  ;;  %5097 = vmatmul.mubr.f32.gmra.mrb[54].mxu1 %v14131_v29 }
 0x62a   : > { %v4650_v28 = vmul.f32 %v9114_v14, %v16206_v12  ;;  %v14140_v62 = vadd.f32 %v13766_v19, %v4724_v6  ;;  %v14143_v35 = vadd.f32 %v13761_v47, %v4723_v17  ;;  %v4651_v60 = vmul.f32 %v9114_v14, %v16209_v10  ;;  %v16211_v17 = vld [vmem:[#allocation284_spill] sm:$0xff] }
 0x62c   : > { %16207 = vst [vmem:[#allocation90_spill] sm:$0xff] %v14140_v62  ;;  %16208 = vst [vmem:[#allocation91_spill] sm:$0xff] %v14143_v35  ;;  %5102 = vmatprep.mubr.f32.mxu1 %v14140_v62  ;;  %v4726_v15 = vmul.f32 %v13758_v61, %v4651_v60  ;;  %v4725_v42 = vmul.f32 %v13755_v50, %v4650_v28  ;;  %v16212_v60 = vld [vmem:[#allocation285_spill] sm:$0xff] }
 0x62d   : > { %v9116_v21 = vpop.eup %9115  ;;  %5103 = vmatmul.mubr.f32.gmra.mrb[56].mxu1 %v14143_v35 }
 0x62e   : > { %v4652_v46 = vmul.f32 %v9116_v21, %v16210_v0  ;;  %v14152_v12 = vadd.f32 %v13766_v19, %v4726_v15  ;;  %v14155_v6 = vadd.f32 %v13761_v47, %v4725_v42  ;;  %v4653_v29 = vmul.f32 %v9116_v21, %v16211_v17  ;;  %v16214_v42 = vld [vmem:[#allocation286_spill] sm:$0xff] }
 0x630   : > { %v4727_v14 = vmul.f32 %v13755_v50, %v4652_v46  ;;  %5108 = vmatprep.mubr.f32.mxu1 %v14152_v12  ;;  %v4728_v10 = vmul.f32 %v13758_v61, %v4653_v29 }
 0x631   : > { %v9118_v28 = vpop.eup %9117  ;;  %5109 = vmatmul.mubr.f32.gmra.mrb[58].mxu1 %v14155_v6 }
 0x632   : > { %v4654_v35 = vmul.f32 %v9118_v28, %v16212_v60  ;;  %v14164_v0 = vadd.f32 %v13766_v19, %v4728_v10  ;;  %v14167_v15 = vadd.f32 %v13761_v47, %v4727_v14  ;;  %v4655_v62 = vmul.f32 %v9118_v28, %v16214_v42  ;;  %v16222_v14 = vld [vmem:[#allocation70_spill] sm:$0xff]  ;;  %v16223_v10 = vld [vmem:[#allocation73_spill] sm:$0xff] }
 0x633   : > { %v16224_v28 = vld [vmem:[#allocation74_spill] sm:$0xff]  ;;  %v16225_v60 = vld [vmem:[#allocation145_spill] sm:$0xff] }
 0x634   : > { %16213 = vst [vmem:[#allocation96_spill] sm:$0xff] %v14164_v0  ;;  %v4729_v21 = vmul.f32 %v13755_v50, %v4654_v35  ;;  %5114 = vmatprep.mubr.f32.mxu1 %v14164_v0  ;;  %v4730_v46 = vmul.f32 %v13758_v61, %v4655_v62  ;;  %v16216_v50 = vld [vmem:[#allocation142_spill] sm:$0xff]  ;;  %v16217_v61 = vld [vmem:[#allocation143_spill] sm:$0xff]  ;;  %v16221_v35 = vld [vmem:[#allocation144_spill] sm:$0xff] }
 0x635   : > { %5115 = vmatmul.mubr.f32.gmra.mrb[60].mxu1 %v14167_v15  ;;  %v16220_v62 = vld [vmem:[#allocation66_spill] sm:$0xff] }
 0x636   : > { %v14175_v29 = vadd.f32 %v13766_v19, %v4730_v46  ;;  %v14178_v17 = vadd.f32 %v13761_v47, %v4729_v21  ;;  %v16218_v19 = vld [vmem:[#allocation16_spill] sm:$0xff]  ;;  %v16219_v47 = vld [vmem:[#allocation65_spill] sm:$0xff]  ;;  %v16226_v42 = vld [vmem:[#allocation146_spill] sm:$0xff] }
 0x637   : > { %v16227_v21 = vld [vmem:[#allocation147_spill] sm:$0xff]  ;;  %v16228_v46 = vld [vmem:[#allocation148_spill] sm:$0xff] }
 0x638   : > { %16215 = vst [vmem:[#allocation48_spill] sm:$0xff] %v14178_v17  ;;  %5120 = vmatprep.mubr.f32.mxu1 %v14175_v29 }
 0x639   : > { %5121 = vmatmul.mubr.f32.gmra.mrb[62].mxu1 %v14178_v17 }
 0x63a   : > { %5191 = vmatprep.mubr.f32.mxu1 %v13775_v27 }
 0x63d   : > { %5192 = vmatmul.mubr.f32.vlgmr.msra.gmra.mrb[64].mxu1 %v13771_v24 }
 0x63e   : > { %8218 = vmatpush1.bf16.msra.mxu1 %v16216_v50  ;;  %5197 = vmatprep.mubr.f32.mxu1 %v13785_v63  ;;  %v16229_v50 = vld [vmem:[#allocation149_spill] sm:$0xff] }
 0x63f   : > { %8220 = vmatprep.subr.bf16.mxu1 %v16217_v61  ;;  %v16230_v61 = vld [vmem:[#allocation150_spill] sm:$0xff] }
 0x641   : > { %5198 = vmatmul.mubr.f32.gmra.mrb[66].mxu1 %v13788_v23 }
 0x642   : > { %5203 = vmatprep.mubr.f32.mxu1 %v13798_v34  ;;  %8222 = vmatpush1.bf16.msra.mxu1 %v16218_v19  ;;  %v16231_v19 = vld [vmem:[#allocation151_spill] sm:$0xff] }
 0x643   : > { %8224 = vmatprep.subr.bf16.mxu1 %v16219_v47  ;;  %v16232_v47 = vld [vmem:[#allocation152_spill] sm:$0xff] }
 0x645   : > { %5204 = vmatmul.mubr.f32.gmra.mrb[68].mxu1 %v13801_v7 }
 0x646   : > { %5209 = vmatprep.mubr.f32.mxu1 %v13812_v22  ;;  %8226 = vmatpush1.bf16.msra.mxu1 %v16220_v62  ;;  %v16233_v62 = vld [vmem:[#allocation153_spill] sm:$0xff] }
 0x647   : > { %8228 = vmatprep.subr.bf16.mxu1 %v16221_v35  ;;  %v16234_v35 = vld [vmem:[#allocation81_spill] sm:$0xff] }
 0x649   : > { %5210 = vmatmul.mubr.f32.gmra.mrb[70].mxu1 %v13815_v43 }
 0x64a   : > { %5215 = vmatprep.mubr.f32.mxu1 %v13826_v3  ;;  %8230 = vmatpush1.bf16.msra.mxu1 %v16222_v14  ;;  %v16235_v14 = vld [vmem:[#allocation154_spill] sm:$0xff] }
 0x64b   : > { %8232 = vmatprep.subr.bf16.mxu1 %v16223_v10  ;;  %v16236_v10 = vld [vmem:[#allocation155_spill] sm:$0xff] }
 0x64d   : > { %5216 = vmatmul.mubr.f32.gmra.mrb[72].mxu1 %v13829_v8 }
 0x64e   : > { %5221 = vmatprep.mubr.f32.mxu1 %v13840_v41  ;;  %8234 = vmatpush1.bf16.msra.mxu1 %v16224_v28  ;;  %v16237_v28 = vld [vmem:[#allocation156_spill] sm:$0xff] }
 0x64f   : > { %8236 = vmatprep.subr.bf16.mxu1 %v16225_v60  ;;  %v16238_v60 = vld [vmem:[#allocation157_spill] sm:$0xff] }
 0x651   : > { %5222 = vmatmul.mubr.f32.gmra.mrb[74].mxu1 %v13843_v56 }
 0x652   : > { %5227 = vmatprep.mubr.f32.mxu1 %v13854_v48  ;;  %8238 = vmatpush1.bf16.msra.mxu1 %v16226_v42  ;;  %v16239_v42 = vld [vmem:[#allocation158_spill] sm:$0xff] }
 0x653   : > { %8240 = vmatprep.subr.bf16.mxu1 %v16227_v21  ;;  %v16240_v21 = vld [vmem:[#allocation159_spill] sm:$0xff] }
 0x655   : > { %5228 = vmatmul.mubr.f32.gmra.mrb[76].mxu1 %v13857_v2 }
 0x656   : > { %5233 = vmatprep.mubr.f32.mxu1 %v13868_v37  ;;  %8242 = vmatpush1.bf16.msra.mxu1 %v16228_v46  ;;  %v16241_v46 = vld [vmem:[#allocation160_spill] sm:$0xff] }
 0x657   : > { %8244 = vmatprep.subr.bf16.mxu1 %v16229_v50  ;;  %v16242_v50 = vld [vmem:[#allocation161_spill] sm:$0xff] }
 0x659   : > { %5234 = vmatmul.mubr.f32.gmra.mrb[78].mxu1 %v13871_v32 }
 0x65a   : > { %5239 = vmatprep.mubr.f32.mxu1 %v13882_v13  ;;  %8246 = vmatpush1.bf16.msra.mxu1 %v16230_v61  ;;  %v16243_v61 = vld [vmem:[#allocation162_spill] sm:$0xff] }
 0x65b   : > { %8248 = vmatprep.subr.bf16.mxu1 %v16231_v19  ;;  %v16244_v19 = vld [vmem:[#allocation163_spill] sm:$0xff] }
 0x65d   : > { %5240 = vmatmul.mubr.f32.gmra.mrb[80].mxu1 %v13885_v31 }
 0x65e   : > { %5245 = vmatprep.mubr.f32.mxu1 %v13896_v38  ;;  %8250 = vmatpush1.bf16.msra.mxu1 %v16232_v47  ;;  %v16245_v47 = vld [vmem:[#allocation164_spill] sm:$0xff] }
 0x65f   : > { %8252 = vmatprep.subr.bf16.mxu1 %v16233_v62  ;;  %v16246_v62 = vld [vmem:[#allocation165_spill] sm:$0xff] }
 0x661   : > { %5246 = vmatmul.mubr.f32.gmra.mrb[82].mxu1 %v13899_v49 }
 0x662   : > { %5251 = vmatprep.mubr.f32.mxu1 %v13910_v59  ;;  %8254 = vmatpush1.bf16.msra.mxu1 %v16234_v35  ;;  %v16247_v35 = vld [vmem:[#allocation166_spill] sm:$0xff] }
 0x663   : > { %8256 = vmatprep.subr.bf16.mxu1 %v16235_v14  ;;  %v16248_v14 = vld [vmem:[#allocation71_spill] sm:$0xff] }
 0x665   : > { %5252 = vmatmul.mubr.f32.gmra.mrb[84].mxu1 %v13913_v26 }
 0x666   : > { %5257 = vmatprep.mubr.f32.mxu1 %v13924_v57  ;;  %8258 = vmatpush1.bf16.msra.mxu1 %v16236_v10  ;;  %v16249_v10 = vld [vmem:[#allocation72_spill] sm:$0xff] }
 0x667   : > { %8260 = vmatprep.subr.bf16.mxu1 %v16237_v28  ;;  %v16250_v28 = vld [vmem:[#allocation41_spill] sm:$0xff] }
 0x669   : > { %5258 = vmatmul.mubr.f32.gmra.mrb[86].mxu1 %v13927_v40 }
 0x66a   : > { %5263 = vmatprep.mubr.f32.mxu1 %v13938_v1  ;;  %8262 = vmatpush1.bf16.msra.mxu1 %v16238_v60 }
 0x66b   : > { %8264 = vmatprep.subr.bf16.mxu1 %v16239_v42  ;;  %v16251_v42 = vld [vmem:[#allocation167_spill] sm:$0xff] }
 0x66d   : > { %5264 = vmatmul.mubr.f32.gmra.mrb[88].mxu1 %v13941_v20 }
 0x66e   : > { %5269 = vmatprep.mubr.f32.mxu1 %v13952_v11  ;;  %8266 = vmatpush1.bf16.msra.mxu1 %v16240_v21 }
 0x66f   : > { %8268 = vmatprep.subr.bf16.mxu1 %v16241_v46 }
 0x671   : > { %5270 = vmatmul.mubr.f32.gmra.mrb[90].mxu1 %v13955_v30 }
 0x672   : > { %5275 = vmatprep.mubr.f32.mxu1 %v13966_v52  ;;  %8270 = vmatpush1.bf16.msra.mxu1 %v16242_v50  ;;  %v16252_v50 = vld [vmem:[#allocation40_spill] sm:$0xff] }
 0x673   : > { %8272 = vmatprep.subr.bf16.mxu1 %v16243_v61  ;;  %v16253_v61 = vld [vmem:[#allocation168_spill] sm:$0xff] }
 0x675   : > { %5276 = vmatmul.mubr.f32.gmra.mrb[92].mxu1 %v13969_v53 }
 0x676   : > { %5281 = vmatprep.mubr.f32.mxu1 %v13980_v55  ;;  %8274 = vmatpush1.bf16.msra.mxu1 %v16244_v19 }
 0x677   : > { %8276 = vmatprep.subr.bf16.mxu1 %v16245_v47  ;;  %v16254_v47 = vld [vmem:[#allocation43_spill] sm:$0xff] }
 0x679   : > { %5282 = vmatmul.mubr.f32.gmra.mrb[94].mxu1 %v13983_v39 }
 0x67a   : > { %5287 = vmatprep.mubr.f32.mxu1 %v13994_v51  ;;  %8278 = vmatpush1.bf16.msra.mxu1 %v16246_v62 }
 0x67b   : > { %8280 = vmatprep.subr.bf16.mxu1 %v16247_v35 }
 0x67d   : > { %5288 = vmatmul.mubr.f32.gmra.mrb[96].mxu1 %v13997_v33 }
 0x67e   : > { %5293 = vmatprep.mubr.f32.mxu1 %v14008_v4 }
 0x681   : > { %5294 = vmatmul.mubr.f32.gmra.mrb[98].mxu1 %v14011_v36 }
 0x682   : > { %5299 = vmatprep.mubr.f32.mxu1 %v14020_v16 }
 0x685   : > { %5300 = vmatmul.mubr.f32.gmra.mrb[100].mxu1 %v14023_v44  ;;  %v16255_v44 = vld [vmem:[#allocation42_spill] sm:$0xff] }
 0x686   : > { %5305 = vmatprep.mubr.f32.mxu1 %v14032_v58 }
 0x689   : > { %5306 = vmatmul.mubr.f32.gmra.mrb[102].mxu1 %v14035_v5 }
 0x68a   : > { %5311 = vmatprep.mubr.f32.mxu1 %v16248_v14 }
 0x68d   : > { %5312 = vmatmul.mubr.f32.gmra.mrb[104].mxu1 %v16249_v10  ;;  %v16256_v10 = vld [vmem:[#allocation75_spill] sm:$0xff] }
 0x68e   : > { %5317 = vmatprep.mubr.f32.mxu1 %v16250_v28 }
 0x690   : > { %v4936_v60 = vpop.f32.mrb[0].mxu1 }
 0x691   : > { %v4937_v21 = vadd.f32 %v4936_v60, %v16251_v42  ;;  %v4938_v46 = vpop.f32.mrb[1].mxu1  ;;  %5318 = vmatmul.mubr.f32.gmra.mrb[106].mxu1 %v16252_v50  ;;  %v16257_v50 = vld [vmem:[#allocation169_spill] sm:$0xff] }
 0x692   : > { %v4939_v19 = vadd.f32 %v4938_v46, %v16253_v61  ;;  %5323 = vmatprep.mubr.f32.mxu1 %v16254_v47 }
 0x693   : > { %v5384_v58 = vmax.f32 %v4937_v21, 0.0  ;;  %v16258_v21 = vld [vmem:[#allocation76_spill] sm:$0xff] }
 0x694   : > { %v5385_v62 = vmax.f32 %v4939_v19, 0.0  ;;  %v4942_v35 = vpop.f32.mrb[2].mxu1 }
 0x695   : > { %v4943_v5 = vadd.f32 %v4942_v35, %v16251_v42  ;;  %v4944_v14 = vpop.f32.mrb[3].mxu1  ;;  %5324 = vmatmul.mubr.f32.gmra.mrb[108].mxu1 %v16255_v44  ;;  %v16259_v35 = vld [vmem:[#allocation170_spill] sm:$0xff] }
 0x696   : > { %v4945_v28 = vadd.f32 %v4944_v14, %v16253_v61  ;;  %5329 = vmatprep.mubr.f32.mxu1 %v16256_v10  ;;  %5576 = vmatprep.mubr.f32.mxu0 %v5385_v62  ;;  %v16262_v10 = vld [vmem:[#allocation172_spill] sm:$0xff] }
 0x697   : > { %5577 = vmatmul.mubr.f32.vlgmr.msra.gmra.mrb[64].mxu0 %v5384_v58  ;;  %v5388_v16 = vmax.f32 %v4943_v5, 0.0 }
 0x698   : > { %v5389_v60 = vmax.f32 %v4945_v28, 0.0  ;;  %8154 = vmatpush1.bf16.msra.mxu0 %v16257_v50  ;;  %v4948_v46 = vpop.f32.mrb[4].mxu1  ;;  %v16260_v28 = vld [vmem:[#allocation171_spill] sm:$0xff] }
 0x699   : > { %v4949_v19 = vadd.f32 %v4948_v46, %v16251_v42  ;;  %v4950_v47 = vpop.f32.mrb[5].mxu1  ;;  %5330 = vmatmul.mubr.f32.gmra.mrb[110].mxu1 %v16258_v21  ;;  %8156 = vmatprep.subr.bf16.mxu0 %v16259_v35  ;;  %v16261_v46 = vld [vmem:[#allocation78_spill] sm:$0xff] }
 0x69a   : > { %v4951_v44 = vadd.f32 %v4950_v47, %v16253_v61  ;;  %5335 = vmatprep.mubr.f32.mxu1 %v14092_v9  ;;  %5582 = vmatprep.mubr.f32.mxu0 %v5389_v60  ;;  %v16265_v9 = vld [vmem:[#allocation174_spill] sm:$0xff] }
 0x69b   : > { %5583 = vmatmul.mubr.f32.gmra.mrb[66].mxu0 %v5388_v16  ;;  %v5392_v50 = vmax.f32 %v4949_v19, 0.0 }
 0x69c   : > { %v5393_v14 = vmax.f32 %v4951_v44, 0.0  ;;  %v4954_v58 = vpop.f32.mrb[6].mxu1  ;;  %8158 = vmatpush1.bf16.msra.mxu0 %v16260_v28  ;;  %v16263_v44 = vld [vmem:[#allocation173_spill] sm:$0xff] }
 0x69d   : > { %v4955_v5 = vadd.f32 %v4954_v58, %v16251_v42  ;;  %v4956_v62 = vpop.f32.mrb[7].mxu1  ;;  %5336 = vmatmul.mubr.f32.gmra.mrb[112].mxu1 %v16261_v46  ;;  %8160 = vmatprep.subr.bf16.mxu0 %v16262_v10  ;;  %v16264_v58 = vld [vmem:[#allocation80_spill] sm:$0xff] }
 0x69e   : > { %v4957_v35 = vadd.f32 %v4956_v62, %v16253_v61  ;;  %5341 = vmatprep.mubr.f32.mxu1 %v14104_v45  ;;  %5588 = vmatprep.mubr.f32.mxu0 %v5393_v14  ;;  %v16266_v62 = vld [vmem:[#allocation175_spill] sm:$0xff] }
 0x69f   : > { %5589 = vmatmul.mubr.f32.gmra.mrb[68].mxu0 %v5392_v50  ;;  %v5396_v60 = vmax.f32 %v4955_v5, 0.0 }
 0x6a0   : > { %v5397_v47 = vmax.f32 %v4957_v35, 0.0  ;;  %v4960_v16 = vpop.f32.mrb[8].mxu1  ;;  %8162 = vmatpush1.bf16.msra.mxu0 %v16263_v44 }
 0x6a1   : > { %v4961_v19 = vadd.f32 %v4960_v16, %v16251_v42  ;;  %v4962_v28 = vpop.f32.mrb[9].mxu1  ;;  %5342 = vmatmul.mubr.f32.gmra.mrb[114].mxu1 %v16264_v58  ;;  %8164 = vmatprep.subr.bf16.mxu0 %v16265_v9  ;;  %v16267_v16 = vld [vmem:[#allocation176_spill] sm:$0xff] }
 0x6a2   : > { %v4963_v10 = vadd.f32 %v4962_v28, %v16253_v61  ;;  %5347 = vmatprep.mubr.f32.mxu1 %v14116_v25  ;;  %5594 = vmatprep.mubr.f32.mxu0 %v5397_v47  ;;  %v16268_v28 = vld [vmem:[#allocation177_spill] sm:$0xff]  ;;  %v16270_v25 = vld [vmem:[#allocation178_spill] sm:$0xff] }
 0x6a3   : > { %5595 = vmatmul.mubr.f32.gmra.mrb[70].mxu0 %v5396_v60  ;;  %v5400_v35 = vmax.f32 %v4961_v19, 0.0 }
 0x6a4   : > { %v5401_v14 = vmax.f32 %v4963_v10, 0.0  ;;  %v4966_v50 = vpop.f32.mrb[10].mxu1  ;;  %8166 = vmatpush1.bf16.msra.mxu0 %v16266_v62 }
 0x6a5   : > { %v4967_v5 = vadd.f32 %v4966_v50, %v16251_v42  ;;  %v4968_v44 = vpop.f32.mrb[11].mxu1  ;;  %5348 = vmatmul.mubr.f32.gmra.mrb[116].mxu1 %v14119_v54  ;;  %8168 = vmatprep.subr.bf16.mxu0 %v16267_v16  ;;  %v16269_v50 = vld [vmem:[#allocation87_spill] sm:$0xff]  ;;  %v16271_v54 = vld [vmem:[#allocation90_spill] sm:$0xff] }
 0x6a6   : > { %v4969_v9 = vadd.f32 %v4968_v44, %v16253_v61  ;;  %5353 = vmatprep.mubr.f32.mxu1 %v14128_v18  ;;  %5600 = vmatprep.mubr.f32.mxu0 %v5401_v14  ;;  %v16272_v44 = vld [vmem:[#allocation179_spill] sm:$0xff]  ;;  %v16274_v18 = vld [vmem:[#allocation137_spill] sm:$0xff] }
 0x6a7   : > { %5601 = vmatmul.mubr.f32.gmra.mrb[72].mxu0 %v5400_v35  ;;  %v5404_v10 = vmax.f32 %v4967_v5, 0.0 }
 0x6a8   : > { %v5405_v47 = vmax.f32 %v4969_v9, 0.0  ;;  %v4972_v60 = vpop.f32.mrb[12].mxu1  ;;  %8170 = vmatpush1.bf16.msra.mxu0 %v16268_v28 }
 0x6a9   : > { %v4973_v19 = vadd.f32 %v4972_v60, %v16251_v42  ;;  %v4974_v62 = vpop.f32.mrb[13].mxu1  ;;  %5354 = vmatmul.mubr.f32.gmra.mrb[118].mxu1 %v16269_v50  ;;  %8172 = vmatprep.subr.bf16.mxu0 %v16270_v25  ;;  %v16273_v60 = vld [vmem:[#allocation91_spill] sm:$0xff] }
 0x6aa   : > { %v4975_v16 = vadd.f32 %v4974_v62, %v16253_v61  ;;  %5359 = vmatprep.mubr.f32.mxu1 %v16271_v54  ;;  %5606 = vmatprep.mubr.f32.mxu0 %v5405_v47  ;;  %v16275_v62 = vld [vmem:[#allocation180_spill] sm:$0xff] }
 0x6ab   : > { %5607 = vmatmul.mubr.f32.gmra.mrb[74].mxu0 %v5404_v10  ;;  %v5408_v9 = vmax.f32 %v4973_v19, 0.0 }
 0x6ac   : > { %v5409_v14 = vmax.f32 %v4975_v16, 0.0  ;;  %v4978_v35 = vpop.f32.mrb[14].mxu1  ;;  %8174 = vmatpush1.bf16.msra.mxu0 %v16272_v44 }
 0x6ad   : > { %v4979_v5 = vadd.f32 %v4978_v35, %v16251_v42  ;;  %v4980_v28 = vpop.f32.mrb[15].mxu1  ;;  %5360 = vmatmul.mubr.f32.gmra.mrb[120].mxu1 %v16273_v60  ;;  %8176 = vmatprep.subr.bf16.mxu0 %v16274_v18  ;;  %v16276_v35 = vld [vmem:[#allocation181_spill] sm:$0xff] }
 0x6ae   : > { %v4981_v25 = vadd.f32 %v4980_v28, %v16253_v61  ;;  %5365 = vmatprep.mubr.f32.mxu1 %v14152_v12  ;;  %5612 = vmatprep.mubr.f32.mxu0 %v5409_v14  ;;  %v16277_v28 = vld [vmem:[#allocation182_spill] sm:$0xff] }
 0x6af   : > { %5613 = vmatmul.mubr.f32.gmra.mrb[76].mxu0 %v5408_v9  ;;  %v5412_v16 = vmax.f32 %v4979_v5, 0.0 }
 0x6b0   : > { %v5413_v47 = vmax.f32 %v4981_v25, 0.0  ;;  %v4984_v10 = vpop.f32.mrb[16].mxu1  ;;  %8178 = vmatpush1.bf16.msra.mxu0 %v16275_v62 }
 0x6b1   : > { %v4985_v19 = vadd.f32 %v4984_v10, %v16251_v42  ;;  %v4986_v44 = vpop.f32.mrb[17].mxu1  ;;  %5366 = vmatmul.mubr.f32.gmra.mrb[122].mxu1 %v14155_v6  ;;  %8180 = vmatprep.subr.bf16.mxu0 %v16276_v35  ;;  %v16278_v10 = vld [vmem:[#allocation183_spill] sm:$0xff] }
 0x6b2   : > { %v4987_v18 = vadd.f32 %v4986_v44, %v16253_v61  ;;  %5371 = vmatprep.mubr.f32.mxu1 %v14164_v0  ;;  %5618 = vmatprep.mubr.f32.mxu0 %v5413_v47  ;;  %v16279_v44 = vld [vmem:[#allocation184_spill] sm:$0xff] }
 0x6b3   : > { %5619 = vmatmul.mubr.f32.gmra.mrb[78].mxu0 %v5412_v16  ;;  %v5416_v25 = vmax.f32 %v4985_v19, 0.0 }
 0x6b4   : > { %v5417_v14 = vmax.f32 %v4987_v18, 0.0  ;;  %v4990_v9 = vpop.f32.mrb[18].mxu1  ;;  %8182 = vmatpush1.bf16.msra.mxu0 %v16277_v28 }
 0x6b5   : > { %v4991_v5 = vadd.f32 %v4990_v9, %v16251_v42  ;;  %v4992_v62 = vpop.f32.mrb[19].mxu1  ;;  %5372 = vmatmul.mubr.f32.gmra.mrb[124].mxu1 %v14167_v15  ;;  %8184 = vmatprep.subr.bf16.mxu0 %v16278_v10  ;;  %v16280_v9 = vld [vmem:[#allocation185_spill] sm:$0xff] }
 0x6b6   : > { %v4993_v35 = vadd.f32 %v4992_v62, %v16253_v61  ;;  %5377 = vmatprep.mubr.f32.mxu1 %v14175_v29  ;;  %5624 = vmatprep.mubr.f32.mxu0 %v5417_v14  ;;  %v16281_v62 = vld [vmem:[#allocation186_spill] sm:$0xff] }
 0x6b7   : > { %5625 = vmatmul.mubr.f32.gmra.mrb[80].mxu0 %v5416_v25  ;;  %v5420_v18 = vmax.f32 %v4991_v5, 0.0 }
 0x6b8   : > { %v5421_v47 = vmax.f32 %v4993_v35, 0.0  ;;  %v4996_v16 = vpop.f32.mrb[20].mxu1  ;;  %8186 = vmatpush1.bf16.msra.mxu0 %v16279_v44 }
 0x6b9   : > { %v4997_v19 = vadd.f32 %v4996_v16, %v16251_v42  ;;  %v4998_v28 = vpop.f32.mrb[21].mxu1  ;;  %5378 = vmatmul.mubr.f32.gmra.mrb[126].mxu1 %v14178_v17  ;;  %8188 = vmatprep.subr.bf16.mxu0 %v16280_v9  ;;  %v16282_v16 = vld [vmem:[#allocation187_spill] sm:$0xff]  ;;  %v16283_v17 = vld [vmem:[#allocation188_spill] sm:$0xff] }
 0x6ba   : > { %v4999_v10 = vadd.f32 %v4998_v28, %v16253_v61  ;;  %5630 = vmatprep.mubr.f32.mxu0 %v5421_v47  ;;  %6154 = vmatprep.mubr.f32.mxu1 %v13775_v27  ;;  %v16284_v28 = vld [vmem:[#allocation189_spill] sm:$0xff] }
 0x6bb   : > { %5631 = vmatmul.mubr.f32.gmra.mrb[82].mxu0 %v5420_v18  ;;  %v5424_v35 = vmax.f32 %v4997_v19, 0.0  ;;  %v16285_v19 = vld [vmem:[#allocation190_spill] sm:$0xff] }
 0x6bc   : > { %v5425_v14 = vmax.f32 %v4999_v10, 0.0  ;;  %v5002_v25 = vpop.f32.mrb[22].mxu1  ;;  %8190 = vmatpush1.bf16.msra.mxu0 %v16281_v62 }
 0x6bd   : > { %v5003_v5 = vadd.f32 %v5002_v25, %v16251_v42  ;;  %v5004_v44 = vpop.f32.mrb[23].mxu1  ;;  %6155 = vmatmul.mubr.f32.vlgmr.msra.gmra.mrb[128].mxu1 %v13771_v24  ;;  %8192 = vmatprep.subr.bf16.mxu0 %v16282_v16  ;;  %v16286_v16 = vld [vmem:[#allocation191_spill] sm:$0xff] }
 0x6be   : > { %v5005_v9 = vadd.f32 %v5004_v44, %v16253_v61  ;;  %8282 = vmatpush1.bf16.msra.mxu1 %v16283_v17  ;;  %5636 = vmatprep.mubr.f32.mxu0 %v5425_v14  ;;  %v16287_v14 = vld [vmem:[#allocation192_spill] sm:$0xff] }
 0x6bf   : > { %6160 = vmatprep.mubr.f32.mxu1 %v13785_v63  ;;  %5637 = vmatmul.mubr.f32.gmra.mrb[84].mxu0 %v5424_v35  ;;  %v5428_v10 = vmax.f32 %v5003_v5, 0.0  ;;  %v16289_v5 = vld [vmem:[#allocation194_spill] sm:$0xff] }
 0x6c0   : > { %v5429_v47 = vmax.f32 %v5005_v9, 0.0  ;;  %v5008_v18 = vpop.f32.mrb[24].mxu1  ;;  %8284 = vmatprep.subr.bf16.mxu1 %v16284_v28  ;;  %8194 = vmatpush1.bf16.msra.mxu0 %v16285_v19  ;;  %v16288_v9 = vld [vmem:[#allocation193_spill] sm:$0xff] }
 0x6c1   : > { %v5009_v25 = vadd.f32 %v5008_v18, %v16251_v42  ;;  %v5010_v62 = vpop.f32.mrb[25].mxu1  ;;  %6161 = vmatmul.mubr.f32.gmra.mrb[130].mxu1 %v13788_v23  ;;  %8196 = vmatprep.subr.bf16.mxu0 %v16286_v16  ;;  %v16290_v16 = vld [vmem:[#allocation195_spill] sm:$0xff] }
 0x6c2   : > { %v5011_v17 = vadd.f32 %v5010_v62, %v16253_v61  ;;  %5642 = vmatprep.mubr.f32.mxu0 %v5429_v47  ;;  %6166 = vmatprep.mubr.f32.mxu1 %v13798_v34 }
 0x6c3   : > { %5643 = vmatmul.mubr.f32.gmra.mrb[86].mxu0 %v5428_v10  ;;  %8286 = vmatpush1.bf16.msra.mxu1 %v16287_v14  ;;  %v5432_v18 = vmax.f32 %v5009_v25, 0.0  ;;  %v16291_v10 = vld [vmem:[#allocation196_spill] sm:$0xff]  ;;  %v16292_v14 = vld [vmem:[#allocation197_spill] sm:$0xff]  ;;  %v16293_v25 = vld [vmem:[#allocation198_spill] sm:$0xff] }
 0x6c4   : > { %v5433_v35 = vmax.f32 %v5011_v17, 0.0  ;;  %v5014_v44 = vpop.f32.mrb[26].mxu1  ;;  %8288 = vmatprep.subr.bf16.mxu1 %v16288_v9  ;;  %8198 = vmatpush1.bf16.msra.mxu0 %v16289_v5 }
 0x6c5   : > { %v5015_v28 = vadd.f32 %v5014_v44, %v16251_v42  ;;  %v5016_v19 = vpop.f32.mrb[27].mxu1  ;;  %6167 = vmatmul.mubr.f32.gmra.mrb[132].mxu1 %v13801_v7  ;;  %8200 = vmatprep.subr.bf16.mxu0 %v16290_v16  ;;  %v16294_v16 = vld [vmem:[#allocation199_spill] sm:$0xff] }
 0x6c6   : > { %v5017_v47 = vadd.f32 %v5016_v19, %v16253_v61  ;;  %5648 = vmatprep.mubr.f32.mxu0 %v5433_v35  ;;  %6172 = vmatprep.mubr.f32.mxu1 %v13812_v22 }
 0x6c7   : > { %5649 = vmatmul.mubr.f32.gmra.mrb[88].mxu0 %v5432_v18  ;;  %8290 = vmatpush1.bf16.msra.mxu1 %v16291_v10  ;;  %v5436_v44 = vmax.f32 %v5015_v28, 0.0  ;;  %v16295_v18 = vld [vmem:[#allocation200_spill] sm:$0xff]  ;;  %v16296_v10 = vld [vmem:[#allocation201_spill] sm:$0xff]  ;;  %v16297_v28 = vld [vmem:[#allocation202_spill] sm:$0xff] }
 0x6c8   : > { %v5437_v62 = vmax.f32 %v5017_v47, 0.0  ;;  %v5020_v17 = vpop.f32.mrb[28].mxu1  ;;  %8292 = vmatprep.subr.bf16.mxu1 %v16292_v14  ;;  %8202 = vmatpush1.bf16.msra.mxu0 %v16293_v25 }
 0x6c9   : > { %v5021_v9 = vadd.f32 %v5020_v17, %v16251_v42  ;;  %v5022_v5 = vpop.f32.mrb[29].mxu1  ;;  %6173 = vmatmul.mubr.f32.gmra.mrb[134].mxu1 %v13815_v43  ;;  %8204 = vmatprep.subr.bf16.mxu0 %v16294_v16  ;;  %v16298_v16 = vld [vmem:[#allocation203_spill] sm:$0xff] }
 0x6ca   : > { %v5023_v35 = vadd.f32 %v5022_v5, %v16253_v61  ;;  %5654 = vmatprep.mubr.f32.mxu0 %v5437_v62  ;;  %6178 = vmatprep.mubr.f32.mxu1 %v13826_v3 }
 0x6cb   : > { %5655 = vmatmul.mubr.f32.gmra.mrb[90].mxu0 %v5436_v44  ;;  %8294 = vmatpush1.bf16.msra.mxu1 %v16295_v18  ;;  %v5440_v17 = vmax.f32 %v5021_v9, 0.0  ;;  %v16299_v44 = vld [vmem:[#allocation204_spill] sm:$0xff]  ;;  %v16300_v18 = vld [vmem:[#allocation205_spill] sm:$0xff]  ;;  %v16301_v9 = vld [vmem:[#allocation206_spill] sm:$0xff] }
 0x6cc   : > { %v5441_v19 = vmax.f32 %v5023_v35, 0.0  ;;  %v5026_v47 = vpop.f32.mrb[30].mxu1  ;;  %8296 = vmatprep.subr.bf16.mxu1 %v16296_v10  ;;  %8206 = vmatpush1.bf16.msra.mxu0 %v16297_v28 }
 0x6cd   : > { %v5027_v14 = vadd.f32 %v5026_v47, %v16251_v42  ;;  %v5028_v25 = vpop.f32.mrb[31].mxu1  ;;  %6179 = vmatmul.mubr.f32.gmra.mrb[136].mxu1 %v13829_v8  ;;  %8208 = vmatprep.subr.bf16.mxu0 %v16298_v16  ;;  %v16302_v16 = vld [vmem:[#allocation207_spill] sm:$0xff] }
 0x6ce   : > { %v5029_v62 = vadd.f32 %v5028_v25, %v16253_v61  ;;  %5660 = vmatprep.mubr.f32.mxu0 %v5441_v19  ;;  %6184 = vmatprep.mubr.f32.mxu1 %v13840_v41 }
 0x6cf   : > { %5661 = vmatmul.mubr.f32.gmra.mrb[92].mxu0 %v5440_v17  ;;  %8298 = vmatpush1.bf16.msra.mxu1 %v16299_v44  ;;  %v5444_v47 = vmax.f32 %v5027_v14, 0.0  ;;  %v16303_v17 = vld [vmem:[#allocation208_spill] sm:$0xff]  ;;  %v16304_v44 = vld [vmem:[#allocation209_spill] sm:$0xff]  ;;  %v16305_v14 = vld [vmem:[#allocation210_spill] sm:$0xff] }
 0x6d0   : > { %v5445_v5 = vmax.f32 %v5029_v62, 0.0  ;;  %v5032_v35 = vpop.f32.mrb[32].mxu1  ;;  %8300 = vmatprep.subr.bf16.mxu1 %v16300_v18  ;;  %8210 = vmatpush1.bf16.msra.mxu0 %v16301_v9 }
 0x6d1   : > { %v5033_v10 = vadd.f32 %v5032_v35, %v16251_v42  ;;  %v5034_v28 = vpop.f32.mrb[33].mxu1  ;;  %6185 = vmatmul.mubr.f32.gmra.mrb[138].mxu1 %v13843_v56  ;;  %8212 = vmatprep.subr.bf16.mxu0 %v16302_v16  ;;  %v16306_v16 = vld [vmem:[#allocation211_spill] sm:$0xff] }
 0x6d2   : > { %v5035_v19 = vadd.f32 %v5034_v28, %v16253_v61  ;;  %5666 = vmatprep.mubr.f32.mxu0 %v5445_v5  ;;  %6190 = vmatprep.mubr.f32.mxu1 %v13854_v48 }
 0x6d3   : > { %5667 = vmatmul.mubr.f32.gmra.mrb[94].mxu0 %v5444_v47  ;;  %8302 = vmatpush1.bf16.msra.mxu1 %v16303_v17  ;;  %v5448_v35 = vmax.f32 %v5033_v10, 0.0  ;;  %v16307_v47 = vld [vmem:[#allocation212_spill] sm:$0xff]  ;;  %v16308_v17 = vld [vmem:[#allocation213_spill] sm:$0xff] }
 0x6d4   : > { %v5449_v25 = vmax.f32 %v5035_v19, 0.0  ;;  %v5038_v62 = vpop.f32.mrb[34].mxu1  ;;  %8304 = vmatprep.subr.bf16.mxu1 %v16304_v44  ;;  %8214 = vmatpush1.bf16.msra.mxu0 %v16305_v14 }
 0x6d5   : > { %v5039_v18 = vadd.f32 %v5038_v62, %v16251_v42  ;;  %v5040_v9 = vpop.f32.mrb[35].mxu1  ;;  %6191 = vmatmul.mubr.f32.gmra.mrb[140].mxu1 %v13857_v2  ;;  %8344 = vmatprep.subr.bf16.mxu0 %v16306_v16  ;;  %v16310_v16 = vld [vmem:[#allocation215_spill] sm:$0xff] }
 0x6d6   : > { %v5041_v5 = vadd.f32 %v5040_v9, %v16253_v61  ;;  %5672 = vmatprep.mubr.f32.mxu0 %v5449_v25  ;;  %6196 = vmatprep.mubr.f32.mxu1 %v13868_v37  ;;  %v16309_v25 = vld [vmem:[#allocation214_spill] sm:$0xff] }
 0x6d7   : > { %5673 = vmatmul.mubr.f32.gmra.mrb[96].mxu0 %v5448_v35  ;;  %8306 = vmatpush1.bf16.msra.mxu1 %v16307_v47  ;;  %v5452_v10 = vmax.f32 %v5039_v18, 0.0 }
 0x6d8   : > { %v5453_v28 = vmax.f32 %v5041_v5, 0.0  ;;  %v5044_v19 = vpop.f32.mrb[36].mxu1  ;;  %8308 = vmatprep.subr.bf16.mxu1 %v16308_v17 }
 0x6d9   : > { %v5045_v62 = vadd.f32 %v5044_v19, %v16251_v42  ;;  %v5046_v44 = vpop.f32.mrb[37].mxu1  ;;  %6197 = vmatmul.mubr.f32.gmra.mrb[142].mxu1 %v13871_v32 }
 0x6da   : > { %v5047_v14 = vadd.f32 %v5046_v44, %v16253_v61  ;;  %5678 = vmatprep.mubr.f32.mxu0 %v5453_v28  ;;  %6202 = vmatprep.mubr.f32.mxu1 %v13882_v13  ;;  %v16311_v28 = vld [vmem:[#allocation216_spill] sm:$0xff]  ;;  %v16312_v44 = vld [vmem:[#allocation217_spill] sm:$0xff] }
 0x6db   : > { %5679 = vmatmul.mubr.f32.gmra.mrb[98].mxu0 %v5452_v10  ;;  %8310 = vmatpush1.bf16.msra.mxu1 %v16309_v25  ;;  %v5456_v5 = vmax.f32 %v5045_v62, 0.0 }
 0x6dc   : > { %v5457_v35 = vmax.f32 %v5047_v14, 0.0  ;;  %v5050_v9 = vpop.f32.mrb[38].mxu1  ;;  %8312 = vmatprep.subr.bf16.mxu1 %v16310_v16 }
 0x6dd   : > { %v5051_v18 = vadd.f32 %v5050_v9, %v16251_v42  ;;  %v5052_v47 = vpop.f32.mrb[39].mxu1  ;;  %6203 = vmatmul.mubr.f32.gmra.mrb[144].mxu1 %v13885_v31 }
 0x6de   : > { %v5053_v19 = vadd.f32 %v5052_v47, %v16253_v61  ;;  %5684 = vmatprep.mubr.f32.mxu0 %v5457_v35  ;;  %6208 = vmatprep.mubr.f32.mxu1 %v13896_v38  ;;  %v16313_v35 = vld [vmem:[#allocation84_spill] sm:$0xff]  ;;  %v16314_v47 = vld [vmem:[#allocation218_spill] sm:$0xff] }
 0x6df   : > { %5685 = vmatmul.mubr.f32.gmra.mrb[100].mxu0 %v5456_v5  ;;  %8314 = vmatpush1.bf16.msra.mxu1 %v16311_v28  ;;  %v5460_v14 = vmax.f32 %v5051_v18, 0.0 }
 0x6e0   : > { %v5461_v17 = vmax.f32 %v5053_v19, 0.0  ;;  %v5056_v10 = vpop.f32.mrb[40].mxu1  ;;  %8316 = vmatprep.subr.bf16.mxu1 %v16312_v44 }
 0x6e1   : > { %v5057_v62 = vadd.f32 %v5056_v10, %v16251_v42  ;;  %v5058_v25 = vpop.f32.mrb[41].mxu1  ;;  %6209 = vmatmul.mubr.f32.gmra.mrb[146].mxu1 %v13899_v49 }
 0x6e2   : > { %v5059_v9 = vadd.f32 %v5058_v25, %v16253_v61  ;;  %5690 = vmatprep.mubr.f32.mxu0 %v5461_v17  ;;  %6214 = vmatprep.mubr.f32.mxu1 %v13910_v59  ;;  %v16315_v17 = vld [vmem:[#allocation85_spill] sm:$0xff]  ;;  %v16316_v25 = vld [vmem:[#allocation88_spill] sm:$0xff] }
 0x6e3   : > { %5691 = vmatmul.mubr.f32.gmra.mrb[102].mxu0 %v5460_v14  ;;  %8318 = vmatpush1.bf16.msra.mxu1 %v16313_v35  ;;  %v5464_v19 = vmax.f32 %v5057_v62, 0.0 }
 0x6e4   : > { %v5465_v16 = vmax.f32 %v5059_v9, 0.0  ;;  %v5062_v5 = vpop.f32.mrb[42].mxu1  ;;  %8320 = vmatprep.subr.bf16.mxu1 %v16314_v47 }
 0x6e5   : > { %v5063_v18 = vadd.f32 %v5062_v5, %v16251_v42  ;;  %v5064_v28 = vpop.f32.mrb[43].mxu1  ;;  %6215 = vmatmul.mubr.f32.gmra.mrb[148].mxu1 %v13913_v26 }
 0x6e6   : > { %v5065_v10 = vadd.f32 %v5064_v28, %v16253_v61  ;;  %5696 = vmatprep.mubr.f32.mxu0 %v5465_v16  ;;  %6220 = vmatprep.mubr.f32.mxu1 %v13924_v57  ;;  %v16317_v16 = vld [vmem:[#allocation89_spill] sm:$0xff] }
 0x6e7   : > { %5697 = vmatmul.mubr.f32.gmra.mrb[104].mxu0 %v5464_v19  ;;  %8322 = vmatpush1.bf16.msra.mxu1 %v16315_v17  ;;  %v5468_v9 = vmax.f32 %v5063_v18, 0.0  ;;  %v16318_v28 = vld [vmem:[#allocation93_spill] sm:$0xff] }
 0x6e8   : > { %v5469_v44 = vmax.f32 %v5065_v10, 0.0  ;;  %v5068_v14 = vpop.f32.mrb[44].mxu1  ;;  %8324 = vmatprep.subr.bf16.mxu1 %v16316_v25 }
 0x6e9   : > { %v5069_v62 = vadd.f32 %v5068_v14, %v16251_v42  ;;  %v5070_v35 = vpop.f32.mrb[45].mxu1  ;;  %6221 = vmatmul.mubr.f32.gmra.mrb[150].mxu1 %v13927_v40 }
 0x6ea   : > { %v5071_v5 = vadd.f32 %v5070_v35, %v16253_v61  ;;  %5702 = vmatprep.mubr.f32.mxu0 %v5469_v44  ;;  %6226 = vmatprep.mubr.f32.mxu1 %v13938_v1  ;;  %v16319_v44 = vld [vmem:[#allocation95_spill] sm:$0xff] }
 0x6eb   : > { %5703 = vmatmul.mubr.f32.gmra.mrb[106].mxu0 %v5468_v9  ;;  %8326 = vmatpush1.bf16.msra.mxu1 %v16317_v16  ;;  %v5472_v10 = vmax.f32 %v5069_v62, 0.0  ;;  %v16320_v35 = vld [vmem:[#allocation219_spill] sm:$0xff] }
 0x6ec   : > { %v5473_v47 = vmax.f32 %v5071_v5, 0.0  ;;  %v5074_v19 = vpop.f32.mrb[46].mxu1  ;;  %8328 = vmatprep.subr.bf16.mxu1 %v16318_v28 }
 0x6ed   : > { %v5075_v18 = vadd.f32 %v5074_v19, %v16251_v42  ;;  %v5076_v17 = vpop.f32.mrb[47].mxu1  ;;  %6227 = vmatmul.mubr.f32.gmra.mrb[152].mxu1 %v13941_v20 }
 0x6ee   : > { %v5077_v14 = vadd.f32 %v5076_v17, %v16253_v61  ;;  %5708 = vmatprep.mubr.f32.mxu0 %v5473_v47  ;;  %6232 = vmatprep.mubr.f32.mxu1 %v13952_v11  ;;  %v16321_v47 = vld [vmem:[#allocation220_spill] sm:$0xff]  ;;  %v16322_v17 = vld [vmem:[#allocation221_spill] sm:$0xff] }
 0x6ef   : > { %5709 = vmatmul.mubr.f32.gmra.mrb[108].mxu0 %v5472_v10  ;;  %8330 = vmatpush1.bf16.msra.mxu1 %v16319_v44  ;;  %v5476_v5 = vmax.f32 %v5075_v18, 0.0 }
 0x6f0   : > { %v5477_v25 = vmax.f32 %v5077_v14, 0.0  ;;  %v5080_v9 = vpop.f32.mrb[48].mxu1  ;;  %8332 = vmatprep.subr.bf16.mxu1 %v16320_v35 }
 0x6f1   : > { %v5081_v62 = vadd.f32 %v5080_v9, %v16251_v42  ;;  %v5082_v16 = vpop.f32.mrb[49].mxu1  ;;  %6233 = vmatmul.mubr.f32.gmra.mrb[154].mxu1 %v13955_v30 }
 0x6f2   : > { %v5083_v19 = vadd.f32 %v5082_v16, %v16253_v61  ;;  %5714 = vmatprep.mubr.f32.mxu0 %v5477_v25  ;;  %6238 = vmatprep.mubr.f32.mxu1 %v13966_v52  ;;  %v16323_v25 = vld [vmem:[#allocation104_spill] sm:$0xff]  ;;  %v16324_v16 = vld [vmem:[#allocation222_spill] sm:$0xff] }
 0x6f3   : > { %5715 = vmatmul.mubr.f32.gmra.mrb[110].mxu0 %v5476_v5  ;;  %8334 = vmatpush1.bf16.msra.mxu1 %v16321_v47  ;;  %v5480_v14 = vmax.f32 %v5081_v62, 0.0 }
 0x6f4   : > { %v5481_v28 = vmax.f32 %v5083_v19, 0.0  ;;  %v5086_v10 = vpop.f32.mrb[50].mxu1  ;;  %8336 = vmatprep.subr.bf16.mxu1 %v16322_v17 }
 0x6f5   : > { %v5087_v18 = vadd.f32 %v5086_v10, %v16251_v42  ;;  %v5088_v44 = vpop.f32.mrb[51].mxu1  ;;  %6239 = vmatmul.mubr.f32.gmra.mrb[156].mxu1 %v13969_v53 }
 0x6f6   : > { %v5089_v9 = vadd.f32 %v5088_v44, %v16253_v61  ;;  %5720 = vmatprep.mubr.f32.mxu0 %v5481_v28  ;;  %6244 = vmatprep.mubr.f32.mxu1 %v13980_v55  ;;  %v16325_v28 = vld [vmem:[#allocation223_spill] sm:$0xff] }
 0x6f7   : > { %5721 = vmatmul.mubr.f32.gmra.mrb[112].mxu0 %v5480_v14  ;;  %8338 = vmatpush1.bf16.msra.mxu1 %v16323_v25  ;;  %v5484_v19 = vmax.f32 %v5087_v18, 0.0 }
 0x6f8   : > { %v5485_v35 = vmax.f32 %v5089_v9, 0.0  ;;  %v5092_v5 = vpop.f32.mrb[52].mxu1  ;;  %8340 = vmatprep.subr.bf16.mxu1 %v16324_v16 }
 0x6f9   : > { %v5093_v62 = vadd.f32 %v5092_v5, %v16251_v42  ;;  %v5094_v47 = vpop.f32.mrb[53].mxu1  ;;  %6245 = vmatmul.mubr.f32.gmra.mrb[158].mxu1 %v13983_v39 }
 0x6fa   : > { %v5095_v10 = vadd.f32 %v5094_v47, %v16253_v61  ;;  %5726 = vmatprep.mubr.f32.mxu0 %v5485_v35  ;;  %6250 = vmatprep.mubr.f32.mxu1 %v13994_v51 }
 0x6fb   : > { %5727 = vmatmul.mubr.f32.gmra.mrb[114].mxu0 %v5484_v19  ;;  %8342 = vmatpush1.bf16.msra.mxu1 %v16325_v28  ;;  %v5488_v44 = vmax.f32 %v5093_v62, 0.0 }
 0x6fc   : > { %v5489_v17 = vmax.f32 %v5095_v10, 0.0  ;;  %v5098_v14 = vpop.f32.mrb[54].mxu1  ;;  %v16326_v10 = vld [vmem:[#allocation38_spill] sm:$0xff] }
 0x6fd   : > { %v5099_v9 = vadd.f32 %v5098_v14, %v16251_v42  ;;  %v5100_v25 = vpop.f32.mrb[55].mxu1  ;;  %6251 = vmatmul.mubr.f32.gmra.mrb[160].mxu1 %v13997_v33 }
 0x6fe   : > { %v5101_v18 = vadd.f32 %v5100_v25, %v16253_v61  ;;  %5732 = vmatprep.mubr.f32.mxu0 %v5489_v17  ;;  %6256 = vmatprep.mubr.f32.mxu1 %v14008_v4  ;;  %v16333_v4 = vld [vmem:[#allocation59_spill] sm:$0xff] }
 0x6ff   : > { %5733 = vmatmul.mubr.f32.gmra.mrb[116].mxu0 %v5488_v44  ;;  %v5492_v16 = vmax.f32 %v5099_v9, 0.0 }
 0x700   : > { %v5493_v35 = vmax.f32 %v5101_v18, 0.0  ;;  %v5104_v5 = vpop.f32.mrb[56].mxu1  ;;  %v16327_v18 = vld [vmem:[#allocation64_spill] sm:$0xff] }
 0x701   : > { %v5105_v19 = vadd.f32 %v5104_v5, %v16251_v42  ;;  %v5106_v47 = vpop.f32.mrb[57].mxu1  ;;  %6257 = vmatmul.mubr.f32.gmra.mrb[162].mxu1 %v14011_v36  ;;  %v16328_v5 = vld [vmem:[#allocation67_spill] sm:$0xff] }
 0x702   : > { %v5107_v62 = vadd.f32 %v5106_v47, %v16253_v61  ;;  %5738 = vmatprep.mubr.f32.mxu0 %v5493_v35  ;;  %6262 = vmatprep.mubr.f32.mxu1 %v16326_v10 }
 0x703   : > { %5739 = vmatmul.mubr.f32.gmra.mrb[118].mxu0 %v5492_v16  ;;  %v5496_v17 = vmax.f32 %v5105_v19, 0.0 }
 0x704   : > { %v5497_v28 = vmax.f32 %v5107_v62, 0.0  ;;  %v5110_v14 = vpop.f32.mrb[58].mxu1  ;;  %v16329_v62 = vld [vmem:[#allocation68_spill] sm:$0xff] }
 0x705   : > { %v5111_v25 = vadd.f32 %v5110_v14, %v16251_v42  ;;  %v5112_v44 = vpop.f32.mrb[59].mxu1  ;;  %6263 = vmatmul.mubr.f32.gmra.mrb[164].mxu1 %v16327_v18  ;;  %v16330_v14 = vld [vmem:[#allocation71_spill] sm:$0xff] }
 0x706   : > { %v5113_v9 = vadd.f32 %v5112_v44, %v16253_v61  ;;  %5744 = vmatprep.mubr.f32.mxu0 %v5497_v28  ;;  %6268 = vmatprep.mubr.f32.mxu1 %v16328_v5 }
 0x707   : > { %5745 = vmatmul.mubr.f32.gmra.mrb[120].mxu0 %v5496_v17  ;;  %v5500_v35 = vmax.f32 %v5111_v25, 0.0 }
 0x708   : > { %v5501_v36 = vmax.f32 %v5113_v9, 0.0  ;;  %v5116_v47 = vpop.f32.mrb[60].mxu1  ;;  %v16331_v9 = vld [vmem:[#allocation72_spill] sm:$0xff] }
 0x709   : > { %v5117_v10 = vadd.f32 %v5116_v47, %v16251_v42  ;;  %v5118_v16 = vpop.f32.mrb[61].mxu1  ;;  %6269 = vmatmul.mubr.f32.gmra.mrb[166].mxu1 %v16329_v62  ;;  %v16332_v47 = vld [vmem:[#allocation41_spill] sm:$0xff] }
 0x70a   : > { %v5119_v19 = vadd.f32 %v5118_v16, %v16253_v61  ;;  %5750 = vmatprep.mubr.f32.mxu0 %v5501_v36  ;;  %6274 = vmatprep.mubr.f32.mxu1 %v16330_v14 }
 0x70b   : > { %5751 = vmatmul.mubr.f32.gmra.mrb[122].mxu0 %v5500_v35  ;;  %v5504_v28 = vmax.f32 %v5117_v10, 0.0  ;;  %v16335_v10 = vld [vmem:[#allocation60_spill] sm:$0xff] }
 0x70c   : > { %v5505_v18 = vmax.f32 %v5119_v19, 0.0  ;;  %v5122_v44 = vpop.f32.mrb[62].mxu1  ;;  %v16334_v19 = vld [vmem:[#allocation40_spill] sm:$0xff] }
 0x70d   : > { %v5123_v5 = vadd.f32 %v5122_v44, %v16251_v42  ;;  %v5124_v17 = vpop.f32.mrb[63].mxu1  ;;  %6275 = vmatmul.mubr.f32.gmra.mrb[168].mxu1 %v16331_v9  ;;  %v16336_v42 = vld [vmem:[#allocation43_spill] sm:$0xff] }
 0x70e   : > { %v5125_v25 = vadd.f32 %v5124_v17, %v16253_v61  ;;  %5756 = vmatprep.mubr.f32.mxu0 %v5505_v18  ;;  %6280 = vmatprep.mubr.f32.mxu1 %v16332_v47 }
 0x70f   : > { %5757 = vmatmul.mubr.f32.gmra.mrb[124].mxu0 %v5504_v28  ;;  %v5508_v36 = vmax.f32 %v5123_v5, 0.0 }
 0x710   : > { %v5509_v62 = vmax.f32 %v5125_v25, 0.0  ;;  %v5193_v16 = vpop.f32.mrb[64].mxu1  ;;  %v16337_v25 = vld [vmem:[#allocation42_spill] sm:$0xff] }
 0x711   : > { %v5194_v14 = vadd.f32 %v5193_v16, %v16333_v4  ;;  %v5195_v35 = vpop.f32.mrb[65].mxu1  ;;  %6281 = vmatmul.mubr.f32.gmra.mrb[170].mxu1 %v16334_v19  ;;  %v16338_v16 = vld [vmem:[#allocation75_spill] sm:$0xff] }
 0x712   : > { %v5196_v33 = vadd.f32 %v5195_v35, %v16335_v10  ;;  %5762 = vmatprep.mubr.f32.mxu0 %v5509_v62  ;;  %6286 = vmatprep.mubr.f32.mxu1 %v16336_v42  ;;  %v16339_v35 = vld [vmem:[#allocation17_spill] sm:$0xff] }
 0x713   : > { %5763 = vmatmul.mubr.f32.gmra.mrb[126].mxu0 %v5508_v36  ;;  %v5386_v18 = vmax.f32 %v5194_v14, 0.0  ;;  %v16340_v14 = vld [vmem:[#allocation118_spill] sm:$0xff] }
 0x714   : > { %v5387_v44 = vmax.f32 %v5196_v33, 0.0  ;;  %v5199_v61 = vpop.f32.mrb[66].mxu1 }
 0x715   : > { %v5200_v17 = vadd.f32 %v5199_v61, %v16333_v4  ;;  %v5201_v28 = vpop.f32.mrb[67].mxu1  ;;  %6287 = vmatmul.mubr.f32.gmra.mrb[172].mxu1 %v16337_v25 }
 0x716   : > { %v5202_v5 = vadd.f32 %v5201_v28, %v16335_v10  ;;  %5833 = vmatprep.mubr.f32.mxu0 %v5387_v44  ;;  %6292 = vmatprep.mubr.f32.mxu1 %v16338_v16  ;;  %v16341_v28 = vld [vmem:[#allocation77_spill] sm:$0xff] }
 0x717   : > { %5834 = vmatmul.mubr.f32.vlgmr.msra.gmra.mrb[64].mxu0 %v5386_v18  ;;  %v5390_v42 = vmax.f32 %v5200_v17, 0.0 }
 0x718   : > { %v5391_v19 = vmax.f32 %v5202_v5, 0.0  ;;  %8346 = vmatpush1.bf16.msra.mxu0 %v16339_v35  ;;  %v5205_v62 = vpop.f32.mrb[68].mxu1  ;;  %v16342_v5 = vld [vmem:[#allocation224_spill] sm:$0xff] }
 0x719   : > { %v5206_v33 = vadd.f32 %v5205_v62, %v16333_v4  ;;  %v5207_v36 = vpop.f32.mrb[69].mxu1  ;;  %6293 = vmatmul.mubr.f32.gmra.mrb[174].mxu1 %v16258_v21  ;;  %8348 = vmatprep.subr.bf16.mxu0 %v16340_v14  ;;  %v16343_v62 = vld [vmem:[#allocation225_spill] sm:$0xff] }
 0x71a   : > { %v5208_v61 = vadd.f32 %v5207_v36, %v16335_v10  ;;  %5839 = vmatprep.mubr.f32.mxu0 %v5391_v19  ;;  %6298 = vmatprep.mubr.f32.mxu1 %v16341_v28  ;;  %v16344_v36 = vld [vmem:[#allocation226_spill] sm:$0xff] }
 0x71b   : > { %5840 = vmatmul.mubr.f32.gmra.mrb[66].mxu0 %v5390_v42  ;;  %v5394_v35 = vmax.f32 %v5206_v33, 0.0 }
 0x71c   : > { %v5395_v44 = vmax.f32 %v5208_v61, 0.0  ;;  %v5211_v18 = vpop.f32.mrb[70].mxu1  ;;  %8350 = vmatpush1.bf16.msra.mxu0 %v16342_v5 }
 0x71d   : > { %v5212_v17 = vadd.f32 %v5211_v18, %v16333_v4  ;;  %v5213_v16 = vpop.f32.mrb[71].mxu1  ;;  %6299 = vmatmul.mubr.f32.gmra.mrb[176].mxu1 %v16261_v46  ;;  %8352 = vmatprep.subr.bf16.mxu0 %v16343_v62  ;;  %v16345_v18 = vld [vmem:[#allocation227_spill] sm:$0xff]  ;;  %v16349_v46 = vld [vmem:[#allocation229_spill] sm:$0xff] }
 0x71e   : > { %v5214_v14 = vadd.f32 %v5213_v16, %v16335_v10  ;;  %5845 = vmatprep.mubr.f32.mxu0 %v5395_v44  ;;  %6304 = vmatprep.mubr.f32.mxu1 %v14104_v45  ;;  %v16346_v16 = vld [vmem:[#allocation82_spill] sm:$0xff] }
 0x71f   : > { %5846 = vmatmul.mubr.f32.gmra.mrb[68].mxu0 %v5394_v35  ;;  %v5398_v61 = vmax.f32 %v5212_v17, 0.0 }
 0x720   : > { %v5399_v19 = vmax.f32 %v5214_v14, 0.0  ;;  %v5217_v42 = vpop.f32.mrb[72].mxu1  ;;  %8354 = vmatpush1.bf16.msra.mxu0 %v16344_v36  ;;  %v16347_v14 = vld [vmem:[#allocation228_spill] sm:$0xff] }
 0x721   : > { %v5218_v33 = vadd.f32 %v5217_v42, %v16333_v4  ;;  %v5219_v5 = vpop.f32.mrb[73].mxu1  ;;  %6305 = vmatmul.mubr.f32.gmra.mrb[178].mxu1 %v16264_v58  ;;  %8356 = vmatprep.subr.bf16.mxu0 %v16345_v18  ;;  %v16348_v42 = vld [vmem:[#allocation83_spill] sm:$0xff] }
 0x722   : > { %v5220_v62 = vadd.f32 %v5219_v5, %v16335_v10  ;;  %5851 = vmatprep.mubr.f32.mxu0 %v5399_v19  ;;  %6310 = vmatprep.mubr.f32.mxu1 %v16346_v16  ;;  %v16350_v5 = vld [vmem:[#allocation86_spill] sm:$0xff] }
 0x723   : > { %5852 = vmatmul.mubr.f32.gmra.mrb[70].mxu0 %v5398_v61  ;;  %v5402_v45 = vmax.f32 %v5218_v33, 0.0 }
 0x724   : > { %v5403_v44 = vmax.f32 %v5220_v62, 0.0  ;;  %v5223_v35 = vpop.f32.mrb[74].mxu1  ;;  %8358 = vmatpush1.bf16.msra.mxu0 %v16347_v14  ;;  %v16351_v62 = vld [vmem:[#allocation230_spill] sm:$0xff] }
 0x725   : > { %v5224_v17 = vadd.f32 %v5223_v35, %v16333_v4  ;;  %v5225_v36 = vpop.f32.mrb[75].mxu1  ;;  %6311 = vmatmul.mubr.f32.gmra.mrb[180].mxu1 %v16348_v42  ;;  %8360 = vmatprep.subr.bf16.mxu0 %v16349_v46  ;;  %v16352_v35 = vld [vmem:[#allocation135_spill] sm:$0xff] }
 0x726   : > { %v5226_v18 = vadd.f32 %v5225_v36, %v16335_v10  ;;  %5857 = vmatprep.mubr.f32.mxu0 %v5403_v44  ;;  %6316 = vmatprep.mubr.f32.mxu1 %v16350_v5  ;;  %v16353_v36 = vld [vmem:[#allocation231_spill] sm:$0xff] }
 0x727   : > { %5858 = vmatmul.mubr.f32.gmra.mrb[72].mxu0 %v5402_v45  ;;  %v5406_v16 = vmax.f32 %v5224_v17, 0.0 }
 0x728   : > { %v5407_v19 = vmax.f32 %v5226_v18, 0.0  ;;  %v5229_v61 = vpop.f32.mrb[76].mxu1  ;;  %8362 = vmatpush1.bf16.msra.mxu0 %v16351_v62 }
 0x729   : > { %v5230_v33 = vadd.f32 %v5229_v61, %v16333_v4  ;;  %v5231_v14 = vpop.f32.mrb[77].mxu1  ;;  %6317 = vmatmul.mubr.f32.gmra.mrb[182].mxu1 %v16269_v50  ;;  %8364 = vmatprep.subr.bf16.mxu0 %v16352_v35  ;;  %v16354_v61 = vld [vmem:[#allocation232_spill] sm:$0xff] }
 0x72a   : > { %v5232_v46 = vadd.f32 %v5231_v14, %v16335_v10  ;;  %5863 = vmatprep.mubr.f32.mxu0 %v5407_v19  ;;  %6322 = vmatprep.mubr.f32.mxu1 %v16271_v54  ;;  %v16355_v14 = vld [vmem:[#allocation233_spill] sm:$0xff] }
 0x72b   : > { %5864 = vmatmul.mubr.f32.gmra.mrb[74].mxu0 %v5406_v16  ;;  %v5410_v18 = vmax.f32 %v5230_v33, 0.0 }
 0x72c   : > { %v5411_v44 = vmax.f32 %v5232_v46, 0.0  ;;  %v5235_v45 = vpop.f32.mrb[78].mxu1  ;;  %8366 = vmatpush1.bf16.msra.mxu0 %v16353_v36 }
 0x72d   : > { %v5236_v17 = vadd.f32 %v5235_v45, %v16333_v4  ;;  %v5237_v62 = vpop.f32.mrb[79].mxu1  ;;  %6323 = vmatmul.mubr.f32.gmra.mrb[184].mxu1 %v16273_v60  ;;  %8368 = vmatprep.subr.bf16.mxu0 %v16354_v61  ;;  %v16356_v45 = vld [vmem:[#allocation234_spill] sm:$0xff] }
 0x72e   : > { %v5238_v35 = vadd.f32 %v5237_v62, %v16335_v10  ;;  %5869 = vmatprep.mubr.f32.mxu0 %v5411_v44  ;;  %6328 = vmatprep.mubr.f32.mxu1 %v14152_v12  ;;  %v16357_v62 = vld [vmem:[#allocation235_spill] sm:$0xff] }
 0x72f   : > { %5870 = vmatmul.mubr.f32.gmra.mrb[76].mxu0 %v5410_v18  ;;  %v5414_v46 = vmax.f32 %v5236_v17, 0.0 }
 0x730   : > { %v5415_v19 = vmax.f32 %v5238_v35, 0.0  ;;  %v5241_v16 = vpop.f32.mrb[80].mxu1  ;;  %8370 = vmatpush1.bf16.msra.mxu0 %v16355_v14 }
 0x731   : > { %v5242_v33 = vadd.f32 %v5241_v16, %v16333_v4  ;;  %v5243_v36 = vpop.f32.mrb[81].mxu1  ;;  %6329 = vmatmul.mubr.f32.gmra.mrb[186].mxu1 %v14155_v6  ;;  %8372 = vmatprep.subr.bf16.mxu0 %v16356_v45  ;;  %v16358_v16 = vld [vmem:[#allocation236_spill] sm:$0xff] }
 0x732   : > { %v5244_v61 = vadd.f32 %v5243_v36, %v16335_v10  ;;  %5875 = vmatprep.mubr.f32.mxu0 %v5415_v19  ;;  %6334 = vmatprep.mubr.f32.mxu1 %v14164_v0  ;;  %v16359_v36 = vld [vmem:[#allocation237_spill] sm:$0xff]  ;;  %v16361_v0 = vld [vmem:[#allocation238_spill] sm:$0xff] }
 0x733   : > { %5876 = vmatmul.mubr.f32.gmra.mrb[78].mxu0 %v5414_v46  ;;  %v5418_v35 = vmax.f32 %v5242_v33, 0.0 }
 0x734   : > { %v5419_v44 = vmax.f32 %v5244_v61, 0.0  ;;  %v5247_v18 = vpop.f32.mrb[82].mxu1  ;;  %8374 = vmatpush1.bf16.msra.mxu0 %v16357_v62 }
 0x735   : > { %v5248_v17 = vadd.f32 %v5247_v18, %v16333_v4  ;;  %v5249_v14 = vpop.f32.mrb[83].mxu1  ;;  %6335 = vmatmul.mubr.f32.gmra.mrb[188].mxu1 %v14167_v15  ;;  %8376 = vmatprep.subr.bf16.mxu0 %v16358_v16  ;;  %v16360_v18 = vld [vmem:[#allocation48_spill] sm:$0xff] }
 0x736   : > { %v5250_v45 = vadd.f32 %v5249_v14, %v16335_v10  ;;  %5881 = vmatprep.mubr.f32.mxu0 %v5419_v44  ;;  %6340 = vmatprep.mubr.f32.mxu1 %v14175_v29  ;;  %v16362_v14 = vld [vmem:[#allocation239_spill] sm:$0xff] }
 0x737   : > { %5882 = vmatmul.mubr.f32.gmra.mrb[80].mxu0 %v5418_v35  ;;  %v5422_v61 = vmax.f32 %v5248_v17, 0.0 }
 0x738   : > { %v5423_v19 = vmax.f32 %v5250_v45, 0.0  ;;  %v5253_v46 = vpop.f32.mrb[84].mxu1  ;;  %8378 = vmatpush1.bf16.msra.mxu0 %v16359_v36 }
 0x739   : > { %v5254_v33 = vadd.f32 %v5253_v46, %v16333_v4  ;;  %v5255_v62 = vpop.f32.mrb[85].mxu1  ;;  %6341 = vmatmul.mubr.f32.gmra.mrb[190].mxu1 %v16360_v18  ;;  %8380 = vmatprep.subr.bf16.mxu0 %v16361_v0  ;;  %v16363_v46 = vld [vmem:[#allocation141_spill] sm:$0xff] }
 0x73a   : > { %v5256_v16 = vadd.f32 %v5255_v62, %v16335_v10  ;;  %5887 = vmatprep.mubr.f32.mxu0 %v5423_v19  ;;  %6411 = vmatprep.mubr.f32.mxu1 %v13775_v27 }
 0x73b   : > { %5888 = vmatmul.mubr.f32.gmra.mrb[82].mxu0 %v5422_v61  ;;  %v5426_v45 = vmax.f32 %v5254_v33, 0.0  ;;  %v16364_v61 = vld [vmem:[#allocation15_spill] sm:$0xff] }
 0x73c   : > { %v5427_v44 = vmax.f32 %v5256_v16, 0.0  ;;  %v5259_v35 = vpop.f32.mrb[86].mxu1  ;;  %8382 = vmatpush1.bf16.msra.mxu0 %v16362_v14  ;;  %v16366_v14 = vld [vmem:[#allocation18_spill] sm:$0xff] }
 0x73d   : > { %v5260_v17 = vadd.f32 %v5259_v35, %v16333_v4  ;;  %v5261_v36 = vpop.f32.mrb[87].mxu1  ;;  %6412 = vmatmul.mubr.f32.vlgmr.msra.gmra.mrb[192].mxu1 %v13771_v24  ;;  %8384 = vmatprep.subr.bf16.mxu0 %v16363_v46  ;;  %v16365_v35 = vld [vmem:[#allocation240_spill] sm:$0xff]  ;;  %v16367_v46 = vld [vmem:[#allocation19_spill] sm:$0xff] }
 0x73e   : > { %v5262_v0 = vadd.f32 %v5261_v36, %v16335_v10  ;;  %5893 = vmatprep.mubr.f32.mxu0 %v5427_v44  ;;  %6417 = vmatprep.mubr.f32.mxu1 %v13785_v63 }
 0x73f   : > { %5894 = vmatmul.mubr.f32.gmra.mrb[84].mxu0 %v5426_v45  ;;  %v5430_v62 = vmax.f32 %v5260_v17, 0.0 }
 0x740   : > { %v5431_v27 = vmax.f32 %v5262_v0, 0.0  ;;  %v5265_v19 = vpop.f32.mrb[88].mxu1  ;;  %8386 = vmatpush1.bf16.msra.mxu0 %v16364_v61 }
 0x741   : > { %v5266_v33 = vadd.f32 %v5265_v19, %v16333_v4  ;;  %v5267_v16 = vpop.f32.mrb[89].mxu1  ;;  %6418 = vmatmul.mubr.f32.gmra.mrb[194].mxu1 %v13788_v23  ;;  %8388 = vmatprep.subr.bf16.mxu0 %v16365_v35  ;;  %v16370_v35 = vld [vmem:[#allocation21_spill] sm:$0xff] }
 0x742   : > { %v5268_v24 = vadd.f32 %v5267_v16, %v16335_v10  ;;  %5899 = vmatprep.mubr.f32.mxu0 %v5431_v27  ;;  %6423 = vmatprep.mubr.f32.mxu1 %v13798_v34  ;;  %v16368_v27 = vld [vmem:[#allocation69_spill] sm:$0xff] }
 0x743   : > { %5900 = vmatmul.mubr.f32.gmra.mrb[86].mxu0 %v5430_v62  ;;  %v5434_v45 = vmax.f32 %v5266_v33, 0.0  ;;  %v16369_v33 = vld [vmem:[#allocation20_spill] sm:$0xff] }
 0x744   : > { %v5435_v63 = vmax.f32 %v5268_v24, 0.0  ;;  %v5271_v44 = vpop.f32.mrb[90].mxu1  ;;  %8390 = vmatpush1.bf16.msra.mxu0 %v16366_v14  ;;  %v16371_v14 = vld [vmem:[#allocation22_spill] sm:$0xff] }
 0x745   : > { %v5272_v17 = vadd.f32 %v5271_v44, %v16333_v4  ;;  %v5273_v36 = vpop.f32.mrb[91].mxu1  ;;  %6424 = vmatmul.mubr.f32.gmra.mrb[196].mxu1 %v13801_v7  ;;  %8392 = vmatprep.subr.bf16.mxu0 %v16367_v46 }
 0x746   : > { %v5274_v23 = vadd.f32 %v5273_v36, %v16335_v10  ;;  %5905 = vmatprep.mubr.f32.mxu0 %v5435_v63  ;;  %6429 = vmatprep.mubr.f32.mxu1 %v13812_v22 }
 0x747   : > { %5906 = vmatmul.mubr.f32.gmra.mrb[88].mxu0 %v5434_v45  ;;  %v5438_v19 = vmax.f32 %v5272_v17, 0.0  ;;  %v16372_v17 = vld [vmem:[#allocation23_spill] sm:$0xff] }
 0x748   : > { %v5439_v34 = vmax.f32 %v5274_v23, 0.0  ;;  %v5277_v0 = vpop.f32.mrb[92].mxu1  ;;  %8394 = vmatpush1.bf16.msra.mxu0 %v16368_v27  ;;  %v16374_v27 = vld [vmem:[#allocation25_spill] sm:$0xff] }
 0x749   : > { %v5278_v61 = vadd.f32 %v5277_v0, %v16333_v4  ;;  %v5279_v62 = vpop.f32.mrb[93].mxu1  ;;  %6430 = vmatmul.mubr.f32.gmra.mrb[198].mxu1 %v13815_v43  ;;  %8396 = vmatprep.subr.bf16.mxu0 %v16369_v33  ;;  %v16375_v33 = vld [vmem:[#allocation26_spill] sm:$0xff] }
 0x74a   : > { %v5280_v7 = vadd.f32 %v5279_v62, %v16335_v10  ;;  %5911 = vmatprep.mubr.f32.mxu0 %v5439_v34  ;;  %6435 = vmatprep.mubr.f32.mxu1 %v13826_v3  ;;  %v16373_v34 = vld [vmem:[#allocation24_spill] sm:$0xff] }
 0x74b   : > { %5912 = vmatmul.mubr.f32.gmra.mrb[90].mxu0 %v5438_v19  ;;  %v5442_v24 = vmax.f32 %v5278_v61, 0.0 }
 0x74c   : > { %v5443_v22 = vmax.f32 %v5280_v7, 0.0  ;;  %v5283_v16 = vpop.f32.mrb[94].mxu1  ;;  %8398 = vmatpush1.bf16.msra.mxu0 %v16370_v35 }
 0x74d   : > { %v5284_v63 = vadd.f32 %v5283_v16, %v16333_v4  ;;  %v5285_v44 = vpop.f32.mrb[95].mxu1  ;;  %6436 = vmatmul.mubr.f32.gmra.mrb[200].mxu1 %v13829_v8  ;;  %8400 = vmatprep.subr.bf16.mxu0 %v16371_v14 }
 0x74e   : > { %v5286_v43 = vadd.f32 %v5285_v44, %v16335_v10  ;;  %5917 = vmatprep.mubr.f32.mxu0 %v5443_v22  ;;  %6441 = vmatprep.mubr.f32.mxu1 %v13840_v41 }
 0x74f   : > { %5918 = vmatmul.mubr.f32.gmra.mrb[92].mxu0 %v5442_v24  ;;  %v5446_v36 = vmax.f32 %v5284_v63, 0.0 }
 0x750   : > { %v5447_v3 = vmax.f32 %v5286_v43, 0.0  ;;  %v5289_v45 = vpop.f32.mrb[96].mxu1  ;;  %8402 = vmatpush1.bf16.msra.mxu0 %v16372_v17 }
 0x751   : > { %v5290_v46 = vadd.f32 %v5289_v45, %v16333_v4  ;;  %v5291_v23 = vpop.f32.mrb[97].mxu1  ;;  %6442 = vmatmul.mubr.f32.gmra.mrb[202].mxu1 %v13843_v56  ;;  %8404 = vmatprep.subr.bf16.mxu0 %v16373_v34 }
 0x752   : > { %v5292_v8 = vadd.f32 %v5291_v23, %v16335_v10  ;;  %5923 = vmatprep.mubr.f32.mxu0 %v5447_v3  ;;  %6447 = vmatprep.mubr.f32.mxu1 %v13854_v48 }
 0x753   : > { %5924 = vmatmul.mubr.f32.gmra.mrb[94].mxu0 %v5446_v36  ;;  %v5450_v19 = vmax.f32 %v5290_v46, 0.0 }
 0x754   : > { %v5451_v41 = vmax.f32 %v5292_v8, 0.0  ;;  %v5295_v0 = vpop.f32.mrb[98].mxu1  ;;  %8406 = vmatpush1.bf16.msra.mxu0 %v16374_v27 }
 0x755   : > { %v5296_v61 = vadd.f32 %v5295_v0, %v16333_v4  ;;  %v5297_v62 = vpop.f32.mrb[99].mxu1  ;;  %6448 = vmatmul.mubr.f32.gmra.mrb[204].mxu1 %v13857_v2  ;;  %8408 = vmatprep.subr.bf16.mxu0 %v16375_v33 }
 0x756   : > { %v5298_v56 = vadd.f32 %v5297_v62, %v16335_v10  ;;  %5929 = vmatprep.mubr.f32.mxu0 %v5451_v41  ;;  %6453 = vmatprep.mubr.f32.mxu1 %v13868_v37 }
 0x757   : > { %5930 = vmatmul.mubr.f32.gmra.mrb[96].mxu0 %v5450_v19  ;;  %v5454_v22 = vmax.f32 %v5296_v61, 0.0 }
 0x758   : > { %v5455_v48 = vmax.f32 %v5298_v56, 0.0  ;;  %v5301_v7 = vpop.f32.mrb[100].mxu1 }
 0x759   : > { %v5302_v16 = vadd.f32 %v5301_v7, %v16333_v4  ;;  %v5303_v35 = vpop.f32.mrb[101].mxu1  ;;  %6454 = vmatmul.mubr.f32.gmra.mrb[206].mxu1 %v13871_v32 }
 0x75a   : > { %v5304_v24 = vadd.f32 %v5303_v35, %v16335_v10  ;;  %5935 = vmatprep.mubr.f32.mxu0 %v5455_v48  ;;  %6459 = vmatprep.mubr.f32.mxu1 %v13882_v13 }
 0x75b   : > { %5936 = vmatmul.mubr.f32.gmra.mrb[98].mxu0 %v5454_v22  ;;  %v5458_v44 = vmax.f32 %v5302_v16, 0.0 }
 0x75c   : > { %v5459_v2 = vmax.f32 %v5304_v24, 0.0  ;;  %v5307_v63 = vpop.f32.mrb[102].mxu1 }
 0x75d   : > { %v5308_v37 = vadd.f32 %v5307_v63, %v16333_v4  ;;  %v5309_v14 = vpop.f32.mrb[103].mxu1  ;;  %6460 = vmatmul.mubr.f32.gmra.mrb[208].mxu1 %v13885_v31 }
 0x75e   : > { %v5310_v43 = vadd.f32 %v5309_v14, %v16335_v10  ;;  %5941 = vmatprep.mubr.f32.mxu0 %v5459_v2  ;;  %6465 = vmatprep.mubr.f32.mxu1 %v13896_v38 }
 0x75f   : > { %5942 = vmatmul.mubr.f32.gmra.mrb[100].mxu0 %v5458_v44  ;;  %v5462_v45 = vmax.f32 %v5308_v37, 0.0 }
 0x760   : > { %v5463_v32 = vmax.f32 %v5310_v43, 0.0  ;;  %v5313_v3 = vpop.f32.mrb[104].mxu1 }
 0x761   : > { %v5314_v13 = vadd.f32 %v5313_v3, %v16333_v4  ;;  %v5315_v17 = vpop.f32.mrb[105].mxu1  ;;  %6466 = vmatmul.mubr.f32.gmra.mrb[210].mxu1 %v13899_v49 }
 0x762   : > { %v5316_v36 = vadd.f32 %v5315_v17, %v16335_v10  ;;  %5947 = vmatprep.mubr.f32.mxu0 %v5463_v32  ;;  %6471 = vmatprep.mubr.f32.mxu1 %v13910_v59 }
 0x763   : > { %5948 = vmatmul.mubr.f32.gmra.mrb[102].mxu0 %v5462_v45  ;;  %v5466_v23 = vmax.f32 %v5314_v13, 0.0  ;;  %v16376_v13 = vld [vmem:[#allocation13_spill] sm:$0xff] }
 0x764   : > { %v5467_v31 = vmax.f32 %v5316_v36, 0.0  ;;  %v5319_v46 = vpop.f32.mrb[106].mxu1  ;;  %v16377_v36 = vld [vmem:[#allocation12_spill] sm:$0xff] }
 0x765   : > { %v5320_v38 = vadd.f32 %v5319_v46, %v16333_v4  ;;  %v5321_v34 = vpop.f32.mrb[107].mxu1  ;;  %6472 = vmatmul.mubr.f32.gmra.mrb[212].mxu1 %v13913_v26 }
 0x766   : > { %v5322_v8 = vadd.f32 %v5321_v34, %v16335_v10  ;;  %5953 = vmatprep.mubr.f32.mxu0 %v5467_v31  ;;  %6477 = vmatprep.mubr.f32.mxu1 %v13924_v57 }
 0x767   : > { %5954 = vmatmul.mubr.f32.gmra.mrb[104].mxu0 %v5466_v23  ;;  %v5470_v0 = vmax.f32 %v5320_v38, 0.0  ;;  %v16378_v38 = vld [vmem:[#allocation14_spill] sm:$0xff] }
 0x768   : > { %v5471_v49 = vmax.f32 %v5322_v8, 0.0  ;;  %v5325_v41 = vpop.f32.mrb[108].mxu1  ;;  %v16379_v8 = vld [vmem:[#allocation38_spill] sm:$0xff] }
 0x769   : > { %v5326_v59 = vadd.f32 %v5325_v41, %v16333_v4  ;;  %v5327_v27 = vpop.f32.mrb[109].mxu1  ;;  %6478 = vmatmul.mubr.f32.gmra.mrb[214].mxu1 %v13927_v40 }
 0x76a   : > { %v5328_v19 = vadd.f32 %v5327_v27, %v16335_v10  ;;  %5959 = vmatprep.mubr.f32.mxu0 %v5471_v49  ;;  %6483 = vmatprep.mubr.f32.mxu1 %v13938_v1 }
 0x76b   : > { %5960 = vmatmul.mubr.f32.gmra.mrb[106].mxu0 %v5470_v0  ;;  %v5474_v62 = vmax.f32 %v5326_v59, 0.0 }
 0x76c   : > { %v5475_v26 = vmax.f32 %v5328_v19, 0.0  ;;  %v5331_v61 = vpop.f32.mrb[110].mxu1  ;;  %v16380_v19 = vld [vmem:[#allocation64_spill] sm:$0xff] }
 0x76d   : > { %v5332_v57 = vadd.f32 %v5331_v61, %v16333_v4  ;;  %v5333_v33 = vpop.f32.mrb[111].mxu1  ;;  %6484 = vmatmul.mubr.f32.gmra.mrb[216].mxu1 %v13941_v20  ;;  %v16381_v61 = vld [vmem:[#allocation67_spill] sm:$0xff] }
 0x76e   : > { %v5334_v56 = vadd.f32 %v5333_v33, %v16335_v10  ;;  %5965 = vmatprep.mubr.f32.mxu0 %v5475_v26  ;;  %6489 = vmatprep.mubr.f32.mxu1 %v13952_v11 }
 0x76f   : > { %5966 = vmatmul.mubr.f32.gmra.mrb[108].mxu0 %v5474_v62  ;;  %v5478_v7 = vmax.f32 %v5332_v57, 0.0 }
 0x770   : > { %v5479_v40 = vmax.f32 %v5334_v56, 0.0  ;;  %v5337_v48 = vpop.f32.mrb[112].mxu1 }
 0x771   : > { %v5338_v1 = vadd.f32 %v5337_v48, %v16333_v4  ;;  %v5339_v22 = vpop.f32.mrb[113].mxu1  ;;  %6490 = vmatmul.mubr.f32.gmra.mrb[218].mxu1 %v13955_v30  ;;  %v16382_v48 = vld [vmem:[#allocation68_spill] sm:$0xff] }
 0x772   : > { %v5340_v16 = vadd.f32 %v5339_v22, %v16335_v10  ;;  %5971 = vmatprep.mubr.f32.mxu0 %v5479_v40  ;;  %6495 = vmatprep.mubr.f32.mxu1 %v13966_v52 }
 0x773   : > { %5972 = vmatmul.mubr.f32.gmra.mrb[110].mxu0 %v5478_v7  ;;  %v5482_v24 = vmax.f32 %v5338_v1, 0.0  ;;  %v16383_v1 = vld [vmem:[#allocation71_spill] sm:$0xff] }
 0x774   : > { %v5483_v20 = vmax.f32 %v5340_v16, 0.0  ;;  %v5343_v35 = vpop.f32.mrb[114].mxu1 }
 0x775   : > { %v5344_v11 = vadd.f32 %v5343_v35, %v16333_v4  ;;  %v5345_v2 = vpop.f32.mrb[115].mxu1  ;;  %6496 = vmatmul.mubr.f32.gmra.mrb[220].mxu1 %v13969_v53 }
 0x776   : > { %v5346_v63 = vadd.f32 %v5345_v2, %v16335_v10  ;;  %5977 = vmatprep.mubr.f32.mxu0 %v5483_v20  ;;  %6501 = vmatprep.mubr.f32.mxu1 %v13980_v55 }
 0x777   : > { %5978 = vmatmul.mubr.f32.gmra.mrb[112].mxu0 %v5482_v24  ;;  %v5486_v37 = vmax.f32 %v5344_v11, 0.0 }
 0x778   : > { %v5487_v30 = vmax.f32 %v5346_v63, 0.0  ;;  %v5349_v44 = vpop.f32.mrb[116].mxu1 }
 0x779   : > { %v5350_v52 = vadd.f32 %v5349_v44, %v16333_v4  ;;  %v5351_v14 = vpop.f32.mrb[117].mxu1  ;;  %6502 = vmatmul.mubr.f32.gmra.mrb[222].mxu1 %v13983_v39  ;;  %v16384_v44 = vld [vmem:[#allocation27_spill] sm:$0xff] }
 0x77a   : > { %v5352_v43 = vadd.f32 %v5351_v14, %v16335_v10  ;;  %5983 = vmatprep.mubr.f32.mxu0 %v5487_v30  ;;  %6507 = vmatprep.mubr.f32.mxu1 %v13994_v51  ;;  %v16385_v14 = vld [vmem:[#allocation40_spill] sm:$0xff] }
 0x77b   : > { %5984 = vmatmul.mubr.f32.gmra.mrb[114].mxu0 %v5486_v37  ;;  %v5490_v3 = vmax.f32 %v5350_v52, 0.0 }
 0x77c   : > { %v5491_v53 = vmax.f32 %v5352_v43, 0.0  ;;  %v5355_v32 = vpop.f32.mrb[118].mxu1  ;;  %v16386_v43 = vld [vmem:[#allocation28_spill] sm:$0xff] }
 0x77d   : > { %v5356_v55 = vadd.f32 %v5355_v32, %v16333_v4  ;;  %v5357_v45 = vpop.f32.mrb[119].mxu1  ;;  %6508 = vmatmul.mubr.f32.gmra.mrb[224].mxu1 %v16376_v13 }
 0x77e   : > { %v5358_v17 = vadd.f32 %v5357_v45, %v16335_v10  ;;  %5989 = vmatprep.mubr.f32.mxu0 %v5491_v53  ;;  %6513 = vmatprep.mubr.f32.mxu1 %v16377_v36  ;;  %v16388_v45 = vld [vmem:[#allocation75_spill] sm:$0xff] }
 0x77f   : > { %5990 = vmatmul.mubr.f32.gmra.mrb[116].mxu0 %v5490_v3  ;;  %v5494_v46 = vmax.f32 %v5356_v55, 0.0 }
 0x780   : > { %v5495_v39 = vmax.f32 %v5358_v17, 0.0  ;;  %v5361_v31 = vpop.f32.mrb[120].mxu1  ;;  %v16389_v17 = vld [vmem:[#allocation29_spill] sm:$0xff] }
 0x781   : > { %v5362_v51 = vadd.f32 %v5361_v31, %v16333_v4  ;;  %v5363_v23 = vpop.f32.mrb[121].mxu1  ;;  %6514 = vmatmul.mubr.f32.gmra.mrb[226].mxu1 %v16378_v38 }
 0x782   : > { %v5364_v34 = vadd.f32 %v5363_v23, %v16335_v10  ;;  %5995 = vmatprep.mubr.f32.mxu0 %v5495_v39  ;;  %6519 = vmatprep.mubr.f32.mxu1 %v16379_v8 }
 0x783   : > { %5996 = vmatmul.mubr.f32.gmra.mrb[118].mxu0 %v5494_v46  ;;  %v5498_v0 = vmax.f32 %v5362_v51, 0.0  ;;  %v16390_v51 = vld [vmem:[#allocation30_spill] sm:$0xff] }
 0x784   : > { %v5499_v49 = vmax.f32 %v5364_v34, 0.0  ;;  %v5367_v41 = vpop.f32.mrb[122].mxu1  ;;  %v16391_v34 = vld [vmem:[#allocation31_spill] sm:$0xff] }
 0x785   : > { %v5368_v59 = vadd.f32 %v5367_v41, %v16333_v4  ;;  %v5369_v27 = vpop.f32.mrb[123].mxu1  ;;  %6520 = vmatmul.mubr.f32.gmra.mrb[228].mxu1 %v16380_v19 }
 0x786   : > { %v5370_v26 = vadd.f32 %v5369_v27, %v16335_v10  ;;  %6001 = vmatprep.mubr.f32.mxu0 %v5499_v49  ;;  %6525 = vmatprep.mubr.f32.mxu1 %v16381_v61  ;;  %v16394_v27 = vld [vmem:[#allocation79_spill] sm:$0xff] }
 0x787   : > { %6002 = vmatmul.mubr.f32.gmra.mrb[120].mxu0 %v5498_v0  ;;  %v5502_v33 = vmax.f32 %v5368_v59, 0.0  ;;  %v16392_v0 = vld [vmem:[#allocation78_spill] sm:$0xff]  ;;  %v16393_v59 = vld [vmem:[#allocation32_spill] sm:$0xff] }
 0x788   : > { %v5503_v62 = vmax.f32 %v5370_v26, 0.0  ;;  %v5373_v57 = vpop.f32.mrb[124].mxu1  ;;  %v16395_v26 = vld [vmem:[#allocation33_spill] sm:$0xff] }
 0x789   : > { %v5374_v56 = vadd.f32 %v5373_v57, %v16333_v4  ;;  %v5375_v40 = vpop.f32.mrb[125].mxu1  ;;  %6526 = vmatmul.mubr.f32.gmra.mrb[230].mxu1 %v16382_v48 }
 0x78a   : > { %v5376_v7 = vadd.f32 %v5375_v40, %v16335_v10  ;;  %6007 = vmatprep.mubr.f32.mxu0 %v5503_v62  ;;  %6531 = vmatprep.mubr.f32.mxu1 %v16383_v1  ;;  %v16397_v40 = vld [vmem:[#allocation82_spill] sm:$0xff]  ;;  %v16398_v1 = vld [vmem:[#allocation35_spill] sm:$0xff] }
 0x78b   : > { %6008 = vmatmul.mubr.f32.gmra.mrb[122].mxu0 %v5502_v33  ;;  %v5506_v20 = vmax.f32 %v5374_v56, 0.0  ;;  %v16396_v33 = vld [vmem:[#allocation34_spill] sm:$0xff] }
 0x78c   : > { %v5507_v22 = vmax.f32 %v5376_v7, 0.0  ;;  %v5379_v16 = vpop.f32.mrb[126].mxu1 }
 0x78d   : > { %v5380_v35 = vadd.f32 %v5379_v16, %v16333_v4  ;;  %v5381_v24 = vpop.f32.mrb[127].mxu1  ;;  %6532 = vmatmul.mubr.f32.gmra.mrb[232].mxu1 %v16331_v9  ;;  %v16387_v4 = vld [vmem:[#allocation43_spill] sm:$0xff] }
 0x78e   : > { %v5382_v11 = vadd.f32 %v5381_v24, %v16335_v10  ;;  %6013 = vmatprep.mubr.f32.mxu0 %v5507_v22  ;;  %6537 = vmatprep.mubr.f32.mxu1 %v16332_v47 }
 0x78f   : > { %6014 = vmatmul.mubr.f32.gmra.mrb[124].mxu0 %v5506_v20  ;;  %v5510_v30 = vmax.f32 %v5380_v35, 0.0  ;;  %v16399_v35 = vld [vmem:[#allocation36_spill] sm:$0xff] }
 0x790   : > { %v5511_v2 = vmax.f32 %v5382_v11, 0.0  ;;  %v6156_v63 = vpop.f32.mrb[128].mxu1 }
 0x791   : > { %v6157_v37 = vadd.f32 %v6156_v63, %v16384_v44  ;;  %v6158_v52 = vpop.f32.mrb[129].mxu1  ;;  %6538 = vmatmul.mubr.f32.gmra.mrb[234].mxu1 %v16385_v14 }
 0x792   : > { %v6159_v53 = vadd.f32 %v6158_v52, %v16386_v43  ;;  %6019 = vmatprep.mubr.f32.mxu0 %v5511_v2  ;;  %6543 = vmatprep.mubr.f32.mxu1 %v16387_v4  ;;  %v16400_v2 = vld [vmem:[#allocation37_spill] sm:$0xff]  ;;  %v16401_v52 = vld [vmem:[#allocation39_spill] sm:$0xff] }
 0x793   : > { %6020 = vmatmul.mubr.f32.gmra.mrb[126].mxu0 %v5510_v30  ;;  %v6604_v32 = vmax.f32 %v6157_v37, 0.0 }
 0x794   : > { %v6605_v9 = vmax.f32 %v6159_v53, 0.0  ;;  %v6162_v10 = vpop.f32.mrb[130].mxu1  ;;  %v16402_v53 = vld [vmem:[#allocation44_spill] sm:$0xff] }
 0x795   : > { %v6163_v47 = vadd.f32 %v6162_v10, %v16384_v44  ;;  %v6164_v3 = vpop.f32.mrb[131].mxu1  ;;  %6544 = vmatmul.mubr.f32.gmra.mrb[236].mxu1 %v16337_v25 }
 0x796   : > { %v6165_v55 = vadd.f32 %v6164_v3, %v16386_v43  ;;  %6549 = vmatprep.mubr.f32.mxu1 %v16388_v45  ;;  %6796 = vmatprep.mubr.f32.mxu0 %v6605_v9  ;;  %v16404_v3 = vld [vmem:[#allocation45_spill] sm:$0xff] }
 0x797   : > { %6797 = vmatmul.mubr.f32.vlgmr.msra.gmra.mrb[64].mxu0 %v6604_v32  ;;  %v6608_v39 = vmax.f32 %v6163_v47, 0.0  ;;  %v16403_v32 = vld [vmem:[#allocation94_spill] sm:$0xff] }
 0x798   : > { %v6609_v13 = vmax.f32 %v6165_v55, 0.0  ;;  %8410 = vmatpush1.bf16.msra.mxu0 %v16389_v17  ;;  %v6168_v36 = vpop.f32.mrb[132].mxu1  ;;  %v16405_v17 = vld [vmem:[#allocation46_spill] sm:$0xff] }
 0x799   : > { %v6169_v31 = vadd.f32 %v6168_v36, %v16384_v44  ;;  %v6170_v46 = vpop.f32.mrb[133].mxu1  ;;  %6550 = vmatmul.mubr.f32.gmra.mrb[238].mxu1 %v16258_v21  ;;  %8412 = vmatprep.subr.bf16.mxu0 %v16390_v51  ;;  %v16406_v36 = vld [vmem:[#allocation96_spill] sm:$0xff] }
 0x79a   : > { %v6171_v25 = vadd.f32 %v6170_v46, %v16386_v43  ;;  %6555 = vmatprep.mubr.f32.mxu1 %v16341_v28  ;;  %6802 = vmatprep.mubr.f32.mxu0 %v6609_v13 }
 0x79b   : > { %6803 = vmatmul.mubr.f32.gmra.mrb[66].mxu0 %v6608_v39  ;;  %v6612_v8 = vmax.f32 %v6169_v31, 0.0  ;;  %v16407_v31 = vld [vmem:[#allocation47_spill] sm:$0xff] }
 0x79c   : > { %v6613_v23 = vmax.f32 %v6171_v25, 0.0  ;;  %v6174_v38 = vpop.f32.mrb[134].mxu1  ;;  %8414 = vmatpush1.bf16.msra.mxu0 %v16391_v34 }
 0x79d   : > { %v6175_v49 = vadd.f32 %v6174_v38, %v16384_v44  ;;  %v6176_v41 = vpop.f32.mrb[135].mxu1  ;;  %6556 = vmatmul.mubr.f32.gmra.mrb[240].mxu1 %v16392_v0  ;;  %8416 = vmatprep.subr.bf16.mxu0 %v16393_v59  ;;  %v16410_v59 = vld [vmem:[#allocation50_spill] sm:$0xff] }
 0x79e   : > { %v6177_v21 = vadd.f32 %v6176_v41, %v16386_v43  ;;  %6561 = vmatprep.mubr.f32.mxu1 %v16394_v27  ;;  %6808 = vmatprep.mubr.f32.mxu0 %v6613_v23  ;;  %v16408_v23 = vld [vmem:[#allocation49_spill] sm:$0xff]  ;;  %v16411_v27 = vld [vmem:[#allocation51_spill] sm:$0xff] }
 0x79f   : > { %6809 = vmatmul.mubr.f32.gmra.mrb[68].mxu0 %v6612_v8  ;;  %v6616_v61 = vmax.f32 %v6175_v49, 0.0  ;;  %v16409_v8 = vld [vmem:[#allocation103_spill] sm:$0xff] }
 0x7a0   : > { %v6617_v28 = vmax.f32 %v6177_v21, 0.0  ;;  %v6180_v19 = vpop.f32.mrb[136].mxu1  ;;  %8418 = vmatpush1.bf16.msra.mxu0 %v16395_v26 }
 0x7a1   : > { %v6181_v62 = vadd.f32 %v6180_v19, %v16384_v44  ;;  %v6182_v57 = vpop.f32.mrb[137].mxu1  ;;  %6562 = vmatmul.mubr.f32.gmra.mrb[242].mxu1 %v16264_v58  ;;  %8420 = vmatprep.subr.bf16.mxu0 %v16396_v33  ;;  %v16413_v33 = vld [vmem:[#allocation55_spill] sm:$0xff] }
 0x7a2   : > { %v6183_v56 = vadd.f32 %v6182_v57, %v16386_v43  ;;  %6567 = vmatprep.mubr.f32.mxu1 %v16397_v40  ;;  %6814 = vmatprep.mubr.f32.mxu0 %v6617_v28 }
 0x7a3   : > { %6815 = vmatmul.mubr.f32.gmra.mrb[70].mxu0 %v6616_v61  ;;  %v6620_v22 = vmax.f32 %v6181_v62, 0.0  ;;  %v16412_v61 = vld [vmem:[#allocation52_spill] sm:$0xff] }
 0x7a4   : > { %v6621_v48 = vmax.f32 %v6183_v56, 0.0  ;;  %v6186_v7 = vpop.f32.mrb[138].mxu1  ;;  %8422 = vmatpush1.bf16.msra.mxu0 %v16398_v1 }
 0x7a5   : > { %v6187_v16 = vadd.f32 %v6186_v7, %v16384_v44  ;;  %v6188_v20 = vpop.f32.mrb[139].mxu1  ;;  %6568 = vmatmul.mubr.f32.gmra.mrb[244].mxu1 %v16348_v42  ;;  %8424 = vmatprep.subr.bf16.mxu0 %v16399_v35  ;;  %v16414_v7 = vld [vmem:[#allocation56_spill] sm:$0xff] }
 0x7a6   : > { %v6189_v58 = vadd.f32 %v6188_v20, %v16386_v43  ;;  %6573 = vmatprep.mubr.f32.mxu1 %v16350_v5  ;;  %6820 = vmatprep.mubr.f32.mxu0 %v6621_v48  ;;  %v16415_v20 = vld [vmem:[#allocation63_spill] sm:$0xff] }
 0x7a7   : > { %6821 = vmatmul.mubr.f32.gmra.mrb[72].mxu0 %v6620_v22  ;;  %v6624_v63 = vmax.f32 %v6187_v16, 0.0 }
 0x7a8   : > { %v6625_v24 = vmax.f32 %v6189_v58, 0.0  ;;  %v6192_v11 = vpop.f32.mrb[140].mxu1  ;;  %8426 = vmatpush1.bf16.msra.mxu0 %v16400_v2 }
 0x7a9   : > { %v6193_v30 = vadd.f32 %v6192_v11, %v16384_v44  ;;  %v6194_v37 = vpop.f32.mrb[141].mxu1  ;;  %6574 = vmatmul.mubr.f32.gmra.mrb[246].mxu1 %v16269_v50  ;;  %8428 = vmatprep.subr.bf16.mxu0 %v16401_v52  ;;  %v16416_v11 = vld [vmem:[#allocation114_spill] sm:$0xff] }
 0x7aa   : > { %v6195_v42 = vadd.f32 %v6194_v37, %v16386_v43  ;;  %6579 = vmatprep.mubr.f32.mxu1 %v16271_v54  ;;  %6826 = vmatprep.mubr.f32.mxu0 %v6625_v24  ;;  %v16417_v37 = vld [vmem:[#allocation116_spill] sm:$0xff] }
 0x7ab   : > { %6827 = vmatmul.mubr.f32.gmra.mrb[74].mxu0 %v6624_v63  ;;  %v6628_v4 = vmax.f32 %v6193_v30, 0.0 }
 0x7ac   : > { %v6629_v5 = vmax.f32 %v6195_v42, 0.0  ;;  %v6198_v14 = vpop.f32.mrb[142].mxu1  ;;  %8430 = vmatpush1.bf16.msra.mxu0 %v16402_v53 }
 0x7ad   : > { %v6199_v9 = vadd.f32 %v6198_v14, %v16384_v44  ;;  %v6200_v10 = vpop.f32.mrb[143].mxu1  ;;  %6580 = vmatmul.mubr.f32.gmra.mrb[248].mxu1 %v16273_v60  ;;  %8432 = vmatprep.subr.bf16.mxu0 %v16403_v32  ;;  %v16418_v14 = vld [vmem:[#allocation120_spill] sm:$0xff] }
 0x7ae   : > { %v6201_v50 = vadd.f32 %v6200_v10, %v16386_v43  ;;  %6585 = vmatprep.mubr.f32.mxu1 %v14152_v12  ;;  %6832 = vmatprep.mubr.f32.mxu0 %v6629_v5  ;;  %v16419_v10 = vld [vmem:[#allocation122_spill] sm:$0xff] }
 0x7af   : > { %6833 = vmatmul.mubr.f32.gmra.mrb[76].mxu0 %v6628_v4  ;;  %v6632_v55 = vmax.f32 %v6199_v9, 0.0 }
 0x7b0   : > { %v6633_v54 = vmax.f32 %v6201_v50, 0.0  ;;  %v6204_v47 = vpop.f32.mrb[144].mxu1  ;;  %8434 = vmatpush1.bf16.msra.mxu0 %v16404_v3 }
 0x7b1   : > { %v6205_v45 = vadd.f32 %v6204_v47, %v16384_v44  ;;  %v6206_v13 = vpop.f32.mrb[145].mxu1  ;;  %6586 = vmatmul.mubr.f32.gmra.mrb[250].mxu1 %v14155_v6  ;;  %8436 = vmatprep.subr.bf16.mxu0 %v16405_v17  ;;  %v16420_v47 = vld [vmem:[#allocation124_spill] sm:$0xff] }
 0x7b2   : > { %v6207_v60 = vadd.f32 %v6206_v13, %v16386_v43  ;;  %6591 = vmatprep.mubr.f32.mxu1 %v16406_v36  ;;  %6838 = vmatprep.mubr.f32.mxu0 %v6633_v54  ;;  %v16421_v13 = vld [vmem:[#allocation126_spill] sm:$0xff] }
 0x7b3   : > { %6839 = vmatmul.mubr.f32.gmra.mrb[78].mxu0 %v6632_v55  ;;  %v6636_v46 = vmax.f32 %v6205_v45, 0.0 }
 0x7b4   : > { %v6637_v12 = vmax.f32 %v6207_v60, 0.0  ;;  %v6210_v39 = vpop.f32.mrb[146].mxu1  ;;  %8438 = vmatpush1.bf16.msra.mxu0 %v16407_v31 }
 0x7b5   : > { %v6211_v51 = vadd.f32 %v6210_v39, %v16384_v44  ;;  %v6212_v25 = vpop.f32.mrb[147].mxu1  ;;  %6592 = vmatmul.mubr.f32.gmra.mrb[252].mxu1 %v14167_v15  ;;  %8440 = vmatprep.subr.bf16.mxu0 %v16408_v23 }
 0x7b6   : > { %v6213_v6 = vadd.f32 %v6212_v25, %v16386_v43  ;;  %6597 = vmatprep.mubr.f32.mxu1 %v14175_v29  ;;  %6844 = vmatprep.mubr.f32.mxu0 %v6637_v12  ;;  %v16422_v12 = vld [vmem:[#allocation128_spill] sm:$0xff] }
 0x7b7   : > { %6845 = vmatmul.mubr.f32.gmra.mrb[80].mxu0 %v6636_v46  ;;  %v6640_v49 = vmax.f32 %v6211_v51, 0.0  ;;  %v16423_v51 = vld [vmem:[#allocation132_spill] sm:$0xff] }
 0x7b8   : > { %v6641_v38 = vmax.f32 %v6213_v6, 0.0  ;;  %v6216_v34 = vpop.f32.mrb[148].mxu1  ;;  %8442 = vmatpush1.bf16.msra.mxu0 %v16409_v8 }
 0x7b9   : > { %v6217_v41 = vadd.f32 %v6216_v34, %v16384_v44  ;;  %v6218_v0 = vpop.f32.mrb[149].mxu1  ;;  %6598 = vmatmul.mubr.f32.gmra.mrb[254].mxu1 %v16360_v18  ;;  %8444 = vmatprep.subr.bf16.mxu0 %v16410_v59 }
 0x7ba   : > { %v6219_v15 = vadd.f32 %v6218_v0, %v16386_v43  ;;  %6850 = vmatprep.mubr.f32.mxu0 %v6641_v38 }
 0x7bb   : > { %6851 = vmatmul.mubr.f32.gmra.mrb[82].mxu0 %v6640_v49  ;;  %v6644_v28 = vmax.f32 %v6217_v41, 0.0 }
 0x7bc   : > { %v6645_v21 = vmax.f32 %v6219_v15, 0.0  ;;  %v6222_v29 = vpop.f32.mrb[150].mxu1  ;;  %8446 = vmatpush1.bf16.msra.mxu0 %v16411_v27 }
 0x7bd   : > { %v6223_v19 = vadd.f32 %v6222_v29, %v16384_v44  ;;  %v6224_v26 = vpop.f32.mrb[151].mxu1  ;;  %8448 = vmatprep.subr.bf16.mxu0 %v16412_v61 }
 0x7be   : > { %v6225_v62 = vadd.f32 %v6224_v26, %v16386_v43  ;;  %6856 = vmatprep.mubr.f32.mxu0 %v6645_v21 }
 0x7bf   : > { %6857 = vmatmul.mubr.f32.gmra.mrb[84].mxu0 %v6644_v28  ;;  %v6648_v56 = vmax.f32 %v6223_v19, 0.0 }
 0x7c0   : > { %v6649_v18 = vmax.f32 %v6225_v62, 0.0  ;;  %v6228_v57 = vpop.f32.mrb[152].mxu1  ;;  %8450 = vmatpush1.bf16.msra.mxu0 %v16413_v33 }
 0x7c1   : > { %v6229_v40 = vadd.f32 %v6228_v57, %v16384_v44  ;;  %v6230_v48 = vpop.f32.mrb[153].mxu1  ;;  %8452 = vmatprep.subr.bf16.mxu0 %v16414_v7 }
 0x7c2   : > { %v6231_v1 = vadd.f32 %v6230_v48, %v16386_v43  ;;  %6862 = vmatprep.mubr.f32.mxu0 %v6649_v18 }
 0x7c3   : > { %6863 = vmatmul.mubr.f32.gmra.mrb[86].mxu0 %v6648_v56  ;;  %v6652_v35 = vmax.f32 %v6229_v40, 0.0 }
 0x7c4   : > { %v6653_v22 = vmax.f32 %v6231_v1, 0.0  ;;  %v6234_v16 = vpop.f32.mrb[154].mxu1  ;;  %8454 = vmatpush1.bf16.msra.mxu0 %v16415_v20 }
 0x7c5   : > { %v6235_v58 = vadd.f32 %v6234_v16, %v16384_v44  ;;  %v6236_v24 = vpop.f32.mrb[155].mxu1  ;;  %8456 = vmatprep.subr.bf16.mxu0 %v16416_v11 }
 0x7c6   : > { %v6237_v2 = vadd.f32 %v6236_v24, %v16386_v43  ;;  %6868 = vmatprep.mubr.f32.mxu0 %v6653_v22 }
 0x7c7   : > { %6869 = vmatmul.mubr.f32.gmra.mrb[88].mxu0 %v6652_v35  ;;  %v6656_v52 = vmax.f32 %v6235_v58, 0.0 }
 0x7c8   : > { %v6657_v63 = vmax.f32 %v6237_v2, 0.0  ;;  %v6240_v30 = vpop.f32.mrb[156].mxu1  ;;  %8458 = vmatpush1.bf16.msra.mxu0 %v16417_v37 }
 0x7c9   : > { %v6241_v42 = vadd.f32 %v6240_v30, %v16384_v44  ;;  %v6242_v5 = vpop.f32.mrb[157].mxu1  ;;  %8460 = vmatprep.subr.bf16.mxu0 %v16418_v14 }
 0x7ca   : > { %v6243_v53 = vadd.f32 %v6242_v5, %v16386_v43  ;;  %6874 = vmatprep.mubr.f32.mxu0 %v6657_v63 }
 0x7cb   : > { %6875 = vmatmul.mubr.f32.gmra.mrb[90].mxu0 %v6656_v52  ;;  %v6660_v32 = vmax.f32 %v6241_v42, 0.0 }
 0x7cc   : > { %v6661_v4 = vmax.f32 %v6243_v53, 0.0  ;;  %v6246_v9 = vpop.f32.mrb[158].mxu1  ;;  %8462 = vmatpush1.bf16.msra.mxu0 %v16419_v10 }
 0x7cd   : > { %v6247_v50 = vadd.f32 %v6246_v9, %v16384_v44  ;;  %v6248_v54 = vpop.f32.mrb[159].mxu1  ;;  %8464 = vmatprep.subr.bf16.mxu0 %v16420_v47 }
 0x7ce   : > { %v6249_v3 = vadd.f32 %v6248_v54, %v16386_v43  ;;  %6880 = vmatprep.mubr.f32.mxu0 %v6661_v4 }
 0x7cf   : > { %6881 = vmatmul.mubr.f32.gmra.mrb[92].mxu0 %v6660_v32  ;;  %v6664_v17 = vmax.f32 %v6247_v50, 0.0 }
 0x7d0   : > { %v6665_v55 = vmax.f32 %v6249_v3, 0.0  ;;  %v6252_v45 = vpop.f32.mrb[160].mxu1  ;;  %8466 = vmatpush1.bf16.msra.mxu0 %v16421_v13 }
 0x7d1   : > { %v6253_v60 = vadd.f32 %v6252_v45, %v16384_v44  ;;  %v6254_v36 = vpop.f32.mrb[161].mxu1  ;;  %8468 = vmatprep.subr.bf16.mxu0 %v16422_v12 }
 0x7d2   : > { %v6255_v39 = vadd.f32 %v6254_v36, %v16386_v43  ;;  %6886 = vmatprep.mubr.f32.mxu0 %v6665_v55 }
 0x7d3   : > { %6887 = vmatmul.mubr.f32.gmra.mrb[94].mxu0 %v6664_v17  ;;  %v6668_v25 = vmax.f32 %v6253_v60, 0.0 }
 0x7d4   : > { %v6669_v31 = vmax.f32 %v6255_v39, 0.0  ;;  %v6258_v46 = vpop.f32.mrb[162].mxu1  ;;  %8470 = vmatpush1.bf16.msra.mxu0 %v16423_v51 }
 0x7d5   : > { %v6259_v23 = vadd.f32 %v6258_v46, %v16384_v44  ;;  %v6260_v6 = vpop.f32.mrb[163].mxu1 }
 0x7d6   : > { %v6261_v38 = vadd.f32 %v6260_v6, %v16386_v43  ;;  %6892 = vmatprep.mubr.f32.mxu0 %v6669_v31 }
 0x7d7   : > { %6893 = vmatmul.mubr.f32.gmra.mrb[96].mxu0 %v6668_v25  ;;  %v6672_v49 = vmax.f32 %v6259_v23, 0.0 }
 0x7d8   : > { %v6673_v34 = vmax.f32 %v6261_v38, 0.0  ;;  %v6264_v8 = vpop.f32.mrb[164].mxu1 }
 0x7d9   : > { %v6265_v41 = vadd.f32 %v6264_v8, %v16384_v44  ;;  %v6266_v0 = vpop.f32.mrb[165].mxu1 }
 0x7da   : > { %v6267_v59 = vadd.f32 %v6266_v0, %v16386_v43  ;;  %6898 = vmatprep.mubr.f32.mxu0 %v6673_v34 }
 0x7db   : > { %6899 = vmatmul.mubr.f32.gmra.mrb[98].mxu0 %v6672_v49  ;;  %v6676_v29 = vmax.f32 %v6265_v41, 0.0 }
 0x7dc   : > { %v6677_v15 = vmax.f32 %v6267_v59, 0.0  ;;  %v6270_v21 = vpop.f32.mrb[166].mxu1 }
 0x7dd   : > { %v6271_v27 = vadd.f32 %v6270_v21, %v16384_v44  ;;  %v6272_v28 = vpop.f32.mrb[167].mxu1 }
 0x7de   : > { %v6273_v19 = vadd.f32 %v6272_v28, %v16386_v43  ;;  %6904 = vmatprep.mubr.f32.mxu0 %v6677_v15 }
 0x7df   : > { %6905 = vmatmul.mubr.f32.gmra.mrb[100].mxu0 %v6676_v29  ;;  %v6680_v62 = vmax.f32 %v6271_v27, 0.0 }
 0x7e0   : > { %v6681_v26 = vmax.f32 %v6273_v19, 0.0  ;;  %v6276_v61 = vpop.f32.mrb[168].mxu1 }
 0x7e1   : > { %v6277_v18 = vadd.f32 %v6276_v61, %v16384_v44  ;;  %v6278_v57 = vpop.f32.mrb[169].mxu1 }
 0x7e2   : > { %v6279_v33 = vadd.f32 %v6278_v57, %v16386_v43  ;;  %6910 = vmatprep.mubr.f32.mxu0 %v6681_v26 }
 0x7e3   : > { %6911 = vmatmul.mubr.f32.gmra.mrb[102].mxu0 %v6680_v62  ;;  %v6684_v48 = vmax.f32 %v6277_v18, 0.0 }
 0x7e4   : > { %v6685_v56 = vmax.f32 %v6279_v33, 0.0  ;;  %v6282_v40 = vpop.f32.mrb[170].mxu1 }
 0x7e5   : > { %v6283_v7 = vadd.f32 %v6282_v40, %v16384_v44  ;;  %v6284_v1 = vpop.f32.mrb[171].mxu1 }
 0x7e6   : > { %v6285_v22 = vadd.f32 %v6284_v1, %v16386_v43  ;;  %6916 = vmatprep.mubr.f32.mxu0 %v6685_v56 }
 0x7e7   : > { %6917 = vmatmul.mubr.f32.gmra.mrb[104].mxu0 %v6684_v48  ;;  %v6688_v35 = vmax.f32 %v6283_v7, 0.0 }
 0x7e8   : > { %v6689_v16 = vmax.f32 %v6285_v22, 0.0  ;;  %v6288_v20 = vpop.f32.mrb[172].mxu1 }
 0x7e9   : > { %v6289_v58 = vadd.f32 %v6288_v20, %v16384_v44  ;;  %v6290_v24 = vpop.f32.mrb[173].mxu1  ;;  %v16424_v20 = vld [vmem:[#allocation61_spill] sm:$0xff] }
 0x7ea   : > { %v6291_v11 = vadd.f32 %v6290_v24, %v16386_v43  ;;  %6922 = vmatprep.mubr.f32.mxu0 %v6689_v16  ;;  %v16425_v24 = vld [vmem:[#allocation62_spill] sm:$0xff] }
 0x7eb   : > { %6923 = vmatmul.mubr.f32.gmra.mrb[106].mxu0 %v6688_v35  ;;  %v6692_v30 = vmax.f32 %v6289_v58, 0.0 }
 0x7ec   : > { %v6693_v2 = vmax.f32 %v6291_v11, 0.0  ;;  %v6294_v63 = vpop.f32.mrb[174].mxu1 }
 0x7ed   : > { %v6295_v37 = vadd.f32 %v6294_v63, %v16384_v44  ;;  %v6296_v52 = vpop.f32.mrb[175].mxu1 }
 0x7ee   : > { %v6297_v42 = vadd.f32 %v6296_v52, %v16386_v43  ;;  %6928 = vmatprep.mubr.f32.mxu0 %v6693_v2 }
 0x7ef   : > { %6929 = vmatmul.mubr.f32.gmra.mrb[108].mxu0 %v6692_v30  ;;  %v6696_v53 = vmax.f32 %v6295_v37, 0.0 }
 0x7f0   : > { %v6697_v5 = vmax.f32 %v6297_v42, 0.0  ;;  %v6300_v14 = vpop.f32.mrb[176].mxu1 }
 0x7f1   : > { %v6301_v4 = vadd.f32 %v6300_v14, %v16384_v44  ;;  %v6302_v9 = vpop.f32.mrb[177].mxu1 }
 0x7f2   : > { %v6303_v10 = vadd.f32 %v6302_v9, %v16386_v43  ;;  %6934 = vmatprep.mubr.f32.mxu0 %v6697_v5 }
 0x7f3   : > { %6935 = vmatmul.mubr.f32.gmra.mrb[110].mxu0 %v6696_v53  ;;  %v6700_v54 = vmax.f32 %v6301_v4, 0.0 }
 0x7f4   : > { %v6701_v32 = vmax.f32 %v6303_v10, 0.0  ;;  %v6306_v50 = vpop.f32.mrb[178].mxu1 }
 0x7f5   : > { %v6307_v47 = vadd.f32 %v6306_v50, %v16384_v44  ;;  %v6308_v3 = vpop.f32.mrb[179].mxu1 }
 0x7f6   : > { %v6309_v55 = vadd.f32 %v6308_v3, %v16386_v43  ;;  %6940 = vmatprep.mubr.f32.mxu0 %v6701_v32 }
 0x7f7   : > { %6941 = vmatmul.mubr.f32.gmra.mrb[112].mxu0 %v6700_v54  ;;  %v6704_v17 = vmax.f32 %v6307_v47, 0.0 }
 0x7f8   : > { %v6705_v45 = vmax.f32 %v6309_v55, 0.0  ;;  %v6312_v13 = vpop.f32.mrb[180].mxu1 }
 0x7f9   : > { %v6313_v60 = vadd.f32 %v6312_v13, %v16384_v44  ;;  %v6314_v36 = vpop.f32.mrb[181].mxu1 }
 0x7fa   : > { %v6315_v12 = vadd.f32 %v6314_v36, %v16386_v43  ;;  %6946 = vmatprep.mubr.f32.mxu0 %v6705_v45 }
 0x7fb   : > { %6947 = vmatmul.mubr.f32.gmra.mrb[114].mxu0 %v6704_v17  ;;  %v6708_v46 = vmax.f32 %v6313_v60, 0.0 }
 0x7fc   : > { %v6709_v39 = vmax.f32 %v6315_v12, 0.0  ;;  %v6318_v31 = vpop.f32.mrb[182].mxu1 }
 0x7fd   : > { %v6319_v51 = vadd.f32 %v6318_v31, %v16384_v44  ;;  %v6320_v25 = vpop.f32.mrb[183].mxu1 }
 0x7fe   : > { %v6321_v23 = vadd.f32 %v6320_v25, %v16386_v43  ;;  %6952 = vmatprep.mubr.f32.mxu0 %v6709_v39 }
 0x7ff   : > { %6953 = vmatmul.mubr.f32.gmra.mrb[116].mxu0 %v6708_v46  ;;  %v6712_v34 = vmax.f32 %v6319_v51, 0.0 }
 0x800   : > { %v6713_v6 = vmax.f32 %v6321_v23, 0.0  ;;  %v6324_v38 = vpop.f32.mrb[184].mxu1 }
 0x801   : > { %v6325_v8 = vadd.f32 %v6324_v38, %v16384_v44  ;;  %v6326_v49 = vpop.f32.mrb[185].mxu1 }
 0x802   : > { %v6327_v41 = vadd.f32 %v6326_v49, %v16386_v43  ;;  %6958 = vmatprep.mubr.f32.mxu0 %v6713_v6 }
 0x803   : > { %6959 = vmatmul.mubr.f32.gmra.mrb[118].mxu0 %v6712_v34  ;;  %v6716_v15 = vmax.f32 %v6325_v8, 0.0 }
 0x804   : > { %v6717_v0 = vmax.f32 %v6327_v41, 0.0  ;;  %v6330_v59 = vpop.f32.mrb[186].mxu1 }
 0x805   : > { %v6331_v21 = vadd.f32 %v6330_v59, %v16384_v44  ;;  %v6332_v29 = vpop.f32.mrb[187].mxu1 }
 0x806   : > { %v6333_v27 = vadd.f32 %v6332_v29, %v16386_v43  ;;  %6964 = vmatprep.mubr.f32.mxu0 %v6717_v0 }
 0x807   : > { %6965 = vmatmul.mubr.f32.gmra.mrb[120].mxu0 %v6716_v15  ;;  %v6720_v26 = vmax.f32 %v6331_v21, 0.0 }
 0x808   : > { %v6721_v28 = vmax.f32 %v6333_v27, 0.0  ;;  %v6336_v19 = vpop.f32.mrb[188].mxu1 }
 0x809   : > { %v6337_v61 = vadd.f32 %v6336_v19, %v16384_v44  ;;  %v6338_v62 = vpop.f32.mrb[189].mxu1 }
 0x80a   : > { %v6339_v18 = vadd.f32 %v6338_v62, %v16386_v43  ;;  %6970 = vmatprep.mubr.f32.mxu0 %v6721_v28 }
 0x80b   : > { %6971 = vmatmul.mubr.f32.gmra.mrb[122].mxu0 %v6720_v26  ;;  %v6724_v56 = vmax.f32 %v6337_v61, 0.0 }
 0x80c   : > { %v6725_v57 = vmax.f32 %v6339_v18, 0.0  ;;  %v6342_v33 = vpop.f32.mrb[190].mxu1 }
 0x80d   : > { %v6343_v40 = vadd.f32 %v6342_v33, %v16384_v44  ;;  %v6344_v48 = vpop.f32.mrb[191].mxu1 }
 0x80e   : > { %v6345_v7 = vadd.f32 %v6344_v48, %v16386_v43  ;;  %6976 = vmatprep.mubr.f32.mxu0 %v6725_v57 }
 0x80f   : > { %6977 = vmatmul.mubr.f32.gmra.mrb[124].mxu0 %v6724_v56  ;;  %v6728_v16 = vmax.f32 %v6343_v40, 0.0 }
 0x810   : > { %v6729_v1 = vmax.f32 %v6345_v7, 0.0  ;;  %v6413_v22 = vpop.f32.mrb[192].mxu1 }
 0x811   : > { %v6414_v35 = vadd.f32 %v6413_v22, %v16424_v20  ;;  %v6415_v58 = vpop.f32.mrb[193].mxu1 }
 0x812   : > { %v6416_v11 = vadd.f32 %v6415_v58, %v16425_v24  ;;  %6982 = vmatprep.mubr.f32.mxu0 %v6729_v1 }
 0x813   : > { %6983 = vmatmul.mubr.f32.gmra.mrb[126].mxu0 %v6728_v16  ;;  %v6606_v30 = vmax.f32 %v6414_v35, 0.0 }
 0x814   : > { %v6607_v2 = vmax.f32 %v6416_v11, 0.0  ;;  %v6419_v63 = vpop.f32.mrb[194].mxu1 }
 0x815   : > { %v6420_v44 = vadd.f32 %v6419_v63, %v16424_v20  ;;  %v6421_v37 = vpop.f32.mrb[195].mxu1 }
 0x816   : > { %v6422_v43 = vadd.f32 %v6421_v37, %v16425_v24  ;;  %7053 = vmatprep.mubr.f32.mxu0 %v6607_v2 }
 0x817   : > { %7054 = vmatmul.mubr.f32.vlgmr.msra.gmra.mrb[64].mxu0 %v6606_v30  ;;  %v6610_v5 = vmax.f32 %v6420_v44, 0.0 }
 0x818   : > { %v6611_v52 = vmax.f32 %v6422_v43, 0.0  ;;  %v6425_v42 = vpop.f32.mrb[196].mxu1 }
 0x819   : > { %v6426_v14 = vadd.f32 %v6425_v42, %v16424_v20  ;;  %v6427_v53 = vpop.f32.mrb[197].mxu1 }
 0x81a   : > { %v6428_v4 = vadd.f32 %v6427_v53, %v16425_v24  ;;  %7059 = vmatprep.mubr.f32.mxu0 %v6611_v52 }
 0x81b   : > { %7060 = vmatmul.mubr.f32.gmra.mrb[66].mxu0 %v6610_v5  ;;  %v6614_v32 = vmax.f32 %v6426_v14, 0.0 }
 0x81c   : > { %v6615_v9 = vmax.f32 %v6428_v4, 0.0  ;;  %v6431_v10 = vpop.f32.mrb[198].mxu1 }
 0x81d   : > { %v6432_v50 = vadd.f32 %v6431_v10, %v16424_v20  ;;  %v6433_v54 = vpop.f32.mrb[199].mxu1 }
 0x81e   : > { %v6434_v47 = vadd.f32 %v6433_v54, %v16425_v24  ;;  %7065 = vmatprep.mubr.f32.mxu0 %v6615_v9 }
 0x81f   : > { %7066 = vmatmul.mubr.f32.gmra.mrb[68].mxu0 %v6614_v32  ;;  %v6618_v45 = vmax.f32 %v6432_v50, 0.0 }
 0x820   : > { %v6619_v3 = vmax.f32 %v6434_v47, 0.0  ;;  %v6437_v55 = vpop.f32.mrb[200].mxu1 }
 0x821   : > { %v6438_v13 = vadd.f32 %v6437_v55, %v16424_v20  ;;  %v6439_v17 = vpop.f32.mrb[201].mxu1 }
 0x822   : > { %v6440_v60 = vadd.f32 %v6439_v17, %v16425_v24  ;;  %7071 = vmatprep.mubr.f32.mxu0 %v6619_v3 }
 0x823   : > { %7072 = vmatmul.mubr.f32.gmra.mrb[70].mxu0 %v6618_v45  ;;  %v6622_v39 = vmax.f32 %v6438_v13, 0.0 }
 0x824   : > { %v6623_v36 = vmax.f32 %v6440_v60, 0.0  ;;  %v6443_v12 = vpop.f32.mrb[202].mxu1 }
 0x825   : > { %v6444_v31 = vadd.f32 %v6443_v12, %v16424_v20  ;;  %v6445_v46 = vpop.f32.mrb[203].mxu1 }
 0x826   : > { %v6446_v51 = vadd.f32 %v6445_v46, %v16425_v24  ;;  %7077 = vmatprep.mubr.f32.mxu0 %v6623_v36 }
 0x827   : > { %7078 = vmatmul.mubr.f32.gmra.mrb[72].mxu0 %v6622_v39  ;;  %v6626_v6 = vmax.f32 %v6444_v31, 0.0 }
 0x828   : > { %v6627_v25 = vmax.f32 %v6446_v51, 0.0  ;;  %v6449_v23 = vpop.f32.mrb[204].mxu1 }
 0x829   : > { %v6450_v38 = vadd.f32 %v6449_v23, %v16424_v20  ;;  %v6451_v34 = vpop.f32.mrb[205].mxu1 }
 0x82a   : > { %v6452_v8 = vadd.f32 %v6451_v34, %v16425_v24  ;;  %7083 = vmatprep.mubr.f32.mxu0 %v6627_v25 }
 0x82b   : > { %7084 = vmatmul.mubr.f32.gmra.mrb[74].mxu0 %v6626_v6  ;;  %v6630_v0 = vmax.f32 %v6450_v38, 0.0 }
 0x82c   : > { %v6631_v49 = vmax.f32 %v6452_v8, 0.0  ;;  %v6455_v41 = vpop.f32.mrb[206].mxu1 }
 0x82d   : > { %v6456_v59 = vadd.f32 %v6455_v41, %v16424_v20  ;;  %v6457_v15 = vpop.f32.mrb[207].mxu1 }
 0x82e   : > { %v6458_v21 = vadd.f32 %v6457_v15, %v16425_v24  ;;  %7089 = vmatprep.mubr.f32.mxu0 %v6631_v49 }
 0x82f   : > { %7090 = vmatmul.mubr.f32.gmra.mrb[76].mxu0 %v6630_v0  ;;  %v6634_v28 = vmax.f32 %v6456_v59, 0.0 }
 0x830   : > { %v6635_v29 = vmax.f32 %v6458_v21, 0.0  ;;  %v6461_v27 = vpop.f32.mrb[208].mxu1 }
 0x831   : > { %v6462_v19 = vadd.f32 %v6461_v27, %v16424_v20  ;;  %v6463_v26 = vpop.f32.mrb[209].mxu1 }
 0x832   : > { %v6464_v61 = vadd.f32 %v6463_v26, %v16425_v24  ;;  %7095 = vmatprep.mubr.f32.mxu0 %v6635_v29 }
 0x833   : > { %7096 = vmatmul.mubr.f32.gmra.mrb[78].mxu0 %v6634_v28  ;;  %v6638_v57 = vmax.f32 %v6462_v19, 0.0 }
 0x834   : > { %v6639_v62 = vmax.f32 %v6464_v61, 0.0  ;;  %v6467_v18 = vpop.f32.mrb[210].mxu1 }
 0x835   : > { %v6468_v33 = vadd.f32 %v6467_v18, %v16424_v20  ;;  %v6469_v56 = vpop.f32.mrb[211].mxu1 }
 0x836   : > { %v6470_v40 = vadd.f32 %v6469_v56, %v16425_v24  ;;  %7101 = vmatprep.mubr.f32.mxu0 %v6639_v62 }
 0x837   : > { %7102 = vmatmul.mubr.f32.gmra.mrb[80].mxu0 %v6638_v57  ;;  %v6642_v1 = vmax.f32 %v6468_v33, 0.0 }
 0x838   : > { %v6643_v48 = vmax.f32 %v6470_v40, 0.0  ;;  %v6473_v7 = vpop.f32.mrb[212].mxu1 }
 0x839   : > { %v6474_v22 = vadd.f32 %v6473_v7, %v16424_v20  ;;  %v6475_v16 = vpop.f32.mrb[213].mxu1 }
 0x83a   : > { %v6476_v35 = vadd.f32 %v6475_v16, %v16425_v24  ;;  %7107 = vmatprep.mubr.f32.mxu0 %v6643_v48 }
 0x83b   : > { %7108 = vmatmul.mubr.f32.gmra.mrb[82].mxu0 %v6642_v1  ;;  %v6646_v2 = vmax.f32 %v6474_v22, 0.0 }
 0x83c   : > { %v6647_v58 = vmax.f32 %v6476_v35, 0.0  ;;  %v6479_v11 = vpop.f32.mrb[214].mxu1 }
 0x83d   : > { %v6480_v63 = vadd.f32 %v6479_v11, %v16424_v20  ;;  %v6481_v30 = vpop.f32.mrb[215].mxu1 }
 0x83e   : > { %v6482_v44 = vadd.f32 %v6481_v30, %v16425_v24  ;;  %7113 = vmatprep.mubr.f32.mxu0 %v6647_v58 }
 0x83f   : > { %7114 = vmatmul.mubr.f32.gmra.mrb[84].mxu0 %v6646_v2  ;;  %v6650_v52 = vmax.f32 %v6480_v63, 0.0 }
 0x840   : > { %v6651_v37 = vmax.f32 %v6482_v44, 0.0  ;;  %v6485_v43 = vpop.f32.mrb[216].mxu1 }
 0x841   : > { %v6486_v42 = vadd.f32 %v6485_v43, %v16424_v20  ;;  %v6487_v5 = vpop.f32.mrb[217].mxu1 }
 0x842   : > { %v6488_v14 = vadd.f32 %v6487_v5, %v16425_v24  ;;  %7119 = vmatprep.mubr.f32.mxu0 %v6651_v37 }
 0x843   : > { %7120 = vmatmul.mubr.f32.gmra.mrb[86].mxu0 %v6650_v52  ;;  %v6654_v9 = vmax.f32 %v6486_v42, 0.0 }
 0x844   : > { %v6655_v53 = vmax.f32 %v6488_v14, 0.0  ;;  %v6491_v4 = vpop.f32.mrb[218].mxu1 }
 0x845   : > { %v6492_v10 = vadd.f32 %v6491_v4, %v16424_v20  ;;  %v6493_v32 = vpop.f32.mrb[219].mxu1 }
 0x846   : > { %v6494_v50 = vadd.f32 %v6493_v32, %v16425_v24  ;;  %7125 = vmatprep.mubr.f32.mxu0 %v6655_v53 }
 0x847   : > { %7126 = vmatmul.mubr.f32.gmra.mrb[88].mxu0 %v6654_v9  ;;  %v6658_v3 = vmax.f32 %v6492_v10, 0.0 }
 0x848   : > { %v6659_v54 = vmax.f32 %v6494_v50, 0.0  ;;  %v6497_v47 = vpop.f32.mrb[220].mxu1 }
 0x849   : > { %v6498_v55 = vadd.f32 %v6497_v47, %v16424_v20  ;;  %v6499_v45 = vpop.f32.mrb[221].mxu1 }
 0x84a   : > { %v6500_v13 = vadd.f32 %v6499_v45, %v16425_v24  ;;  %7131 = vmatprep.mubr.f32.mxu0 %v6659_v54 }
 0x84b   : > { %7132 = vmatmul.mubr.f32.gmra.mrb[90].mxu0 %v6658_v3  ;;  %v6662_v36 = vmax.f32 %v6498_v55, 0.0 }
 0x84c   : > { %v6663_v17 = vmax.f32 %v6500_v13, 0.0  ;;  %v6503_v60 = vpop.f32.mrb[222].mxu1 }
 0x84d   : > { %v6504_v12 = vadd.f32 %v6503_v60, %v16424_v20  ;;  %v6505_v39 = vpop.f32.mrb[223].mxu1 }
 0x84e   : > { %v6506_v31 = vadd.f32 %v6505_v39, %v16425_v24  ;;  %7137 = vmatprep.mubr.f32.mxu0 %v6663_v17 }
 0x84f   : > { %7138 = vmatmul.mubr.f32.gmra.mrb[92].mxu0 %v6662_v36  ;;  %v6666_v25 = vmax.f32 %v6504_v12, 0.0 }
 0x850   : > { %v6667_v46 = vmax.f32 %v6506_v31, 0.0  ;;  %v6509_v51 = vpop.f32.mrb[224].mxu1 }
 0x851   : > { %v6510_v23 = vadd.f32 %v6509_v51, %v16424_v20  ;;  %v6511_v6 = vpop.f32.mrb[225].mxu1 }
 0x852   : > { %v6512_v38 = vadd.f32 %v6511_v6, %v16425_v24  ;;  %7143 = vmatprep.mubr.f32.mxu0 %v6667_v46 }
 0x853   : > { %7144 = vmatmul.mubr.f32.gmra.mrb[94].mxu0 %v6666_v25  ;;  %v6670_v49 = vmax.f32 %v6510_v23, 0.0 }
 0x854   : > { %v6671_v34 = vmax.f32 %v6512_v38, 0.0  ;;  %v6515_v8 = vpop.f32.mrb[226].mxu1 }
 0x855   : > { %v6516_v41 = vadd.f32 %v6515_v8, %v16424_v20  ;;  %v6517_v0 = vpop.f32.mrb[227].mxu1 }
 0x856   : > { %v6518_v59 = vadd.f32 %v6517_v0, %v16425_v24  ;;  %7149 = vmatprep.mubr.f32.mxu0 %v6671_v34 }
 0x857   : > { %7150 = vmatmul.mubr.f32.gmra.mrb[96].mxu0 %v6670_v49  ;;  %v6674_v29 = vmax.f32 %v6516_v41, 0.0 }
 0x858   : > { %v6675_v15 = vmax.f32 %v6518_v59, 0.0  ;;  %v6521_v21 = vpop.f32.mrb[228].mxu1 }
 0x859   : > { %v6522_v27 = vadd.f32 %v6521_v21, %v16424_v20  ;;  %v6523_v28 = vpop.f32.mrb[229].mxu1 }
 0x85a   : > { %v6524_v19 = vadd.f32 %v6523_v28, %v16425_v24  ;;  %7155 = vmatprep.mubr.f32.mxu0 %v6675_v15 }
 0x85b   : > { %7156 = vmatmul.mubr.f32.gmra.mrb[98].mxu0 %v6674_v29  ;;  %v6678_v62 = vmax.f32 %v6522_v27, 0.0 }
 0x85c   : > { %v6679_v26 = vmax.f32 %v6524_v19, 0.0  ;;  %v6527_v61 = vpop.f32.mrb[230].mxu1 }
 0x85d   : > { %v6528_v18 = vadd.f32 %v6527_v61, %v16424_v20  ;;  %v6529_v57 = vpop.f32.mrb[231].mxu1 }
 0x85e   : > { %v6530_v33 = vadd.f32 %v6529_v57, %v16425_v24  ;;  %7161 = vmatprep.mubr.f32.mxu0 %v6679_v26 }
 0x85f   : > { %7162 = vmatmul.mubr.f32.gmra.mrb[100].mxu0 %v6678_v62  ;;  %v6682_v48 = vmax.f32 %v6528_v18, 0.0 }
 0x860   : > { %v6683_v56 = vmax.f32 %v6530_v33, 0.0  ;;  %v6533_v40 = vpop.f32.mrb[232].mxu1 }
 0x861   : > { %v6534_v7 = vadd.f32 %v6533_v40, %v16424_v20  ;;  %v6535_v1 = vpop.f32.mrb[233].mxu1 }
 0x862   : > { %v6536_v22 = vadd.f32 %v6535_v1, %v16425_v24  ;;  %7167 = vmatprep.mubr.f32.mxu0 %v6683_v56 }
 0x863   : > { %7168 = vmatmul.mubr.f32.gmra.mrb[102].mxu0 %v6682_v48  ;;  %v6686_v58 = vmax.f32 %v6534_v7, 0.0 }
 0x864   : > { %v6687_v16 = vmax.f32 %v6536_v22, 0.0  ;;  %v6539_v35 = vpop.f32.mrb[234].mxu1 }
 0x865   : > { %v6540_v11 = vadd.f32 %v6539_v35, %v16424_v20  ;;  %v6541_v2 = vpop.f32.mrb[235].mxu1 }
 0x866   : > { %v6542_v63 = vadd.f32 %v6541_v2, %v16425_v24  ;;  %7173 = vmatprep.mubr.f32.mxu0 %v6687_v16 }
 0x867   : > { %7174 = vmatmul.mubr.f32.gmra.mrb[104].mxu0 %v6686_v58  ;;  %v6690_v37 = vmax.f32 %v6540_v11, 0.0 }
 0x868   : > { %v6691_v30 = vmax.f32 %v6542_v63, 0.0  ;;  %v6545_v44 = vpop.f32.mrb[236].mxu1 }
 0x869   : > { %v6546_v43 = vadd.f32 %v6545_v44, %v16424_v20  ;;  %v6547_v52 = vpop.f32.mrb[237].mxu1  ;;  %v16427_v44 = vld [vmem:[#allocation138_spill] sm:$0xff] }
 0x86a   : > { %v6548_v42 = vadd.f32 %v6547_v52, %v16425_v24  ;;  %7179 = vmatprep.mubr.f32.mxu0 %v6691_v30  ;;  %v16426_v30 = vld [vmem:[#allocation134_spill] sm:$0xff] }
 0x86b   : > { %7180 = vmatmul.mubr.f32.gmra.mrb[106].mxu0 %v6690_v37  ;;  %v6694_v53 = vmax.f32 %v6546_v43, 0.0  ;;  %v4806_v37 = vadd.f32 %v16427_v44, %v16426_v30  ;;  %v16429_v43 = vld [vmem:[#allocation10_spill] sm:$0xff] }
 0x86c   : > { %v6695_v5 = vmax.f32 %v6548_v42, 0.0  ;;  %v6551_v14 = vpop.f32.mrb[238].mxu1 }
 0x86d   : > { %v6552_v4 = vadd.f32 %v6551_v14, %v16424_v20  ;;  %v6553_v9 = vpop.f32.mrb[239].mxu1 }
 0x86e   : > { %v6554_v10 = vadd.f32 %v6553_v9, %v16425_v24  ;;  %7185 = vmatprep.mubr.f32.mxu0 %v6695_v5 }
 0x86f   : > { %7186 = vmatmul.mubr.f32.gmra.mrb[108].mxu0 %v6694_v53  ;;  %v6698_v54 = vmax.f32 %v6552_v4, 0.0  ;;  %v16430_v53 = vld [vmem:[#allocation139_spill] sm:$0xff] }
 0x870   : > { %v6699_v32 = vmax.f32 %v6554_v10, 0.0  ;;  %v6557_v50 = vpop.f32.mrb[240].mxu1  ;;  %v4808_v4 = vadd.f32 %v16430_v53, %v16426_v30  ;;  %v16431_v10 = vld [vmem:[#allocation140_spill] sm:$0xff] }
 0x871   : > { %v6558_v47 = vadd.f32 %v6557_v50, %v16424_v20  ;;  %v6559_v3 = vpop.f32.mrb[241].mxu1 }
 0x872   : > { %v6560_v55 = vadd.f32 %v6559_v3, %v16425_v24  ;;  %7191 = vmatprep.mubr.f32.mxu0 %v6699_v32  ;;  %v16432_v3 = vld [vmem:[#allocation92_spill] sm:$0xff] }
 0x873   : > { %7192 = vmatmul.mubr.f32.gmra.mrb[110].mxu0 %v6698_v54  ;;  %v6702_v17 = vmax.f32 %v6558_v47, 0.0 }
 0x874   : > { %v6703_v45 = vmax.f32 %v6560_v55, 0.0  ;;  %v6563_v13 = vpop.f32.mrb[242].mxu1  ;;  %v4810_v55 = vadd.f32 %v16432_v3, %v16426_v30 }
 0x875   : > { %v6564_v60 = vadd.f32 %v6563_v13, %v16424_v20  ;;  %v6565_v36 = vpop.f32.mrb[243].mxu1  ;;  %v16433_v13 = vld [vmem:[#allocation97_spill] sm:$0xff] }
 0x876   : > { %v6566_v12 = vadd.f32 %v6565_v36, %v16425_v24  ;;  %7197 = vmatprep.mubr.f32.mxu0 %v6703_v45 }
 0x877   : > { %7198 = vmatmul.mubr.f32.gmra.mrb[112].mxu0 %v6702_v17  ;;  %v6706_v46 = vmax.f32 %v6564_v60, 0.0 }
 0x878   : > { %v6707_v39 = vmax.f32 %v6566_v12, 0.0  ;;  %v6569_v31 = vpop.f32.mrb[244].mxu1 }
 0x879   : > { %v6570_v51 = vadd.f32 %v6569_v31, %v16424_v20  ;;  %v6571_v25 = vpop.f32.mrb[245].mxu1 }
 0x87a   : > { %v6572_v23 = vadd.f32 %v6571_v25, %v16425_v24  ;;  %7203 = vmatprep.mubr.f32.mxu0 %v6707_v39  ;;  %v16434_v39 = vld [vmem:[#allocation99_spill] sm:$0xff] }
 0x87b   : > { %7204 = vmatmul.mubr.f32.gmra.mrb[114].mxu0 %v6706_v46  ;;  %v6710_v34 = vmax.f32 %v6570_v51, 0.0  ;;  %v4812_v31 = vadd.f32 %v16434_v39, %v16426_v30  ;;  %v16435_v51 = vld [vmem:[#allocation100_spill] sm:$0xff] }
 0x87c   : > { %v6711_v6 = vmax.f32 %v6572_v23, 0.0  ;;  %v6575_v38 = vpop.f32.mrb[246].mxu1 }
 0x87d   : > { %v6576_v8 = vadd.f32 %v6575_v38, %v16424_v20  ;;  %v6577_v49 = vpop.f32.mrb[247].mxu1 }
 0x87e   : > { %v6578_v41 = vadd.f32 %v6577_v49, %v16425_v24  ;;  %7209 = vmatprep.mubr.f32.mxu0 %v6711_v6 }
 0x87f   : > { %7210 = vmatmul.mubr.f32.gmra.mrb[116].mxu0 %v6710_v34  ;;  %v6714_v15 = vmax.f32 %v6576_v8, 0.0  ;;  %v16436_v34 = vld [vmem:[#allocation107_spill] sm:$0xff] }
 0x880   : > { %v6715_v0 = vmax.f32 %v6578_v41, 0.0  ;;  %v6581_v59 = vpop.f32.mrb[248].mxu1  ;;  %v4814_v8 = vadd.f32 %v16436_v34, %v16426_v30  ;;  %v16437_v41 = vld [vmem:[#allocation108_spill] sm:$0xff] }
 0x881   : > { %v6582_v21 = vadd.f32 %v6581_v59, %v16424_v20  ;;  %v6583_v29 = vpop.f32.mrb[249].mxu1 }
 0x882   : > { %v6584_v27 = vadd.f32 %v6583_v29, %v16425_v24  ;;  %7215 = vmatprep.mubr.f32.mxu0 %v6715_v0  ;;  %v16438_v29 = vld [vmem:[#allocation54_spill] sm:$0xff] }
 0x883   : > { %7216 = vmatmul.mubr.f32.gmra.mrb[118].mxu0 %v6714_v15  ;;  %v6718_v26 = vmax.f32 %v6582_v21, 0.0 }
 0x884   : > { %v6719_v28 = vmax.f32 %v6584_v27, 0.0  ;;  %v6587_v19 = vpop.f32.mrb[250].mxu1  ;;  %v4816_v27 = vadd.f32 %v16438_v29, %v16426_v30 }
 0x885   : > { %v6588_v61 = vadd.f32 %v6587_v19, %v16424_v20  ;;  %v6589_v62 = vpop.f32.mrb[251].mxu1  ;;  %v16439_v19 = vld [vmem:[#allocation53_spill] sm:$0xff] }
 0x886   : > { %v6590_v18 = vadd.f32 %v6589_v62, %v16425_v24  ;;  %7221 = vmatprep.mubr.f32.mxu0 %v6719_v28 }
 0x887   : > { %7222 = vmatmul.mubr.f32.gmra.mrb[120].mxu0 %v6718_v26  ;;  %v6722_v56 = vmax.f32 %v6588_v61, 0.0 }
 0x888   : > { %v6723_v57 = vmax.f32 %v6590_v18, 0.0  ;;  %v6593_v33 = vpop.f32.mrb[252].mxu1 }
 0x889   : > { %v6594_v40 = vadd.f32 %v6593_v33, %v16424_v20  ;;  %v6595_v48 = vpop.f32.mrb[253].mxu1 }
 0x88a   : > { %v6596_v7 = vadd.f32 %v6595_v48, %v16425_v24  ;;  %7227 = vmatprep.mubr.f32.mxu0 %v6723_v57  ;;  %v16440_v57 = vld [vmem:[#allocation58_spill] sm:$0xff] }
 0x88b   : > { %7228 = vmatmul.mubr.f32.gmra.mrb[122].mxu0 %v6722_v56  ;;  %v6726_v16 = vmax.f32 %v6594_v40, 0.0  ;;  %v4818_v33 = vadd.f32 %v16440_v57, %v16426_v30  ;;  %v16441_v40 = vld [vmem:[#allocation111_spill] sm:$0xff] }
 0x88c   : > { %v6727_v1 = vmax.f32 %v6596_v7, 0.0  ;;  %v6599_v22 = vpop.f32.mrb[254].mxu1 }
 0x88d   : > { %v6600_v35 = vadd.f32 %v6599_v22, %v16424_v20  ;;  %v6601_v58 = vpop.f32.mrb[255].mxu1 }
 0x88e   : > { %v6602_v11 = vadd.f32 %v6601_v58, %v16425_v24  ;;  %7233 = vmatprep.mubr.f32.mxu0 %v6727_v1  ;;  %v16428_v24 = vld [vmem:[#allocation136_spill] sm:$0xff] }
 0x88f   : > { %7234 = vmatmul.mubr.f32.gmra.mrb[124].mxu0 %v6726_v16  ;;  %v6730_v63 = vmax.f32 %v6600_v35, 0.0  ;;  %v4807_v52 = vadd.f32 %v16429_v43, %v16428_v24  ;;  %v4809_v32 = vadd.f32 %v16431_v10, %v16428_v24  ;;  %v4811_v17 = vadd.f32 %v16433_v13, %v16428_v24  ;;  %v16442_v16 = vld [vmem:[#allocation112_spill] sm:$0xff] }
 0x890   : > { %v6731_v2 = vmax.f32 %v6602_v11, 0.0  ;;  %v4813_v25 = vadd.f32 %v16435_v51, %v16428_v24  ;;  %v4815_v0 = vadd.f32 %v16437_v41, %v16428_v24  ;;  %v4817_v26 = vadd.f32 %v16439_v19, %v16428_v24  ;;  %v16443_v11 = vld [vmem:[#allocation57_spill] sm:$0xff] }
 0x891   : > { %v4819_v48 = vadd.f32 %v16441_v40, %v16428_v24  ;;  %v4820_v35 = vadd.f32 %v16442_v16, %v16426_v30 }
 0x892   : > { %7239 = vmatprep.mubr.f32.mxu0 %v6731_v2  ;;  %v4821_v2 = vadd.f32 %v16443_v11, %v16428_v24 }
 0x893   : > { %7240 = vmatmul.mubr.f32.gmra.mrb[126].mxu0 %v6730_v63 }
 0x8ea   : > { %v7055_v20 = vpop.f32.mrb[64].mxu0 }
 0x8eb   : > { %v8535_v42 = vadd.f32 %v7055_v20, %v4806_v37  ;;  %v7057_v5 = vpop.f32.mrb[65].mxu0  ;;  %v16444_v20 = vld [vmem:[#allocation113_spill] sm:$0xff] }
 0x8ec   : > { %v8536_v14 = vadd.f32 %v7057_v5, %v4807_v52  ;;  %v4822_v43 = vadd.f32 %v16444_v20, %v16426_v30 }
 0x8ed   : > { %7310 = vst [vmem:[%s14795_s22] sm:$0xff] %v8535_v42  ;;  %v16445_v42 = vld [vmem:[#allocation115_spill] sm:$0xff] }
 0x8ee   : > { %7311 = vst [vmem:[%s14795_s22 + $0x8] sm:$0xff] %v8536_v14  ;;  %v7061_v9 = vpop.f32.mrb[66].mxu0  ;;  %v4823_v5 = vadd.f32 %v16445_v42, %v16428_v24 }
 0x8ef   : > { %v8537_v50 = vadd.f32 %v7061_v9, %v4808_v4  ;;  %v7063_v54 = vpop.f32.mrb[67].mxu0  ;;  %v16446_v9 = vld [vmem:[#allocation117_spill] sm:$0xff] }
 0x8f0   : > { %v8538_v47 = vadd.f32 %v7063_v54, %v4809_v32  ;;  %v4824_v10 = vadd.f32 %v16446_v9, %v16426_v30 }
 0x8f1   : > { %7312 = vst [vmem:[%s14795_s22 + $0x10] sm:$0xff] %v8537_v50  ;;  %v16447_v50 = vld [vmem:[#allocation119_spill] sm:$0xff] }
 0x8f2   : > { %7313 = vst [vmem:[%s14795_s22 + $0x18] sm:$0xff] %v8538_v47  ;;  %v7067_v45 = vpop.f32.mrb[68].mxu0  ;;  %v4825_v54 = vadd.f32 %v16447_v50, %v16428_v24 }
 0x8f3   : > { %v8539_v60 = vadd.f32 %v7067_v45, %v4810_v55  ;;  %v7069_v36 = vpop.f32.mrb[69].mxu0  ;;  %v16448_v45 = vld [vmem:[#allocation121_spill] sm:$0xff] }
 0x8f4   : > { %v8540_v12 = vadd.f32 %v7069_v36, %v4811_v17  ;;  %v4826_v13 = vadd.f32 %v16448_v45, %v16426_v30 }
 0x8f5   : > { %7314 = vst [vmem:[%s14795_s22 + $0x20] sm:$0xff] %v8539_v60  ;;  %v16449_v60 = vld [vmem:[#allocation123_spill] sm:$0xff] }
 0x8f6   : > { %7315 = vst [vmem:[%s14795_s22 + $0x28] sm:$0xff] %v8540_v12  ;;  %v7073_v46 = vpop.f32.mrb[70].mxu0  ;;  %v4827_v36 = vadd.f32 %v16449_v60, %v16428_v24 }
 0x8f7   : > { %v8541_v23 = vadd.f32 %v7073_v46, %v4812_v31  ;;  %v7075_v6 = vpop.f32.mrb[71].mxu0  ;;  %v16450_v46 = vld [vmem:[#allocation125_spill] sm:$0xff] }
 0x8f8   : > { %v8542_v38 = vadd.f32 %v7075_v6, %v4813_v25  ;;  %v4828_v51 = vadd.f32 %v16450_v46, %v16426_v30 }
 0x8f9   : > { %7316 = vst [vmem:[%s14795_s22 + $0x30] sm:$0xff] %v8541_v23  ;;  %v16451_v23 = vld [vmem:[#allocation127_spill] sm:$0xff] }
 0x8fa   : > { %7317 = vst [vmem:[%s14795_s22 + $0x38] sm:$0xff] %v8542_v38  ;;  %v7079_v49 = vpop.f32.mrb[72].mxu0  ;;  %v4829_v6 = vadd.f32 %v16451_v23, %v16428_v24 }
 0x8fb   : > { %v8543_v59 = vadd.f32 %v7079_v49, %v4814_v8  ;;  %v7081_v15 = vpop.f32.mrb[73].mxu0  ;;  %v16452_v49 = vld [vmem:[#allocation129_spill] sm:$0xff] }
 0x8fc   : > { %v8544_v21 = vadd.f32 %v7081_v15, %v4815_v0  ;;  %v4830_v41 = vadd.f32 %v16452_v49, %v16426_v30 }
 0x8fd   : > { %7318 = vst [vmem:[%s14795_s22 + $0x40] sm:$0xff] %v8543_v59  ;;  %v16453_v59 = vld [vmem:[#allocation130_spill] sm:$0xff] }
 0x8fe   : > { %7319 = vst [vmem:[%s14795_s22 + $0x48] sm:$0xff] %v8544_v21  ;;  %v7085_v28 = vpop.f32.mrb[74].mxu0  ;;  %v4831_v15 = vadd.f32 %v16453_v59, %v16428_v24 }
 0x8ff   : > { %v8545_v61 = vadd.f32 %v7085_v28, %v4816_v27  ;;  %v7087_v62 = vpop.f32.mrb[75].mxu0  ;;  %v16454_v28 = vld [vmem:[#allocation5_spill] sm:$0xff] }
 0x900   : > { %v8546_v18 = vadd.f32 %v7087_v62, %v4817_v26  ;;  %v4832_v19 = vadd.f32 %v16454_v28, %v16426_v30 }
 0x901   : > { %7320 = vst [vmem:[%s14795_s22 + $0x50] sm:$0xff] %v8545_v61  ;;  %v16455_v61 = vld [vmem:[#allocation2_spill] sm:$0xff] }
 0x902   : > { %7321 = vst [vmem:[%s14795_s22 + $0x58] sm:$0xff] %v8546_v18  ;;  %v7091_v56 = vpop.f32.mrb[76].mxu0  ;;  %v4833_v62 = vadd.f32 %v16455_v61, %v16428_v24 }
 0x903   : > { %v8547_v7 = vadd.f32 %v7091_v56, %v4818_v33  ;;  %v7093_v1 = vpop.f32.mrb[77].mxu0  ;;  %v16456_v56 = vld [vmem:[#allocation131_spill] sm:$0xff] }
 0x904   : > { %v8548_v22 = vadd.f32 %v7093_v1, %v4819_v48  ;;  %v4834_v40 = vadd.f32 %v16456_v56, %v16426_v30 }
 0x905   : > { %7322 = vst [vmem:[%s14795_s22 + $0x60] sm:$0xff] %v8547_v7  ;;  %v16457_v7 = vld [vmem:[#allocation133_spill] sm:$0xff] }
 0x906   : > { %7323 = vst [vmem:[%s14795_s22 + $0x68] sm:$0xff] %v8548_v22  ;;  %v7097_v58 = vpop.f32.mrb[78].mxu0  ;;  %v4835_v1 = vadd.f32 %v16457_v7, %v16428_v24 }
 0x907   : > { %v8549_v63 = vadd.f32 %v7097_v58, %v4820_v35  ;;  %v7099_v44 = vpop.f32.mrb[79].mxu0  ;;  %v16458_v58 = vld [vmem:[#allocation3_spill] sm:$0xff] }
 0x908   : > { %v8550_v37 = vadd.f32 %v7099_v44, %v4821_v2  ;;  %v4836_v11 = vadd.f32 %v16458_v58, %v16426_v30 }
 0x909   : > { %7324 = vst [vmem:[%s14795_s22 + $0x70] sm:$0xff] %v8549_v63  ;;  %v16459_v63 = vld [vmem:[#allocation6_spill] sm:$0xff] }
 0x90a   : > { %7325 = vst [vmem:[%s14795_s22 + $0x78] sm:$0xff] %v8550_v37  ;;  %v7103_v52 = vpop.f32.mrb[80].mxu0  ;;  %v4837_v44 = vadd.f32 %v16459_v63, %v16428_v24 }
 0x90b   : > { %v8551_v14 = vadd.f32 %v7103_v52, %v4822_v43  ;;  %v7105_v53 = vpop.f32.mrb[81].mxu0  ;;  %v16460_v52 = vld [vmem:[#allocation7_spill] sm:$0xff] }
 0x90c   : > { %v8552_v4 = vadd.f32 %v7105_v53, %v4823_v5  ;;  %v4838_v42 = vadd.f32 %v16460_v52, %v16426_v30 }
 0x90d   : > { %7326 = vst [vmem:[%s14795_s22 + $0x80] sm:$0xff] %v8551_v14  ;;  %v16461_v14 = vld [vmem:[#allocation4_spill] sm:$0xff] }
 0x90e   : > { %7327 = vst [vmem:[%s14795_s22 + $0x88] sm:$0xff] %v8552_v4  ;;  %v7109_v32 = vpop.f32.mrb[82].mxu0  ;;  %v4839_v53 = vadd.f32 %v16461_v14, %v16428_v24 }
 0x90f   : > { %v8553_v47 = vadd.f32 %v7109_v32, %v4824_v10  ;;  %v7111_v3 = vpop.f32.mrb[83].mxu0  ;;  %v16462_v32 = vld [vmem:[#allocation9_spill] sm:$0xff] }
 0x910   : > { %v8554_v55 = vadd.f32 %v7111_v3, %v4825_v54  ;;  %v4840_v50 = vadd.f32 %v16462_v32, %v16426_v30 }
 0x911   : > { %7328 = vst [vmem:[%s14795_s22 + $0x90] sm:$0xff] %v8553_v47  ;;  %v16463_v47 = vld [vmem:[#allocation8_spill] sm:$0xff] }
 0x912   : > { %7329 = vst [vmem:[%s14795_s22 + $0x98] sm:$0xff] %v8554_v55  ;;  %v7115_v17 = vpop.f32.mrb[84].mxu0  ;;  %v4841_v3 = vadd.f32 %v16463_v47, %v16428_v24 }
 0x913   : > { %v8555_v12 = vadd.f32 %v7115_v17, %v4826_v13  ;;  %v7117_v39 = vpop.f32.mrb[85].mxu0  ;;  %v16464_v17 = vld [vmem:[#allocation11_spill] sm:$0xff] }
 0x914   : > { %v8556_v31 = vadd.f32 %v7117_v39, %v4827_v36  ;;  %v4842_v60 = vadd.f32 %v16464_v17, %v16426_v30 }
 0x915   : > { %7330 = vst [vmem:[%s14795_s22 + $0xa0] sm:$0xff] %v8555_v12  ;;  %v16465_v12 = vld [vmem:[#allocation241_spill] sm:$0xff] }
 0x916   : > { %7331 = vst [vmem:[%s14795_s22 + $0xa8] sm:$0xff] %v8556_v31  ;;  %v7121_v25 = vpop.f32.mrb[86].mxu0  ;;  %v4843_v39 = vadd.f32 %v16465_v12, %v16428_v24 }
 0x917   : > { %v8557_v38 = vadd.f32 %v7121_v25, %v4828_v51  ;;  %v7123_v34 = vpop.f32.mrb[87].mxu0  ;;  %v16466_v25 = vld [vmem:[#allocation242_spill] sm:$0xff] }
 0x918   : > { %v8558_v8 = vadd.f32 %v7123_v34, %v4829_v6  ;;  %v4844_v23 = vadd.f32 %v16466_v25, %v16426_v30 }
 0x919   : > { %7332 = vst [vmem:[%s14795_s22 + $0xb0] sm:$0xff] %v8557_v38  ;;  %v16467_v38 = vld [vmem:[#allocation243_spill] sm:$0xff] }
 0x91a   : > { %7333 = vst [vmem:[%s14795_s22 + $0xb8] sm:$0xff] %v8558_v8  ;;  %v7127_v0 = vpop.f32.mrb[88].mxu0  ;;  %v4845_v34 = vadd.f32 %v16467_v38, %v16428_v24 }
 0x91b   : > { %v8559_v21 = vadd.f32 %v7127_v0, %v4830_v41  ;;  %v7129_v29 = vpop.f32.mrb[89].mxu0  ;;  %v16468_v0 = vld [vmem:[#allocation244_spill] sm:$0xff] }
 0x91c   : > { %v8560_v27 = vadd.f32 %v7129_v29, %v4831_v15  ;;  %v4846_v59 = vadd.f32 %v16468_v0, %v16426_v30 }
 0x91d   : > { %7334 = vst [vmem:[%s14795_s22 + $0xc0] sm:$0xff] %v8559_v21  ;;  %v16469_v21 = vld [vmem:[#allocation245_spill] sm:$0xff] }
 0x91e   : > { %7335 = vst [vmem:[%s14795_s22 + $0xc8] sm:$0xff] %v8560_v27  ;;  %v7133_v26 = vpop.f32.mrb[90].mxu0  ;;  %v4847_v29 = vadd.f32 %v16469_v21, %v16428_v24 }
 0x91f   : > { %v8561_v18 = vadd.f32 %v7133_v26, %v4832_v19  ;;  %v7135_v57 = vpop.f32.mrb[91].mxu0  ;;  %v16470_v26 = vld [vmem:[#allocation246_spill] sm:$0xff] }
 0x920   : > { %v8562_v33 = vadd.f32 %v7135_v57, %v4833_v62  ;;  %v4848_v61 = vadd.f32 %v16470_v26, %v16426_v30 }
 0x921   : > { %7336 = vst [vmem:[%s14795_s22 + $0xd0] sm:$0xff] %v8561_v18  ;;  %v16471_v18 = vld [vmem:[#allocation247_spill] sm:$0xff] }
 0x922   : > { %7337 = vst [vmem:[%s14795_s22 + $0xd8] sm:$0xff] %v8562_v33  ;;  %v7139_v48 = vpop.f32.mrb[92].mxu0  ;;  %v4849_v57 = vadd.f32 %v16471_v18, %v16428_v24 }
 0x923   : > { %v8563_v22 = vadd.f32 %v7139_v48, %v4834_v40  ;;  %v7141_v16 = vpop.f32.mrb[93].mxu0  ;;  %v16472_v48 = vld [vmem:[#allocation248_spill] sm:$0xff] }
 0x924   : > { %v8564_v35 = vadd.f32 %v7141_v16, %v4835_v1  ;;  %v4850_v7 = vadd.f32 %v16472_v48, %v16426_v30 }
 0x925   : > { %7338 = vst [vmem:[%s14795_s22 + $0xe0] sm:$0xff] %v8563_v22  ;;  %v16473_v22 = vld [vmem:[#allocation249_spill] sm:$0xff] }
 0x926   : > { %7339 = vst [vmem:[%s14795_s22 + $0xe8] sm:$0xff] %v8564_v35  ;;  %v7145_v2 = vpop.f32.mrb[94].mxu0  ;;  %v4851_v16 = vadd.f32 %v16473_v22, %v16428_v24 }
 0x927   : > { %v8565_v37 = vadd.f32 %v7145_v2, %v4836_v11  ;;  %v7147_v20 = vpop.f32.mrb[95].mxu0  ;;  %v16474_v2 = vld [vmem:[#allocation250_spill] sm:$0xff] }
 0x928   : > { %v8566_v43 = vadd.f32 %v7147_v20, %v4837_v44  ;;  %v4852_v63 = vadd.f32 %v16474_v2, %v16426_v30 }
 0x929   : > { %7340 = vst [vmem:[%s14795_s22 + $0xf0] sm:$0xff] %v8565_v37  ;;  %v16475_v37 = vld [vmem:[#allocation251_spill] sm:$0xff] }
 0x92a   : > { %7341 = vst [vmem:[%s14795_s22 + $0xf8] sm:$0xff] %v8566_v43  ;;  %v7151_v5 = vpop.f32.mrb[96].mxu0  ;;  %v4853_v20 = vadd.f32 %v16475_v37, %v16428_v24 }
 0x92b   : > { %v8567_v4 = vadd.f32 %v7151_v5, %v4838_v42  ;;  %v7153_v9 = vpop.f32.mrb[97].mxu0  ;;  %v16476_v5 = vld [vmem:[#allocation252_spill] sm:$0xff] }
 0x92c   : > { %v8568_v10 = vadd.f32 %v7153_v9, %v4839_v53  ;;  %v4854_v14 = vadd.f32 %v16476_v5, %v16426_v30 }
 0x92d   : > { %7342 = vst [vmem:[%s14795_s22 + $0x100] sm:$0xff] %v8567_v4  ;;  %v16477_v4 = vld [vmem:[#allocation253_spill] sm:$0xff] }
 0x92e   : > { %7343 = vst [vmem:[%s14795_s22 + $0x108] sm:$0xff] %v8568_v10  ;;  %v7157_v54 = vpop.f32.mrb[98].mxu0  ;;  %v4855_v9 = vadd.f32 %v16477_v4, %v16428_v24 }
 0x92f   : > { %v8569_v55 = vadd.f32 %v7157_v54, %v4840_v50  ;;  %v7159_v45 = vpop.f32.mrb[99].mxu0  ;;  %v16478_v54 = vld [vmem:[#allocation254_spill] sm:$0xff] }
 0x930   : > { %v8570_v13 = vadd.f32 %v7159_v45, %v4841_v3  ;;  %v4856_v47 = vadd.f32 %v16478_v54, %v16426_v30 }
 0x931   : > { %7344 = vst [vmem:[%s14795_s22 + $0x110] sm:$0xff] %v8569_v55  ;;  %v16479_v55 = vld [vmem:[#allocation255_spill] sm:$0xff] }
 0x932   : > { %7345 = vst [vmem:[%s14795_s22 + $0x118] sm:$0xff] %v8570_v13  ;;  %v7163_v36 = vpop.f32.mrb[100].mxu0  ;;  %v4857_v45 = vadd.f32 %v16479_v55, %v16428_v24 }
 0x933   : > { %v8571_v31 = vadd.f32 %v7163_v36, %v4842_v60  ;;  %v7165_v46 = vpop.f32.mrb[101].mxu0  ;;  %v16480_v36 = vld [vmem:[#allocation256_spill] sm:$0xff] }
 0x934   : > { %v8572_v51 = vadd.f32 %v7165_v46, %v4843_v39  ;;  %v4858_v12 = vadd.f32 %v16480_v36, %v16426_v30 }
 0x935   : > { %7346 = vst [vmem:[%s14795_s22 + $0x120] sm:$0xff] %v8571_v31  ;;  %v16481_v31 = vld [vmem:[#allocation257_spill] sm:$0xff] }
 0x936   : > { %7347 = vst [vmem:[%s14795_s22 + $0x128] sm:$0xff] %v8572_v51  ;;  %v7169_v6 = vpop.f32.mrb[102].mxu0  ;;  %v4859_v46 = vadd.f32 %v16481_v31, %v16428_v24 }
 0x937   : > { %v8573_v8 = vadd.f32 %v7169_v6, %v4844_v23  ;;  %v7171_v49 = vpop.f32.mrb[103].mxu0  ;;  %v16482_v6 = vld [vmem:[#allocation258_spill] sm:$0xff] }
 0x938   : > { %v8574_v41 = vadd.f32 %v7171_v49, %v4845_v34  ;;  %v4860_v38 = vadd.f32 %v16482_v6, %v16426_v30 }
 0x939   : > { %7348 = vst [vmem:[%s14795_s22 + $0x130] sm:$0xff] %v8573_v8  ;;  %v16483_v8 = vld [vmem:[#allocation259_spill] sm:$0xff] }
 0x93a   : > { %7349 = vst [vmem:[%s14795_s22 + $0x138] sm:$0xff] %v8574_v41  ;;  %v7175_v15 = vpop.f32.mrb[104].mxu0  ;;  %v4861_v49 = vadd.f32 %v16483_v8, %v16428_v24 }
 0x93b   : > { %v8575_v27 = vadd.f32 %v7175_v15, %v4846_v59  ;;  %v7177_v28 = vpop.f32.mrb[105].mxu0  ;;  %v16484_v15 = vld [vmem:[#allocation260_spill] sm:$0xff] }
 0x93c   : > { %v8576_v19 = vadd.f32 %v7177_v28, %v4847_v29  ;;  %v4862_v21 = vadd.f32 %v16484_v15, %v16426_v30 }
 0x93d   : > { %7350 = vst [vmem:[%s14795_s22 + $0x140] sm:$0xff] %v8575_v27  ;;  %v16485_v27 = vld [vmem:[#allocation261_spill] sm:$0xff] }
 0x93e   : > { %7351 = vst [vmem:[%s14795_s22 + $0x148] sm:$0xff] %v8576_v19  ;;  %v7181_v62 = vpop.f32.mrb[106].mxu0  ;;  %v4863_v28 = vadd.f32 %v16485_v27, %v16428_v24 }
 0x93f   : > { %v8577_v33 = vadd.f32 %v7181_v62, %v4848_v61  ;;  %v7183_v56 = vpop.f32.mrb[107].mxu0  ;;  %v16486_v62 = vld [vmem:[#allocation262_spill] sm:$0xff] }
 0x940   : > { %v8578_v40 = vadd.f32 %v7183_v56, %v4849_v57  ;;  %v4864_v18 = vadd.f32 %v16486_v62, %v16426_v30 }
 0x941   : > { %7352 = vst [vmem:[%s14795_s22 + $0x150] sm:$0xff] %v8577_v33  ;;  %v16487_v33 = vld [vmem:[#allocation263_spill] sm:$0xff] }
 0x942   : > { %7353 = vst [vmem:[%s14795_s22 + $0x158] sm:$0xff] %v8578_v40  ;;  %v7187_v1 = vpop.f32.mrb[108].mxu0  ;;  %v4865_v56 = vadd.f32 %v16487_v33, %v16428_v24 }
 0x943   : > { %v8579_v35 = vadd.f32 %v7187_v1, %v4850_v7  ;;  %v7189_v58 = vpop.f32.mrb[109].mxu0  ;;  %v16488_v1 = vld [vmem:[#allocation264_spill] sm:$0xff] }
 0x944   : > { %v8580_v11 = vadd.f32 %v7189_v58, %v4851_v16  ;;  %v4866_v22 = vadd.f32 %v16488_v1, %v16426_v30 }
 0x945   : > { %7354 = vst [vmem:[%s14795_s22 + $0x160] sm:$0xff] %v8579_v35  ;;  %v16489_v35 = vld [vmem:[#allocation265_spill] sm:$0xff] }
 0x946   : > { %7355 = vst [vmem:[%s14795_s22 + $0x168] sm:$0xff] %v8580_v11  ;;  %v7193_v44 = vpop.f32.mrb[110].mxu0  ;;  %v4867_v58 = vadd.f32 %v16489_v35, %v16428_v24 }
 0x947   : > { %v8581_v43 = vadd.f32 %v7193_v44, %v4852_v63  ;;  %v7195_v52 = vpop.f32.mrb[111].mxu0  ;;  %v16490_v44 = vld [vmem:[#allocation266_spill] sm:$0xff] }
 0x948   : > { %v8582_v42 = vadd.f32 %v7195_v52, %v4853_v20  ;;  %v4868_v37 = vadd.f32 %v16490_v44, %v16426_v30 }
 0x949   : > { %7356 = vst [vmem:[%s14795_s22 + $0x170] sm:$0xff] %v8581_v43  ;;  %v16491_v43 = vld [vmem:[#allocation267_spill] sm:$0xff] }
 0x94a   : > { %7357 = vst [vmem:[%s14795_s22 + $0x178] sm:$0xff] %v8582_v42  ;;  %v7199_v53 = vpop.f32.mrb[112].mxu0  ;;  %v4869_v52 = vadd.f32 %v16491_v43, %v16428_v24 }
 0x94b   : > { %v8583_v10 = vadd.f32 %v7199_v53, %v4854_v14  ;;  %v7201_v32 = vpop.f32.mrb[113].mxu0 }
 0x94c   : > { %v8584_v50 = vadd.f32 %v7201_v32, %v4855_v9 }
 0x94d   : > { %7358 = vst [vmem:[%s14795_s22 + $0x180] sm:$0xff] %v8583_v10 }
 0x94e   : > { %7359 = vst [vmem:[%s14795_s22 + $0x188] sm:$0xff] %v8584_v50  ;;  %v7205_v3 = vpop.f32.mrb[114].mxu0 }
 0x94f   : > { %v8585_v13 = vadd.f32 %v7205_v3, %v4856_v47  ;;  %v7207_v17 = vpop.f32.mrb[115].mxu0 }
 0x950   : > { %v8586_v60 = vadd.f32 %v7207_v17, %v4857_v45 }
 0x951   : > { %7360 = vst [vmem:[%s14795_s22 + $0x190] sm:$0xff] %v8585_v13 }
 0x952   : > { %7361 = vst [vmem:[%s14795_s22 + $0x198] sm:$0xff] %v8586_v60  ;;  %v7211_v39 = vpop.f32.mrb[116].mxu0 }
 0x953   : > { %v8587_v51 = vadd.f32 %v7211_v39, %v4858_v12  ;;  %v7213_v25 = vpop.f32.mrb[117].mxu0 }
 0x954   : > { %v8588_v23 = vadd.f32 %v7213_v25, %v4859_v46 }
 0x955   : > { %7362 = vst [vmem:[%s14795_s22 + $0x1a0] sm:$0xff] %v8587_v51 }
 0x956   : > { %7363 = vst [vmem:[%s14795_s22 + $0x1a8] sm:$0xff] %v8588_v23  ;;  %v7217_v34 = vpop.f32.mrb[118].mxu0 }
 0x957   : > { %v8589_v41 = vadd.f32 %v7217_v34, %v4860_v38  ;;  %v7219_v0 = vpop.f32.mrb[119].mxu0 }
 0x958   : > { %v8590_v59 = vadd.f32 %v7219_v0, %v4861_v49 }
 0x959   : > { %7364 = vst [vmem:[%s14795_s22 + $0x1b0] sm:$0xff] %v8589_v41 }
 0x95a   : > { %7365 = vst [vmem:[%s14795_s22 + $0x1b8] sm:$0xff] %v8590_v59  ;;  %v7223_v29 = vpop.f32.mrb[120].mxu0 }
 0x95b   : > { %v8591_v19 = vadd.f32 %v7223_v29, %v4862_v21  ;;  %v7225_v26 = vpop.f32.mrb[121].mxu0 }
 0x95c   : > { %v8592_v61 = vadd.f32 %v7225_v26, %v4863_v28 }
 0x95d   : > { %7366 = vst [vmem:[%s14795_s22 + $0x1c0] sm:$0xff] %v8591_v19 }
 0x95e   : > { %7367 = vst [vmem:[%s14795_s22 + $0x1c8] sm:$0xff] %v8592_v61  ;;  %v7229_v57 = vpop.f32.mrb[122].mxu0 }
 0x95f   : > { %v8593_v40 = vadd.f32 %v7229_v57, %v4864_v18  ;;  %v7231_v48 = vpop.f32.mrb[123].mxu0 }
 0x960   : > { %v8594_v7 = vadd.f32 %v7231_v48, %v4865_v56 }
 0x961   : > { %7368 = vst [vmem:[%s14795_s22 + $0x1d0] sm:$0xff] %v8593_v40 }
 0x962   : > { %7369 = vst [vmem:[%s14795_s22 + $0x1d8] sm:$0xff] %v8594_v7  ;;  %v7235_v16 = vpop.f32.mrb[124].mxu0 }
 0x963   : > { %v8595_v11 = vadd.f32 %v7235_v16, %v4866_v22  ;;  %v7237_v2 = vpop.f32.mrb[125].mxu0 }
 0x964   : > { %v8596_v63 = vadd.f32 %v7237_v2, %v4867_v58 }
 0x965   : > { %7370 = vst [vmem:[%s14795_s22 + $0x1e0] sm:$0xff] %v8595_v11 }
 0x966   : > { %7371 = vst [vmem:[%s14795_s22 + $0x1e8] sm:$0xff] %v8596_v63  ;;  %v7241_v20 = vpop.f32.mrb[126].mxu0 }
 0x967   : > { %v8597_v42 = vadd.f32 %v7241_v20, %v4868_v37  ;;  %v7243_v5 = vpop.f32.mrb[127].mxu0 }
 0x968   : > { %v8598_v14 = vadd.f32 %v7243_v5, %v4869_v52 }
 0x969   : > { %7372 = vst [vmem:[%s14795_s22 + $0x1f0] sm:$0xff] %v8597_v42 }
 0x96a   : > { %7373 = vst [vmem:[%s14795_s22 + $0x1f8] sm:$0xff] %v8598_v14 }
 0x96b PF: > { %s19_s30 = sadd.s32 1, %s9191_s30  }
 0x96c   : > { %p16_p4 = scmp.ge.s32.totalorder %s19_s30, 4  }
 0x96e   :  { %18 = sbr.rel (!%p16_p4) target bundleno = 1 (0x1), region = 86 }

</bundles_post_ra>
